<compile_context>
chip_gen: v7x
topology: tpu7x:2x2x1
jax: 0.10.0
libtpu: 0.0.40
codegen_flags: <defaults>
</compile_context>

<pallas_src>
import jax
import jax.numpy as jnp
from jax import lax
from jax.experimental import pallas as pl
from jax.experimental.pallas import tpu as pltpu

KSIZE = 4
PAD = 1
LEAKY_SLOPE = 0.2
IN_EPS = 1e-5  # PyTorch InstanceNorm2d default


# ----------------------------------------------------------------------------
# In-kernel building blocks
# ----------------------------------------------------------------------------
def _accumulate_taps(get_tap, w_ref, m, cout):
    """acc(M, Cout) = sum_{kh,kw} X_tap(M, Cin) @ W_tap(Cin, Cout), f32 accum."""
    acc = jnp.zeros((m, cout), jnp.float32)
    for kh in range(KSIZE):
        for kw in range(KSIZE):
            xm = get_tap(kh, kw)                              # (M, Cin) bf16
            acc = acc + jnp.dot(xm, w_ref[kh * KSIZE + kw],
                                preferred_element_type=jnp.float32)
    return acc


def _s2_tap_reader(x_ref, oh, ow, cin):
    """Taps for a stride-2 conv over a phase-split padded input.

    x_ref block is (4, Hp/2, Wp/2, Cin) with
      x_ref[a*2+b, r, q, c] == x_padded[2r+a, 2q+b, c].
    """
    m = oh * ow

    def get(kh, kw):
        p = (kh % 2) * 2 + (kw % 2)
        r0, c0 = kh // 2, kw // 2
        return x_ref[p, r0:r0 + oh, c0:c0 + ow, :].reshape(m, cin)

    return get


def _s1_tap_reader(pad_ref, oh, ow, cin):
    """Taps for a stride-1 conv over an in-VMEM padded NHWC scratch buffer."""
    m = oh * ow

    def get(kh, kw):
        return pad_ref[kh:kh + oh, kw:kw + ow, :].reshape(m, cin)

    return get


def _instnorm_lrelu(acc, m):
    """InstanceNorm2d(affine=False) + LeakyReLU(0.2) on (M, Cout) f32."""
    inv_m = 1.0 / m
    s1 = jnp.sum(acc, axis=0, keepdims=True)
    s2 = jnp.sum(acc * acc, axis=0, keepdims=True)
    mean = s1 * inv_m
    var = s2 * inv_m - mean * mean                            # biased, like PyTorch
    y = (acc - mean) * lax.rsqrt(var + IN_EPS)
    return jnp.where(y >= 0, y, LEAKY_SLOPE * y)


# ----------------------------------------------------------------------------
# Kernel factories
# ----------------------------------------------------------------------------
def _make_head_kernel(*, oh, ow, cin, cout, has_bias, instnorm):
    """One stride-2 conv (+bias) (+InstanceNorm) + LeakyReLU.  Output (M, Cout)."""
    m = oh * ow

    def kernel(*refs):
        if has_bias:
            x_ref, w_ref, b_ref, o_ref = refs
        else:
            x_ref, w_ref, o_ref = refs
            b_ref = None

        acc = _accumulate_taps(_s2_tap_reader(x_ref, oh, ow, cin), w_ref, m, cout)
        if has_bias:
            acc = acc + b_ref[...]                            # (1, Cout) broadcast
        if instnorm:
            y = _instnorm_lrelu(acc, m)
        else:
            y = jnp.where(acc >= 0, acc, LEAKY_SLOPE * acc)
        o_ref[0] = y.astype(o_ref.dtype)                      # (M, Cout) NHWC block

    return kernel


def _make_tail_kernel(*, oh3, ow3, c2, c3, oh4, ow4, c4, oh5, ow5):
    """Fused layers 3 (s2, IN+LReLU), 4 (s1, IN+LReLU), 5 (s1, bias+sigmoid).

    Layer-3/4 activations live only in VMEM scratch (padded NHWC, zero ring).
    """
    m3, m4, m5 = oh3 * ow3, oh4 * ow4, oh5 * ow5

    def kernel(x_ref, w3_ref, w4_ref, w5_ref, b5_ref, o_ref, y3_pad, y4_pad):
        # ---- layer 3: stride-2 conv + InstanceNorm + LeakyReLU -------------
        acc3 = _accumulate_taps(_s2_tap_reader(x_ref, oh3, ow3, c2), w3_ref, m3, c3)
        y3 = _instnorm_lrelu(acc3, m3).astype(jnp.bfloat16)
        # zero every iteration: batch axis is "parallel" (per-core scratch).
        y3_pad[...] = jnp.zeros_like(y3_pad)
        y3_pad[PAD:PAD + oh3, PAD:PAD + ow3, :] = y3.reshape(oh3, ow3, c3)

        # ---- layer 4: stride-1 conv + InstanceNorm + LeakyReLU -------------
        acc4 = _accumulate_taps(_s1_tap_reader(y3_pad, oh4, ow4, c3), w4_ref, m4, c4)
        y4 = _instnorm_lrelu(acc4, m4).astype(jnp.bfloat16)
        y4_pad[...] = jnp.zeros_like(y4_pad)
        y4_pad[PAD:PAD + oh4, PAD:PAD + ow4, :] = y4.reshape(oh4, ow4, c4)

        # ---- layer 5: stride-1 conv + bias + sigmoid, lane-dense store -----
        acc5 = _accumulate_taps(_s1_tap_reader(y4_pad, oh5, ow5, c4), w5_ref, m5, 1)
        acc5 = acc5 + b5_ref[...]                             # (1, 1) broadcast
        y5 = pl.reciprocal(1.0 + jnp.exp(-acc5), approx=True)
        o_ref[0] = jnp.transpose(y5).astype(o_ref.dtype)      # (1, M5): M on lanes

    return kernel


# ----------------------------------------------------------------------------
# Host-side layout prep (pad ring + 2x2 space-to-depth for stride-2 layers)
# ----------------------------------------------------------------------------
def _pad_and_phase_split(x_nhwc, cin_target):
    """Return phase-split padded bf16 input: xk[n*4 + a*2 + b, r, q, c] =
    x_padded[n, 2r+a, 2q+b, c]."""
    n, h, w, c = x_nhwc.shape
    if cin_target > c:
        x_nhwc = jnp.pad(x_nhwc, ((0, 0), (0, 0), (0, 0), (0, cin_target - c)))
        c = cin_target
    xp = jnp.pad(x_nhwc, ((0, 0), (PAD, PAD), (PAD, PAD), (0, 0))).astype(jnp.bfloat16)
    hp, wp = h + 2 * PAD, w + 2 * PAD
    assert hp % 2 == 0 and wp % 2 == 0, "stride-2 layers need even padded dims"
    xk = xp.reshape(n, hp // 2, 2, wp // 2, 2, c)
    xk = jnp.transpose(xk, (0, 2, 4, 1, 3, 5)).reshape(n * 4, hp // 2, wp // 2, c)
    return xk, hp // 2, wp // 2, c


def _prep_w(w_oihw, cin_target=None):
    """(Cout, Cin, KH, KW) -> (KH*KW, Cin, Cout) bf16, Cin optionally zero-padded."""
    cout, cin = w_oihw.shape[:2]
    if cin_target is not None and cin_target > cin:
        w_oihw = jnp.pad(w_oihw, ((0, 0), (0, cin_target - cin), (0, 0), (0, 0)))
        cin = cin_target
    w = jnp.transpose(w_oihw, (2, 3, 1, 0)).reshape(KSIZE * KSIZE, cin, cout)
    return w.astype(jnp.bfloat16)


# ----------------------------------------------------------------------------
# Layer wrappers (pallas_call sites)
# ----------------------------------------------------------------------------
def _head_layer(x_nhwc, w_oihw, bias, *, instnorm):
    """Stride-2 conv (+bias) (+InstanceNorm) + LeakyReLU as one pallas_call."""
    n, h, w, cin = x_nhwc.shape
    cout = w_oihw.shape[0]
    oh = (h + 2 * PAD - KSIZE) // 2 + 1
    ow = (w + 2 * PAD - KSIZE) // 2 + 1
    m = oh * ow

    cin_p = cin + ((-cin) % 8)                    # pad channels (3 -> 8 for layer 1)
    xk, hp2, wp2, cin_p = _pad_and_phase_split(x_nhwc, cin_p)
    w_taps = _prep_w(w_oihw, cin_p)

    in_specs = [
        pl.BlockSpec((4, hp2, wp2, cin_p), lambda i: (i, 0, 0, 0)),
        pl.BlockSpec((KSIZE * KSIZE, cin_p, cout), lambda i: (0, 0, 0)),
    ]
    args = [xk, w_taps]
    has_bias = bias is not None
    if has_bias:
        in_specs.append(pl.BlockSpec((1, cout), lambda i: (0, 0)))
        args.append(bias.reshape(1, cout).astype(jnp.float32))

    kernel = _make_head_kernel(oh=oh, ow=ow, cin=cin_p, cout=cout,
                               has_bias=has_bias, instnorm=instnorm)
    out = pl.pallas_call(
        kernel,
        out_shape=jax.ShapeDtypeStruct((n, m, cout), jnp.bfloat16),
        grid=(n,),
        in_specs=in_specs,
        out_specs=pl.BlockSpec((1, m, cout), lambda i: (i, 0, 0)),
        compiler_params=pltpu.CompilerParams(dimension_semantics=("parallel",)),
    )(*args)
    return out.reshape(n, oh, ow, cout)


def _tail_layers(x_nhwc, w3, w4, w5, b5):
    """Fused layers 3+4+5 as one pallas_call; returns NCHW f32."""
    n, h, w, _ = x_nhwc.shape
    c3, c4 = w3.shape[0], w4.shape[0]
    oh3 = (h + 2 * PAD - KSIZE) // 2 + 1
    ow3 = (w + 2 * PAD - KSIZE) // 2 + 1
    oh4, ow4 = oh3 + 2 * PAD - KSIZE + 1, ow3 + 2 * PAD - KSIZE + 1
    oh5, ow5 = oh4 + 2 * PAD - KSIZE + 1, ow4 + 2 * PAD - KSIZE + 1
    m5 = oh5 * ow5

    c2 = x_nhwc.shape[-1]
    c2_p = c2 + ((-c2) % 8)
    xk, hp2, wp2, c2_p = _pad_and_phase_split(x_nhwc, c2_p)
    w3_t, w4_t, w5_t = _prep_w(w3, c2_p), _prep_w(w4), _prep_w(w5)

    kernel = _make_tail_kernel(oh3=oh3, ow3=ow3, c2=c2_p, c3=c3,
                               oh4=oh4, ow4=ow4, c4=c4, oh5=oh5, ow5=ow5)
    out = pl.pallas_call(
        kernel,
        out_shape=jax.ShapeDtypeStruct((n, 1, m5), jnp.float32),
        grid=(n,),
        in_specs=[
            pl.BlockSpec((4, hp2, wp2, c2_p), lambda i: (i, 0, 0, 0)),
            pl.BlockSpec((KSIZE * KSIZE, c2_p, c3), lambda i: (0, 0, 0)),
            pl.BlockSpec((KSIZE * KSIZE, c3, c4), lambda i: (0, 0, 0)),
            pl.BlockSpec((KSIZE * KSIZE, c4, 1), lambda i: (0, 0, 0)),
            pl.BlockSpec((1, 1), lambda i: (0, 0)),
        ],
        out_specs=pl.BlockSpec((1, 1, m5), lambda i: (i, 0, 0)),
        scratch_shapes=[
            pltpu.VMEM((oh3 + 2 * PAD, ow3 + 2 * PAD, c3), jnp.bfloat16),
            pltpu.VMEM((oh4 + 2 * PAD, ow4 + 2 * PAD, c4), jnp.bfloat16),
        ],
        compiler_params=pltpu.CompilerParams(dimension_semantics=("parallel",)),
    )(xk, w3_t, w4_t, w5_t, b5.reshape(1, 1).astype(jnp.float32))
    return out.reshape(n, 1, oh5, ow5)


# ----------------------------------------------------------------------------
# Discriminator forward (3 fused Pallas calls total)
# ----------------------------------------------------------------------------
def discriminator_forward(x_nchw, params):
    x = jnp.transpose(x_nchw, (0, 2, 3, 1))                                   # NCHW -> NHWC
    x = _head_layer(x, params["w1"], params["b1"], instnorm=False)            # conv1 + LReLU
    x = _head_layer(x, params["w2"], None, instnorm=True)                     # conv2 + IN + LReLU
    return _tail_layers(x, params["w3"], params["w4"],                        # conv3/4/5 fused
                        params["w5"], params["b5"])                           # -> NCHW f32


# ----------------------------------------------------------------------------
# Pure-JAX f32 reference (correctness check)
# ----------------------------------------------------------------------------
def _ref_conv(x, w, b, stride):
    y = lax.conv_general_dilated(x, w, (stride, stride), [(1, 1), (1, 1)],
                                 dimension_numbers=("NCHW", "OIHW", "NCHW"))
    if b is not None:
        y = y + b[None, :, None, None]
    return y


def _ref_instnorm_lrelu(x):
    mean = jnp.mean(x, axis=(2, 3), keepdims=True)
    var = jnp.mean((x - mean) ** 2, axis=(2, 3), keepdims=True)
    y = (x - mean) / jnp.sqrt(var + IN_EPS)
    return jnp.where(y >= 0, y, LEAKY_SLOPE * y)


def reference_forward(x, p):
    y = _ref_conv(x, p["w1"], p["b1"], 2)
    y = jnp.where(y >= 0, y, LEAKY_SLOPE * y)
    y = _ref_instnorm_lrelu(_ref_conv(y, p["w2"], None, 2))
    y = _ref_instnorm_lrelu(_ref_conv(y, p["w3"], None, 2))
    y = _ref_instnorm_lrelu(_ref_conv(y, p["w4"], None, 1))
    y = _ref_conv(y, p["w5"], p["b5"], 1)
    return 1.0 / (1.0 + jnp.exp(-y))


# ----------------------------------------------------------------------------
# Parameter init: weights ~ N(0, 0.02) (as in _init_weights); biases only for
# the first and last conv (conv_bias=False assumed for the norm-followed convs).
# ----------------------------------------------------------------------------
def init_params(key, channels, ndf):
    shapes = [
        (ndf, channels, KSIZE, KSIZE),
        (ndf * 2, ndf, KSIZE, KSIZE),
        (ndf * 4, ndf * 2, KSIZE, KSIZE),
        (ndf * 8, ndf * 4, KSIZE, KSIZE),
        (1, ndf * 8, KSIZE, KSIZE),
    ]
    keys = jax.random.split(key, len(shapes) + 2)
    params = {}
    for i, (k, s) in enumerate(zip(keys[:len(shapes)], shapes), start=1):
        params[f"w{i}"] = 0.02 * jax.random.normal(k, s, dtype=jnp.float32)
    params["b1"] = 0.02 * jax.random.normal(keys[-2], (ndf,), dtype=jnp.float32)
    params["b5"] = 0.02 * jax.random.normal(keys[-1], (1,), dtype=jnp.float32)
    return params


if __name__ == "__main__":
    channels, ndf = 3, 8
    key = jax.random.PRNGKey(0)
    kx, kp = jax.random.split(key)
    x = jax.random.normal(kx, (2, channels, 32, 32), dtype=jnp.float32)
    params = init_params(kp, channels, ndf)

    forward = jax.jit(discriminator_forward)
    out = jax.block_until_ready(forward(x, params))

    ref = jax.block_until_ready(reference_forward(x, params))
    assert out.shape == ref.shape == (2, 1, 2, 2), out.shape
    # bf16 activations/weights inside the Pallas path vs f32 reference.
    max_err = float(jnp.max(jnp.abs(out.astype(jnp.float32) - ref)))
    assert jnp.allclose(out.astype(jnp.float32), ref, atol=5e-2, rtol=5e-2), max_err

    print("KERNEL_OK")
</pallas_src>

<mosaic_0001>
module attributes {stable_mosaic.version = 11 : i64} {
  func.func @kernel(%arg0: i32, %arg1: memref<4x17x17x8xbf16, #tpu.memory_space<vmem>>, %arg2: memref<16x8x8xbf16, #tpu.memory_space<vmem>>, %arg3: memref<1x8xf32, #tpu.memory_space<vmem>>, %arg4: memref<1x256x8xbf16, #tpu.memory_space<vmem>>) attributes {dimension_semantics = [#tpu.dimension_semantics<parallel>], iteration_bounds = array<i64: 2>, scalar_prefetch = 0 : i64, scratch_operands = 0 : i64, tpu.core_type = #tpu.core_type<tc>, window_params = [{transform_indices = @transform_0, window_bounds = array<i64: 4, 17, 17, 8>}, {pipeline_mode = #tpu.pipeline_mode<synchronous>, transform_indices = @transform_1, window_bounds = array<i64: 16, 8, 8>}, {pipeline_mode = #tpu.pipeline_mode<synchronous>, transform_indices = @transform_2, window_bounds = array<i64: 1, 8>}, {transform_indices = @transform_3, window_bounds = array<i64: 1, 256, 8>}]} {
    %cst = arith.constant 0.000000e+00 : f32
    %0 = vector.broadcast %cst : f32 to vector<256x8xf32>
    %c0 = arith.constant 0 : index
    %c0_0 = arith.constant 0 : index
    %c0_1 = arith.constant 0 : index
    %c0_2 = arith.constant 0 : index
    %1 = vector.load %arg1[%c0, %c0_0, %c0_1, %c0_2] : memref<4x17x17x8xbf16, #tpu.memory_space<vmem>>, vector<1x16x16x8xbf16>
    %2 = vector.shape_cast %1 : vector<1x16x16x8xbf16> to vector<16x16x8xbf16>
    %3 = vector.shape_cast %2 : vector<16x16x8xbf16> to vector<256x8xbf16>
    %c0_3 = arith.constant 0 : index
    %c0_4 = arith.constant 0 : index
    %c0_5 = arith.constant 0 : index
    %4 = vector.load %arg2[%c0_3, %c0_4, %c0_5] : memref<16x8x8xbf16, #tpu.memory_space<vmem>>, vector<1x8x8xbf16>
    %5 = vector.shape_cast %4 : vector<1x8x8xbf16> to vector<8x8xbf16>
    %cst_6 = arith.constant dense<0.000000e+00> : vector<256x8xf32>
    %6 = tpu.matmul %3, %5, %cst_6 {dimension_numbers = #tpu.dot_dimension_numbers<[1], [0], [0], [1], [0, 0, 1, 1], [], []>} : vector<256x8xbf16>, vector<8x8xbf16>, vector<256x8xf32> -> vector<256x8xf32>
    %7 = arith.addf %0, %6 : vector<256x8xf32>
    %c1 = arith.constant 1 : index
    %c0_7 = arith.constant 0 : index
    %c0_8 = arith.constant 0 : index
    %c0_9 = arith.constant 0 : index
    %8 = vector.load %arg1[%c1, %c0_7, %c0_8, %c0_9] : memref<4x17x17x8xbf16, #tpu.memory_space<vmem>>, vector<1x16x16x8xbf16>
    %9 = vector.shape_cast %8 : vector<1x16x16x8xbf16> to vector<16x16x8xbf16>
    %10 = vector.shape_cast %9 : vector<16x16x8xbf16> to vector<256x8xbf16>
    %c1_10 = arith.constant 1 : index
    %c0_11 = arith.constant 0 : index
    %c0_12 = arith.constant 0 : index
    %11 = vector.load %arg2[%c1_10, %c0_11, %c0_12] : memref<16x8x8xbf16, #tpu.memory_space<vmem>>, vector<1x8x8xbf16>
    %12 = vector.shape_cast %11 : vector<1x8x8xbf16> to vector<8x8xbf16>
    %cst_13 = arith.constant dense<0.000000e+00> : vector<256x8xf32>
    %13 = tpu.matmul %10, %12, %cst_13 {dimension_numbers = #tpu.dot_dimension_numbers<[1], [0], [0], [1], [0, 0, 1, 1], [], []>} : vector<256x8xbf16>, vector<8x8xbf16>, vector<256x8xf32> -> vector<256x8xf32>
    %14 = arith.addf %7, %13 : vector<256x8xf32>
    %c0_14 = arith.constant 0 : index
    %c0_15 = arith.constant 0 : index
    %c1_16 = arith.constant 1 : index
    %c0_17 = arith.constant 0 : index
    %15 = vector.load %arg1[%c0_14, %c0_15, %c1_16, %c0_17] : memref<4x17x17x8xbf16, #tpu.memory_space<vmem>>, vector<1x16x16x8xbf16>
    %16 = vector.shape_cast %15 : vector<1x16x16x8xbf16> to vector<16x16x8xbf16>
    %17 = vector.shape_cast %16 : vector<16x16x8xbf16> to vector<256x8xbf16>
    %c2 = arith.constant 2 : index
    %c0_18 = arith.constant 0 : index
    %c0_19 = arith.constant 0 : index
    %18 = vector.load %arg2[%c2, %c0_18, %c0_19] : memref<16x8x8xbf16, #tpu.memory_space<vmem>>, vector<1x8x8xbf16>
    %19 = vector.shape_cast %18 : vector<1x8x8xbf16> to vector<8x8xbf16>
    %cst_20 = arith.constant dense<0.000000e+00> : vector<256x8xf32>
    %20 = tpu.matmul %17, %19, %cst_20 {dimension_numbers = #tpu.dot_dimension_numbers<[1], [0], [0], [1], [0, 0, 1, 1], [], []>} : vector<256x8xbf16>, vector<8x8xbf16>, vector<256x8xf32> -> vector<256x8xf32>
    %21 = arith.addf %14, %20 : vector<256x8xf32>
    %c1_21 = arith.constant 1 : index
    %c0_22 = arith.constant 0 : index
    %c1_23 = arith.constant 1 : index
    %c0_24 = arith.constant 0 : index
    %22 = vector.load %arg1[%c1_21, %c0_22, %c1_23, %c0_24] : memref<4x17x17x8xbf16, #tpu.memory_space<vmem>>, vector<1x16x16x8xbf16>
    %23 = vector.shape_cast %22 : vector<1x16x16x8xbf16> to vector<16x16x8xbf16>
    %24 = vector.shape_cast %23 : vector<16x16x8xbf16> to vector<256x8xbf16>
    %c3 = arith.constant 3 : index
    %c0_25 = arith.constant 0 : index
    %c0_26 = arith.constant 0 : index
    %25 = vector.load %arg2[%c3, %c0_25, %c0_26] : memref<16x8x8xbf16, #tpu.memory_space<vmem>>, vector<1x8x8xbf16>
    %26 = vector.shape_cast %25 : vector<1x8x8xbf16> to vector<8x8xbf16>
    %cst_27 = arith.constant dense<0.000000e+00> : vector<256x8xf32>
    %27 = tpu.matmul %24, %26, %cst_27 {dimension_numbers = #tpu.dot_dimension_numbers<[1], [0], [0], [1], [0, 0, 1, 1], [], []>} : vector<256x8xbf16>, vector<8x8xbf16>, vector<256x8xf32> -> vector<256x8xf32>
    %28 = arith.addf %21, %27 : vector<256x8xf32>
    %c2_28 = arith.constant 2 : index
    %c0_29 = arith.constant 0 : index
    %c0_30 = arith.constant 0 : index
    %c0_31 = arith.constant 0 : index
    %29 = vector.load %arg1[%c2_28, %c0_29, %c0_30, %c0_31] : memref<4x17x17x8xbf16, #tpu.memory_space<vmem>>, vector<1x16x16x8xbf16>
    %30 = vector.shape_cast %29 : vector<1x16x16x8xbf16> to vector<16x16x8xbf16>
    %31 = vector.shape_cast %30 : vector<16x16x8xbf16> to vector<256x8xbf16>
    %c4 = arith.constant 4 : index
    %c0_32 = arith.constant 0 : index
    %c0_33 = arith.constant 0 : index
    %32 = vector.load %arg2[%c4, %c0_32, %c0_33] : memref<16x8x8xbf16, #tpu.memory_space<vmem>>, vector<1x8x8xbf16>
    %33 = vector.shape_cast %32 : vector<1x8x8xbf16> to vector<8x8xbf16>
    %cst_34 = arith.constant dense<0.000000e+00> : vector<256x8xf32>
    %34 = tpu.matmul %31, %33, %cst_34 {dimension_numbers = #tpu.dot_dimension_numbers<[1], [0], [0], [1], [0, 0, 1, 1], [], []>} : vector<256x8xbf16>, vector<8x8xbf16>, vector<256x8xf32> -> vector<256x8xf32>
    %35 = arith.addf %28, %34 : vector<256x8xf32>
    %c3_35 = arith.constant 3 : index
    %c0_36 = arith.constant 0 : index
    %c0_37 = arith.constant 0 : index
    %c0_38 = arith.constant 0 : index
    %36 = vector.load %arg1[%c3_35, %c0_36, %c0_37, %c0_38] : memref<4x17x17x8xbf16, #tpu.memory_space<vmem>>, vector<1x16x16x8xbf16>
    %37 = vector.shape_cast %36 : vector<1x16x16x8xbf16> to vector<16x16x8xbf16>
    %38 = vector.shape_cast %37 : vector<16x16x8xbf16> to vector<256x8xbf16>
    %c5 = arith.constant 5 : index
    %c0_39 = arith.constant 0 : index
    %c0_40 = arith.constant 0 : index
    %39 = vector.load %arg2[%c5, %c0_39, %c0_40] : memref<16x8x8xbf16, #tpu.memory_space<vmem>>, vector<1x8x8xbf16>
    %40 = vector.shape_cast %39 : vector<1x8x8xbf16> to vector<8x8xbf16>
    %cst_41 = arith.constant dense<0.000000e+00> : vector<256x8xf32>
    %41 = tpu.matmul %38, %40, %cst_41 {dimension_numbers = #tpu.dot_dimension_numbers<[1], [0], [0], [1], [0, 0, 1, 1], [], []>} : vector<256x8xbf16>, vector<8x8xbf16>, vector<256x8xf32> -> vector<256x8xf32>
    %42 = arith.addf %35, %41 : vector<256x8xf32>
    %c2_42 = arith.constant 2 : index
    %c0_43 = arith.constant 0 : index
    %c1_44 = arith.constant 1 : index
    %c0_45 = arith.constant 0 : index
    %43 = vector.load %arg1[%c2_42, %c0_43, %c1_44, %c0_45] : memref<4x17x17x8xbf16, #tpu.memory_space<vmem>>, vector<1x16x16x8xbf16>
    %44 = vector.shape_cast %43 : vector<1x16x16x8xbf16> to vector<16x16x8xbf16>
    %45 = vector.shape_cast %44 : vector<16x16x8xbf16> to vector<256x8xbf16>
    %c6 = arith.constant 6 : index
    %c0_46 = arith.constant 0 : index
    %c0_47 = arith.constant 0 : index
    %46 = vector.load %arg2[%c6, %c0_46, %c0_47] : memref<16x8x8xbf16, #tpu.memory_space<vmem>>, vector<1x8x8xbf16>
    %47 = vector.shape_cast %46 : vector<1x8x8xbf16> to vector<8x8xbf16>
    %cst_48 = arith.constant dense<0.000000e+00> : vector<256x8xf32>
    %48 = tpu.matmul %45, %47, %cst_48 {dimension_numbers = #tpu.dot_dimension_numbers<[1], [0], [0], [1], [0, 0, 1, 1], [], []>} : vector<256x8xbf16>, vector<8x8xbf16>, vector<256x8xf32> -> vector<256x8xf32>
    %49 = arith.addf %42, %48 : vector<256x8xf32>
    %c3_49 = arith.constant 3 : index
    %c0_50 = arith.constant 0 : index
    %c1_51 = arith.constant 1 : index
    %c0_52 = arith.constant 0 : index
    %50 = vector.load %arg1[%c3_49, %c0_50, %c1_51, %c0_52] : memref<4x17x17x8xbf16, #tpu.memory_space<vmem>>, vector<1x16x16x8xbf16>
    %51 = vector.shape_cast %50 : vector<1x16x16x8xbf16> to vector<16x16x8xbf16>
    %52 = vector.shape_cast %51 : vector<16x16x8xbf16> to vector<256x8xbf16>
    %c7 = arith.constant 7 : index
    %c0_53 = arith.constant 0 : index
    %c0_54 = arith.constant 0 : index
    %53 = vector.load %arg2[%c7, %c0_53, %c0_54] : memref<16x8x8xbf16, #tpu.memory_space<vmem>>, vector<1x8x8xbf16>
    %54 = vector.shape_cast %53 : vector<1x8x8xbf16> to vector<8x8xbf16>
    %cst_55 = arith.constant dense<0.000000e+00> : vector<256x8xf32>
    %55 = tpu.matmul %52, %54, %cst_55 {dimension_numbers = #tpu.dot_dimension_numbers<[1], [0], [0], [1], [0, 0, 1, 1], [], []>} : vector<256x8xbf16>, vector<8x8xbf16>, vector<256x8xf32> -> vector<256x8xf32>
    %56 = arith.addf %49, %55 : vector<256x8xf32>
    %c0_56 = arith.constant 0 : index
    %c1_57 = arith.constant 1 : index
    %c0_58 = arith.constant 0 : index
    %c0_59 = arith.constant 0 : index
    %57 = vector.load %arg1[%c0_56, %c1_57, %c0_58, %c0_59] : memref<4x17x17x8xbf16, #tpu.memory_space<vmem>>, vector<1x16x16x8xbf16>
    %58 = vector.shape_cast %57 : vector<1x16x16x8xbf16> to vector<16x16x8xbf16>
    %59 = vector.shape_cast %58 : vector<16x16x8xbf16> to vector<256x8xbf16>
    %c8 = arith.constant 8 : index
    %c0_60 = arith.constant 0 : index
    %c0_61 = arith.constant 0 : index
    %60 = vector.load %arg2[%c8, %c0_60, %c0_61] : memref<16x8x8xbf16, #tpu.memory_space<vmem>>, vector<1x8x8xbf16>
    %61 = vector.shape_cast %60 : vector<1x8x8xbf16> to vector<8x8xbf16>
    %cst_62 = arith.constant dense<0.000000e+00> : vector<256x8xf32>
    %62 = tpu.matmul %59, %61, %cst_62 {dimension_numbers = #tpu.dot_dimension_numbers<[1], [0], [0], [1], [0, 0, 1, 1], [], []>} : vector<256x8xbf16>, vector<8x8xbf16>, vector<256x8xf32> -> vector<256x8xf32>
    %63 = arith.addf %56, %62 : vector<256x8xf32>
    %c1_63 = arith.constant 1 : index
    %c1_64 = arith.constant 1 : index
    %c0_65 = arith.constant 0 : index
    %c0_66 = arith.constant 0 : index
    %64 = vector.load %arg1[%c1_63, %c1_64, %c0_65, %c0_66] : memref<4x17x17x8xbf16, #tpu.memory_space<vmem>>, vector<1x16x16x8xbf16>
    %65 = vector.shape_cast %64 : vector<1x16x16x8xbf16> to vector<16x16x8xbf16>
    %66 = vector.shape_cast %65 : vector<16x16x8xbf16> to vector<256x8xbf16>
    %c9 = arith.constant 9 : index
    %c0_67 = arith.constant 0 : index
    %c0_68 = arith.constant 0 : index
    %67 = vector.load %arg2[%c9, %c0_67, %c0_68] : memref<16x8x8xbf16, #tpu.memory_space<vmem>>, vector<1x8x8xbf16>
    %68 = vector.shape_cast %67 : vector<1x8x8xbf16> to vector<8x8xbf16>
    %cst_69 = arith.constant dense<0.000000e+00> : vector<256x8xf32>
    %69 = tpu.matmul %66, %68, %cst_69 {dimension_numbers = #tpu.dot_dimension_numbers<[1], [0], [0], [1], [0, 0, 1, 1], [], []>} : vector<256x8xbf16>, vector<8x8xbf16>, vector<256x8xf32> -> vector<256x8xf32>
    %70 = arith.addf %63, %69 : vector<256x8xf32>
    %c0_70 = arith.constant 0 : index
    %c1_71 = arith.constant 1 : index
    %c1_72 = arith.constant 1 : index
    %c0_73 = arith.constant 0 : index
    %71 = vector.load %arg1[%c0_70, %c1_71, %c1_72, %c0_73] : memref<4x17x17x8xbf16, #tpu.memory_space<vmem>>, vector<1x16x16x8xbf16>
    %72 = vector.shape_cast %71 : vector<1x16x16x8xbf16> to vector<16x16x8xbf16>
    %73 = vector.shape_cast %72 : vector<16x16x8xbf16> to vector<256x8xbf16>
    %c10 = arith.constant 10 : index
    %c0_74 = arith.constant 0 : index
    %c0_75 = arith.constant 0 : index
    %74 = vector.load %arg2[%c10, %c0_74, %c0_75] : memref<16x8x8xbf16, #tpu.memory_space<vmem>>, vector<1x8x8xbf16>
    %75 = vector.shape_cast %74 : vector<1x8x8xbf16> to vector<8x8xbf16>
    %cst_76 = arith.constant dense<0.000000e+00> : vector<256x8xf32>
    %76 = tpu.matmul %73, %75, %cst_76 {dimension_numbers = #tpu.dot_dimension_numbers<[1], [0], [0], [1], [0, 0, 1, 1], [], []>} : vector<256x8xbf16>, vector<8x8xbf16>, vector<256x8xf32> -> vector<256x8xf32>
    %77 = arith.addf %70, %76 : vector<256x8xf32>
    %c1_77 = arith.constant 1 : index
    %c1_78 = arith.constant 1 : index
    %c1_79 = arith.constant 1 : index
    %c0_80 = arith.constant 0 : index
    %78 = vector.load %arg1[%c1_77, %c1_78, %c1_79, %c0_80] : memref<4x17x17x8xbf16, #tpu.memory_space<vmem>>, vector<1x16x16x8xbf16>
    %79 = vector.shape_cast %78 : vector<1x16x16x8xbf16> to vector<16x16x8xbf16>
    %80 = vector.shape_cast %79 : vector<16x16x8xbf16> to vector<256x8xbf16>
    %c11 = arith.constant 11 : index
    %c0_81 = arith.constant 0 : index
    %c0_82 = arith.constant 0 : index
    %81 = vector.load %arg2[%c11, %c0_81, %c0_82] : memref<16x8x8xbf16, #tpu.memory_space<vmem>>, vector<1x8x8xbf16>
    %82 = vector.shape_cast %81 : vector<1x8x8xbf16> to vector<8x8xbf16>
    %cst_83 = arith.constant dense<0.000000e+00> : vector<256x8xf32>
    %83 = tpu.matmul %80, %82, %cst_83 {dimension_numbers = #tpu.dot_dimension_numbers<[1], [0], [0], [1], [0, 0, 1, 1], [], []>} : vector<256x8xbf16>, vector<8x8xbf16>, vector<256x8xf32> -> vector<256x8xf32>
    %84 = arith.addf %77, %83 : vector<256x8xf32>
    %c2_84 = arith.constant 2 : index
    %c1_85 = arith.constant 1 : index
    %c0_86 = arith.constant 0 : index
    %c0_87 = arith.constant 0 : index
    %85 = vector.load %arg1[%c2_84, %c1_85, %c0_86, %c0_87] : memref<4x17x17x8xbf16, #tpu.memory_space<vmem>>, vector<1x16x16x8xbf16>
    %86 = vector.shape_cast %85 : vector<1x16x16x8xbf16> to vector<16x16x8xbf16>
    %87 = vector.shape_cast %86 : vector<16x16x8xbf16> to vector<256x8xbf16>
    %c12 = arith.constant 12 : index
    %c0_88 = arith.constant 0 : index
    %c0_89 = arith.constant 0 : index
    %88 = vector.load %arg2[%c12, %c0_88, %c0_89] : memref<16x8x8xbf16, #tpu.memory_space<vmem>>, vector<1x8x8xbf16>
    %89 = vector.shape_cast %88 : vector<1x8x8xbf16> to vector<8x8xbf16>
    %cst_90 = arith.constant dense<0.000000e+00> : vector<256x8xf32>
    %90 = tpu.matmul %87, %89, %cst_90 {dimension_numbers = #tpu.dot_dimension_numbers<[1], [0], [0], [1], [0, 0, 1, 1], [], []>} : vector<256x8xbf16>, vector<8x8xbf16>, vector<256x8xf32> -> vector<256x8xf32>
    %91 = arith.addf %84, %90 : vector<256x8xf32>
    %c3_91 = arith.constant 3 : index
    %c1_92 = arith.constant 1 : index
    %c0_93 = arith.constant 0 : index
    %c0_94 = arith.constant 0 : index
    %92 = vector.load %arg1[%c3_91, %c1_92, %c0_93, %c0_94] : memref<4x17x17x8xbf16, #tpu.memory_space<vmem>>, vector<1x16x16x8xbf16>
    %93 = vector.shape_cast %92 : vector<1x16x16x8xbf16> to vector<16x16x8xbf16>
    %94 = vector.shape_cast %93 : vector<16x16x8xbf16> to vector<256x8xbf16>
    %c13 = arith.constant 13 : index
    %c0_95 = arith.constant 0 : index
    %c0_96 = arith.constant 0 : index
    %95 = vector.load %arg2[%c13, %c0_95, %c0_96] : memref<16x8x8xbf16, #tpu.memory_space<vmem>>, vector<1x8x8xbf16>
    %96 = vector.shape_cast %95 : vector<1x8x8xbf16> to vector<8x8xbf16>
    %cst_97 = arith.constant dense<0.000000e+00> : vector<256x8xf32>
    %97 = tpu.matmul %94, %96, %cst_97 {dimension_numbers = #tpu.dot_dimension_numbers<[1], [0], [0], [1], [0, 0, 1, 1], [], []>} : vector<256x8xbf16>, vector<8x8xbf16>, vector<256x8xf32> -> vector<256x8xf32>
    %98 = arith.addf %91, %97 : vector<256x8xf32>
    %c2_98 = arith.constant 2 : index
    %c1_99 = arith.constant 1 : index
    %c1_100 = arith.constant 1 : index
    %c0_101 = arith.constant 0 : index
    %99 = vector.load %arg1[%c2_98, %c1_99, %c1_100, %c0_101] : memref<4x17x17x8xbf16, #tpu.memory_space<vmem>>, vector<1x16x16x8xbf16>
    %100 = vector.shape_cast %99 : vector<1x16x16x8xbf16> to vector<16x16x8xbf16>
    %101 = vector.shape_cast %100 : vector<16x16x8xbf16> to vector<256x8xbf16>
    %c14 = arith.constant 14 : index
    %c0_102 = arith.constant 0 : index
    %c0_103 = arith.constant 0 : index
    %102 = vector.load %arg2[%c14, %c0_102, %c0_103] : memref<16x8x8xbf16, #tpu.memory_space<vmem>>, vector<1x8x8xbf16>
    %103 = vector.shape_cast %102 : vector<1x8x8xbf16> to vector<8x8xbf16>
    %cst_104 = arith.constant dense<0.000000e+00> : vector<256x8xf32>
    %104 = tpu.matmul %101, %103, %cst_104 {dimension_numbers = #tpu.dot_dimension_numbers<[1], [0], [0], [1], [0, 0, 1, 1], [], []>} : vector<256x8xbf16>, vector<8x8xbf16>, vector<256x8xf32> -> vector<256x8xf32>
    %105 = arith.addf %98, %104 : vector<256x8xf32>
    %c3_105 = arith.constant 3 : index
    %c1_106 = arith.constant 1 : index
    %c1_107 = arith.constant 1 : index
    %c0_108 = arith.constant 0 : index
    %106 = vector.load %arg1[%c3_105, %c1_106, %c1_107, %c0_108] : memref<4x17x17x8xbf16, #tpu.memory_space<vmem>>, vector<1x16x16x8xbf16>
    %107 = vector.shape_cast %106 : vector<1x16x16x8xbf16> to vector<16x16x8xbf16>
    %108 = vector.shape_cast %107 : vector<16x16x8xbf16> to vector<256x8xbf16>
    %c15 = arith.constant 15 : index
    %c0_109 = arith.constant 0 : index
    %c0_110 = arith.constant 0 : index
    %109 = vector.load %arg2[%c15, %c0_109, %c0_110] : memref<16x8x8xbf16, #tpu.memory_space<vmem>>, vector<1x8x8xbf16>
    %110 = vector.shape_cast %109 : vector<1x8x8xbf16> to vector<8x8xbf16>
    %cst_111 = arith.constant dense<0.000000e+00> : vector<256x8xf32>
    %111 = tpu.matmul %108, %110, %cst_111 {dimension_numbers = #tpu.dot_dimension_numbers<[1], [0], [0], [1], [0, 0, 1, 1], [], []>} : vector<256x8xbf16>, vector<8x8xbf16>, vector<256x8xf32> -> vector<256x8xf32>
    %112 = arith.addf %105, %111 : vector<256x8xf32>
    %c0_112 = arith.constant 0 : index
    %c0_113 = arith.constant 0 : index
    %113 = vector.load %arg3[%c0_112, %c0_113] : memref<1x8xf32, #tpu.memory_space<vmem>>, vector<1x8xf32>
    %114 = vector.broadcast %113 : vector<1x8xf32> to vector<256x8xf32>
    %115 = arith.addf %112, %114 : vector<256x8xf32>
    %cst_114 = arith.constant 0.000000e+00 : f32
    %116 = vector.broadcast %cst_114 : f32 to vector<256x8xf32>
    %117 = arith.cmpf oge, %115, %116 : vector<256x8xf32>
    %cst_115 = arith.constant 2.000000e-01 : f32
    %118 = vector.broadcast %cst_115 : f32 to vector<256x8xf32>
    %119 = arith.mulf %118, %115 : vector<256x8xf32>
    %120 = arith.select %117, %115, %119 : vector<256x8xi1>, vector<256x8xf32>
    %121 = arith.truncf %120 : vector<256x8xf32> to vector<256x8xbf16>
    %c0_116 = arith.constant 0 : index
    %c0_117 = arith.constant 0 : index
    %c0_118 = arith.constant 0 : index
    %122 = vector.load %arg4[%c0_116, %c0_117, %c0_118] : memref<1x256x8xbf16, #tpu.memory_space<vmem>>, vector<1x256x8xbf16>
    %123 = vector.shape_cast %122 : vector<1x256x8xbf16> to vector<256x8xbf16>
    %124 = vector.shape_cast %121 : vector<256x8xbf16> to vector<1x256x8xbf16>
    tpu.vector_store %arg4[%c0_116, %c0_117, %c0_118], %124 {strides = array<i32>} : memref<1x256x8xbf16, #tpu.memory_space<vmem>>, vector<1x256x8xbf16>,
    return
  }
  func.func @transform_0(%arg0: i32) -> (i32, i32, i32, i32) {
    %c0_i32 = arith.constant 0 : i32
    %c0_i32_0 = arith.constant 0 : i32
    %c0_i32_1 = arith.constant 0 : i32
    %c0_i32_2 = arith.constant 0 : i32
    return %arg0, %c0_i32, %c0_i32_0, %c0_i32_1 : i32, i32, i32, i32
  }
  func.func @transform_1(%arg0: i32) -> (i32, i32, i32) {
    %c0_i32 = arith.constant 0 : i32
    %c0_i32_0 = arith.constant 0 : i32
    %c0_i32_1 = arith.constant 0 : i32
    %c0_i32_2 = arith.constant 0 : i32
    return %c0_i32, %c0_i32_0, %c0_i32_1 : i32, i32, i32
  }
  func.func @transform_2(%arg0: i32) -> (i32, i32) {
    %c0_i32 = arith.constant 0 : i32
    %c0_i32_0 = arith.constant 0 : i32
    %c0_i32_1 = arith.constant 0 : i32
    return %c0_i32, %c0_i32_0 : i32, i32
  }
  func.func @transform_3(%arg0: i32) -> (i32, i32, i32) {
    %c0_i32 = arith.constant 0 : i32
    %c0_i32_0 = arith.constant 0 : i32
    %c0_i32_1 = arith.constant 0 : i32
    return %arg0, %c0_i32, %c0_i32_0 : i32, i32, i32
  }
}

module attributes {stable_mosaic.version = 11 : i64} {
  func.func @kernel(%arg0: i32, %arg1: memref<4x9x9x8xbf16, #tpu.memory_space<vmem>>, %arg2: memref<16x8x16xbf16, #tpu.memory_space<vmem>>, %arg3: memref<1x64x16xbf16, #tpu.memory_space<vmem>>) attributes {dimension_semantics = [#tpu.dimension_semantics<parallel>], iteration_bounds = array<i64: 2>, scalar_prefetch = 0 : i64, scratch_operands = 0 : i64, tpu.core_type = #tpu.core_type<tc>, window_params = [{transform_indices = @transform_0, window_bounds = array<i64: 4, 9, 9, 8>}, {pipeline_mode = #tpu.pipeline_mode<synchronous>, transform_indices = @transform_1, window_bounds = array<i64: 16, 8, 16>}, {transform_indices = @transform_2, window_bounds = array<i64: 1, 64, 16>}]} {
    %cst = arith.constant 0.000000e+00 : f32
    %0 = vector.broadcast %cst : f32 to vector<64x16xf32>
    %c0 = arith.constant 0 : index
    %c0_0 = arith.constant 0 : index
    %c0_1 = arith.constant 0 : index
    %c0_2 = arith.constant 0 : index
    %1 = vector.load %arg1[%c0, %c0_0, %c0_1, %c0_2] : memref<4x9x9x8xbf16, #tpu.memory_space<vmem>>, vector<1x8x8x8xbf16>
    %2 = vector.shape_cast %1 : vector<1x8x8x8xbf16> to vector<8x8x8xbf16>
    %3 = vector.shape_cast %2 : vector<8x8x8xbf16> to vector<64x8xbf16>
    %c0_3 = arith.constant 0 : index
    %c0_4 = arith.constant 0 : index
    %c0_5 = arith.constant 0 : index
    %4 = vector.load %arg2[%c0_3, %c0_4, %c0_5] : memref<16x8x16xbf16, #tpu.memory_space<vmem>>, vector<1x8x16xbf16>
    %5 = vector.shape_cast %4 : vector<1x8x16xbf16> to vector<8x16xbf16>
    %cst_6 = arith.constant dense<0.000000e+00> : vector<64x16xf32>
    %6 = tpu.matmul %3, %5, %cst_6 {dimension_numbers = #tpu.dot_dimension_numbers<[1], [0], [0], [1], [0, 0, 1, 1], [], []>} : vector<64x8xbf16>, vector<8x16xbf16>, vector<64x16xf32> -> vector<64x16xf32>
    %7 = arith.addf %0, %6 : vector<64x16xf32>
    %c1 = arith.constant 1 : index
    %c0_7 = arith.constant 0 : index
    %c0_8 = arith.constant 0 : index
    %c0_9 = arith.constant 0 : index
    %8 = vector.load %arg1[%c1, %c0_7, %c0_8, %c0_9] : memref<4x9x9x8xbf16, #tpu.memory_space<vmem>>, vector<1x8x8x8xbf16>
    %9 = vector.shape_cast %8 : vector<1x8x8x8xbf16> to vector<8x8x8xbf16>
    %10 = vector.shape_cast %9 : vector<8x8x8xbf16> to vector<64x8xbf16>
    %c1_10 = arith.constant 1 : index
    %c0_11 = arith.constant 0 : index
    %c0_12 = arith.constant 0 : index
    %11 = vector.load %arg2[%c1_10, %c0_11, %c0_12] : memref<16x8x16xbf16, #tpu.memory_space<vmem>>, vector<1x8x16xbf16>
    %12 = vector.shape_cast %11 : vector<1x8x16xbf16> to vector<8x16xbf16>
    %cst_13 = arith.constant dense<0.000000e+00> : vector<64x16xf32>
    %13 = tpu.matmul %10, %12, %cst_13 {dimension_numbers = #tpu.dot_dimension_numbers<[1], [0], [0], [1], [0, 0, 1, 1], [], []>} : vector<64x8xbf16>, vector<8x16xbf16>, vector<64x16xf32> -> vector<64x16xf32>
    %14 = arith.addf %7, %13 : vector<64x16xf32>
    %c0_14 = arith.constant 0 : index
    %c0_15 = arith.constant 0 : index
    %c1_16 = arith.constant 1 : index
    %c0_17 = arith.constant 0 : index
    %15 = vector.load %arg1[%c0_14, %c0_15, %c1_16, %c0_17] : memref<4x9x9x8xbf16, #tpu.memory_space<vmem>>, vector<1x8x8x8xbf16>
    %16 = vector.shape_cast %15 : vector<1x8x8x8xbf16> to vector<8x8x8xbf16>
    %17 = vector.shape_cast %16 : vector<8x8x8xbf16> to vector<64x8xbf16>
    %c2 = arith.constant 2 : index
    %c0_18 = arith.constant 0 : index
    %c0_19 = arith.constant 0 : index
    %18 = vector.load %arg2[%c2, %c0_18, %c0_19] : memref<16x8x16xbf16, #tpu.memory_space<vmem>>, vector<1x8x16xbf16>
    %19 = vector.shape_cast %18 : vector<1x8x16xbf16> to vector<8x16xbf16>
    %cst_20 = arith.constant dense<0.000000e+00> : vector<64x16xf32>
    %20 = tpu.matmul %17, %19, %cst_20 {dimension_numbers = #tpu.dot_dimension_numbers<[1], [0], [0], [1], [0, 0, 1, 1], [], []>} : vector<64x8xbf16>, vector<8x16xbf16>, vector<64x16xf32> -> vector<64x16xf32>
    %21 = arith.addf %14, %20 : vector<64x16xf32>
    %c1_21 = arith.constant 1 : index
    %c0_22 = arith.constant 0 : index
    %c1_23 = arith.constant 1 : index
    %c0_24 = arith.constant 0 : index
    %22 = vector.load %arg1[%c1_21, %c0_22, %c1_23, %c0_24] : memref<4x9x9x8xbf16, #tpu.memory_space<vmem>>, vector<1x8x8x8xbf16>
    %23 = vector.shape_cast %22 : vector<1x8x8x8xbf16> to vector<8x8x8xbf16>
    %24 = vector.shape_cast %23 : vector<8x8x8xbf16> to vector<64x8xbf16>
    %c3 = arith.constant 3 : index
    %c0_25 = arith.constant 0 : index
    %c0_26 = arith.constant 0 : index
    %25 = vector.load %arg2[%c3, %c0_25, %c0_26] : memref<16x8x16xbf16, #tpu.memory_space<vmem>>, vector<1x8x16xbf16>
    %26 = vector.shape_cast %25 : vector<1x8x16xbf16> to vector<8x16xbf16>
    %cst_27 = arith.constant dense<0.000000e+00> : vector<64x16xf32>
    %27 = tpu.matmul %24, %26, %cst_27 {dimension_numbers = #tpu.dot_dimension_numbers<[1], [0], [0], [1], [0, 0, 1, 1], [], []>} : vector<64x8xbf16>, vector<8x16xbf16>, vector<64x16xf32> -> vector<64x16xf32>
    %28 = arith.addf %21, %27 : vector<64x16xf32>
    %c2_28 = arith.constant 2 : index
    %c0_29 = arith.constant 0 : index
    %c0_30 = arith.constant 0 : index
    %c0_31 = arith.constant 0 : index
    %29 = vector.load %arg1[%c2_28, %c0_29, %c0_30, %c0_31] : memref<4x9x9x8xbf16, #tpu.memory_space<vmem>>, vector<1x8x8x8xbf16>
    %30 = vector.shape_cast %29 : vector<1x8x8x8xbf16> to vector<8x8x8xbf16>
    %31 = vector.shape_cast %30 : vector<8x8x8xbf16> to vector<64x8xbf16>
    %c4 = arith.constant 4 : index
    %c0_32 = arith.constant 0 : index
    %c0_33 = arith.constant 0 : index
    %32 = vector.load %arg2[%c4, %c0_32, %c0_33] : memref<16x8x16xbf16, #tpu.memory_space<vmem>>, vector<1x8x16xbf16>
    %33 = vector.shape_cast %32 : vector<1x8x16xbf16> to vector<8x16xbf16>
    %cst_34 = arith.constant dense<0.000000e+00> : vector<64x16xf32>
    %34 = tpu.matmul %31, %33, %cst_34 {dimension_numbers = #tpu.dot_dimension_numbers<[1], [0], [0], [1], [0, 0, 1, 1], [], []>} : vector<64x8xbf16>, vector<8x16xbf16>, vector<64x16xf32> -> vector<64x16xf32>
    %35 = arith.addf %28, %34 : vector<64x16xf32>
    %c3_35 = arith.constant 3 : index
    %c0_36 = arith.constant 0 : index
    %c0_37 = arith.constant 0 : index
    %c0_38 = arith.constant 0 : index
    %36 = vector.load %arg1[%c3_35, %c0_36, %c0_37, %c0_38] : memref<4x9x9x8xbf16, #tpu.memory_space<vmem>>, vector<1x8x8x8xbf16>
    %37 = vector.shape_cast %36 : vector<1x8x8x8xbf16> to vector<8x8x8xbf16>
    %38 = vector.shape_cast %37 : vector<8x8x8xbf16> to vector<64x8xbf16>
    %c5 = arith.constant 5 : index
    %c0_39 = arith.constant 0 : index
    %c0_40 = arith.constant 0 : index
    %39 = vector.load %arg2[%c5, %c0_39, %c0_40] : memref<16x8x16xbf16, #tpu.memory_space<vmem>>, vector<1x8x16xbf16>
    %40 = vector.shape_cast %39 : vector<1x8x16xbf16> to vector<8x16xbf16>
    %cst_41 = arith.constant dense<0.000000e+00> : vector<64x16xf32>
    %41 = tpu.matmul %38, %40, %cst_41 {dimension_numbers = #tpu.dot_dimension_numbers<[1], [0], [0], [1], [0, 0, 1, 1], [], []>} : vector<64x8xbf16>, vector<8x16xbf16>, vector<64x16xf32> -> vector<64x16xf32>
    %42 = arith.addf %35, %41 : vector<64x16xf32>
    %c2_42 = arith.constant 2 : index
    %c0_43 = arith.constant 0 : index
    %c1_44 = arith.constant 1 : index
    %c0_45 = arith.constant 0 : index
    %43 = vector.load %arg1[%c2_42, %c0_43, %c1_44, %c0_45] : memref<4x9x9x8xbf16, #tpu.memory_space<vmem>>, vector<1x8x8x8xbf16>
    %44 = vector.shape_cast %43 : vector<1x8x8x8xbf16> to vector<8x8x8xbf16>
    %45 = vector.shape_cast %44 : vector<8x8x8xbf16> to vector<64x8xbf16>
    %c6 = arith.constant 6 : index
    %c0_46 = arith.constant 0 : index
    %c0_47 = arith.constant 0 : index
    %46 = vector.load %arg2[%c6, %c0_46, %c0_47] : memref<16x8x16xbf16, #tpu.memory_space<vmem>>, vector<1x8x16xbf16>
    %47 = vector.shape_cast %46 : vector<1x8x16xbf16> to vector<8x16xbf16>
    %cst_48 = arith.constant dense<0.000000e+00> : vector<64x16xf32>
    %48 = tpu.matmul %45, %47, %cst_48 {dimension_numbers = #tpu.dot_dimension_numbers<[1], [0], [0], [1], [0, 0, 1, 1], [], []>} : vector<64x8xbf16>, vector<8x16xbf16>, vector<64x16xf32> -> vector<64x16xf32>
    %49 = arith.addf %42, %48 : vector<64x16xf32>
    %c3_49 = arith.constant 3 : index
    %c0_50 = arith.constant 0 : index
    %c1_51 = arith.constant 1 : index
    %c0_52 = arith.constant 0 : index
    %50 = vector.load %arg1[%c3_49, %c0_50, %c1_51, %c0_52] : memref<4x9x9x8xbf16, #tpu.memory_space<vmem>>, vector<1x8x8x8xbf16>
    %51 = vector.shape_cast %50 : vector<1x8x8x8xbf16> to vector<8x8x8xbf16>
    %52 = vector.shape_cast %51 : vector<8x8x8xbf16> to vector<64x8xbf16>
    %c7 = arith.constant 7 : index
    %c0_53 = arith.constant 0 : index
    %c0_54 = arith.constant 0 : index
    %53 = vector.load %arg2[%c7, %c0_53, %c0_54] : memref<16x8x16xbf16, #tpu.memory_space<vmem>>, vector<1x8x16xbf16>
    %54 = vector.shape_cast %53 : vector<1x8x16xbf16> to vector<8x16xbf16>
    %cst_55 = arith.constant dense<0.000000e+00> : vector<64x16xf32>
    %55 = tpu.matmul %52, %54, %cst_55 {dimension_numbers = #tpu.dot_dimension_numbers<[1], [0], [0], [1], [0, 0, 1, 1], [], []>} : vector<64x8xbf16>, vector<8x16xbf16>, vector<64x16xf32> -> vector<64x16xf32>
    %56 = arith.addf %49, %55 : vector<64x16xf32>
    %c0_56 = arith.constant 0 : index
    %c1_57 = arith.constant 1 : index
    %c0_58 = arith.constant 0 : index
    %c0_59 = arith.constant 0 : index
    %57 = vector.load %arg1[%c0_56, %c1_57, %c0_58, %c0_59] : memref<4x9x9x8xbf16, #tpu.memory_space<vmem>>, vector<1x8x8x8xbf16>
    %58 = vector.shape_cast %57 : vector<1x8x8x8xbf16> to vector<8x8x8xbf16>
    %59 = vector.shape_cast %58 : vector<8x8x8xbf16> to vector<64x8xbf16>
    %c8 = arith.constant 8 : index
    %c0_60 = arith.constant 0 : index
    %c0_61 = arith.constant 0 : index
    %60 = vector.load %arg2[%c8, %c0_60, %c0_61] : memref<16x8x16xbf16, #tpu.memory_space<vmem>>, vector<1x8x16xbf16>
    %61 = vector.shape_cast %60 : vector<1x8x16xbf16> to vector<8x16xbf16>
    %cst_62 = arith.constant dense<0.000000e+00> : vector<64x16xf32>
    %62 = tpu.matmul %59, %61, %cst_62 {dimension_numbers = #tpu.dot_dimension_numbers<[1], [0], [0], [1], [0, 0, 1, 1], [], []>} : vector<64x8xbf16>, vector<8x16xbf16>, vector<64x16xf32> -> vector<64x16xf32>
    %63 = arith.addf %56, %62 : vector<64x16xf32>
    %c1_63 = arith.constant 1 : index
    %c1_64 = arith.constant 1 : index
    %c0_65 = arith.constant 0 : index
    %c0_66 = arith.constant 0 : index
    %64 = vector.load %arg1[%c1_63, %c1_64, %c0_65, %c0_66] : memref<4x9x9x8xbf16, #tpu.memory_space<vmem>>, vector<1x8x8x8xbf16>
    %65 = vector.shape_cast %64 : vector<1x8x8x8xbf16> to vector<8x8x8xbf16>
    %66 = vector.shape_cast %65 : vector<8x8x8xbf16> to vector<64x8xbf16>
    %c9 = arith.constant 9 : index
    %c0_67 = arith.constant 0 : index
    %c0_68 = arith.constant 0 : index
    %67 = vector.load %arg2[%c9, %c0_67, %c0_68] : memref<16x8x16xbf16, #tpu.memory_space<vmem>>, vector<1x8x16xbf16>
    %68 = vector.shape_cast %67 : vector<1x8x16xbf16> to vector<8x16xbf16>
    %cst_69 = arith.constant dense<0.000000e+00> : vector<64x16xf32>
    %69 = tpu.matmul %66, %68, %cst_69 {dimension_numbers = #tpu.dot_dimension_numbers<[1], [0], [0], [1], [0, 0, 1, 1], [], []>} : vector<64x8xbf16>, vector<8x16xbf16>, vector<64x16xf32> -> vector<64x16xf32>
    %70 = arith.addf %63, %69 : vector<64x16xf32>
    %c0_70 = arith.constant 0 : index
    %c1_71 = arith.constant 1 : index
    %c1_72 = arith.constant 1 : index
    %c0_73 = arith.constant 0 : index
    %71 = vector.load %arg1[%c0_70, %c1_71, %c1_72, %c0_73] : memref<4x9x9x8xbf16, #tpu.memory_space<vmem>>, vector<1x8x8x8xbf16>
    %72 = vector.shape_cast %71 : vector<1x8x8x8xbf16> to vector<8x8x8xbf16>
    %73 = vector.shape_cast %72 : vector<8x8x8xbf16> to vector<64x8xbf16>
    %c10 = arith.constant 10 : index
    %c0_74 = arith.constant 0 : index
    %c0_75 = arith.constant 0 : index
    %74 = vector.load %arg2[%c10, %c0_74, %c0_75] : memref<16x8x16xbf16, #tpu.memory_space<vmem>>, vector<1x8x16xbf16>
    %75 = vector.shape_cast %74 : vector<1x8x16xbf16> to vector<8x16xbf16>
    %cst_76 = arith.constant dense<0.000000e+00> : vector<64x16xf32>
    %76 = tpu.matmul %73, %75, %cst_76 {dimension_numbers = #tpu.dot_dimension_numbers<[1], [0], [0], [1], [0, 0, 1, 1], [], []>} : vector<64x8xbf16>, vector<8x16xbf16>, vector<64x16xf32> -> vector<64x16xf32>
    %77 = arith.addf %70, %76 : vector<64x16xf32>
    %c1_77 = arith.constant 1 : index
    %c1_78 = arith.constant 1 : index
    %c1_79 = arith.constant 1 : index
    %c0_80 = arith.constant 0 : index
    %78 = vector.load %arg1[%c1_77, %c1_78, %c1_79, %c0_80] : memref<4x9x9x8xbf16, #tpu.memory_space<vmem>>, vector<1x8x8x8xbf16>
    %79 = vector.shape_cast %78 : vector<1x8x8x8xbf16> to vector<8x8x8xbf16>
    %80 = vector.shape_cast %79 : vector<8x8x8xbf16> to vector<64x8xbf16>
    %c11 = arith.constant 11 : index
    %c0_81 = arith.constant 0 : index
    %c0_82 = arith.constant 0 : index
    %81 = vector.load %arg2[%c11, %c0_81, %c0_82] : memref<16x8x16xbf16, #tpu.memory_space<vmem>>, vector<1x8x16xbf16>
    %82 = vector.shape_cast %81 : vector<1x8x16xbf16> to vector<8x16xbf16>
    %cst_83 = arith.constant dense<0.000000e+00> : vector<64x16xf32>
    %83 = tpu.matmul %80, %82, %cst_83 {dimension_numbers = #tpu.dot_dimension_numbers<[1], [0], [0], [1], [0, 0, 1, 1], [], []>} : vector<64x8xbf16>, vector<8x16xbf16>, vector<64x16xf32> -> vector<64x16xf32>
    %84 = arith.addf %77, %83 : vector<64x16xf32>
    %c2_84 = arith.constant 2 : index
    %c1_85 = arith.constant 1 : index
    %c0_86 = arith.constant 0 : index
    %c0_87 = arith.constant 0 : index
    %85 = vector.load %arg1[%c2_84, %c1_85, %c0_86, %c0_87] : memref<4x9x9x8xbf16, #tpu.memory_space<vmem>>, vector<1x8x8x8xbf16>
    %86 = vector.shape_cast %85 : vector<1x8x8x8xbf16> to vector<8x8x8xbf16>
    %87 = vector.shape_cast %86 : vector<8x8x8xbf16> to vector<64x8xbf16>
    %c12 = arith.constant 12 : index
    %c0_88 = arith.constant 0 : index
    %c0_89 = arith.constant 0 : index
    %88 = vector.load %arg2[%c12, %c0_88, %c0_89] : memref<16x8x16xbf16, #tpu.memory_space<vmem>>, vector<1x8x16xbf16>
    %89 = vector.shape_cast %88 : vector<1x8x16xbf16> to vector<8x16xbf16>
    %cst_90 = arith.constant dense<0.000000e+00> : vector<64x16xf32>
    %90 = tpu.matmul %87, %89, %cst_90 {dimension_numbers = #tpu.dot_dimension_numbers<[1], [0], [0], [1], [0, 0, 1, 1], [], []>} : vector<64x8xbf16>, vector<8x16xbf16>, vector<64x16xf32> -> vector<64x16xf32>
    %91 = arith.addf %84, %90 : vector<64x16xf32>
    %c3_91 = arith.constant 3 : index
    %c1_92 = arith.constant 1 : index
    %c0_93 = arith.constant 0 : index
    %c0_94 = arith.constant 0 : index
    %92 = vector.load %arg1[%c3_91, %c1_92, %c0_93, %c0_94] : memref<4x9x9x8xbf16, #tpu.memory_space<vmem>>, vector<1x8x8x8xbf16>
    %93 = vector.shape_cast %92 : vector<1x8x8x8xbf16> to vector<8x8x8xbf16>
    %94 = vector.shape_cast %93 : vector<8x8x8xbf16> to vector<64x8xbf16>
    %c13 = arith.constant 13 : index
    %c0_95 = arith.constant 0 : index
    %c0_96 = arith.constant 0 : index
    %95 = vector.load %arg2[%c13, %c0_95, %c0_96] : memref<16x8x16xbf16, #tpu.memory_space<vmem>>, vector<1x8x16xbf16>
    %96 = vector.shape_cast %95 : vector<1x8x16xbf16> to vector<8x16xbf16>
    %cst_97 = arith.constant dense<0.000000e+00> : vector<64x16xf32>
    %97 = tpu.matmul %94, %96, %cst_97 {dimension_numbers = #tpu.dot_dimension_numbers<[1], [0], [0], [1], [0, 0, 1, 1], [], []>} : vector<64x8xbf16>, vector<8x16xbf16>, vector<64x16xf32> -> vector<64x16xf32>
    %98 = arith.addf %91, %97 : vector<64x16xf32>
    %c2_98 = arith.constant 2 : index
    %c1_99 = arith.constant 1 : index
    %c1_100 = arith.constant 1 : index
    %c0_101 = arith.constant 0 : index
    %99 = vector.load %arg1[%c2_98, %c1_99, %c1_100, %c0_101] : memref<4x9x9x8xbf16, #tpu.memory_space<vmem>>, vector<1x8x8x8xbf16>
    %100 = vector.shape_cast %99 : vector<1x8x8x8xbf16> to vector<8x8x8xbf16>
    %101 = vector.shape_cast %100 : vector<8x8x8xbf16> to vector<64x8xbf16>
    %c14 = arith.constant 14 : index
    %c0_102 = arith.constant 0 : index
    %c0_103 = arith.constant 0 : index
    %102 = vector.load %arg2[%c14, %c0_102, %c0_103] : memref<16x8x16xbf16, #tpu.memory_space<vmem>>, vector<1x8x16xbf16>
    %103 = vector.shape_cast %102 : vector<1x8x16xbf16> to vector<8x16xbf16>
    %cst_104 = arith.constant dense<0.000000e+00> : vector<64x16xf32>
    %104 = tpu.matmul %101, %103, %cst_104 {dimension_numbers = #tpu.dot_dimension_numbers<[1], [0], [0], [1], [0, 0, 1, 1], [], []>} : vector<64x8xbf16>, vector<8x16xbf16>, vector<64x16xf32> -> vector<64x16xf32>
    %105 = arith.addf %98, %104 : vector<64x16xf32>
    %c3_105 = arith.constant 3 : index
    %c1_106 = arith.constant 1 : index
    %c1_107 = arith.constant 1 : index
    %c0_108 = arith.constant 0 : index
    %106 = vector.load %arg1[%c3_105, %c1_106, %c1_107, %c0_108] : memref<4x9x9x8xbf16, #tpu.memory_space<vmem>>, vector<1x8x8x8xbf16>
    %107 = vector.shape_cast %106 : vector<1x8x8x8xbf16> to vector<8x8x8xbf16>
    %108 = vector.shape_cast %107 : vector<8x8x8xbf16> to vector<64x8xbf16>
    %c15 = arith.constant 15 : index
    %c0_109 = arith.constant 0 : index
    %c0_110 = arith.constant 0 : index
    %109 = vector.load %arg2[%c15, %c0_109, %c0_110] : memref<16x8x16xbf16, #tpu.memory_space<vmem>>, vector<1x8x16xbf16>
    %110 = vector.shape_cast %109 : vector<1x8x16xbf16> to vector<8x16xbf16>
    %cst_111 = arith.constant dense<0.000000e+00> : vector<64x16xf32>
    %111 = tpu.matmul %108, %110, %cst_111 {dimension_numbers = #tpu.dot_dimension_numbers<[1], [0], [0], [1], [0, 0, 1, 1], [], []>} : vector<64x8xbf16>, vector<8x16xbf16>, vector<64x16xf32> -> vector<64x16xf32>
    %112 = arith.addf %105, %111 : vector<64x16xf32>
    %cst_112 = arith.constant dense<0.000000e+00> : vector<16xf32>
    %113 = vector.multi_reduction <add>, %112, %cst_112 [0] : vector<64x16xf32> to vector<16xf32>
    %114 = vector.shape_cast %113 : vector<16xf32> to vector<1x16xf32>
    %115 = arith.mulf %112, %112 : vector<64x16xf32>
    %cst_113 = arith.constant dense<0.000000e+00> : vector<16xf32>
    %116 = vector.multi_reduction <add>, %115, %cst_113 [0] : vector<64x16xf32> to vector<16xf32>
    %117 = vector.shape_cast %116 : vector<16xf32> to vector<1x16xf32>
    %cst_114 = arith.constant 1.562500e-02 : f32
    %118 = vector.broadcast %cst_114 : f32 to vector<1x16xf32>
    %119 = arith.mulf %114, %118 : vector<1x16xf32>
    %cst_115 = arith.constant 1.562500e-02 : f32
    %120 = vector.broadcast %cst_115 : f32 to vector<1x16xf32>
    %121 = arith.mulf %117, %120 : vector<1x16xf32>
    %122 = arith.mulf %119, %119 : vector<1x16xf32>
    %123 = arith.subf %121, %122 : vector<1x16xf32>
    %124 = vector.broadcast %119 : vector<1x16xf32> to vector<64x16xf32>
    %125 = arith.subf %112, %124 : vector<64x16xf32>
    %cst_116 = arith.constant 9.99999974E-6 : f32
    %126 = vector.broadcast %cst_116 : f32 to vector<1x16xf32>
    %127 = arith.addf %123, %126 : vector<1x16xf32>
    %128 = math.rsqrt %127 : vector<1x16xf32>
    %129 = vector.broadcast %128 : vector<1x16xf32> to vector<64x16xf32>
    %130 = arith.mulf %125, %129 : vector<64x16xf32>
    %cst_117 = arith.constant 0.000000e+00 : f32
    %131 = vector.broadcast %cst_117 : f32 to vector<64x16xf32>
    %132 = arith.cmpf oge, %130, %131 : vector<64x16xf32>
    %cst_118 = arith.constant 2.000000e-01 : f32
    %133 = vector.broadcast %cst_118 : f32 to vector<64x16xf32>
    %134 = arith.mulf %133, %130 : vector<64x16xf32>
    %135 = arith.select %132, %130, %134 : vector<64x16xi1>, vector<64x16xf32>
    %136 = arith.truncf %135 : vector<64x16xf32> to vector<64x16xbf16>
    %c0_119 = arith.constant 0 : index
    %c0_120 = arith.constant 0 : index
    %c0_121 = arith.constant 0 : index
    %137 = vector.load %arg3[%c0_119, %c0_120, %c0_121] : memref<1x64x16xbf16, #tpu.memory_space<vmem>>, vector<1x64x16xbf16>
    %138 = vector.shape_cast %137 : vector<1x64x16xbf16> to vector<64x16xbf16>
    %139 = vector.shape_cast %136 : vector<64x16xbf16> to vector<1x64x16xbf16>
    tpu.vector_store %arg3[%c0_119, %c0_120, %c0_121], %139 {strides = array<i32>} : memref<1x64x16xbf16, #tpu.memory_space<vmem>>, vector<1x64x16xbf16>,
    return
  }
  func.func @transform_0(%arg0: i32) -> (i32, i32, i32, i32) {
    %c0_i32 = arith.constant 0 : i32
    %c0_i32_0 = arith.constant 0 : i32
    %c0_i32_1 = arith.constant 0 : i32
    %c0_i32_2 = arith.constant 0 : i32
    return %arg0, %c0_i32, %c0_i32_0, %c0_i32_1 : i32, i32, i32, i32
  }
  func.func @transform_1(%arg0: i32) -> (i32, i32, i32) {
    %c0_i32 = arith.constant 0 : i32
    %c0_i32_0 = arith.constant 0 : i32
    %c0_i32_1 = arith.constant 0 : i32
    %c0_i32_2 = arith.constant 0 : i32
    return %c0_i32, %c0_i32_0, %c0_i32_1 : i32, i32, i32
  }
  func.func @transform_2(%arg0: i32) -> (i32, i32, i32) {
    %c0_i32 = arith.constant 0 : i32
    %c0_i32_0 = arith.constant 0 : i32
    %c0_i32_1 = arith.constant 0 : i32
    return %arg0, %c0_i32, %c0_i32_0 : i32, i32, i32
  }
}

module attributes {stable_mosaic.version = 11 : i64} {
  func.func @kernel(%arg0: i32, %arg1: memref<4x5x5x16xbf16, #tpu.memory_space<vmem>>, %arg2: memref<16x16x32xbf16, #tpu.memory_space<vmem>>, %arg3: memref<16x32x64xbf16, #tpu.memory_space<vmem>>, %arg4: memref<16x64x1xbf16, #tpu.memory_space<vmem>>, %arg5: memref<1x1xf32, #tpu.memory_space<vmem>>, %arg6: memref<1x1x4xf32, #tpu.memory_space<vmem>>, %arg7: memref<6x6x32xbf16, #tpu.memory_space<vmem>>, %arg8: memref<5x5x64xbf16, #tpu.memory_space<vmem>>) attributes {dimension_semantics = [#tpu.dimension_semantics<parallel>], iteration_bounds = array<i64: 2>, scalar_prefetch = 0 : i64, scratch_operands = 2 : i64, tpu.core_type = #tpu.core_type<tc>, window_params = [{transform_indices = @transform_0, window_bounds = array<i64: 4, 5, 5, 16>}, {pipeline_mode = #tpu.pipeline_mode<synchronous>, transform_indices = @transform_1, window_bounds = array<i64: 16, 16, 32>}, {pipeline_mode = #tpu.pipeline_mode<synchronous>, transform_indices = @transform_2, window_bounds = array<i64: 16, 32, 64>}, {pipeline_mode = #tpu.pipeline_mode<synchronous>, transform_indices = @transform_3, window_bounds = array<i64: 16, 64, 1>}, {pipeline_mode = #tpu.pipeline_mode<synchronous>, transform_indices = @transform_4, window_bounds = array<i64: 1, 1>}, {transform_indices = @transform_5, window_bounds = array<i64: 1, 1, 4>}]} {
    %cst = arith.constant 0.000000e+00 : f32
    %0 = vector.broadcast %cst : f32 to vector<16x32xf32>
    %c0 = arith.constant 0 : index
    %c0_0 = arith.constant 0 : index
    %c0_1 = arith.constant 0 : index
    %c0_2 = arith.constant 0 : index
    %1 = vector.load %arg1[%c0, %c0_0, %c0_1, %c0_2] : memref<4x5x5x16xbf16, #tpu.memory_space<vmem>>, vector<1x4x4x16xbf16>
    %2 = vector.shape_cast %1 : vector<1x4x4x16xbf16> to vector<4x4x16xbf16>
    %3 = vector.shape_cast %2 : vector<4x4x16xbf16> to vector<16x16xbf16>
    %c0_3 = arith.constant 0 : index
    %c0_4 = arith.constant 0 : index
    %c0_5 = arith.constant 0 : index
    %4 = vector.load %arg2[%c0_3, %c0_4, %c0_5] : memref<16x16x32xbf16, #tpu.memory_space<vmem>>, vector<1x16x32xbf16>
    %5 = vector.shape_cast %4 : vector<1x16x32xbf16> to vector<16x32xbf16>
    %cst_6 = arith.constant dense<0.000000e+00> : vector<16x32xf32>
    %6 = tpu.matmul %3, %5, %cst_6 {dimension_numbers = #tpu.dot_dimension_numbers<[1], [0], [0], [1], [0, 0, 1, 1], [], []>} : vector<16x16xbf16>, vector<16x32xbf16>, vector<16x32xf32> -> vector<16x32xf32>
    %7 = arith.addf %0, %6 : vector<16x32xf32>
    %c1 = arith.constant 1 : index
    %c0_7 = arith.constant 0 : index
    %c0_8 = arith.constant 0 : index
    %c0_9 = arith.constant 0 : index
    %8 = vector.load %arg1[%c1, %c0_7, %c0_8, %c0_9] : memref<4x5x5x16xbf16, #tpu.memory_space<vmem>>, vector<1x4x4x16xbf16>
    %9 = vector.shape_cast %8 : vector<1x4x4x16xbf16> to vector<4x4x16xbf16>
    %10 = vector.shape_cast %9 : vector<4x4x16xbf16> to vector<16x16xbf16>
    %c1_10 = arith.constant 1 : index
    %c0_11 = arith.constant 0 : index
    %c0_12 = arith.constant 0 : index
    %11 = vector.load %arg2[%c1_10, %c0_11, %c0_12] : memref<16x16x32xbf16, #tpu.memory_space<vmem>>, vector<1x16x32xbf16>
    %12 = vector.shape_cast %11 : vector<1x16x32xbf16> to vector<16x32xbf16>
    %cst_13 = arith.constant dense<0.000000e+00> : vector<16x32xf32>
    %13 = tpu.matmul %10, %12, %cst_13 {dimension_numbers = #tpu.dot_dimension_numbers<[1], [0], [0], [1], [0, 0, 1, 1], [], []>} : vector<16x16xbf16>, vector<16x32xbf16>, vector<16x32xf32> -> vector<16x32xf32>
    %14 = arith.addf %7, %13 : vector<16x32xf32>
    %c0_14 = arith.constant 0 : index
    %c0_15 = arith.constant 0 : index
    %c1_16 = arith.constant 1 : index
    %c0_17 = arith.constant 0 : index
    %15 = vector.load %arg1[%c0_14, %c0_15, %c1_16, %c0_17] : memref<4x5x5x16xbf16, #tpu.memory_space<vmem>>, vector<1x4x4x16xbf16>
    %16 = vector.shape_cast %15 : vector<1x4x4x16xbf16> to vector<4x4x16xbf16>
    %17 = vector.shape_cast %16 : vector<4x4x16xbf16> to vector<16x16xbf16>
    %c2 = arith.constant 2 : index
    %c0_18 = arith.constant 0 : index
    %c0_19 = arith.constant 0 : index
    %18 = vector.load %arg2[%c2, %c0_18, %c0_19] : memref<16x16x32xbf16, #tpu.memory_space<vmem>>, vector<1x16x32xbf16>
    %19 = vector.shape_cast %18 : vector<1x16x32xbf16> to vector<16x32xbf16>
    %cst_20 = arith.constant dense<0.000000e+00> : vector<16x32xf32>
    %20 = tpu.matmul %17, %19, %cst_20 {dimension_numbers = #tpu.dot_dimension_numbers<[1], [0], [0], [1], [0, 0, 1, 1], [], []>} : vector<16x16xbf16>, vector<16x32xbf16>, vector<16x32xf32> -> vector<16x32xf32>
    %21 = arith.addf %14, %20 : vector<16x32xf32>
    %c1_21 = arith.constant 1 : index
    %c0_22 = arith.constant 0 : index
    %c1_23 = arith.constant 1 : index
    %c0_24 = arith.constant 0 : index
    %22 = vector.load %arg1[%c1_21, %c0_22, %c1_23, %c0_24] : memref<4x5x5x16xbf16, #tpu.memory_space<vmem>>, vector<1x4x4x16xbf16>
    %23 = vector.shape_cast %22 : vector<1x4x4x16xbf16> to vector<4x4x16xbf16>
    %24 = vector.shape_cast %23 : vector<4x4x16xbf16> to vector<16x16xbf16>
    %c3 = arith.constant 3 : index
    %c0_25 = arith.constant 0 : index
    %c0_26 = arith.constant 0 : index
    %25 = vector.load %arg2[%c3, %c0_25, %c0_26] : memref<16x16x32xbf16, #tpu.memory_space<vmem>>, vector<1x16x32xbf16>
    %26 = vector.shape_cast %25 : vector<1x16x32xbf16> to vector<16x32xbf16>
    %cst_27 = arith.constant dense<0.000000e+00> : vector<16x32xf32>
    %27 = tpu.matmul %24, %26, %cst_27 {dimension_numbers = #tpu.dot_dimension_numbers<[1], [0], [0], [1], [0, 0, 1, 1], [], []>} : vector<16x16xbf16>, vector<16x32xbf16>, vector<16x32xf32> -> vector<16x32xf32>
    %28 = arith.addf %21, %27 : vector<16x32xf32>
    %c2_28 = arith.constant 2 : index
    %c0_29 = arith.constant 0 : index
    %c0_30 = arith.constant 0 : index
    %c0_31 = arith.constant 0 : index
    %29 = vector.load %arg1[%c2_28, %c0_29, %c0_30, %c0_31] : memref<4x5x5x16xbf16, #tpu.memory_space<vmem>>, vector<1x4x4x16xbf16>
    %30 = vector.shape_cast %29 : vector<1x4x4x16xbf16> to vector<4x4x16xbf16>
    %31 = vector.shape_cast %30 : vector<4x4x16xbf16> to vector<16x16xbf16>
    %c4 = arith.constant 4 : index
    %c0_32 = arith.constant 0 : index
    %c0_33 = arith.constant 0 : index
    %32 = vector.load %arg2[%c4, %c0_32, %c0_33] : memref<16x16x32xbf16, #tpu.memory_space<vmem>>, vector<1x16x32xbf16>
    %33 = vector.shape_cast %32 : vector<1x16x32xbf16> to vector<16x32xbf16>
    %cst_34 = arith.constant dense<0.000000e+00> : vector<16x32xf32>
    %34 = tpu.matmul %31, %33, %cst_34 {dimension_numbers = #tpu.dot_dimension_numbers<[1], [0], [0], [1], [0, 0, 1, 1], [], []>} : vector<16x16xbf16>, vector<16x32xbf16>, vector<16x32xf32> -> vector<16x32xf32>
    %35 = arith.addf %28, %34 : vector<16x32xf32>
    %c3_35 = arith.constant 3 : index
    %c0_36 = arith.constant 0 : index
    %c0_37 = arith.constant 0 : index
    %c0_38 = arith.constant 0 : index
    %36 = vector.load %arg1[%c3_35, %c0_36, %c0_37, %c0_38] : memref<4x5x5x16xbf16, #tpu.memory_space<vmem>>, vector<1x4x4x16xbf16>
    %37 = vector.shape_cast %36 : vector<1x4x4x16xbf16> to vector<4x4x16xbf16>
    %38 = vector.shape_cast %37 : vector<4x4x16xbf16> to vector<16x16xbf16>
    %c5 = arith.constant 5 : index
    %c0_39 = arith.constant 0 : index
    %c0_40 = arith.constant 0 : index
    %39 = vector.load %arg2[%c5, %c0_39, %c0_40] : memref<16x16x32xbf16, #tpu.memory_space<vmem>>, vector<1x16x32xbf16>
    %40 = vector.shape_cast %39 : vector<1x16x32xbf16> to vector<16x32xbf16>
    %cst_41 = arith.constant dense<0.000000e+00> : vector<16x32xf32>
    %41 = tpu.matmul %38, %40, %cst_41 {dimension_numbers = #tpu.dot_dimension_numbers<[1], [0], [0], [1], [0, 0, 1, 1], [], []>} : vector<16x16xbf16>, vector<16x32xbf16>, vector<16x32xf32> -> vector<16x32xf32>
    %42 = arith.addf %35, %41 : vector<16x32xf32>
    %c2_42 = arith.constant 2 : index
    %c0_43 = arith.constant 0 : index
    %c1_44 = arith.constant 1 : index
    %c0_45 = arith.constant 0 : index
    %43 = vector.load %arg1[%c2_42, %c0_43, %c1_44, %c0_45] : memref<4x5x5x16xbf16, #tpu.memory_space<vmem>>, vector<1x4x4x16xbf16>
    %44 = vector.shape_cast %43 : vector<1x4x4x16xbf16> to vector<4x4x16xbf16>
    %45 = vector.shape_cast %44 : vector<4x4x16xbf16> to vector<16x16xbf16>
    %c6 = arith.constant 6 : index
    %c0_46 = arith.constant 0 : index
    %c0_47 = arith.constant 0 : index
    %46 = vector.load %arg2[%c6, %c0_46, %c0_47] : memref<16x16x32xbf16, #tpu.memory_space<vmem>>, vector<1x16x32xbf16>
    %47 = vector.shape_cast %46 : vector<1x16x32xbf16> to vector<16x32xbf16>
    %cst_48 = arith.constant dense<0.000000e+00> : vector<16x32xf32>
    %48 = tpu.matmul %45, %47, %cst_48 {dimension_numbers = #tpu.dot_dimension_numbers<[1], [0], [0], [1], [0, 0, 1, 1], [], []>} : vector<16x16xbf16>, vector<16x32xbf16>, vector<16x32xf32> -> vector<16x32xf32>
    %49 = arith.addf %42, %48 : vector<16x32xf32>
    %c3_49 = arith.constant 3 : index
    %c0_50 = arith.constant 0 : index
    %c1_51 = arith.constant 1 : index
    %c0_52 = arith.constant 0 : index
    %50 = vector.load %arg1[%c3_49, %c0_50, %c1_51, %c0_52] : memref<4x5x5x16xbf16, #tpu.memory_space<vmem>>, vector<1x4x4x16xbf16>
    %51 = vector.shape_cast %50 : vector<1x4x4x16xbf16> to vector<4x4x16xbf16>
    %52 = vector.shape_cast %51 : vector<4x4x16xbf16> to vector<16x16xbf16>
    %c7 = arith.constant 7 : index
    %c0_53 = arith.constant 0 : index
    %c0_54 = arith.constant 0 : index
    %53 = vector.load %arg2[%c7, %c0_53, %c0_54] : memref<16x16x32xbf16, #tpu.memory_space<vmem>>, vector<1x16x32xbf16>
    %54 = vector.shape_cast %53 : vector<1x16x32xbf16> to vector<16x32xbf16>
    %cst_55 = arith.constant dense<0.000000e+00> : vector<16x32xf32>
    %55 = tpu.matmul %52, %54, %cst_55 {dimension_numbers = #tpu.dot_dimension_numbers<[1], [0], [0], [1], [0, 0, 1, 1], [], []>} : vector<16x16xbf16>, vector<16x32xbf16>, vector<16x32xf32> -> vector<16x32xf32>
    %56 = arith.addf %49, %55 : vector<16x32xf32>
    %c0_56 = arith.constant 0 : index
    %c1_57 = arith.constant 1 : index
    %c0_58 = arith.constant 0 : index
    %c0_59 = arith.constant 0 : index
    %57 = vector.load %arg1[%c0_56, %c1_57, %c0_58, %c0_59] : memref<4x5x5x16xbf16, #tpu.memory_space<vmem>>, vector<1x4x4x16xbf16>
    %58 = vector.shape_cast %57 : vector<1x4x4x16xbf16> to vector<4x4x16xbf16>
    %59 = vector.shape_cast %58 : vector<4x4x16xbf16> to vector<16x16xbf16>
    %c8 = arith.constant 8 : index
    %c0_60 = arith.constant 0 : index
    %c0_61 = arith.constant 0 : index
    %60 = vector.load %arg2[%c8, %c0_60, %c0_61] : memref<16x16x32xbf16, #tpu.memory_space<vmem>>, vector<1x16x32xbf16>
    %61 = vector.shape_cast %60 : vector<1x16x32xbf16> to vector<16x32xbf16>
    %cst_62 = arith.constant dense<0.000000e+00> : vector<16x32xf32>
    %62 = tpu.matmul %59, %61, %cst_62 {dimension_numbers = #tpu.dot_dimension_numbers<[1], [0], [0], [1], [0, 0, 1, 1], [], []>} : vector<16x16xbf16>, vector<16x32xbf16>, vector<16x32xf32> -> vector<16x32xf32>
    %63 = arith.addf %56, %62 : vector<16x32xf32>
    %c1_63 = arith.constant 1 : index
    %c1_64 = arith.constant 1 : index
    %c0_65 = arith.constant 0 : index
    %c0_66 = arith.constant 0 : index
    %64 = vector.load %arg1[%c1_63, %c1_64, %c0_65, %c0_66] : memref<4x5x5x16xbf16, #tpu.memory_space<vmem>>, vector<1x4x4x16xbf16>
    %65 = vector.shape_cast %64 : vector<1x4x4x16xbf16> to vector<4x4x16xbf16>
    %66 = vector.shape_cast %65 : vector<4x4x16xbf16> to vector<16x16xbf16>
    %c9 = arith.constant 9 : index
    %c0_67 = arith.constant 0 : index
    %c0_68 = arith.constant 0 : index
    %67 = vector.load %arg2[%c9, %c0_67, %c0_68] : memref<16x16x32xbf16, #tpu.memory_space<vmem>>, vector<1x16x32xbf16>
    %68 = vector.shape_cast %67 : vector<1x16x32xbf16> to vector<16x32xbf16>
    %cst_69 = arith.constant dense<0.000000e+00> : vector<16x32xf32>
    %69 = tpu.matmul %66, %68, %cst_69 {dimension_numbers = #tpu.dot_dimension_numbers<[1], [0], [0], [1], [0, 0, 1, 1], [], []>} : vector<16x16xbf16>, vector<16x32xbf16>, vector<16x32xf32> -> vector<16x32xf32>
    %70 = arith.addf %63, %69 : vector<16x32xf32>
    %c0_70 = arith.constant 0 : index
    %c1_71 = arith.constant 1 : index
    %c1_72 = arith.constant 1 : index
    %c0_73 = arith.constant 0 : index
    %71 = vector.load %arg1[%c0_70, %c1_71, %c1_72, %c0_73] : memref<4x5x5x16xbf16, #tpu.memory_space<vmem>>, vector<1x4x4x16xbf16>
    %72 = vector.shape_cast %71 : vector<1x4x4x16xbf16> to vector<4x4x16xbf16>
    %73 = vector.shape_cast %72 : vector<4x4x16xbf16> to vector<16x16xbf16>
    %c10 = arith.constant 10 : index
    %c0_74 = arith.constant 0 : index
    %c0_75 = arith.constant 0 : index
    %74 = vector.load %arg2[%c10, %c0_74, %c0_75] : memref<16x16x32xbf16, #tpu.memory_space<vmem>>, vector<1x16x32xbf16>
    %75 = vector.shape_cast %74 : vector<1x16x32xbf16> to vector<16x32xbf16>
    %cst_76 = arith.constant dense<0.000000e+00> : vector<16x32xf32>
    %76 = tpu.matmul %73, %75, %cst_76 {dimension_numbers = #tpu.dot_dimension_numbers<[1], [0], [0], [1], [0, 0, 1, 1], [], []>} : vector<16x16xbf16>, vector<16x32xbf16>, vector<16x32xf32> -> vector<16x32xf32>
    %77 = arith.addf %70, %76 : vector<16x32xf32>
    %c1_77 = arith.constant 1 : index
    %c1_78 = arith.constant 1 : index
    %c1_79 = arith.constant 1 : index
    %c0_80 = arith.constant 0 : index
    %78 = vector.load %arg1[%c1_77, %c1_78, %c1_79, %c0_80] : memref<4x5x5x16xbf16, #tpu.memory_space<vmem>>, vector<1x4x4x16xbf16>
    %79 = vector.shape_cast %78 : vector<1x4x4x16xbf16> to vector<4x4x16xbf16>
    %80 = vector.shape_cast %79 : vector<4x4x16xbf16> to vector<16x16xbf16>
    %c11 = arith.constant 11 : index
    %c0_81 = arith.constant 0 : index
    %c0_82 = arith.constant 0 : index
    %81 = vector.load %arg2[%c11, %c0_81, %c0_82] : memref<16x16x32xbf16, #tpu.memory_space<vmem>>, vector<1x16x32xbf16>
    %82 = vector.shape_cast %81 : vector<1x16x32xbf16> to vector<16x32xbf16>
    %cst_83 = arith.constant dense<0.000000e+00> : vector<16x32xf32>
    %83 = tpu.matmul %80, %82, %cst_83 {dimension_numbers = #tpu.dot_dimension_numbers<[1], [0], [0], [1], [0, 0, 1, 1], [], []>} : vector<16x16xbf16>, vector<16x32xbf16>, vector<16x32xf32> -> vector<16x32xf32>
    %84 = arith.addf %77, %83 : vector<16x32xf32>
    %c2_84 = arith.constant 2 : index
    %c1_85 = arith.constant 1 : index
    %c0_86 = arith.constant 0 : index
    %c0_87 = arith.constant 0 : index
    %85 = vector.load %arg1[%c2_84, %c1_85, %c0_86, %c0_87] : memref<4x5x5x16xbf16, #tpu.memory_space<vmem>>, vector<1x4x4x16xbf16>
    %86 = vector.shape_cast %85 : vector<1x4x4x16xbf16> to vector<4x4x16xbf16>
    %87 = vector.shape_cast %86 : vector<4x4x16xbf16> to vector<16x16xbf16>
    %c12 = arith.constant 12 : index
    %c0_88 = arith.constant 0 : index
    %c0_89 = arith.constant 0 : index
    %88 = vector.load %arg2[%c12, %c0_88, %c0_89] : memref<16x16x32xbf16, #tpu.memory_space<vmem>>, vector<1x16x32xbf16>
    %89 = vector.shape_cast %88 : vector<1x16x32xbf16> to vector<16x32xbf16>
    %cst_90 = arith.constant dense<0.000000e+00> : vector<16x32xf32>
    %90 = tpu.matmul %87, %89, %cst_90 {dimension_numbers = #tpu.dot_dimension_numbers<[1], [0], [0], [1], [0, 0, 1, 1], [], []>} : vector<16x16xbf16>, vector<16x32xbf16>, vector<16x32xf32> -> vector<16x32xf32>
    %91 = arith.addf %84, %90 : vector<16x32xf32>
    %c3_91 = arith.constant 3 : index
    %c1_92 = arith.constant 1 : index
    %c0_93 = arith.constant 0 : index
    %c0_94 = arith.constant 0 : index
    %92 = vector.load %arg1[%c3_91, %c1_92, %c0_93, %c0_94] : memref<4x5x5x16xbf16, #tpu.memory_space<vmem>>, vector<1x4x4x16xbf16>
    %93 = vector.shape_cast %92 : vector<1x4x4x16xbf16> to vector<4x4x16xbf16>
    %94 = vector.shape_cast %93 : vector<4x4x16xbf16> to vector<16x16xbf16>
    %c13 = arith.constant 13 : index
    %c0_95 = arith.constant 0 : index
    %c0_96 = arith.constant 0 : index
    %95 = vector.load %arg2[%c13, %c0_95, %c0_96] : memref<16x16x32xbf16, #tpu.memory_space<vmem>>, vector<1x16x32xbf16>
    %96 = vector.shape_cast %95 : vector<1x16x32xbf16> to vector<16x32xbf16>
    %cst_97 = arith.constant dense<0.000000e+00> : vector<16x32xf32>
    %97 = tpu.matmul %94, %96, %cst_97 {dimension_numbers = #tpu.dot_dimension_numbers<[1], [0], [0], [1], [0, 0, 1, 1], [], []>} : vector<16x16xbf16>, vector<16x32xbf16>, vector<16x32xf32> -> vector<16x32xf32>
    %98 = arith.addf %91, %97 : vector<16x32xf32>
    %c2_98 = arith.constant 2 : index
    %c1_99 = arith.constant 1 : index
    %c1_100 = arith.constant 1 : index
    %c0_101 = arith.constant 0 : index
    %99 = vector.load %arg1[%c2_98, %c1_99, %c1_100, %c0_101] : memref<4x5x5x16xbf16, #tpu.memory_space<vmem>>, vector<1x4x4x16xbf16>
    %100 = vector.shape_cast %99 : vector<1x4x4x16xbf16> to vector<4x4x16xbf16>
    %101 = vector.shape_cast %100 : vector<4x4x16xbf16> to vector<16x16xbf16>
    %c14 = arith.constant 14 : index
    %c0_102 = arith.constant 0 : index
    %c0_103 = arith.constant 0 : index
    %102 = vector.load %arg2[%c14, %c0_102, %c0_103] : memref<16x16x32xbf16, #tpu.memory_space<vmem>>, vector<1x16x32xbf16>
    %103 = vector.shape_cast %102 : vector<1x16x32xbf16> to vector<16x32xbf16>
    %cst_104 = arith.constant dense<0.000000e+00> : vector<16x32xf32>
    %104 = tpu.matmul %101, %103, %cst_104 {dimension_numbers = #tpu.dot_dimension_numbers<[1], [0], [0], [1], [0, 0, 1, 1], [], []>} : vector<16x16xbf16>, vector<16x32xbf16>, vector<16x32xf32> -> vector<16x32xf32>
    %105 = arith.addf %98, %104 : vector<16x32xf32>
    %c3_105 = arith.constant 3 : index
    %c1_106 = arith.constant 1 : index
    %c1_107 = arith.constant 1 : index
    %c0_108 = arith.constant 0 : index
    %106 = vector.load %arg1[%c3_105, %c1_106, %c1_107, %c0_108] : memref<4x5x5x16xbf16, #tpu.memory_space<vmem>>, vector<1x4x4x16xbf16>
    %107 = vector.shape_cast %106 : vector<1x4x4x16xbf16> to vector<4x4x16xbf16>
    %108 = vector.shape_cast %107 : vector<4x4x16xbf16> to vector<16x16xbf16>
    %c15 = arith.constant 15 : index
    %c0_109 = arith.constant 0 : index
    %c0_110 = arith.constant 0 : index
    %109 = vector.load %arg2[%c15, %c0_109, %c0_110] : memref<16x16x32xbf16, #tpu.memory_space<vmem>>, vector<1x16x32xbf16>
    %110 = vector.shape_cast %109 : vector<1x16x32xbf16> to vector<16x32xbf16>
    %cst_111 = arith.constant dense<0.000000e+00> : vector<16x32xf32>
    %111 = tpu.matmul %108, %110, %cst_111 {dimension_numbers = #tpu.dot_dimension_numbers<[1], [0], [0], [1], [0, 0, 1, 1], [], []>} : vector<16x16xbf16>, vector<16x32xbf16>, vector<16x32xf32> -> vector<16x32xf32>
    %112 = arith.addf %105, %111 : vector<16x32xf32>
    %cst_112 = arith.constant dense<0.000000e+00> : vector<32xf32>
    %113 = vector.multi_reduction <add>, %112, %cst_112 [0] : vector<16x32xf32> to vector<32xf32>
    %114 = vector.shape_cast %113 : vector<32xf32> to vector<1x32xf32>
    %115 = arith.mulf %112, %112 : vector<16x32xf32>
    %cst_113 = arith.constant dense<0.000000e+00> : vector<32xf32>
    %116 = vector.multi_reduction <add>, %115, %cst_113 [0] : vector<16x32xf32> to vector<32xf32>
    %117 = vector.shape_cast %116 : vector<32xf32> to vector<1x32xf32>
    %cst_114 = arith.constant 6.250000e-02 : f32
    %118 = vector.broadcast %cst_114 : f32 to vector<1x32xf32>
    %119 = arith.mulf %114, %118 : vector<1x32xf32>
    %cst_115 = arith.constant 6.250000e-02 : f32
    %120 = vector.broadcast %cst_115 : f32 to vector<1x32xf32>
    %121 = arith.mulf %117, %120 : vector<1x32xf32>
    %122 = arith.mulf %119, %119 : vector<1x32xf32>
    %123 = arith.subf %121, %122 : vector<1x32xf32>
    %124 = vector.broadcast %119 : vector<1x32xf32> to vector<16x32xf32>
    %125 = arith.subf %112, %124 : vector<16x32xf32>
    %cst_116 = arith.constant 9.99999974E-6 : f32
    %126 = vector.broadcast %cst_116 : f32 to vector<1x32xf32>
    %127 = arith.addf %123, %126 : vector<1x32xf32>
    %128 = math.rsqrt %127 : vector<1x32xf32>
    %129 = vector.broadcast %128 : vector<1x32xf32> to vector<16x32xf32>
    %130 = arith.mulf %125, %129 : vector<16x32xf32>
    %cst_117 = arith.constant 0.000000e+00 : f32
    %131 = vector.broadcast %cst_117 : f32 to vector<16x32xf32>
    %132 = arith.cmpf oge, %130, %131 : vector<16x32xf32>
    %cst_118 = arith.constant 2.000000e-01 : f32
    %133 = vector.broadcast %cst_118 : f32 to vector<16x32xf32>
    %134 = arith.mulf %133, %130 : vector<16x32xf32>
    %135 = arith.select %132, %130, %134 : vector<16x32xi1>, vector<16x32xf32>
    %136 = arith.truncf %135 : vector<16x32xf32> to vector<16x32xbf16>
    %cst_119 = arith.constant 0.000000e+00 : bf16
    %137 = vector.broadcast %cst_119 : bf16 to vector<6x6x32xbf16>
    %c0_120 = arith.constant 0 : index
    %c0_121 = arith.constant 0 : index
    %c0_122 = arith.constant 0 : index
    %138 = vector.load %arg7[%c0_120, %c0_121, %c0_122] : memref<6x6x32xbf16, #tpu.memory_space<vmem>>, vector<6x6x32xbf16>
    tpu.vector_store %arg7[%c0_120, %c0_121, %c0_122], %137 {strides = array<i32>} : memref<6x6x32xbf16, #tpu.memory_space<vmem>>, vector<6x6x32xbf16>,
    %139 = vector.shape_cast %136 : vector<16x32xbf16> to vector<4x4x32xbf16>
    %c1_123 = arith.constant 1 : index
    %c1_124 = arith.constant 1 : index
    %c0_125 = arith.constant 0 : index
    %140 = vector.load %arg7[%c1_123, %c1_124, %c0_125] : memref<6x6x32xbf16, #tpu.memory_space<vmem>>, vector<4x4x32xbf16>
    tpu.vector_store %arg7[%c1_123, %c1_124, %c0_125], %139 {strides = array<i32>} : memref<6x6x32xbf16, #tpu.memory_space<vmem>>, vector<4x4x32xbf16>,
    %cst_126 = arith.constant 0.000000e+00 : f32
    %141 = vector.broadcast %cst_126 : f32 to vector<9x64xf32>
    %c0_127 = arith.constant 0 : index
    %c0_128 = arith.constant 0 : index
    %c0_129 = arith.constant 0 : index
    %142 = vector.load %arg7[%c0_127, %c0_128, %c0_129] : memref<6x6x32xbf16, #tpu.memory_space<vmem>>, vector<3x3x32xbf16>
    %143 = vector.shape_cast %142 : vector<3x3x32xbf16> to vector<9x32xbf16>
    %c0_130 = arith.constant 0 : index
    %c0_131 = arith.constant 0 : index
    %c0_132 = arith.constant 0 : index
    %144 = vector.load %arg3[%c0_130, %c0_131, %c0_132] : memref<16x32x64xbf16, #tpu.memory_space<vmem>>, vector<1x32x64xbf16>
    %145 = vector.shape_cast %144 : vector<1x32x64xbf16> to vector<32x64xbf16>
    %cst_133 = arith.constant dense<0.000000e+00> : vector<9x64xf32>
    %146 = tpu.matmul %143, %145, %cst_133 {dimension_numbers = #tpu.dot_dimension_numbers<[1], [0], [0], [1], [0, 0, 1, 1], [], []>} : vector<9x32xbf16>, vector<32x64xbf16>, vector<9x64xf32> -> vector<9x64xf32>
    %147 = arith.addf %141, %146 : vector<9x64xf32>
    %c0_134 = arith.constant 0 : index
    %c1_135 = arith.constant 1 : index
    %c0_136 = arith.constant 0 : index
    %148 = vector.load %arg7[%c0_134, %c1_135, %c0_136] : memref<6x6x32xbf16, #tpu.memory_space<vmem>>, vector<3x3x32xbf16>
    %149 = vector.shape_cast %148 : vector<3x3x32xbf16> to vector<9x32xbf16>
    %c1_137 = arith.constant 1 : index
    %c0_138 = arith.constant 0 : index
    %c0_139 = arith.constant 0 : index
    %150 = vector.load %arg3[%c1_137, %c0_138, %c0_139] : memref<16x32x64xbf16, #tpu.memory_space<vmem>>, vector<1x32x64xbf16>
    %151 = vector.shape_cast %150 : vector<1x32x64xbf16> to vector<32x64xbf16>
    %cst_140 = arith.constant dense<0.000000e+00> : vector<9x64xf32>
    %152 = tpu.matmul %149, %151, %cst_140 {dimension_numbers = #tpu.dot_dimension_numbers<[1], [0], [0], [1], [0, 0, 1, 1], [], []>} : vector<9x32xbf16>, vector<32x64xbf16>, vector<9x64xf32> -> vector<9x64xf32>
    %153 = arith.addf %147, %152 : vector<9x64xf32>
    %c0_141 = arith.constant 0 : index
    %c2_142 = arith.constant 2 : index
    %c0_143 = arith.constant 0 : index
    %154 = vector.load %arg7[%c0_141, %c2_142, %c0_143] : memref<6x6x32xbf16, #tpu.memory_space<vmem>>, vector<3x3x32xbf16>
    %155 = vector.shape_cast %154 : vector<3x3x32xbf16> to vector<9x32xbf16>
    %c2_144 = arith.constant 2 : index
    %c0_145 = arith.constant 0 : index
    %c0_146 = arith.constant 0 : index
    %156 = vector.load %arg3[%c2_144, %c0_145, %c0_146] : memref<16x32x64xbf16, #tpu.memory_space<vmem>>, vector<1x32x64xbf16>
    %157 = vector.shape_cast %156 : vector<1x32x64xbf16> to vector<32x64xbf16>
    %cst_147 = arith.constant dense<0.000000e+00> : vector<9x64xf32>
    %158 = tpu.matmul %155, %157, %cst_147 {dimension_numbers = #tpu.dot_dimension_numbers<[1], [0], [0], [1], [0, 0, 1, 1], [], []>} : vector<9x32xbf16>, vector<32x64xbf16>, vector<9x64xf32> -> vector<9x64xf32>
    %159 = arith.addf %153, %158 : vector<9x64xf32>
    %c0_148 = arith.constant 0 : index
    %c3_149 = arith.constant 3 : index
    %c0_150 = arith.constant 0 : index
    %160 = vector.load %arg7[%c0_148, %c3_149, %c0_150] : memref<6x6x32xbf16, #tpu.memory_space<vmem>>, vector<3x3x32xbf16>
    %161 = vector.shape_cast %160 : vector<3x3x32xbf16> to vector<9x32xbf16>
    %c3_151 = arith.constant 3 : index
    %c0_152 = arith.constant 0 : index
    %c0_153 = arith.constant 0 : index
    %162 = vector.load %arg3[%c3_151, %c0_152, %c0_153] : memref<16x32x64xbf16, #tpu.memory_space<vmem>>, vector<1x32x64xbf16>
    %163 = vector.shape_cast %162 : vector<1x32x64xbf16> to vector<32x64xbf16>
    %cst_154 = arith.constant dense<0.000000e+00> : vector<9x64xf32>
    %164 = tpu.matmul %161, %163, %cst_154 {dimension_numbers = #tpu.dot_dimension_numbers<[1], [0], [0], [1], [0, 0, 1, 1], [], []>} : vector<9x32xbf16>, vector<32x64xbf16>, vector<9x64xf32> -> vector<9x64xf32>
    %165 = arith.addf %159, %164 : vector<9x64xf32>
    %c1_155 = arith.constant 1 : index
    %c0_156 = arith.constant 0 : index
    %c0_157 = arith.constant 0 : index
    %166 = vector.load %arg7[%c1_155, %c0_156, %c0_157] : memref<6x6x32xbf16, #tpu.memory_space<vmem>>, vector<3x3x32xbf16>
    %167 = vector.shape_cast %166 : vector<3x3x32xbf16> to vector<9x32xbf16>
    %c4_158 = arith.constant 4 : index
    %c0_159 = arith.constant 0 : index
    %c0_160 = arith.constant 0 : index
    %168 = vector.load %arg3[%c4_158, %c0_159, %c0_160] : memref<16x32x64xbf16, #tpu.memory_space<vmem>>, vector<1x32x64xbf16>
    %169 = vector.shape_cast %168 : vector<1x32x64xbf16> to vector<32x64xbf16>
    %cst_161 = arith.constant dense<0.000000e+00> : vector<9x64xf32>
    %170 = tpu.matmul %167, %169, %cst_161 {dimension_numbers = #tpu.dot_dimension_numbers<[1], [0], [0], [1], [0, 0, 1, 1], [], []>} : vector<9x32xbf16>, vector<32x64xbf16>, vector<9x64xf32> -> vector<9x64xf32>
    %171 = arith.addf %165, %170 : vector<9x64xf32>
    %c1_162 = arith.constant 1 : index
    %c1_163 = arith.constant 1 : index
    %c0_164 = arith.constant 0 : index
    %172 = vector.load %arg7[%c1_162, %c1_163, %c0_164] : memref<6x6x32xbf16, #tpu.memory_space<vmem>>, vector<3x3x32xbf16>
    %173 = vector.shape_cast %172 : vector<3x3x32xbf16> to vector<9x32xbf16>
    %c5_165 = arith.constant 5 : index
    %c0_166 = arith.constant 0 : index
    %c0_167 = arith.constant 0 : index
    %174 = vector.load %arg3[%c5_165, %c0_166, %c0_167] : memref<16x32x64xbf16, #tpu.memory_space<vmem>>, vector<1x32x64xbf16>
    %175 = vector.shape_cast %174 : vector<1x32x64xbf16> to vector<32x64xbf16>
    %cst_168 = arith.constant dense<0.000000e+00> : vector<9x64xf32>
    %176 = tpu.matmul %173, %175, %cst_168 {dimension_numbers = #tpu.dot_dimension_numbers<[1], [0], [0], [1], [0, 0, 1, 1], [], []>} : vector<9x32xbf16>, vector<32x64xbf16>, vector<9x64xf32> -> vector<9x64xf32>
    %177 = arith.addf %171, %176 : vector<9x64xf32>
    %c1_169 = arith.constant 1 : index
    %c2_170 = arith.constant 2 : index
    %c0_171 = arith.constant 0 : index
    %178 = vector.load %arg7[%c1_169, %c2_170, %c0_171] : memref<6x6x32xbf16, #tpu.memory_space<vmem>>, vector<3x3x32xbf16>
    %179 = vector.shape_cast %178 : vector<3x3x32xbf16> to vector<9x32xbf16>
    %c6_172 = arith.constant 6 : index
    %c0_173 = arith.constant 0 : index
    %c0_174 = arith.constant 0 : index
    %180 = vector.load %arg3[%c6_172, %c0_173, %c0_174] : memref<16x32x64xbf16, #tpu.memory_space<vmem>>, vector<1x32x64xbf16>
    %181 = vector.shape_cast %180 : vector<1x32x64xbf16> to vector<32x64xbf16>
    %cst_175 = arith.constant dense<0.000000e+00> : vector<9x64xf32>
    %182 = tpu.matmul %179, %181, %cst_175 {dimension_numbers = #tpu.dot_dimension_numbers<[1], [0], [0], [1], [0, 0, 1, 1], [], []>} : vector<9x32xbf16>, vector<32x64xbf16>, vector<9x64xf32> -> vector<9x64xf32>
    %183 = arith.addf %177, %182 : vector<9x64xf32>
    %c1_176 = arith.constant 1 : index
    %c3_177 = arith.constant 3 : index
    %c0_178 = arith.constant 0 : index
    %184 = vector.load %arg7[%c1_176, %c3_177, %c0_178] : memref<6x6x32xbf16, #tpu.memory_space<vmem>>, vector<3x3x32xbf16>
    %185 = vector.shape_cast %184 : vector<3x3x32xbf16> to vector<9x32xbf16>
    %c7_179 = arith.constant 7 : index
    %c0_180 = arith.constant 0 : index
    %c0_181 = arith.constant 0 : index
    %186 = vector.load %arg3[%c7_179, %c0_180, %c0_181] : memref<16x32x64xbf16, #tpu.memory_space<vmem>>, vector<1x32x64xbf16>
    %187 = vector.shape_cast %186 : vector<1x32x64xbf16> to vector<32x64xbf16>
    %cst_182 = arith.constant dense<0.000000e+00> : vector<9x64xf32>
    %188 = tpu.matmul %185, %187, %cst_182 {dimension_numbers = #tpu.dot_dimension_numbers<[1], [0], [0], [1], [0, 0, 1, 1], [], []>} : vector<9x32xbf16>, vector<32x64xbf16>, vector<9x64xf32> -> vector<9x64xf32>
    %189 = arith.addf %183, %188 : vector<9x64xf32>
    %c2_183 = arith.constant 2 : index
    %c0_184 = arith.constant 0 : index
    %c0_185 = arith.constant 0 : index
    %190 = vector.load %arg7[%c2_183, %c0_184, %c0_185] : memref<6x6x32xbf16, #tpu.memory_space<vmem>>, vector<3x3x32xbf16>
    %191 = vector.shape_cast %190 : vector<3x3x32xbf16> to vector<9x32xbf16>
    %c8_186 = arith.constant 8 : index
    %c0_187 = arith.constant 0 : index
    %c0_188 = arith.constant 0 : index
    %192 = vector.load %arg3[%c8_186, %c0_187, %c0_188] : memref<16x32x64xbf16, #tpu.memory_space<vmem>>, vector<1x32x64xbf16>
    %193 = vector.shape_cast %192 : vector<1x32x64xbf16> to vector<32x64xbf16>
    %cst_189 = arith.constant dense<0.000000e+00> : vector<9x64xf32>
    %194 = tpu.matmul %191, %193, %cst_189 {dimension_numbers = #tpu.dot_dimension_numbers<[1], [0], [0], [1], [0, 0, 1, 1], [], []>} : vector<9x32xbf16>, vector<32x64xbf16>, vector<9x64xf32> -> vector<9x64xf32>
    %195 = arith.addf %189, %194 : vector<9x64xf32>
    %c2_190 = arith.constant 2 : index
    %c1_191 = arith.constant 1 : index
    %c0_192 = arith.constant 0 : index
    %196 = vector.load %arg7[%c2_190, %c1_191, %c0_192] : memref<6x6x32xbf16, #tpu.memory_space<vmem>>, vector<3x3x32xbf16>
    %197 = vector.shape_cast %196 : vector<3x3x32xbf16> to vector<9x32xbf16>
    %c9_193 = arith.constant 9 : index
    %c0_194 = arith.constant 0 : index
    %c0_195 = arith.constant 0 : index
    %198 = vector.load %arg3[%c9_193, %c0_194, %c0_195] : memref<16x32x64xbf16, #tpu.memory_space<vmem>>, vector<1x32x64xbf16>
    %199 = vector.shape_cast %198 : vector<1x32x64xbf16> to vector<32x64xbf16>
    %cst_196 = arith.constant dense<0.000000e+00> : vector<9x64xf32>
    %200 = tpu.matmul %197, %199, %cst_196 {dimension_numbers = #tpu.dot_dimension_numbers<[1], [0], [0], [1], [0, 0, 1, 1], [], []>} : vector<9x32xbf16>, vector<32x64xbf16>, vector<9x64xf32> -> vector<9x64xf32>
    %201 = arith.addf %195, %200 : vector<9x64xf32>
    %c2_197 = arith.constant 2 : index
    %c2_198 = arith.constant 2 : index
    %c0_199 = arith.constant 0 : index
    %202 = vector.load %arg7[%c2_197, %c2_198, %c0_199] : memref<6x6x32xbf16, #tpu.memory_space<vmem>>, vector<3x3x32xbf16>
    %203 = vector.shape_cast %202 : vector<3x3x32xbf16> to vector<9x32xbf16>
    %c10_200 = arith.constant 10 : index
    %c0_201 = arith.constant 0 : index
    %c0_202 = arith.constant 0 : index
    %204 = vector.load %arg3[%c10_200, %c0_201, %c0_202] : memref<16x32x64xbf16, #tpu.memory_space<vmem>>, vector<1x32x64xbf16>
    %205 = vector.shape_cast %204 : vector<1x32x64xbf16> to vector<32x64xbf16>
    %cst_203 = arith.constant dense<0.000000e+00> : vector<9x64xf32>
    %206 = tpu.matmul %203, %205, %cst_203 {dimension_numbers = #tpu.dot_dimension_numbers<[1], [0], [0], [1], [0, 0, 1, 1], [], []>} : vector<9x32xbf16>, vector<32x64xbf16>, vector<9x64xf32> -> vector<9x64xf32>
    %207 = arith.addf %201, %206 : vector<9x64xf32>
    %c2_204 = arith.constant 2 : index
    %c3_205 = arith.constant 3 : index
    %c0_206 = arith.constant 0 : index
    %208 = vector.load %arg7[%c2_204, %c3_205, %c0_206] : memref<6x6x32xbf16, #tpu.memory_space<vmem>>, vector<3x3x32xbf16>
    %209 = vector.shape_cast %208 : vector<3x3x32xbf16> to vector<9x32xbf16>
    %c11_207 = arith.constant 11 : index
    %c0_208 = arith.constant 0 : index
    %c0_209 = arith.constant 0 : index
    %210 = vector.load %arg3[%c11_207, %c0_208, %c0_209] : memref<16x32x64xbf16, #tpu.memory_space<vmem>>, vector<1x32x64xbf16>
    %211 = vector.shape_cast %210 : vector<1x32x64xbf16> to vector<32x64xbf16>
    %cst_210 = arith.constant dense<0.000000e+00> : vector<9x64xf32>
    %212 = tpu.matmul %209, %211, %cst_210 {dimension_numbers = #tpu.dot_dimension_numbers<[1], [0], [0], [1], [0, 0, 1, 1], [], []>} : vector<9x32xbf16>, vector<32x64xbf16>, vector<9x64xf32> -> vector<9x64xf32>
    %213 = arith.addf %207, %212 : vector<9x64xf32>
    %c3_211 = arith.constant 3 : index
    %c0_212 = arith.constant 0 : index
    %c0_213 = arith.constant 0 : index
    %214 = vector.load %arg7[%c3_211, %c0_212, %c0_213] : memref<6x6x32xbf16, #tpu.memory_space<vmem>>, vector<3x3x32xbf16>
    %215 = vector.shape_cast %214 : vector<3x3x32xbf16> to vector<9x32xbf16>
    %c12_214 = arith.constant 12 : index
    %c0_215 = arith.constant 0 : index
    %c0_216 = arith.constant 0 : index
    %216 = vector.load %arg3[%c12_214, %c0_215, %c0_216] : memref<16x32x64xbf16, #tpu.memory_space<vmem>>, vector<1x32x64xbf16>
    %217 = vector.shape_cast %216 : vector<1x32x64xbf16> to vector<32x64xbf16>
    %cst_217 = arith.constant dense<0.000000e+00> : vector<9x64xf32>
    %218 = tpu.matmul %215, %217, %cst_217 {dimension_numbers = #tpu.dot_dimension_numbers<[1], [0], [0], [1], [0, 0, 1, 1], [], []>} : vector<9x32xbf16>, vector<32x64xbf16>, vector<9x64xf32> -> vector<9x64xf32>
    %219 = arith.addf %213, %218 : vector<9x64xf32>
    %c3_218 = arith.constant 3 : index
    %c1_219 = arith.constant 1 : index
    %c0_220 = arith.constant 0 : index
    %220 = vector.load %arg7[%c3_218, %c1_219, %c0_220] : memref<6x6x32xbf16, #tpu.memory_space<vmem>>, vector<3x3x32xbf16>
    %221 = vector.shape_cast %220 : vector<3x3x32xbf16> to vector<9x32xbf16>
    %c13_221 = arith.constant 13 : index
    %c0_222 = arith.constant 0 : index
    %c0_223 = arith.constant 0 : index
    %222 = vector.load %arg3[%c13_221, %c0_222, %c0_223] : memref<16x32x64xbf16, #tpu.memory_space<vmem>>, vector<1x32x64xbf16>
    %223 = vector.shape_cast %222 : vector<1x32x64xbf16> to vector<32x64xbf16>
    %cst_224 = arith.constant dense<0.000000e+00> : vector<9x64xf32>
    %224 = tpu.matmul %221, %223, %cst_224 {dimension_numbers = #tpu.dot_dimension_numbers<[1], [0], [0], [1], [0, 0, 1, 1], [], []>} : vector<9x32xbf16>, vector<32x64xbf16>, vector<9x64xf32> -> vector<9x64xf32>
    %225 = arith.addf %219, %224 : vector<9x64xf32>
    %c3_225 = arith.constant 3 : index
    %c2_226 = arith.constant 2 : index
    %c0_227 = arith.constant 0 : index
    %226 = vector.load %arg7[%c3_225, %c2_226, %c0_227] : memref<6x6x32xbf16, #tpu.memory_space<vmem>>, vector<3x3x32xbf16>
    %227 = vector.shape_cast %226 : vector<3x3x32xbf16> to vector<9x32xbf16>
    %c14_228 = arith.constant 14 : index
    %c0_229 = arith.constant 0 : index
    %c0_230 = arith.constant 0 : index
    %228 = vector.load %arg3[%c14_228, %c0_229, %c0_230] : memref<16x32x64xbf16, #tpu.memory_space<vmem>>, vector<1x32x64xbf16>
    %229 = vector.shape_cast %228 : vector<1x32x64xbf16> to vector<32x64xbf16>
    %cst_231 = arith.constant dense<0.000000e+00> : vector<9x64xf32>
    %230 = tpu.matmul %227, %229, %cst_231 {dimension_numbers = #tpu.dot_dimension_numbers<[1], [0], [0], [1], [0, 0, 1, 1], [], []>} : vector<9x32xbf16>, vector<32x64xbf16>, vector<9x64xf32> -> vector<9x64xf32>
    %231 = arith.addf %225, %230 : vector<9x64xf32>
    %c3_232 = arith.constant 3 : index
    %c3_233 = arith.constant 3 : index
    %c0_234 = arith.constant 0 : index
    %232 = vector.load %arg7[%c3_232, %c3_233, %c0_234] : memref<6x6x32xbf16, #tpu.memory_space<vmem>>, vector<3x3x32xbf16>
    %233 = vector.shape_cast %232 : vector<3x3x32xbf16> to vector<9x32xbf16>
    %c15_235 = arith.constant 15 : index
    %c0_236 = arith.constant 0 : index
    %c0_237 = arith.constant 0 : index
    %234 = vector.load %arg3[%c15_235, %c0_236, %c0_237] : memref<16x32x64xbf16, #tpu.memory_space<vmem>>, vector<1x32x64xbf16>
    %235 = vector.shape_cast %234 : vector<1x32x64xbf16> to vector<32x64xbf16>
    %cst_238 = arith.constant dense<0.000000e+00> : vector<9x64xf32>
    %236 = tpu.matmul %233, %235, %cst_238 {dimension_numbers = #tpu.dot_dimension_numbers<[1], [0], [0], [1], [0, 0, 1, 1], [], []>} : vector<9x32xbf16>, vector<32x64xbf16>, vector<9x64xf32> -> vector<9x64xf32>
    %237 = arith.addf %231, %236 : vector<9x64xf32>
    %cst_239 = arith.constant dense<0.000000e+00> : vector<64xf32>
    %238 = vector.multi_reduction <add>, %237, %cst_239 [0] : vector<9x64xf32> to vector<64xf32>
    %239 = vector.shape_cast %238 : vector<64xf32> to vector<1x64xf32>
    %240 = arith.mulf %237, %237 : vector<9x64xf32>
    %cst_240 = arith.constant dense<0.000000e+00> : vector<64xf32>
    %241 = vector.multi_reduction <add>, %240, %cst_240 [0] : vector<9x64xf32> to vector<64xf32>
    %242 = vector.shape_cast %241 : vector<64xf32> to vector<1x64xf32>
    %cst_241 = arith.constant 0.111111112 : f32
    %243 = vector.broadcast %cst_241 : f32 to vector<1x64xf32>
    %244 = arith.mulf %239, %243 : vector<1x64xf32>
    %cst_242 = arith.constant 0.111111112 : f32
    %245 = vector.broadcast %cst_242 : f32 to vector<1x64xf32>
    %246 = arith.mulf %242, %245 : vector<1x64xf32>
    %247 = arith.mulf %244, %244 : vector<1x64xf32>
    %248 = arith.subf %246, %247 : vector<1x64xf32>
    %249 = vector.broadcast %244 : vector<1x64xf32> to vector<9x64xf32>
    %250 = arith.subf %237, %249 : vector<9x64xf32>
    %cst_243 = arith.constant 9.99999974E-6 : f32
    %251 = vector.broadcast %cst_243 : f32 to vector<1x64xf32>
    %252 = arith.addf %248, %251 : vector<1x64xf32>
    %253 = math.rsqrt %252 : vector<1x64xf32>
    %254 = vector.broadcast %253 : vector<1x64xf32> to vector<9x64xf32>
    %255 = arith.mulf %250, %254 : vector<9x64xf32>
    %cst_244 = arith.constant 0.000000e+00 : f32
    %256 = vector.broadcast %cst_244 : f32 to vector<9x64xf32>
    %257 = arith.cmpf oge, %255, %256 : vector<9x64xf32>
    %cst_245 = arith.constant 2.000000e-01 : f32
    %258 = vector.broadcast %cst_245 : f32 to vector<9x64xf32>
    %259 = arith.mulf %258, %255 : vector<9x64xf32>
    %260 = arith.select %257, %255, %259 : vector<9x64xi1>, vector<9x64xf32>
    %261 = arith.truncf %260 : vector<9x64xf32> to vector<9x64xbf16>
    %cst_246 = arith.constant 0.000000e+00 : bf16
    %262 = vector.broadcast %cst_246 : bf16 to vector<5x5x64xbf16>
    %c0_247 = arith.constant 0 : index
    %c0_248 = arith.constant 0 : index
    %c0_249 = arith.constant 0 : index
    %263 = vector.load %arg8[%c0_247, %c0_248, %c0_249] : memref<5x5x64xbf16, #tpu.memory_space<vmem>>, vector<5x5x64xbf16>
    tpu.vector_store %arg8[%c0_247, %c0_248, %c0_249], %262 {strides = array<i32>} : memref<5x5x64xbf16, #tpu.memory_space<vmem>>, vector<5x5x64xbf16>,
    %264 = vector.shape_cast %261 : vector<9x64xbf16> to vector<3x3x64xbf16>
    %c1_250 = arith.constant 1 : index
    %c1_251 = arith.constant 1 : index
    %c0_252 = arith.constant 0 : index
    %265 = vector.load %arg8[%c1_250, %c1_251, %c0_252] : memref<5x5x64xbf16, #tpu.memory_space<vmem>>, vector<3x3x64xbf16>
    tpu.vector_store %arg8[%c1_250, %c1_251, %c0_252], %264 {strides = array<i32>} : memref<5x5x64xbf16, #tpu.memory_space<vmem>>, vector<3x3x64xbf16>,
    %cst_253 = arith.constant 0.000000e+00 : f32
    %266 = vector.broadcast %cst_253 : f32 to vector<4x1xf32>
    %c0_254 = arith.constant 0 : index
    %c0_255 = arith.constant 0 : index
    %c0_256 = arith.constant 0 : index
    %267 = vector.load %arg8[%c0_254, %c0_255, %c0_256] : memref<5x5x64xbf16, #tpu.memory_space<vmem>>, vector<2x2x64xbf16>
    %268 = vector.shape_cast %267 : vector<2x2x64xbf16> to vector<4x64xbf16>
    %c0_257 = arith.constant 0 : index
    %c0_258 = arith.constant 0 : index
    %c0_259 = arith.constant 0 : index
    %269 = vector.load %arg4[%c0_257, %c0_258, %c0_259] : memref<16x64x1xbf16, #tpu.memory_space<vmem>>, vector<1x64x1xbf16>
    %270 = vector.shape_cast %269 : vector<1x64x1xbf16> to vector<64x1xbf16>
    %cst_260 = arith.constant dense<0.000000e+00> : vector<4x1xf32>
    %271 = tpu.matmul %268, %270, %cst_260 {dimension_numbers = #tpu.dot_dimension_numbers<[1], [0], [0], [1], [0, 0, 1, 1], [], []>} : vector<4x64xbf16>, vector<64x1xbf16>, vector<4x1xf32> -> vector<4x1xf32>
    %272 = arith.addf %266, %271 : vector<4x1xf32>
    %c0_261 = arith.constant 0 : index
    %c1_262 = arith.constant 1 : index
    %c0_263 = arith.constant 0 : index
    %273 = vector.load %arg8[%c0_261, %c1_262, %c0_263] : memref<5x5x64xbf16, #tpu.memory_space<vmem>>, vector<2x2x64xbf16>
    %274 = vector.shape_cast %273 : vector<2x2x64xbf16> to vector<4x64xbf16>
    %c1_264 = arith.constant 1 : index
    %c0_265 = arith.constant 0 : index
    %c0_266 = arith.constant 0 : index
    %275 = vector.load %arg4[%c1_264, %c0_265, %c0_266] : memref<16x64x1xbf16, #tpu.memory_space<vmem>>, vector<1x64x1xbf16>
    %276 = vector.shape_cast %275 : vector<1x64x1xbf16> to vector<64x1xbf16>
    %cst_267 = arith.constant dense<0.000000e+00> : vector<4x1xf32>
    %277 = tpu.matmul %274, %276, %cst_267 {dimension_numbers = #tpu.dot_dimension_numbers<[1], [0], [0], [1], [0, 0, 1, 1], [], []>} : vector<4x64xbf16>, vector<64x1xbf16>, vector<4x1xf32> -> vector<4x1xf32>
    %278 = arith.addf %272, %277 : vector<4x1xf32>
    %c0_268 = arith.constant 0 : index
    %c2_269 = arith.constant 2 : index
    %c0_270 = arith.constant 0 : index
    %279 = vector.load %arg8[%c0_268, %c2_269, %c0_270] : memref<5x5x64xbf16, #tpu.memory_space<vmem>>, vector<2x2x64xbf16>
    %280 = vector.shape_cast %279 : vector<2x2x64xbf16> to vector<4x64xbf16>
    %c2_271 = arith.constant 2 : index
    %c0_272 = arith.constant 0 : index
    %c0_273 = arith.constant 0 : index
    %281 = vector.load %arg4[%c2_271, %c0_272, %c0_273] : memref<16x64x1xbf16, #tpu.memory_space<vmem>>, vector<1x64x1xbf16>
    %282 = vector.shape_cast %281 : vector<1x64x1xbf16> to vector<64x1xbf16>
    %cst_274 = arith.constant dense<0.000000e+00> : vector<4x1xf32>
    %283 = tpu.matmul %280, %282, %cst_274 {dimension_numbers = #tpu.dot_dimension_numbers<[1], [0], [0], [1], [0, 0, 1, 1], [], []>} : vector<4x64xbf16>, vector<64x1xbf16>, vector<4x1xf32> -> vector<4x1xf32>
    %284 = arith.addf %278, %283 : vector<4x1xf32>
    %c0_275 = arith.constant 0 : index
    %c3_276 = arith.constant 3 : index
    %c0_277 = arith.constant 0 : index
    %285 = vector.load %arg8[%c0_275, %c3_276, %c0_277] : memref<5x5x64xbf16, #tpu.memory_space<vmem>>, vector<2x2x64xbf16>
    %286 = vector.shape_cast %285 : vector<2x2x64xbf16> to vector<4x64xbf16>
    %c3_278 = arith.constant 3 : index
    %c0_279 = arith.constant 0 : index
    %c0_280 = arith.constant 0 : index
    %287 = vector.load %arg4[%c3_278, %c0_279, %c0_280] : memref<16x64x1xbf16, #tpu.memory_space<vmem>>, vector<1x64x1xbf16>
    %288 = vector.shape_cast %287 : vector<1x64x1xbf16> to vector<64x1xbf16>
    %cst_281 = arith.constant dense<0.000000e+00> : vector<4x1xf32>
    %289 = tpu.matmul %286, %288, %cst_281 {dimension_numbers = #tpu.dot_dimension_numbers<[1], [0], [0], [1], [0, 0, 1, 1], [], []>} : vector<4x64xbf16>, vector<64x1xbf16>, vector<4x1xf32> -> vector<4x1xf32>
    %290 = arith.addf %284, %289 : vector<4x1xf32>
    %c1_282 = arith.constant 1 : index
    %c0_283 = arith.constant 0 : index
    %c0_284 = arith.constant 0 : index
    %291 = vector.load %arg8[%c1_282, %c0_283, %c0_284] : memref<5x5x64xbf16, #tpu.memory_space<vmem>>, vector<2x2x64xbf16>
    %292 = vector.shape_cast %291 : vector<2x2x64xbf16> to vector<4x64xbf16>
    %c4_285 = arith.constant 4 : index
    %c0_286 = arith.constant 0 : index
    %c0_287 = arith.constant 0 : index
    %293 = vector.load %arg4[%c4_285, %c0_286, %c0_287] : memref<16x64x1xbf16, #tpu.memory_space<vmem>>, vector<1x64x1xbf16>
    %294 = vector.shape_cast %293 : vector<1x64x1xbf16> to vector<64x1xbf16>
    %cst_288 = arith.constant dense<0.000000e+00> : vector<4x1xf32>
    %295 = tpu.matmul %292, %294, %cst_288 {dimension_numbers = #tpu.dot_dimension_numbers<[1], [0], [0], [1], [0, 0, 1, 1], [], []>} : vector<4x64xbf16>, vector<64x1xbf16>, vector<4x1xf32> -> vector<4x1xf32>
    %296 = arith.addf %290, %295 : vector<4x1xf32>
    %c1_289 = arith.constant 1 : index
    %c1_290 = arith.constant 1 : index
    %c0_291 = arith.constant 0 : index
    %297 = vector.load %arg8[%c1_289, %c1_290, %c0_291] : memref<5x5x64xbf16, #tpu.memory_space<vmem>>, vector<2x2x64xbf16>
    %298 = vector.shape_cast %297 : vector<2x2x64xbf16> to vector<4x64xbf16>
    %c5_292 = arith.constant 5 : index
    %c0_293 = arith.constant 0 : index
    %c0_294 = arith.constant 0 : index
    %299 = vector.load %arg4[%c5_292, %c0_293, %c0_294] : memref<16x64x1xbf16, #tpu.memory_space<vmem>>, vector<1x64x1xbf16>
    %300 = vector.shape_cast %299 : vector<1x64x1xbf16> to vector<64x1xbf16>
    %cst_295 = arith.constant dense<0.000000e+00> : vector<4x1xf32>
    %301 = tpu.matmul %298, %300, %cst_295 {dimension_numbers = #tpu.dot_dimension_numbers<[1], [0], [0], [1], [0, 0, 1, 1], [], []>} : vector<4x64xbf16>, vector<64x1xbf16>, vector<4x1xf32> -> vector<4x1xf32>
    %302 = arith.addf %296, %301 : vector<4x1xf32>
    %c1_296 = arith.constant 1 : index
    %c2_297 = arith.constant 2 : index
    %c0_298 = arith.constant 0 : index
    %303 = vector.load %arg8[%c1_296, %c2_297, %c0_298] : memref<5x5x64xbf16, #tpu.memory_space<vmem>>, vector<2x2x64xbf16>
    %304 = vector.shape_cast %303 : vector<2x2x64xbf16> to vector<4x64xbf16>
    %c6_299 = arith.constant 6 : index
    %c0_300 = arith.constant 0 : index
    %c0_301 = arith.constant 0 : index
    %305 = vector.load %arg4[%c6_299, %c0_300, %c0_301] : memref<16x64x1xbf16, #tpu.memory_space<vmem>>, vector<1x64x1xbf16>
    %306 = vector.shape_cast %305 : vector<1x64x1xbf16> to vector<64x1xbf16>
    %cst_302 = arith.constant dense<0.000000e+00> : vector<4x1xf32>
    %307 = tpu.matmul %304, %306, %cst_302 {dimension_numbers = #tpu.dot_dimension_numbers<[1], [0], [0], [1], [0, 0, 1, 1], [], []>} : vector<4x64xbf16>, vector<64x1xbf16>, vector<4x1xf32> -> vector<4x1xf32>
    %308 = arith.addf %302, %307 : vector<4x1xf32>
    %c1_303 = arith.constant 1 : index
    %c3_304 = arith.constant 3 : index
    %c0_305 = arith.constant 0 : index
    %309 = vector.load %arg8[%c1_303, %c3_304, %c0_305] : memref<5x5x64xbf16, #tpu.memory_space<vmem>>, vector<2x2x64xbf16>
    %310 = vector.shape_cast %309 : vector<2x2x64xbf16> to vector<4x64xbf16>
    %c7_306 = arith.constant 7 : index
    %c0_307 = arith.constant 0 : index
    %c0_308 = arith.constant 0 : index
    %311 = vector.load %arg4[%c7_306, %c0_307, %c0_308] : memref<16x64x1xbf16, #tpu.memory_space<vmem>>, vector<1x64x1xbf16>
    %312 = vector.shape_cast %311 : vector<1x64x1xbf16> to vector<64x1xbf16>
    %cst_309 = arith.constant dense<0.000000e+00> : vector<4x1xf32>
    %313 = tpu.matmul %310, %312, %cst_309 {dimension_numbers = #tpu.dot_dimension_numbers<[1], [0], [0], [1], [0, 0, 1, 1], [], []>} : vector<4x64xbf16>, vector<64x1xbf16>, vector<4x1xf32> -> vector<4x1xf32>
    %314 = arith.addf %308, %313 : vector<4x1xf32>
    %c2_310 = arith.constant 2 : index
    %c0_311 = arith.constant 0 : index
    %c0_312 = arith.constant 0 : index
    %315 = vector.load %arg8[%c2_310, %c0_311, %c0_312] : memref<5x5x64xbf16, #tpu.memory_space<vmem>>, vector<2x2x64xbf16>
    %316 = vector.shape_cast %315 : vector<2x2x64xbf16> to vector<4x64xbf16>
    %c8_313 = arith.constant 8 : index
    %c0_314 = arith.constant 0 : index
    %c0_315 = arith.constant 0 : index
    %317 = vector.load %arg4[%c8_313, %c0_314, %c0_315] : memref<16x64x1xbf16, #tpu.memory_space<vmem>>, vector<1x64x1xbf16>
    %318 = vector.shape_cast %317 : vector<1x64x1xbf16> to vector<64x1xbf16>
    %cst_316 = arith.constant dense<0.000000e+00> : vector<4x1xf32>
    %319 = tpu.matmul %316, %318, %cst_316 {dimension_numbers = #tpu.dot_dimension_numbers<[1], [0], [0], [1], [0, 0, 1, 1], [], []>} : vector<4x64xbf16>, vector<64x1xbf16>, vector<4x1xf32> -> vector<4x1xf32>
    %320 = arith.addf %314, %319 : vector<4x1xf32>
    %c2_317 = arith.constant 2 : index
    %c1_318 = arith.constant 1 : index
    %c0_319 = arith.constant 0 : index
    %321 = vector.load %arg8[%c2_317, %c1_318, %c0_319] : memref<5x5x64xbf16, #tpu.memory_space<vmem>>, vector<2x2x64xbf16>
    %322 = vector.shape_cast %321 : vector<2x2x64xbf16> to vector<4x64xbf16>
    %c9_320 = arith.constant 9 : index
    %c0_321 = arith.constant 0 : index
    %c0_322 = arith.constant 0 : index
    %323 = vector.load %arg4[%c9_320, %c0_321, %c0_322] : memref<16x64x1xbf16, #tpu.memory_space<vmem>>, vector<1x64x1xbf16>
    %324 = vector.shape_cast %323 : vector<1x64x1xbf16> to vector<64x1xbf16>
    %cst_323 = arith.constant dense<0.000000e+00> : vector<4x1xf32>
    %325 = tpu.matmul %322, %324, %cst_323 {dimension_numbers = #tpu.dot_dimension_numbers<[1], [0], [0], [1], [0, 0, 1, 1], [], []>} : vector<4x64xbf16>, vector<64x1xbf16>, vector<4x1xf32> -> vector<4x1xf32>
    %326 = arith.addf %320, %325 : vector<4x1xf32>
    %c2_324 = arith.constant 2 : index
    %c2_325 = arith.constant 2 : index
    %c0_326 = arith.constant 0 : index
    %327 = vector.load %arg8[%c2_324, %c2_325, %c0_326] : memref<5x5x64xbf16, #tpu.memory_space<vmem>>, vector<2x2x64xbf16>
    %328 = vector.shape_cast %327 : vector<2x2x64xbf16> to vector<4x64xbf16>
    %c10_327 = arith.constant 10 : index
    %c0_328 = arith.constant 0 : index
    %c0_329 = arith.constant 0 : index
    %329 = vector.load %arg4[%c10_327, %c0_328, %c0_329] : memref<16x64x1xbf16, #tpu.memory_space<vmem>>, vector<1x64x1xbf16>
    %330 = vector.shape_cast %329 : vector<1x64x1xbf16> to vector<64x1xbf16>
    %cst_330 = arith.constant dense<0.000000e+00> : vector<4x1xf32>
    %331 = tpu.matmul %328, %330, %cst_330 {dimension_numbers = #tpu.dot_dimension_numbers<[1], [0], [0], [1], [0, 0, 1, 1], [], []>} : vector<4x64xbf16>, vector<64x1xbf16>, vector<4x1xf32> -> vector<4x1xf32>
    %332 = arith.addf %326, %331 : vector<4x1xf32>
    %c2_331 = arith.constant 2 : index
    %c3_332 = arith.constant 3 : index
    %c0_333 = arith.constant 0 : index
    %333 = vector.load %arg8[%c2_331, %c3_332, %c0_333] : memref<5x5x64xbf16, #tpu.memory_space<vmem>>, vector<2x2x64xbf16>
    %334 = vector.shape_cast %333 : vector<2x2x64xbf16> to vector<4x64xbf16>
    %c11_334 = arith.constant 11 : index
    %c0_335 = arith.constant 0 : index
    %c0_336 = arith.constant 0 : index
    %335 = vector.load %arg4[%c11_334, %c0_335, %c0_336] : memref<16x64x1xbf16, #tpu.memory_space<vmem>>, vector<1x64x1xbf16>
    %336 = vector.shape_cast %335 : vector<1x64x1xbf16> to vector<64x1xbf16>
    %cst_337 = arith.constant dense<0.000000e+00> : vector<4x1xf32>
    %337 = tpu.matmul %334, %336, %cst_337 {dimension_numbers = #tpu.dot_dimension_numbers<[1], [0], [0], [1], [0, 0, 1, 1], [], []>} : vector<4x64xbf16>, vector<64x1xbf16>, vector<4x1xf32> -> vector<4x1xf32>
    %338 = arith.addf %332, %337 : vector<4x1xf32>
    %c3_338 = arith.constant 3 : index
    %c0_339 = arith.constant 0 : index
    %c0_340 = arith.constant 0 : index
    %339 = vector.load %arg8[%c3_338, %c0_339, %c0_340] : memref<5x5x64xbf16, #tpu.memory_space<vmem>>, vector<2x2x64xbf16>
    %340 = vector.shape_cast %339 : vector<2x2x64xbf16> to vector<4x64xbf16>
    %c12_341 = arith.constant 12 : index
    %c0_342 = arith.constant 0 : index
    %c0_343 = arith.constant 0 : index
    %341 = vector.load %arg4[%c12_341, %c0_342, %c0_343] : memref<16x64x1xbf16, #tpu.memory_space<vmem>>, vector<1x64x1xbf16>
    %342 = vector.shape_cast %341 : vector<1x64x1xbf16> to vector<64x1xbf16>
    %cst_344 = arith.constant dense<0.000000e+00> : vector<4x1xf32>
    %343 = tpu.matmul %340, %342, %cst_344 {dimension_numbers = #tpu.dot_dimension_numbers<[1], [0], [0], [1], [0, 0, 1, 1], [], []>} : vector<4x64xbf16>, vector<64x1xbf16>, vector<4x1xf32> -> vector<4x1xf32>
    %344 = arith.addf %338, %343 : vector<4x1xf32>
    %c3_345 = arith.constant 3 : index
    %c1_346 = arith.constant 1 : index
    %c0_347 = arith.constant 0 : index
    %345 = vector.load %arg8[%c3_345, %c1_346, %c0_347] : memref<5x5x64xbf16, #tpu.memory_space<vmem>>, vector<2x2x64xbf16>
    %346 = vector.shape_cast %345 : vector<2x2x64xbf16> to vector<4x64xbf16>
    %c13_348 = arith.constant 13 : index
    %c0_349 = arith.constant 0 : index
    %c0_350 = arith.constant 0 : index
    %347 = vector.load %arg4[%c13_348, %c0_349, %c0_350] : memref<16x64x1xbf16, #tpu.memory_space<vmem>>, vector<1x64x1xbf16>
    %348 = vector.shape_cast %347 : vector<1x64x1xbf16> to vector<64x1xbf16>
    %cst_351 = arith.constant dense<0.000000e+00> : vector<4x1xf32>
    %349 = tpu.matmul %346, %348, %cst_351 {dimension_numbers = #tpu.dot_dimension_numbers<[1], [0], [0], [1], [0, 0, 1, 1], [], []>} : vector<4x64xbf16>, vector<64x1xbf16>, vector<4x1xf32> -> vector<4x1xf32>
    %350 = arith.addf %344, %349 : vector<4x1xf32>
    %c3_352 = arith.constant 3 : index
    %c2_353 = arith.constant 2 : index
    %c0_354 = arith.constant 0 : index
    %351 = vector.load %arg8[%c3_352, %c2_353, %c0_354] : memref<5x5x64xbf16, #tpu.memory_space<vmem>>, vector<2x2x64xbf16>
    %352 = vector.shape_cast %351 : vector<2x2x64xbf16> to vector<4x64xbf16>
    %c14_355 = arith.constant 14 : index
    %c0_356 = arith.constant 0 : index
    %c0_357 = arith.constant 0 : index
    %353 = vector.load %arg4[%c14_355, %c0_356, %c0_357] : memref<16x64x1xbf16, #tpu.memory_space<vmem>>, vector<1x64x1xbf16>
    %354 = vector.shape_cast %353 : vector<1x64x1xbf16> to vector<64x1xbf16>
    %cst_358 = arith.constant dense<0.000000e+00> : vector<4x1xf32>
    %355 = tpu.matmul %352, %354, %cst_358 {dimension_numbers = #tpu.dot_dimension_numbers<[1], [0], [0], [1], [0, 0, 1, 1], [], []>} : vector<4x64xbf16>, vector<64x1xbf16>, vector<4x1xf32> -> vector<4x1xf32>
    %356 = arith.addf %350, %355 : vector<4x1xf32>
    %c3_359 = arith.constant 3 : index
    %c3_360 = arith.constant 3 : index
    %c0_361 = arith.constant 0 : index
    %357 = vector.load %arg8[%c3_359, %c3_360, %c0_361] : memref<5x5x64xbf16, #tpu.memory_space<vmem>>, vector<2x2x64xbf16>
    %358 = vector.shape_cast %357 : vector<2x2x64xbf16> to vector<4x64xbf16>
    %c15_362 = arith.constant 15 : index
    %c0_363 = arith.constant 0 : index
    %c0_364 = arith.constant 0 : index
    %359 = vector.load %arg4[%c15_362, %c0_363, %c0_364] : memref<16x64x1xbf16, #tpu.memory_space<vmem>>, vector<1x64x1xbf16>
    %360 = vector.shape_cast %359 : vector<1x64x1xbf16> to vector<64x1xbf16>
    %cst_365 = arith.constant dense<0.000000e+00> : vector<4x1xf32>
    %361 = tpu.matmul %358, %360, %cst_365 {dimension_numbers = #tpu.dot_dimension_numbers<[1], [0], [0], [1], [0, 0, 1, 1], [], []>} : vector<4x64xbf16>, vector<64x1xbf16>, vector<4x1xf32> -> vector<4x1xf32>
    %362 = arith.addf %356, %361 : vector<4x1xf32>
    %c0_366 = arith.constant 0 : index
    %c0_367 = arith.constant 0 : index
    %363 = vector.load %arg5[%c0_366, %c0_367] : memref<1x1xf32, #tpu.memory_space<vmem>>, vector<1x1xf32>
    %364 = vector.broadcast %363 : vector<1x1xf32> to vector<4x1xf32>
    %365 = arith.addf %362, %364 : vector<4x1xf32>
    %cst_368 = arith.constant 0.000000e+00 : f32
    %366 = vector.broadcast %cst_368 : f32 to vector<4x1xf32>
    %367 = arith.subf %366, %365 : vector<4x1xf32>
    %368 = math.exp %367 : vector<4x1xf32>
    %cst_369 = arith.constant 1.000000e+00 : f32
    %369 = vector.broadcast %cst_369 : f32 to vector<4x1xf32>
    %370 = arith.addf %369, %368 : vector<4x1xf32>
    %371 = tpu.reciprocal %370 {approx = true} : vector<4x1xf32> -> vector<4x1xf32>
    %372 = tpu.transpose %371, [1, 0] : vector<4x1xf32> -> vector<1x4xf32>
    %c0_370 = arith.constant 0 : index
    %c0_371 = arith.constant 0 : index
    %c0_372 = arith.constant 0 : index
    %373 = vector.load %arg6[%c0_370, %c0_371, %c0_372] : memref<1x1x4xf32, #tpu.memory_space<vmem>>, vector<1x1x4xf32>
    %374 = vector.shape_cast %373 : vector<1x1x4xf32> to vector<1x4xf32>
    %375 = vector.shape_cast %372 : vector<1x4xf32> to vector<1x1x4xf32>
    tpu.vector_store %arg6[%c0_370, %c0_371, %c0_372], %375 {strides = array<i32>} : memref<1x1x4xf32, #tpu.memory_space<vmem>>, vector<1x1x4xf32>,
    return
  }
  func.func @transform_0(%arg0: i32) -> (i32, i32, i32, i32) {
    %c0_i32 = arith.constant 0 : i32
    %c0_i32_0 = arith.constant 0 : i32
    %c0_i32_1 = arith.constant 0 : i32
    %c0_i32_2 = arith.constant 0 : i32
    return %arg0, %c0_i32, %c0_i32_0, %c0_i32_1 : i32, i32, i32, i32
  }
  func.func @transform_1(%arg0: i32) -> (i32, i32, i32) {
    %c0_i32 = arith.constant 0 : i32
    %c0_i32_0 = arith.constant 0 : i32
    %c0_i32_1 = arith.constant 0 : i32
    %c0_i32_2 = arith.constant 0 : i32
    return %c0_i32, %c0_i32_0, %c0_i32_1 : i32, i32, i32
  }
  func.func @transform_2(%arg0: i32) -> (i32, i32, i32) {
    %c0_i32 = arith.constant 0 : i32
    %c0_i32_0 = arith.constant 0 : i32
    %c0_i32_1 = arith.constant 0 : i32
    %c0_i32_2 = arith.constant 0 : i32
    return %c0_i32, %c0_i32_0, %c0_i32_1 : i32, i32, i32
  }
  func.func @transform_3(%arg0: i32) -> (i32, i32, i32) {
    %c0_i32 = arith.constant 0 : i32
    %c0_i32_0 = arith.constant 0 : i32
    %c0_i32_1 = arith.constant 0 : i32
    %c0_i32_2 = arith.constant 0 : i32
    return %c0_i32, %c0_i32_0, %c0_i32_1 : i32, i32, i32
  }
  func.func @transform_4(%arg0: i32) -> (i32, i32) {
    %c0_i32 = arith.constant 0 : i32
    %c0_i32_0 = arith.constant 0 : i32
    %c0_i32_1 = arith.constant 0 : i32
    return %c0_i32, %c0_i32_0 : i32, i32
  }
  func.func @transform_5(%arg0: i32) -> (i32, i32, i32) {
    %c0_i32 = arith.constant 0 : i32
    %c0_i32_0 = arith.constant 0 : i32
    %c0_i32_1 = arith.constant 0 : i32
    return %arg0, %c0_i32, %c0_i32_0 : i32, i32, i32
  }
}

</mosaic_0001>

<bundles_post_ra>
// kernel: discriminator_forward.4
= control target key start
LH: loop header
LB: loop body
LE: loop exit
PB: predicated region body
PF: predicated region fallthrough
CT: control target
= control target key end

     0   :  { %s3903_s9 = smov 0   ;;  %s4501_s0 = inlined_call_operand.vmem [shape: bf16[8,9,9,8], index: 0, kind: input, shape index: {}]   ;;  %s4502_s1 = inlined_call_operand.vmem [shape: bf16[16,8,16], index: 1, kind: input, shape index: {}]   ;;  %s4503_s2 = inlined_call_operand.vmem [shape: bf16[2,64,16], index: 2, kind: output, shape index: {}]  }
   0x1 LB: > { %s3909_s10 = sadd.s32 4294967295, %s3886_s9   ;;  %p3126_p0 = scmp.ge.s32.totalorder %s3886_s9, 1  ;;  %s3886_s9 = sphi %s3903_s9, %s12_s9  }
   0x2   : > { %p114_p1 = scmp.lt.s32.totalorder %s3886_s9, 3 }
   0x4   : > { %p115_p2 = pnand %p3126_p0, %p114_p1 }
   0x5   : > { %v3139_v0 = vld [vmem:[%s4502_s1 + $0x4] sm:$0xf] (!%p115_p2)  ;;  %vm203_vm0 = vcmask (!%p115_p2), 1043456   ;;  %v3282_v1 = vld [vmem:[%s4502_s1 + $0x20] sm:$0xf] (!%p115_p2)  ;;  %s3127_s15 = sshll.u32 (!%p115_p2), %s3909_s10, 2 }
   0x6   : > { %118 = sbr.rel (%p115_p2) target bundleno = 454 (0x1c6), region = 28  ;;  %3821 = vmatprep.subr.msk.bf16.mxu1 (!%p115_p2), %vm203_vm0, %v3139_v0  ;;  %3829 = vmatprep.subr.msk.bf16.mxu0 (!%p115_p2), %vm203_vm0, %v3282_v1  ;;  %v205_v2 = vsel (!%p115_p2), %vm203_vm0, %v3139_v0, 0  ;;  %v1577_v3 = vsel (!%p115_p2), %vm203_vm0, %v3282_v1, 0  ;;  %p138_p3 = scmp.lt.s32.totalorder (!%p115_p2), %s3127_s15, 7  ;;  %v158_v4 = vld [vmem:[%s4502_s1] sm:$0xf] (!%p115_p2) }
   0x7   : > { %3542 = vmatpush3.bf16.msra.mxu1 (!%p115_p2), %v205_v2  ;;  %3622 = vmatpush3.bf16.msra.mxu0 (!%p115_p2), %v1577_v3  ;;  %v3299_v5 = vld [vmem:[%s4502_s1 + $0x24] sm:$0xf] (!%p115_p2)  ;;  %vm190_vm1 = vcmask (!%p115_p2), 64512   ;;  %v305_v6 = vsel (!%p115_p2), %vm203_vm0, %v158_v4, 0  ;;  %v3156_v10 = vld [vmem:[%s4502_s1 + $0x8] sm:$0xf] (!%p115_p2) }
   0x8   : > { %3822 = vmatprep.subr.msk.bf16.mxu1 (!%p115_p2), %vm203_vm0, %v158_v4  ;;  %3830 = vmatprep.subr.msk.bf16.mxu0 (!%p115_p2), %vm203_vm0, %v3299_v5  ;;  %v1696_v7 = vsel (!%p115_p2), %vm203_vm0, %v3299_v5, 0  ;;  %v3324_v13 = vld [vmem:[%s4502_s1 + $0x28] sm:$0xf] (!%p115_p2)  ;;  %v530_v16 = vsel (!%p115_p2), %vm203_vm0, %v3156_v10, 0  ;;  %v3181_v18 = vld [vmem:[%s4502_s1 + $0xc] sm:$0xf] (!%p115_p2) }
   0x9   : > { %v3968_v20 = vld [vmem:[%s4502_s1 + $0x2c] sm:$0xf] (!%p115_p2)  ;;  %v3973_v21 = vld [vmem:[%s4502_s1 + $0x10] sm:$0xf] (!%p115_p2)  ;;  %vm388_vm2 = vsmask.f32 (!%p115_p2), 3328 }
   0xa   : > { %vm389_vm3 = vsmask.f32 (!%p115_p2), 7440  ;;  %v1926_v24 = vsel (!%p115_p2), %vm203_vm0, %v3324_v13, 0  ;;  %v3980_v25 = vsel (!%p115_p2), %vm203_vm0, %v3181_v18, 0  ;;  %v3986_v26 = vsel (!%p115_p2), %vm203_vm0, %v3968_v20, 0  ;;  %p144_p4 = scmp.lt.s32.totalorder (!%p115_p2), %s3909_s10, 1 }
   0xb   : > { %v3990_v27 = vsel (!%p115_p2), %vm203_vm0, %v3973_v21, 0  ;;  %vm4011_vm4 = vmor (!%p115_p2), %vm388_vm2, %vm389_vm3  ;;  %vm2929_vm5 = vcmask (!%p115_p2), 130048   ;;  %vm3058_vm6 = vcmask (!%p115_p2), 125952  }
   0xd   : > { %s4507_s15 = smov (!%p138_p3, %s3127_s15), 7  ;;  %s4509_s10 = smov (!%p144_p4, %s3909_s10), 1 }
   0xe   : > { %s3837_s20 = smul.u32 72, %s4507_s15  ;;  %s3452_s22 = sshll.u32 %s4509_s10, 5 }
   0xf   : > { %s148_s10 = scalar_lea.vmem %s4503_s2, %s3452_s22 }
  0x10   : > { %s3935_s23 = scalar_lea.vmem %s4501_s0, %s3837_s20 }
  0x11   : > { %v3846_v8 = vld [vmem:[%s3935_s23 + $0x48] ss:$8 sps:$4 sm:$0xff]   ;;  %v3848_v11 = vld [vmem:[%s3935_s23 + $0x58] ss:$8 sps:$4 sm:$0xff]   ;;  %v373_v32 = vld [vmem:[%s3935_s23 + $0x4] sm:$0x1] }
  0x12   : > { %v3847_v9 = vld [vmem:[%s3935_s23 + $0x8] ss:$8 sps:$4 sm:$0xff]   ;;  %3543 = vmatprep.mubr.msk.bf16.mxu1 %vm190_vm1, %v3846_v8  ;;  %v3849_v12 = vld [vmem:[%s3935_s23 + $0x18] ss:$8 sps:$4 sm:$0xff]   ;;  %v375_v35 = vld [vmem:[%s3935_s23 + $0xc] sm:$0x1] }
  0x13   : > { %3623 = vmatprep.mubr.msk.bf16.mxu0 %vm190_vm1, %v3847_v9  ;;  %3544 = vmatmul.mubr.msk.bf16.vlgmr.msra.gmra.mrb[0].mxu1 %vm190_vm1, %v3848_v11  ;;  %v3850_v14 = vld [vmem:[%s3935_s23 + $0x68] ss:$8 sps:$4 sm:$0xff]   ;;  %v3852_v17 = vld [vmem:[%s3935_s23 + $0x78] ss:$8 sps:$4 sm:$0xff]   ;;  %v401_v38 = vshll.u32 %v373_v32, 16  ;;  %v415_v41 = vshll.u32 %v375_v35, 16 }
  0x14   : > { %3552 = vmatpush3.bf16.msra.mxu1 %v305_v6  ;;  %3624 = vmatmul.mubr.msk.bf16.vlgmr.msra.gmra.mrb[0].mxu0 %vm190_vm1, %v3849_v12  ;;  %v3851_v15 = vld [vmem:[%s3935_s23 + $0x28] ss:$8 sps:$4 sm:$0xff]   ;;  %v3853_v19 = vld [vmem:[%s3935_s23 + $0x38] ss:$8 sps:$4 sm:$0xff]   ;;  %v3309_v43 = vld [vmem:[%s3935_s23 + $0xc] sm:$0x1] }
  0x15   : > { %3632 = vmatpush3.bf16.msra.mxu0 %v1696_v7  ;;  %3547 = vmatprep.mubr.msk.bf16.mxu1 %vm190_vm1, %v3850_v14  ;;  %v3854_v22 = vld [vmem:[%s3935_s23] ss:$8 sps:$4 sm:$0xff]   ;;  %v3855_v23 = vld [vmem:[%s3935_s23 + $0x50] ss:$8 sps:$4 sm:$0xff]   ;;  %v403_v46 = vrot.slane %v401_v38, 5  ;;  %v417_v50 = vrot.slane %v415_v41, 5 }
  0x16   : > { %3627 = vmatprep.mubr.msk.bf16.mxu0 %vm190_vm1, %v3851_v15  ;;  %3823 = vmatprep.subr.msk.bf16.mxu1 %vm203_vm0, %v3156_v10  ;;  %v3856_v28 = vld [vmem:[%s3935_s23 + $0x10] ss:$8 sps:$4 sm:$0xff]   ;;  %v3857_v29 = vld [vmem:[%s3935_s23 + $0x60] ss:$8 sps:$4 sm:$0xff]   ;;  %v3311_v51 = vld [vmem:[%s3935_s23 + $0x14] sm:$0x1] }
  0x17   : > { %3831 = vmatprep.subr.msk.bf16.mxu0 %vm203_vm0, %v3324_v13  ;;  %v3858_v30 = vld [vmem:[%s3935_s23 + $0x20] ss:$8 sps:$4 sm:$0xff]   ;;  %v3859_v34 = vld [vmem:[%s3935_s23 + $0x70] ss:$8 sps:$4 sm:$0xff]   ;;  %v1797_v55 = vshll.u32 %v3309_v43, 16  ;;  %v1811_v63 = vshll.u32 %v3311_v51, 16 }
  0x18   : > { %v372_v31 = vld [vmem:[%s3935_s23] sm:$0xf]  ;;  %v374_v33 = vld [vmem:[%s3935_s23 + $0x8] sm:$0xf]  ;;  %v3310_v48 = vld [vmem:[%s3935_s23 + $0x10] sm:$0xf] }
  0x19   : > { %v392_v36 = vshrl.u32 %v372_v31, 16  ;;  %v395_v37 = vshll.u32 %v372_v31, 16  ;;  %v406_v39 = vshrl.u32 %v374_v33, 16  ;;  %v409_v40 = vshll.u32 %v374_v33, 16  ;;  %v3308_v42 = vld [vmem:[%s3935_s23 + $0x8] sm:$0xf] }
  0x1a   : > { %v1788_v52 = vshrl.u32 %v3308_v42, 16  ;;  %v1791_v53 = vshll.u32 %v3308_v42, 16  ;;  %v1802_v56 = vshrl.u32 %v3310_v48, 16  ;;  %v1805_v57 = vshll.u32 %v3310_v48, 16  ;;  %v376_v58 = vld [vmem:[%s3935_s23 + $0x10] sm:$0xf] }
  0x1b   : > { %3548 = vmatmul.mubr.msk.bf16.gmra.mrb[4].mxu1 %vm190_vm1, %v3852_v17  ;;  %v394_v44 = vrot.slane %v392_v36, 4  ;;  %v397_v45 = vrot.slane %v395_v37, 5  ;;  %v408_v47 = vrot.slane %v406_v39, 4  ;;  %v411_v49 = vrot.slane %v409_v40, 5  ;;  %v377_v0 = vld [vmem:[%s3935_s23 + $0x14] sm:$0x1] }
  0x1c   : > { %3628 = vmatmul.mubr.msk.bf16.gmra.mrb[4].mxu0 %vm190_vm1, %v3853_v19  ;;  %3553 = vmatprep.mubr.msk.bf16.mxu1 %vm190_vm1, %v3854_v22  ;;  %v1790_v61 = vrot.slane %v1788_v52, 4  ;;  %v1793_v62 = vrot.slane %v1791_v53, 5  ;;  %v1799_v2 = vrot.slane %v1797_v55, 5  ;;  %v1804_v3 = vrot.slane %v1802_v56, 4  ;;  %v378_v5 = vld [vmem:[%s3935_s23 + $0x18] sm:$0xf] }
  0x1d   : > { %3633 = vmatprep.mubr.msk.bf16.mxu0 %vm190_vm1, %v3855_v23  ;;  %v398_v54 = vor.u32 %v397_v45, %v394_v44  ;;  %v412_v60 = vor.u32 %v411_v49, %v408_v47  ;;  %v1807_v4 = vrot.slane %v1805_v57, 5  ;;  %v3860_v6 = vld [vmem:[%s3935_s23 + $0x30] ss:$8 sps:$4 sm:$0xff]   ;;  %v1813_v9 = vrot.slane %v1811_v63, 5  ;;  %v3861_v11 = vld [vmem:[%s3935_s23 + $0x80] ss:$8 sps:$4 sm:$0xff]  }
  0x1e   : > { %v1794_v8 = vor.u32 %v1793_v62, %v1790_v61  ;;  %v420_v10 = vshrl.u32 %v376_v58, 16  ;;  %v379_v14 = vld [vmem:[%s3935_s23 + $0x1c] sm:$0x1]  ;;  %v423_v15 = vshll.u32 %v376_v58, 16  ;;  %v434_v22 = vshrl.u32 %v378_v5, 16 }
  0x1f   : > { %v399_v1 = vrot.slane %v398_v54, 4  ;;  %v413_v7 = vrot.slane %v412_v60, 4  ;;  %v1808_v13 = vor.u32 %v1807_v4, %v1804_v3  ;;  %v3312_v23 = vld [vmem:[%s3935_s23 + $0x18] sm:$0xf]  ;;  %v437_v33 = vshll.u32 %v378_v5, 16 }
  0x20   : > { %v422_v19 = vrot.slane %v420_v10, 4  ;;  %v436_v32 = vrot.slane %v434_v22, 4  ;;  %v3314_v35 = vld [vmem:[%s3935_s23 + $0x20] sm:$0xf]  ;;  %v3315_v38 = vld [vmem:[%s3935_s23 + $0x24] sm:$0x1] }
  0x21   : > { %v404_v12 = vsel %vm4011_vm4, %v399_v1, %v403_v46  ;;  %v418_v17 = vsel %vm4011_vm4, %v413_v7, %v417_v50  ;;  %v1816_v39 = vshrl.u32 %v3312_v23, 16  ;;  %v1819_v40 = vshll.u32 %v3312_v23, 16  ;;  %v380_v45 = vld [vmem:[%s3935_s23 + $0x20] sm:$0xf]  ;;  %v381_v50 = vld [vmem:[%s3935_s23 + $0x24] sm:$0x1] }
  0x22   : > { %v439_v42 = vrot.slane %v437_v33, 5  ;;  %v1830_v49 = vshrl.u32 %v3314_v35, 16  ;;  %v1833_v53 = vshll.u32 %v3314_v35, 16  ;;  %v1839_v54 = vshll.u32 %v3315_v38, 16  ;;  %v382_v55 = vld [vmem:[%s3935_s23 + $0x28] sm:$0xf] }
  0x23   : > { %3554 = vmatmul.mubr.msk.bf16.vlgmr.msra.gmra.mrb[0].mxu1 %vm190_vm1, %v3856_v28  ;;  %v425_v28 = vrot.slane %v423_v15, 5  ;;  %v1818_v47 = vrot.slane %v1816_v39, 4  ;;  %v1821_v48 = vrot.slane %v1819_v40, 5  ;;  %v448_v60 = vshrl.u32 %v380_v45, 16  ;;  %v3319_v23 = vld [vmem:[%s3935_s23 + $0x34] sm:$0x1] }
  0x24   : > { %3562 = vmatpush3.bf16.msra.mxu1 %v530_v16  ;;  %3634 = vmatmul.mubr.msk.bf16.vlgmr.msra.gmra.mrb[0].mxu0 %vm190_vm1, %v3857_v29  ;;  %v429_v16 = vshll.u32 %v377_v0, 16  ;;  %v440_v51 = vor.u32 %v439_v42, %v436_v32  ;;  %v1832_v58 = vrot.slane %v1830_v49, 4  ;;  %v1835_v62 = vrot.slane %v1833_v53, 5  ;;  %v383_v0 = vld [vmem:[%s3935_s23 + $0x2c] sm:$0x1] }
  0x25   : > { %3642 = vmatpush3.bf16.msra.mxu0 %v1926_v24  ;;  %3557 = vmatprep.mubr.msk.bf16.mxu1 %vm190_vm1, %v3858_v30  ;;  %v1809_v24 = vrot.slane %v1808_v13, 4  ;;  %v3313_v30 = vld [vmem:[%s3935_s23 + $0x1c] sm:$0x1]  ;;  %v426_v37 = vor.u32 %v425_v28, %v422_v19  ;;  %v1822_v57 = vor.u32 %v1821_v48, %v1818_v47  ;;  %v1841_v63 = vrot.slane %v1839_v54, 5  ;;  %v385_v35 = vld [vmem:[%s3935_s23 + $0x34] sm:$0x1] }
  0x26   : > { %3637 = vmatprep.mubr.msk.bf16.mxu0 %vm190_vm1, %v3859_v34  ;;  %3824 = vmatprep.subr.msk.bf16.mxu1 %vm203_vm0, %v3181_v18  ;;  %v1795_v18 = vrot.slane %v1794_v8, 4  ;;  %v431_v29 = vrot.slane %v429_v16, 5  ;;  %v443_v34 = vshll.u32 %v379_v14, 16  ;;  %v1825_v44 = vshll.u32 %v3313_v30, 16  ;;  %v386_v40 = vld [vmem:[%s3935_s23 + $0x38] sm:$0xf] }
  0x27   : > { %3832 = vmatprep.subr.msk.bf16.mxu0 %vm203_vm0, %v3968_v20  ;;  %v3157_v20 = vcombine.low %v404_v12, %v418_v17  ;;  %v1814_v36 = vsel %vm4011_vm4, %v1809_v24, %v1813_v9  ;;  %v427_v46 = vrot.slane %v426_v37, 4  ;;  %v441_v61 = vrot.slane %v440_v51, 4  ;;  %v3318_v12 = vld [vmem:[%s3935_s23 + $0x30] sm:$0xf]  ;;  %v387_v47 = vld [vmem:[%s3935_s23 + $0x3c] sm:$0x1] }
  0x28   : > { %v1800_v31 = vsel %vm4011_vm4, %v1795_v18, %v1799_v2  ;;  %v445_v43 = vrot.slane %v443_v34, 5  ;;  %v1827_v52 = vrot.slane %v1825_v44, 5  ;;  %v451_v1 = vshll.u32 %v380_v45, 16  ;;  %v384_v34 = vld [vmem:[%s3935_s23 + $0x30] sm:$0xf] }
  0x29   : > { %v3325_v41 = vcombine.low %v1800_v31, %v1814_v36  ;;  %v432_v56 = vsel %vm4011_vm4, %v427_v46, %v431_v29  ;;  %v1823_v2 = vrot.slane %v1822_v57, 4  ;;  %v450_v3 = vrot.slane %v448_v60, 4  ;;  %v4068_v44 = vld [vmem:[%s4502_s1 + $0x30] sm:$0xf]  ;;  %v3320_v53 = vld [vmem:[%s3935_s23 + $0x38] sm:$0xf] }
  0x2a   : > { %v457_v4 = vshll.u32 %v381_v50, 16  ;;  %v462_v5 = vshrl.u32 %v382_v55, 16  ;;  %v446_v7 = vsel %vm4011_vm4, %v441_v61, %v445_v43  ;;  %v1836_v8 = vor.u32 %v1835_v62, %v1832_v58  ;;  %v3321_v58 = vld [vmem:[%s3935_s23 + $0x3c] sm:$0x1] }
  0x2b   : > { %3558 = vmatmul.mubr.msk.bf16.gmra.mrb[4].mxu1 %vm190_vm1, %v3860_v6  ;;  %v3316_v6 = vld [vmem:[%s3935_s23 + $0x28] sm:$0xf]  ;;  %v453_v9 = vrot.slane %v451_v1, 5  ;;  %v465_v10 = vshll.u32 %v382_v55, 16  ;;  %v3158_v13 = vcombine.low %v432_v56, %v446_v7  ;;  %v1828_v14 = vsel %vm4011_vm4, %v1823_v2, %v1827_v52 }
  0x2c   : > { %3638 = vmatmul.mubr.msk.bf16.gmra.mrb[4].mxu0 %vm190_vm1, %v3861_v11  ;;  %3563 = vmatprep.mubr.msk.bf16.mxu1 %vm190_vm1, %v3157_v20  ;;  %v3317_v11 = vld [vmem:[%s3935_s23 + $0x2c] sm:$0x1]  ;;  %v459_v15 = vrot.slane %v457_v4, 5  ;;  %v464_v16 = vrot.slane %v462_v5, 4  ;;  %v1837_v17 = vrot.slane %v1836_v8, 4  ;;  %v471_v22 = vshll.u32 %v383_v0, 16 }
  0x2d   : > { %3643 = vmatprep.mubr.msk.bf16.mxu0 %vm190_vm1, %v3325_v41  ;;  %v454_v18 = vor.u32 %v453_v9, %v450_v3  ;;  %v467_v19 = vrot.slane %v465_v10, 5  ;;  %v1844_v20 = vshrl.u32 %v3316_v6, 16  ;;  %v1847_v24 = vshll.u32 %v3316_v6, 16  ;;  %v3323_v6 = vld [vmem:[%s3935_s23 + $0x44] sm:$0x1] }
  0x2e   : > { %v1853_v28 = vshll.u32 %v3317_v11, 16  ;;  %v1858_v29 = vshrl.u32 %v3318_v12, 16  ;;  %v1842_v30 = vsel %vm4011_vm4, %v1837_v17, %v1841_v63  ;;  %v473_v33 = vrot.slane %v471_v22, 5  ;;  %v3322_v63 = vld [vmem:[%s3935_s23 + $0x40] sm:$0xf] }
  0x2f   : > { %v455_v31 = vrot.slane %v454_v18, 4  ;;  %v468_v32 = vor.u32 %v467_v19, %v464_v16  ;;  %v3326_v36 = vcombine.low %v1828_v14, %v1842_v30  ;;  %v1846_v37 = vrot.slane %v1844_v20, 4  ;;  %v3166_v18 = vld [vmem:[%s3935_s23 + $0x4c] sm:$0x1] }
  0x30   : > { %v1849_v38 = vrot.slane %v1847_v24, 5  ;;  %v1855_v39 = vrot.slane %v1853_v28, 5  ;;  %v1860_v42 = vrot.slane %v1858_v29, 4  ;;  %v1861_v43 = vshll.u32 %v3318_v12, 16  ;;  %v3167_v24 = vld [vmem:[%s3935_s23 + $0x50] sm:$0xf] }
  0x31   : > { %v469_v41 = vrot.slane %v468_v32, 4  ;;  %v1867_v46 = vshll.u32 %v3319_v23, 16  ;;  %v476_v48 = vshrl.u32 %v384_v34, 16  ;;  %v485_v51 = vshll.u32 %v385_v35, 16 }
  0x32   : > { %v1850_v45 = vor.u32 %v1849_v38, %v1846_v37  ;;  %v1863_v50 = vrot.slane %v1861_v43, 5  ;;  %v490_v52 = vshrl.u32 %v386_v40, 16  ;;  %v493_v1 = vshll.u32 %v386_v40, 16 }
  0x33   : > { %3564 = vmatmul.mubr.msk.bf16.vlgmr.msra.gmra.mrb[0].mxu1 %vm190_vm1, %v3158_v13  ;;  %v474_v49 = vsel %vm4011_vm4, %v469_v41, %v473_v33  ;;  %v1869_v56 = vrot.slane %v1867_v46, 5  ;;  %v478_v57 = vrot.slane %v476_v48, 4  ;;  %v499_v2 = vshll.u32 %v387_v47, 16  ;;  %v3165_v13 = vld [vmem:[%s3935_s23 + $0x48] sm:$0xf] }
  0x34   : > { %3572 = vmatpush3.bf16.msra.mxu1 %v3980_v25  ;;  %v460_v25 = vsel %vm4011_vm4, %v455_v31, %v459_v15  ;;  %3644 = vmatmul.mubr.msk.bf16.vlgmr.msra.gmra.mrb[0].mxu0 %vm190_vm1, %v3326_v36  ;;  %v1851_v55 = vrot.slane %v1850_v45, 4  ;;  %v1864_v60 = vor.u32 %v1863_v50, %v1860_v42  ;;  %v492_v62 = vrot.slane %v490_v52, 4  ;;  %v3335_v46 = vld [vmem:[%s3935_s23 + $0x58] sm:$0xf]  ;;  %v3334_v50 = vld [vmem:[%s3935_s23 + $0x54] sm:$0x1] }
  0x35   : > { %3825 = vmatprep.subr.msk.bf16.mxu1 %vm203_vm0, %v3973_v21  ;;  %v479_v21 = vshll.u32 %v384_v34, 16  ;;  %3652 = vmatpush3.bf16.msra.mxu0 %v3986_v26  ;;  %v3159_v54 = vcombine.low %v460_v25, %v474_v49  ;;  %v487_v26 = vrot.slane %v485_v51, 5  ;;  %v1872_v3 = vshrl.u32 %v3320_v53, 16  ;;  %v3168_v34 = vld [vmem:[%s3935_s23 + $0x54] sm:$0x1] }
  0x36   : > { %3833 = vmatprep.subr.msk.bf16.mxu0 %vm203_vm0, %v4068_v44  ;;  %v1856_v0 = vsel %vm4011_vm4, %v1851_v55, %v1855_v39  ;;  %v1865_v4 = vrot.slane %v1864_v60, 4  ;;  %v1875_v7 = vshll.u32 %v3320_v53, 16  ;;  %v1881_v8 = vshll.u32 %v3321_v58, 16  ;;  %v3333_v25 = vld [vmem:[%s3935_s23 + $0x50] sm:$0xf] }
  0x37   : > { %v481_v61 = vrot.slane %v479_v21, 5  ;;  %3567 = vmatprep.mubr.msk.bf16.mxu1 %vm190_vm1, %v3159_v54  ;;  %v495_v9 = vrot.slane %v493_v1, 5  ;;  %v501_v10 = vrot.slane %v499_v2, 5  ;;  %v1874_v11 = vrot.slane %v1872_v3, 4 }
  0x38   : > { %v1886_v12 = vshrl.u32 %v3322_v63, 16  ;;  %v1870_v14 = vsel %vm4011_vm4, %v1865_v4, %v1869_v56  ;;  %v1877_v16 = vrot.slane %v1875_v7, 5  ;;  %v1883_v17 = vrot.slane %v1881_v8, 5  ;;  %v3336_v56 = vld [vmem:[%s3935_s23 + $0x5c] sm:$0x1] }
  0x39   : > { %v482_v5 = vor.u32 %v481_v61, %v478_v57  ;;  %v3327_v19 = vcombine.low %v1856_v0, %v1870_v14  ;;  %v496_v22 = vor.u32 %v495_v9, %v492_v62  ;;  %v1889_v20 = vshll.u32 %v3322_v63, 16  ;;  %v3169_v0 = vld [vmem:[%s3935_s23 + $0x58] sm:$0xf] }
  0x3a   : > { %v1888_v23 = vrot.slane %v1886_v12, 4  ;;  %v1878_v29 = vor.u32 %v1877_v16, %v1874_v11  ;;  %v1895_v30 = vshll.u32 %v3323_v6, 16  ;;  %v622_v31 = vshrl.u32 %v3165_v13, 16  ;;  %v3171_v6 = vld [vmem:[%s3935_s23 + $0x60] sm:$0xf] }
  0x3b   : > { %v483_v15 = vrot.slane %v482_v5, 4  ;;  %3647 = vmatprep.mubr.msk.bf16.mxu0 %vm190_vm1, %v3327_v19  ;;  %v497_v32 = vrot.slane %v496_v22, 4  ;;  %v1891_v33 = vrot.slane %v1889_v20, 5  ;;  %v625_v35 = vshll.u32 %v3165_v13, 16  ;;  %v3170_v5 = vld [vmem:[%s3935_s23 + $0x5c] sm:$0x1] }
  0x3c   : > { %v631_v36 = vshll.u32 %v3166_v18, 16  ;;  %v1879_v37 = vrot.slane %v1878_v29, 4  ;;  %v1897_v38 = vrot.slane %v1895_v30, 5  ;;  %v624_v39 = vrot.slane %v622_v31, 4  ;;  %v3172_v12 = vld [vmem:[%s3935_s23 + $0x64] sm:$0x1] }
  0x3d   : > { %v488_v28 = vsel %vm4011_vm4, %v483_v15, %v487_v26  ;;  %v636_v40 = vshrl.u32 %v3167_v24, 16  ;;  %v502_v41 = vsel %vm4011_vm4, %v497_v32, %v501_v10  ;;  %v1892_v42 = vor.u32 %v1891_v33, %v1888_v23  ;;  %v3337_v19 = vld [vmem:[%s3935_s23 + $0x60] sm:$0xf]  ;;  %v3339_v33 = vld [vmem:[%s3935_s23 + $0x68] sm:$0xf] }
  0x3e   : > { %v627_v43 = vrot.slane %v625_v35, 5  ;;  %v633_v45 = vrot.slane %v631_v36, 5  ;;  %v3160_v47 = vcombine.low %v488_v28, %v502_v41  ;;  %v1884_v48 = vsel %vm4011_vm4, %v1879_v37, %v1883_v17  ;;  %v3338_v28 = vld [vmem:[%s3935_s23 + $0x64] sm:$0x1] }
  0x3f   : > { %v638_v21 = vrot.slane %v636_v40, 4  ;;  %v639_v49 = vshll.u32 %v3167_v24, 16  ;;  %v1893_v51 = vrot.slane %v1892_v42, 4  ;;  %v645_v53 = vshll.u32 %v3168_v34, 16 }
  0x40   : > { %v628_v52 = vor.u32 %v627_v43, %v624_v39  ;;  %v2018_v54 = vshrl.u32 %v3333_v25, 16  ;;  %3568 = vmatmul.mubr.msk.bf16.gmra.mrb[4].mxu1 %vm190_vm1, %v3160_v47  ;;  %v2021_v57 = vshll.u32 %v3333_v25, 16  ;;  %v2032_v58 = vshrl.u32 %v3335_v46, 16  ;;  %v3173_v39 = vld [vmem:[%s3935_s23 + $0x68] sm:$0xf] }
  0x41   : > { %v641_v55 = vrot.slane %v639_v49, 5  ;;  %v4104_v60 = vsel %vm203_vm0, %v4068_v44, 0  ;;  %v1898_v61 = vsel %vm4011_vm4, %v1893_v51, %v1897_v38  ;;  %v2027_v63 = vshll.u32 %v3334_v50, 16  ;;  %v3340_v38 = vld [vmem:[%s3935_s23 + $0x6c] sm:$0x1] }
  0x42   : > { %v629_v26 = vrot.slane %v628_v52, 4  ;;  %v2020_v62 = vrot.slane %v2018_v54, 4  ;;  %v3328_v1 = vcombine.low %v1884_v48, %v1898_v61  ;;  %v647_v3 = vrot.slane %v645_v53, 5  ;;  %v3174_v43 = vld [vmem:[%s3935_s23 + $0x6c] sm:$0x1] }
  0x43   : > { %v642_v2 = vor.u32 %v641_v55, %v638_v21  ;;  %v2023_v4 = vrot.slane %v2021_v57, 5  ;;  %v2034_v44 = vrot.slane %v2032_v58, 4  ;;  %v2035_v8 = vshll.u32 %v3335_v46, 16  ;;  %v3175_v52 = vld [vmem:[%s3935_s23 + $0x70] sm:$0xf] }
  0x44   : > { %v634_v7 = vsel %vm4011_vm4, %v629_v26, %v633_v45  ;;  %v2041_v9 = vshll.u32 %v3336_v56, 16  ;;  %3648 = vmatmul.mubr.msk.bf16.gmra.mrb[4].mxu0 %vm190_vm1, %v3328_v1  ;;  %v650_v13 = vshrl.u32 %v3169_v0, 16  ;;  %v653_v14 = vshll.u32 %v3169_v0, 16  ;;  %v3176_v26 = vld [vmem:[%s3935_s23 + $0x74] sm:$0x1] }
  0x45   : > { %v643_v10 = vrot.slane %v642_v2, 4  ;;  %v2024_v11 = vor.u32 %v2023_v4, %v2020_v62  ;;  %v2029_v15 = vrot.slane %v2027_v63, 5  ;;  %v2037_v16 = vrot.slane %v2035_v8, 5  ;;  %v3341_v63 = vld [vmem:[%s3935_s23 + $0x70] sm:$0xf] }
  0x46   : > { %v659_v17 = vshll.u32 %v3170_v5, 16  ;;  %v664_v18 = vshrl.u32 %v3171_v6, 16  ;;  %v652_v20 = vrot.slane %v650_v13, 4  ;;  %v655_v24 = vrot.slane %v653_v14, 5  ;;  %v4141_v13 = vld [vmem:[%s4502_s1 + $0x14] sm:$0xf] }
  0x47   : > { %v648_v22 = vsel %vm4011_vm4, %v643_v10, %v647_v3  ;;  %v2025_v23 = vrot.slane %v2024_v11, 4  ;;  %v2038_v30 = vor.u32 %v2037_v16, %v2034_v44  ;;  %v2043_v31 = vrot.slane %v2041_v9, 5  ;;  %v3342_v44 = vld [vmem:[%s3935_s23 + $0x74] sm:$0x1] }
  0x48   : > { %v3182_v29 = vcombine.low %v634_v7, %v648_v22  ;;  %v661_v32 = vrot.slane %v659_v17, 5  ;;  %v656_v34 = vor.u32 %v655_v24, %v652_v20  ;;  %v666_v35 = vrot.slane %v664_v18, 4  ;;  %v3344_v22 = vld [vmem:[%s3935_s23 + $0x7c] sm:$0x1]  ;;  %v3177_v24 = vld [vmem:[%s3935_s23 + $0x78] sm:$0xf] }
  0x49   : > { %v667_v36 = vshll.u32 %v3171_v6, 16  ;;  %v673_v37 = vshll.u32 %v3172_v12, 16  ;;  %v2030_v40 = vsel %vm4011_vm4, %v2025_v23, %v2029_v15  ;;  %v2039_v25 = vrot.slane %v2038_v30, 4  ;;  %v3343_v12 = vld [vmem:[%s3935_s23 + $0x78] sm:$0xf] }
  0x4a   : > { %3573 = vmatprep.mubr.msk.bf16.mxu1 %vm190_vm1, %v3182_v29  ;;  %v2046_v41 = vshrl.u32 %v3337_v19, 16  ;;  %v2049_v42 = vshll.u32 %v3337_v19, 16  ;;  %v657_v45 = vrot.slane %v656_v34, 4  ;;  %v2055_v47 = vshll.u32 %v3338_v28, 16 }
  0x4b   : > { %v669_v46 = vrot.slane %v667_v36, 5  ;;  %v2060_v48 = vshrl.u32 %v3339_v33, 16  ;;  %v2044_v21 = vsel %vm4011_vm4, %v2039_v25, %v2043_v31  ;;  %v675_v49 = vrot.slane %v673_v37, 5  ;;  %v3178_v36 = vld [vmem:[%s3935_s23 + $0x7c] sm:$0x1] }
  0x4c   : > { %v2048_v50 = vrot.slane %v2046_v41, 4  ;;  %v2051_v51 = vrot.slane %v2049_v42, 5  ;;  %v3350_v53 = vcombine.low %v2030_v40, %v2044_v21  ;;  %v662_v54 = vsel %vm4011_vm4, %v657_v45, %v661_v32  ;;  %v3179_v25 = vld [vmem:[%s3935_s23 + $0x80] sm:$0xf] }
  0x4d   : > { %v670_v55 = vor.u32 %v669_v46, %v666_v35  ;;  %v2062_v56 = vrot.slane %v2060_v48, 4  ;;  %v2063_v58 = vshll.u32 %v3339_v33, 16  ;;  %v2069_v61 = vshll.u32 %v3340_v38, 16  ;;  %v3180_v46 = vld [vmem:[%s3935_s23 + $0x84] sm:$0x1] }
  0x4e   : > { %v2052_v57 = vor.u32 %v2051_v51, %v2048_v50  ;;  %v678_v62 = vshrl.u32 %v3173_v39, 16  ;;  %3653 = vmatprep.mubr.msk.bf16.mxu0 %vm190_vm1, %v3350_v53  ;;  %v681_v1 = vshll.u32 %v3173_v39, 16  ;;  %v687_v2 = vshll.u32 %v3174_v43, 16  ;;  %v3345_v50 = vld [vmem:[%s3935_s23 + $0x80] sm:$0xf] }
  0x4f   : > { %v671_v0 = vrot.slane %v670_v55, 4  ;;  %v692_v3 = vshrl.u32 %v3175_v52, 16  ;;  %v2057_v5 = vrot.slane %v2055_v47, 5  ;;  %v2065_v6 = vrot.slane %v2063_v58, 5 }
  0x50   : > { %v2053_v4 = vrot.slane %v2052_v57, 4  ;;  %v680_v7 = vrot.slane %v678_v62, 4  ;;  %v2071_v9 = vrot.slane %v2069_v61, 5  ;;  %v683_v10 = vrot.slane %v681_v1, 5  ;;  %v3347_v61 = vld [vmem:[%s3935_s23 + $0x88] sm:$0xf] }
  0x51   : > { %v676_v8 = vsel %vm4011_vm4, %v671_v0, %v675_v49  ;;  %v689_v11 = vrot.slane %v687_v2, 5  ;;  %v2066_v15 = vor.u32 %v2065_v6, %v2062_v56  ;;  %v694_v16 = vrot.slane %v692_v3, 4  ;;  %v3348_v6 = vld [vmem:[%s3935_s23 + $0x8c] sm:$0x1] }
  0x52   : > { %v3183_v14 = vcombine.low %v662_v54, %v676_v8  ;;  %v695_v17 = vshll.u32 %v3175_v52, 16  ;;  %v684_v18 = vor.u32 %v683_v10, %v680_v7  ;;  %v701_v19 = vshll.u32 %v3176_v26, 16 }
  0x53   : > { %v2074_v23 = vshrl.u32 %v3341_v63, 16  ;;  %v2077_v20 = vshll.u32 %v3341_v63, 16  ;;  %v2058_v28 = vsel %vm4011_vm4, %v2053_v4, %v2057_v5  ;;  %v2067_v29 = vrot.slane %v2066_v15, 4  ;;  %v3346_v4 = vld [vmem:[%s3935_s23 + $0x84] sm:$0x1] }
  0x54   : > { %3574 = vmatmul.mubr.msk.bf16.vlgmr.msra.gmra.mrb[0].mxu1 %vm190_vm1, %v3183_v14  ;;  %v697_v30 = vrot.slane %v695_v17, 5  ;;  %v2088_v31 = vshrl.u32 %v3343_v12, 16  ;;  %v685_v32 = vrot.slane %v684_v18, 4  ;;  %v2083_v35 = vshll.u32 %v3342_v44, 16 }
  0x55   : > { %3582 = vmatpush3.bf16.msra.mxu1 %v3990_v27  ;;  %v2076_v33 = vrot.slane %v2074_v23, 4  ;;  %v2079_v34 = vrot.slane %v2077_v20, 5  ;;  %v2072_v37 = vsel %vm4011_vm4, %v2067_v29, %v2071_v9  ;;  %v703_v39 = vrot.slane %v701_v19, 5  ;;  %v4158_v27 = vld [vmem:[%s4502_s1 + $0x34] sm:$0xf] }
  0x56   : > { %v698_v38 = vor.u32 %v697_v30, %v694_v16  ;;  %v2090_v40 = vrot.slane %v2088_v31, 4  ;;  %3826 = vmatprep.subr.msk.bf16.mxu1 %vm203_vm0, %v4141_v13  ;;  %v3351_v41 = vcombine.low %v2058_v28, %v2072_v37  ;;  %v690_v42 = vsel %vm4011_vm4, %v685_v32, %v689_v11 }
  0x57   : > { %v2080_v43 = vor.u32 %v2079_v34, %v2076_v33  ;;  %v2091_v45 = vshll.u32 %v3343_v12, 16  ;;  %v2097_v48 = vshll.u32 %v3344_v22, 16  ;;  %v706_v21 = vshrl.u32 %v3177_v24, 16  ;;  %v3862_v34 = vld [vmem:[%s3935_s23 + $0x90] ss:$8 sps:$4 sm:$0xff]  }
  0x58   : > { %v699_v47 = vrot.slane %v698_v38, 4  ;;  %v709_v49 = vshll.u32 %v3177_v24, 16  ;;  %3654 = vmatmul.mubr.msk.bf16.vlgmr.msra.gmra.mrb[0].mxu0 %vm190_vm1, %v3351_v41  ;;  %v2085_v52 = vrot.slane %v2083_v35, 5  ;;  %v720_v54 = vshrl.u32 %v3179_v25, 16  ;;  %v3240_v35 = vld [vmem:[%s4502_s1 + $0x18] sm:$0xf] }
  0x59   : > { %v2081_v51 = vrot.slane %v2080_v43, 4  ;;  %v2093_v53 = vrot.slane %v2091_v45, 5  ;;  %3662 = vmatpush3.bf16.msra.mxu0 %v4104_v60  ;;  %v708_v56 = vrot.slane %v706_v21, 4  ;;  %v715_v58 = vshll.u32 %v3178_v36, 16  ;;  %v3863_v41 = vld [vmem:[%s3935_s23 + $0x98] ss:$8 sps:$4 sm:$0xff]  }
  0x5a   : > { %v704_v55 = vsel %vm4011_vm4, %v699_v47, %v703_v39  ;;  %v711_v57 = vrot.slane %v709_v49, 5  ;;  %v2099_v63 = vrot.slane %v2097_v48, 5  ;;  %3834 = vmatprep.subr.msk.bf16.mxu0 %vm203_vm0, %v4158_v27  ;;  %v722_v1 = vrot.slane %v720_v54, 4  ;;  %v4190_v39 = vld [vmem:[%s4502_s1 + $0x38] sm:$0xf] }
  0x5b   : > { %v3184_v26 = vcombine.low %v690_v42, %v704_v55  ;;  %v2094_v62 = vor.u32 %v2093_v53, %v2090_v40  ;;  %v723_v2 = vshll.u32 %v3179_v25, 16  ;;  %v729_v3 = vshll.u32 %v3180_v46, 16  ;;  %v3864_v46 = vld [vmem:[%s3935_s23 + $0xa0] ss:$8 sps:$4 sm:$0xff]   ;;  %v3224_v21 = vld [vmem:[%s3935_s23 + $0x90] sm:$0xf] }
  0x5c   : > { %v712_v0 = vor.u32 %v711_v57, %v708_v56  ;;  %v2086_v60 = vsel %vm4011_vm4, %v2081_v51, %v2085_v52  ;;  %v2102_v7 = vshrl.u32 %v3345_v50, 16  ;;  %v2105_v44 = vshll.u32 %v3345_v50, 16  ;;  %v3225_v49 = vld [vmem:[%s3935_s23 + $0x94] sm:$0x1]  ;;  %v3226_v50 = vld [vmem:[%s3935_s23 + $0x98] sm:$0xf] }
  0x5d   : > { %3577 = vmatprep.mubr.msk.bf16.mxu1 %vm190_vm1, %v3184_v26  ;;  %v2095_v5 = vrot.slane %v2094_v62, 4  ;;  %v717_v9 = vrot.slane %v715_v58, 5  ;;  %v725_v10 = vrot.slane %v723_v2, 5  ;;  %v2116_v11 = vshrl.u32 %v3347_v61, 16  ;;  %v3227_v51 = vld [vmem:[%s3935_s23 + $0x9c] sm:$0x1] }
  0x5e   : > { %v713_v8 = vrot.slane %v712_v0, 4  ;;  %v2104_v14 = vrot.slane %v2102_v7, 4  ;;  %v2107_v15 = vrot.slane %v2105_v44, 5  ;;  %v2111_v16 = vshll.u32 %v3346_v4, 16  ;;  %v3866_v53 = vld [vmem:[%s3935_s23 + $0xb0] ss:$8 sps:$4 sm:$0xff]  }
  0x5f   : > { %v2100_v12 = vsel %vm4011_vm4, %v2095_v5, %v2099_v63  ;;  %v726_v18 = vor.u32 %v725_v10, %v722_v1  ;;  %v731_v19 = vrot.slane %v729_v3, 5  ;;  %v2118_v23 = vrot.slane %v2116_v11, 4  ;;  %v3392_v26 = vld [vmem:[%s3935_s23 + $0x98] sm:$0xf]  ;;  %v3393_v62 = vld [vmem:[%s3935_s23 + $0x9c] sm:$0x1] }
  0x60   : > { %v3352_v17 = vcombine.low %v2086_v60, %v2100_v12  ;;  %v2108_v22 = vor.u32 %v2107_v15, %v2104_v14  ;;  %v2119_v20 = vshll.u32 %v3347_v61, 16  ;;  %v2125_v24 = vshll.u32 %v3348_v6, 16  ;;  %v3394_v3 = vld [vmem:[%s3935_s23 + $0xa0] sm:$0xf]  ;;  %v3865_v4 = vld [vmem:[%s3935_s23 + $0xa8] ss:$8 sps:$4 sm:$0xff]  }
  0x61   : > { %v718_v28 = vsel %vm4011_vm4, %v713_v8, %v717_v9  ;;  %v727_v29 = vrot.slane %v726_v18, 4  ;;  %v2113_v31 = vrot.slane %v2111_v16, 5  ;;  %v998_v42 = vsel %vm203_vm0, %v4141_v13, 0  ;;  %v3395_v5 = vld [vmem:[%s3935_s23 + $0xa4] sm:$0x1] }
  0x62   : > { %3657 = vmatprep.mubr.msk.bf16.mxu0 %vm190_vm1, %v3352_v17  ;;  %v2109_v30 = vrot.slane %v2108_v22, 4  ;;  %v2121_v32 = vrot.slane %v2119_v20, 5  ;;  %v2127_v38 = vrot.slane %v2125_v24, 5  ;;  %v4201_v43 = vsel %vm203_vm0, %v4158_v27, 0  ;;  %v3867_v8 = vld [vmem:[%s3935_s23 + $0xb8] ss:$8 sps:$4 sm:$0xff]  }
  0x63   : > { %v732_v33 = vsel %vm4011_vm4, %v727_v29, %v731_v19  ;;  %v4207_v47 = vsel %vm203_vm0, %v3240_v35, 0  ;;  %v4211_v48 = vsel %vm203_vm0, %v4190_v39, 0  ;;  %v1090_v27 = vshrl.u32 %v3224_v21, 16  ;;  %v3228_v18 = vld [vmem:[%s3935_s23 + $0xa0] sm:$0xf] }
  0x64   : > { %v3185_v36 = vcombine.low %v718_v28, %v732_v33  ;;  %v2122_v37 = vor.u32 %v2121_v32, %v2118_v23  ;;  %v2114_v40 = vsel %vm4011_vm4, %v2109_v30, %v2113_v31  ;;  %v1093_v52 = vshll.u32 %v3224_v21, 16  ;;  %v3868_v19 = vld [vmem:[%s3935_s23 + $0xc0] ss:$8 sps:$4 sm:$0xff]   ;;  %v3229_v28 = vld [vmem:[%s3935_s23 + $0xa4] sm:$0x1] }
  0x65   : > { %v1099_v54 = vshll.u32 %v3225_v49, 16  ;;  %v1104_v55 = vshrl.u32 %v3226_v50, 16  ;;  %v1107_v56 = vshll.u32 %v3226_v50, 16  ;;  %v1113_v57 = vshll.u32 %v3227_v51, 16  ;;  %v3870_v29 = vld [vmem:[%s3935_s23 + $0xd8] ss:$8 sps:$4 sm:$0xff]  }
  0x66   : > { %3578 = vmatmul.mubr.msk.bf16.gmra.mrb[4].mxu1 %vm190_vm1, %v3185_v36  ;;  %v2123_v25 = vrot.slane %v2122_v37, 4  ;;  %v1092_v58 = vrot.slane %v1090_v27, 4  ;;  %v1095_v61 = vrot.slane %v1093_v52, 5  ;;  %v2486_v6 = vshrl.u32 %v3392_v26, 16  ;;  %v3230_v32 = vld [vmem:[%s3935_s23 + $0xa8] sm:$0xf] }
  0x67   : > { %3583 = vmatprep.mubr.msk.bf16.mxu1 %vm190_vm1, %v3862_v34  ;;  %v1101_v63 = vrot.slane %v1099_v54, 5  ;;  %v1106_v0 = vrot.slane %v1104_v55, 4  ;;  %v1109_v1 = vrot.slane %v1107_v56, 5  ;;  %v1115_v2 = vrot.slane %v1113_v57, 5  ;;  %v3396_v21 = vld [vmem:[%s3935_s23 + $0xa8] sm:$0xf] }
  0x68   : > { %v2128_v45 = vsel %vm4011_vm4, %v2123_v25, %v2127_v38  ;;  %v1096_v60 = vor.u32 %v1095_v61, %v1092_v58  ;;  %v2489_v7 = vshll.u32 %v3392_v26, 16  ;;  %v2495_v44 = vshll.u32 %v3393_v62, 16  ;;  %v3231_v38 = vld [vmem:[%s3935_s23 + $0xac] sm:$0x1]  ;;  %v3869_v52 = vld [vmem:[%s3935_s23 + $0xc8] ss:$8 sps:$4 sm:$0xff]  }
  0x69   : > { %v3353_v13 = vcombine.low %v2114_v40, %v2128_v45  ;;  %v1110_v9 = vor.u32 %v1109_v1, %v1106_v0  ;;  %v2500_v10 = vshrl.u32 %v3394_v3, 16  ;;  %v2503_v11 = vshll.u32 %v3394_v3, 16  ;;  %v3397_v27 = vld [vmem:[%s3935_s23 + $0xac] sm:$0x1]  ;;  %v3398_v57 = vld [vmem:[%s3935_s23 + $0xb0] sm:$0xf] }
  0x6a   : > { %v2509_v12 = vshll.u32 %v3395_v5, 16  ;;  %v1097_v14 = vrot.slane %v1096_v60, 4  ;;  %v2488_v15 = vrot.slane %v2486_v6, 4  ;;  %v2491_v16 = vrot.slane %v2489_v7, 5  ;;  %v3399_v26 = vld [vmem:[%s3935_s23 + $0xb4] sm:$0x1] }
  0x6b   : > { %3658 = vmatmul.mubr.msk.bf16.gmra.mrb[4].mxu0 %vm190_vm1, %v3353_v13  ;;  %v2497_v17 = vrot.slane %v2495_v44, 5  ;;  %v1111_v22 = vrot.slane %v1110_v9, 4  ;;  %v2502_v23 = vrot.slane %v2500_v10, 4  ;;  %v2505_v20 = vrot.slane %v2503_v11, 5  ;;  %v3872_v60 = vld [vmem:[%s3935_s23 + $0xe8] ss:$8 sps:$4 sm:$0xff]  }
  0x6c   : > { %3663 = vmatprep.mubr.msk.bf16.mxu0 %vm190_vm1, %v3863_v41  ;;  %v2511_v24 = vrot.slane %v2509_v12, 5  ;;  %v1102_v30 = vsel %vm4011_vm4, %v1097_v14, %v1101_v63  ;;  %v2492_v31 = vor.u32 %v2491_v16, %v2488_v15  ;;  %v1118_v33 = vshrl.u32 %v3228_v18, 16  ;;  %v3234_v14 = vld [vmem:[%s3935_s23 + $0xb8] sm:$0xf] }
  0x6d   : > { %v1121_v34 = vshll.u32 %v3228_v18, 16  ;;  %v1116_v36 = vsel %vm4011_vm4, %v1111_v22, %v1115_v2  ;;  %v2506_v37 = vor.u32 %v2505_v20, %v2502_v23  ;;  %v1127_v40 = vshll.u32 %v3229_v28, 16  ;;  %v3874_v15 = vld [vmem:[%s3935_s23 + $0xf8] ss:$8 sps:$4 sm:$0xff]   ;;  %v3235_v20 = vld [vmem:[%s3935_s23 + $0xbc] sm:$0x1] }
  0x6e   : > { %3584 = vmatmul.mubr.msk.bf16.vlgmr.msra.gmra.mrb[0].mxu1 %vm190_vm1, %v3864_v46  ;;  %v1132_v25 = vshrl.u32 %v3230_v32, 16  ;;  %v4245_v41 = vcombine.low %v1102_v30, %v1116_v36  ;;  %v1120_v45 = vrot.slane %v1118_v33, 4  ;;  %v1135_v51 = vshll.u32 %v3230_v32, 16  ;;  %v3400_v33 = vld [vmem:[%s3935_s23 + $0xb8] sm:$0xf] }
  0x6f   : > { %3592 = vmatpush3.bf16.msra.mxu1 %v998_v42  ;;  %3587 = vmatprep.mubr.msk.bf16.mxu1 %vm190_vm1, %v3866_v53  ;;  %v2493_v42 = vrot.slane %v2492_v31, 4  ;;  %v1123_v46 = vrot.slane %v1121_v34, 5  ;;  %v2507_v49 = vrot.slane %v2506_v37, 4  ;;  %v1129_v13 = vrot.slane %v1127_v40, 5  ;;  %v3401_v40 = vld [vmem:[%s3935_s23 + $0xbc] sm:$0x1] }
  0x70   : > { %3827 = vmatprep.subr.msk.bf16.mxu1 %vm203_vm0, %v3240_v35  ;;  %v4241_v35 = vld [vmem:[%s4502_s1 + $0x1c] sm:$0xf]  ;;  %v1134_v50 = vrot.slane %v1132_v25, 4  ;;  %v1141_v55 = vshll.u32 %v3231_v38, 16  ;;  %v1137_v61 = vrot.slane %v1135_v51, 5  ;;  %v2514_v62 = vshrl.u32 %v3396_v21, 16 }
  0x71   : > { %v2498_v53 = vsel %vm4011_vm4, %v2493_v42, %v2497_v17  ;;  %v1124_v54 = vor.u32 %v1123_v46, %v1120_v45  ;;  %v4263_v56 = vsel %vm203_vm0, %v4241_v35, 0  ;;  %v2512_v58 = vsel %vm4011_vm4, %v2507_v49, %v2511_v24  ;;  %v3402_v25 = vld [vmem:[%s3935_s23 + $0xc0] sm:$0xf]  ;;  %v3873_v42 = vld [vmem:[%s3935_s23 + $0xf0] ss:$8 sps:$4 sm:$0xff]  }
  0x72   : > { %v2517_v63 = vshll.u32 %v3396_v21, 16  ;;  %v4272_v0 = vcombine.low %v2498_v53, %v2512_v58  ;;  %v1143_v2 = vrot.slane %v1141_v55, 5  ;;  %v2523_v3 = vshll.u32 %v3397_v27, 16  ;;  %v3876_v53 = vld [vmem:[%s3935_s23 + $0x108] ss:$8 sps:$4 sm:$0xff]  }
  0x73   : > { %3664 = vmatmul.mubr.msk.bf16.vlgmr.msra.gmra.mrb[0].mxu0 %vm190_vm1, %v3865_v4  ;;  %v1125_v1 = vrot.slane %v1124_v54, 4  ;;  %v3232_v4 = vld [vmem:[%s3935_s23 + $0xb0] sm:$0xf]  ;;  %v1138_v5 = vor.u32 %v1137_v61, %v1134_v50  ;;  %v2516_v6 = vrot.slane %v2514_v62, 4  ;;  %v2528_v44 = vshrl.u32 %v3398_v57, 16 }
  0x74   : > { %3672 = vmatpush3.bf16.msra.mxu0 %v4201_v43  ;;  %3667 = vmatprep.mubr.msk.bf16.mxu0 %vm190_vm1, %v3867_v8  ;;  %v4259_v43 = vld [vmem:[%s4502_s1 + $0x3c] sm:$0xf]  ;;  %v2519_v7 = vrot.slane %v2517_v63, 5  ;;  %v3233_v8 = vld [vmem:[%s3935_s23 + $0xb4] sm:$0x1]  ;;  %v2525_v10 = vrot.slane %v2523_v3, 5 }
  0x75   : > { %3835 = vmatprep.subr.msk.bf16.mxu0 %vm203_vm0, %v4190_v39  ;;  %v3871_v39 = vld [vmem:[%s3935_s23 + $0xe0] ss:$8 sps:$4 sm:$0xff]   ;;  %v1130_v9 = vsel %vm4011_vm4, %v1125_v1, %v1129_v13  ;;  %v2531_v11 = vshll.u32 %v3398_v57, 16  ;;  %v2537_v12 = vshll.u32 %v3399_v26, 16  ;;  %v1139_v16 = vrot.slane %v1138_v5, 4 }
  0x76   : > { %3588 = vmatmul.mubr.msk.bf16.gmra.mrb[4].mxu1 %vm190_vm1, %v3868_v19  ;;  %v2520_v17 = vor.u32 %v2519_v7, %v2516_v6  ;;  %v2530_v18 = vrot.slane %v2528_v44, 4  ;;  %v4283_v19 = vsel %vm203_vm0, %v4259_v43, 0  ;;  %v1146_v24 = vshrl.u32 %v3232_v4, 16  ;;  %v3875_v13 = vld [vmem:[%s3935_s23 + $0x100] ss:$8 sps:$4 sm:$0xff]  }
  0x77   : > { %3593 = vmatprep.mubr.msk.bf16.mxu1 %vm190_vm1, %v3870_v29  ;;  %v2533_v22 = vrot.slane %v2531_v11, 5  ;;  %v2539_v23 = vrot.slane %v2537_v12, 5  ;;  %v1149_v28 = vshll.u32 %v3232_v4, 16  ;;  %v1144_v29 = vsel %vm4011_vm4, %v1139_v16, %v1143_v2  ;;  %v3403_v55 = vld [vmem:[%s3935_s23 + $0xc4] sm:$0x1] }
  0x78   : > { %v2521_v30 = vrot.slane %v2520_v17, 4  ;;  %v1155_v31 = vshll.u32 %v3233_v8, 16  ;;  %v1160_v32 = vshrl.u32 %v3234_v14, 16  ;;  %v4291_v34 = vcombine.low %v1130_v9, %v1144_v29  ;;  %v3236_v63 = vld [vmem:[%s3935_s23 + $0xc0] sm:$0xf] }
  0x79   : > { %v2534_v36 = vor.u32 %v2533_v22, %v2530_v18  ;;  %v1148_v37 = vrot.slane %v1146_v24, 4  ;;  %v1151_v38 = vrot.slane %v1149_v28, 5  ;;  %v1163_v49 = vshll.u32 %v3234_v14, 16  ;;  %v3404_v18 = vld [vmem:[%s3935_s23 + $0xc8] sm:$0xf] }
  0x7a   : > { %v2526_v45 = vsel %vm4011_vm4, %v2521_v30, %v2525_v10  ;;  %v1157_v46 = vrot.slane %v1155_v31, 5  ;;  %v1162_v21 = vrot.slane %v1160_v32, 4  ;;  %v1169_v27 = vshll.u32 %v3235_v20, 16  ;;  %v3239_v10 = vld [vmem:[%s3935_s23 + $0xcc] sm:$0x1] }
  0x7b   : > { %3668 = vmatmul.mubr.msk.bf16.gmra.mrb[4].mxu0 %vm190_vm1, %v3869_v52  ;;  %v2535_v50 = vrot.slane %v2534_v36, 4  ;;  %v1152_v51 = vor.u32 %v1151_v38, %v1148_v37  ;;  %v2542_v52 = vshrl.u32 %v3400_v33, 16  ;;  %v1165_v54 = vrot.slane %v1163_v49, 5  ;;  %v3405_v24 = vld [vmem:[%s3935_s23 + $0xcc] sm:$0x1] }
  0x7c   : > { %3673 = vmatprep.mubr.msk.bf16.mxu0 %vm190_vm1, %v3871_v39  ;;  %v2545_v57 = vshll.u32 %v3400_v33, 16  ;;  %v2551_v39 = vshll.u32 %v3401_v40, 16  ;;  %v2556_v58 = vshrl.u32 %v3402_v25, 16  ;;  %v1171_v26 = vrot.slane %v1169_v27, 5  ;;  %v3877_v28 = vld [vmem:[%s3935_s23 + $0x110] ss:$8 sps:$4 sm:$0xff]  }
  0x7d   : > { %v1153_v61 = vrot.slane %v1152_v51, 4  ;;  %v2544_v62 = vrot.slane %v2542_v52, 4  ;;  %v1166_v2 = vor.u32 %v1165_v54, %v1162_v21  ;;  %v2559_v7 = vshll.u32 %v3402_v25, 16  ;;  %v3406_v32 = vld [vmem:[%s3935_s23 + $0xd0] sm:$0xf] }
  0x7e   : > { %3594 = vmatmul.mubr.msk.bf16.vlgmr.msra.gmra.mrb[0].mxu1 %vm190_vm1, %v3872_v60  ;;  %v2547_v3 = vrot.slane %v2545_v57, 5  ;;  %v2553_v4 = vrot.slane %v2551_v39, 5  ;;  %v3238_v60 = vld [vmem:[%s3935_s23 + $0xc8] sm:$0xf]  ;;  %v2558_v6 = vrot.slane %v2556_v58, 4  ;;  %v2565_v44 = vshll.u32 %v3403_v55, 16 }
  0x7f   : > { %3602 = vmatpush3.bf16.msra.mxu1 %v4207_v47  ;;  %3597 = vmatprep.mubr.msk.bf16.mxu1 %vm190_vm1, %v3874_v15  ;;  %v2540_v47 = vsel %vm4011_vm4, %v2535_v50, %v2539_v23  ;;  %v1158_v5 = vsel %vm4011_vm4, %v1153_v61, %v1157_v46  ;;  %v1167_v8 = vrot.slane %v1166_v2, 4  ;;  %v1174_v11 = vshrl.u32 %v3236_v63, 16  ;;  %v3407_v40 = vld [vmem:[%s3935_s23 + $0xd4] sm:$0x1]  ;;  %v3249_v21 = vld [vmem:[%s3935_s23 + $0xd8] sm:$0xf] }
  0x80   : > { %3828 = vmatprep.subr.msk.bf16.mxu1 %vm203_vm0, %v4241_v35  ;;  %v4309_v1 = vcombine.low %v2526_v45, %v2540_v47  ;;  %v3237_v35 = vld [vmem:[%s3935_s23 + $0xc4] sm:$0x1]  ;;  %v2548_v9 = vor.u32 %v2547_v3, %v2544_v62  ;;  %v1177_v12 = vshll.u32 %v3236_v63, 16  ;;  %v2561_v14 = vrot.slane %v2559_v7, 5  ;;  %v3250_v51 = vld [vmem:[%s3935_s23 + $0xdc] sm:$0x1] }
  0x81   : > { %v2567_v15 = vrot.slane %v2565_v44, 5  ;;  %v1183_v16 = vshll.u32 %v3237_v35, 16  ;;  %v1188_v17 = vshrl.u32 %v3238_v60, 16  ;;  %v1176_v23 = vrot.slane %v1174_v11, 4  ;;  %v3251_v55 = vld [vmem:[%s3935_s23 + $0xe0] sm:$0xf] }
  0x82   : > { %v2549_v22 = vrot.slane %v2548_v9, 4  ;;  %v1179_v20 = vrot.slane %v1177_v12, 5  ;;  %v2562_v29 = vor.u32 %v2561_v14, %v2558_v6  ;;  %v1191_v37 = vshll.u32 %v3238_v60, 16  ;;  %v3252_v63 = vld [vmem:[%s3935_s23 + $0xe4] sm:$0x1] }
  0x83   : > { %3674 = vmatmul.mubr.msk.bf16.vlgmr.msra.gmra.mrb[0].mxu0 %vm190_vm1, %v3873_v42  ;;  %v1185_v30 = vrot.slane %v1183_v16, 5  ;;  %v1190_v31 = vrot.slane %v1188_v17, 4  ;;  %v1197_v38 = vshll.u32 %v3239_v10, 16  ;;  %v2570_v42 = vshrl.u32 %v3404_v18, 16  ;;  %v3417_v60 = vld [vmem:[%s3935_s23 + $0xe0] sm:$0xf] }
  0x84   : > { %3682 = vmatpush3.bf16.msra.mxu0 %v4211_v48  ;;  %3677 = vmatprep.mubr.msk.bf16.mxu0 %vm190_vm1, %v3875_v13  ;;  %v1172_v48 = vsel %vm4011_vm4, %v1167_v8, %v1171_v26  ;;  %v2554_v33 = vsel %vm4011_vm4, %v2549_v22, %v2553_v4  ;;  %v1180_v36 = vor.u32 %v1179_v20, %v1176_v23  ;;  %v2563_v25 = vrot.slane %v2562_v29, 4  ;;  %v3418_v8 = vld [vmem:[%s3935_s23 + $0xe4] sm:$0x1]  ;;  %v3419_v12 = vld [vmem:[%s3935_s23 + $0xe8] sm:$0xf] }
  0x85   : > { %3836 = vmatprep.subr.msk.bf16.mxu0 %vm203_vm0, %v4259_v43  ;;  %v3243_v43 = vcombine.low %v1158_v5, %v1172_v48  ;;  %v2573_v45 = vshll.u32 %v3404_v18, 16  ;;  %v2579_v46 = vshll.u32 %v3405_v24, 16  ;;  %v1193_v49 = vrot.slane %v1191_v37, 5  ;;  %v3420_v24 = vld [vmem:[%s3935_s23 + $0xec] sm:$0x1] }
  0x86   : > { %3598 = vmatmul.mubr.msk.bf16.gmra.mrb[4].mxu1 %vm190_vm1, %v3876_v53  ;;  %v1199_v13 = vrot.slane %v1197_v38, 5  ;;  %v2584_v50 = vshrl.u32 %v3406_v32, 16  ;;  %v2568_v27 = vsel %vm4011_vm4, %v2563_v25, %v2567_v15  ;;  %v2572_v52 = vrot.slane %v2570_v42, 4  ;;  %v3255_v25 = vld [vmem:[%s3935_s23 + $0xf0] sm:$0xf] }
  0x87   : > { %3603 = vmatprep.mubr.msk.bf16.mxu1 %vm190_vm1, %v4245_v41  ;;  %v1181_v41 = vrot.slane %v1180_v36, 4  ;;  %v2575_v53 = vrot.slane %v2573_v45, 5  ;;  %v2581_v54 = vrot.slane %v2579_v46, 5  ;;  %v3411_v57 = vcombine.low %v2554_v33, %v2568_v27  ;;  %v3253_v33 = vld [vmem:[%s3935_s23 + $0xe8] sm:$0xf] }
  0x88   : > { %v1194_v58 = vor.u32 %v1193_v49, %v1190_v31  ;;  %v2586_v47 = vrot.slane %v2584_v50, 4  ;;  %v2587_v26 = vshll.u32 %v3406_v32, 16  ;;  %v2593_v62 = vshll.u32 %v3407_v40, 16  ;;  %v3254_v40 = vld [vmem:[%s3935_s23 + $0xec] sm:$0x1] }
  0x89   : > { %v1186_v39 = vsel %vm4011_vm4, %v1181_v41, %v1185_v30  ;;  %v2576_v61 = vor.u32 %v2575_v53, %v2572_v52  ;;  %v1320_v2 = vshrl.u32 %v3249_v21, 16  ;;  %v1323_v4 = vshll.u32 %v3249_v21, 16  ;;  %v3256_v27 = vld [vmem:[%s3935_s23 + $0xf4] sm:$0x1] }
  0x8a   : > { %v1195_v3 = vrot.slane %v1194_v58, 4  ;;  %v1329_v35 = vshll.u32 %v3250_v51, 16  ;;  %v2589_v6 = vrot.slane %v2587_v26, 5  ;;  %v2595_v7 = vrot.slane %v2593_v62, 5  ;;  %v3422_v62 = vld [vmem:[%s3935_s23 + $0xf4] sm:$0x1] }
  0x8b   : > { %3678 = vmatmul.mubr.msk.bf16.gmra.mrb[4].mxu0 %vm190_vm1, %v3877_v28  ;;  %v2577_v5 = vrot.slane %v2576_v61, 4  ;;  %v1322_v44 = vrot.slane %v1320_v2, 4  ;;  %v1337_v16 = vshll.u32 %v3251_v55, 16  ;;  %v1343_v18 = vshll.u32 %v3252_v63, 16  ;;  %v3423_v63 = vld [vmem:[%s3935_s23 + $0xf8] sm:$0xf] }
  0x8c   : > { %3683 = vmatprep.mubr.msk.bf16.mxu0 %vm190_vm1, %v4272_v0  ;;  %v1334_v0 = vshrl.u32 %v3251_v55, 16  ;;  %v1200_v9 = vsel %vm4011_vm4, %v1195_v3, %v1199_v13  ;;  %v1331_v10 = vrot.slane %v1329_v35, 5  ;;  %v2716_v48 = vshrl.u32 %v3417_v60, 16 }
  0x8d   : > { %v3244_v14 = vcombine.low %v1186_v39, %v1200_v9  ;;  %v2582_v15 = vsel %vm4011_vm4, %v2577_v5, %v2581_v54  ;;  %v2719_v22 = vshll.u32 %v3417_v60, 16  ;;  %v1339_v20 = vrot.slane %v1337_v16, 5  ;;  %v3421_v39 = vld [vmem:[%s3935_s23 + $0xf0] sm:$0xf]  ;;  %v3259_v16 = vld [vmem:[%s3935_s23 + $0x100] sm:$0xf] }
  0x8e   : > { %3604 = vmatmul.mubr.msk.bf16.vlgmr.msra.gmra.mrb[0].mxu1 %vm190_vm1, %v4291_v34  ;;  %v1325_v34 = vrot.slane %v1323_v4, 5  ;;  %v1336_v11 = vrot.slane %v1334_v0, 4  ;;  %v2725_v28 = vshll.u32 %v3418_v8, 16  ;;  %v1345_v30 = vrot.slane %v1343_v18, 5  ;;  %v3424_v0 = vld [vmem:[%s3935_s23 + $0xfc] sm:$0x1] }
  0x8f   : > { %3612 = vmatpush3.bf16.msra.mxu1 %v4263_v56  ;;  %3607 = vmatprep.mubr.msk.bf16.mxu1 %vm190_vm1, %v3243_v43  ;;  %v2590_v56 = vor.u32 %v2589_v6, %v2586_v47  ;;  %v2730_v43 = vshrl.u32 %v3419_v12, 16  ;;  %v2718_v31 = vrot.slane %v2716_v48, 4  ;;  %v2721_v32 = vrot.slane %v2719_v22, 5 }
  0x90   : > { %v1326_v17 = vor.u32 %v1325_v34, %v1322_v44  ;;  %v2727_v37 = vrot.slane %v2725_v28, 5  ;;  %v2733_v46 = vshll.u32 %v3419_v12, 16  ;;  %v2739_v41 = vshll.u32 %v3420_v24, 16  ;;  %v3257_v44 = vld [vmem:[%s3935_s23 + $0xf8] sm:$0xf] }
  0x91   : > { %v2591_v23 = vrot.slane %v2590_v56, 4  ;;  %v2732_v38 = vrot.slane %v2730_v43, 4  ;;  %v2722_v45 = vor.u32 %v2721_v32, %v2718_v31  ;;  %v1348_v49 = vshrl.u32 %v3253_v33, 16 }
  0x92   : > { %v1327_v29 = vrot.slane %v1326_v17, 4  ;;  %v1351_v13 = vshll.u32 %v3253_v33, 16  ;;  %v2735_v51 = vrot.slane %v2733_v46, 5  ;;  %v1357_v52 = vshll.u32 %v3254_v40, 16 }
  0x93   : > { %3684 = vmatmul.mubr.msk.bf16.vlgmr.msra.gmra.mrb[0].mxu0 %vm190_vm1, %v4309_v1  ;;  %v2596_v36 = vsel %vm4011_vm4, %v2591_v23, %v2595_v7  ;;  %v1340_v1 = vor.u32 %v1339_v20, %v1336_v11  ;;  %v2723_v50 = vrot.slane %v2722_v45, 4  ;;  %v1362_v53 = vshrl.u32 %v3255_v25, 16  ;;  %v3258_v11 = vld [vmem:[%s3935_s23 + $0xfc] sm:$0x1]  ;;  %v3427_v45 = vld [vmem:[%s3935_s23 + $0x108] sm:$0xf] }
  0x94   : > { %3692 = vmatpush3.bf16.msra.mxu0 %v4283_v19  ;;  %3687 = vmatprep.mubr.msk.bf16.mxu0 %vm190_vm1, %v3411_v57  ;;  %v3412_v42 = vcombine.low %v2582_v15, %v2596_v36  ;;  %v1332_v19 = vsel %vm4011_vm4, %v1327_v29, %v1331_v10  ;;  %v1350_v55 = vrot.slane %v1348_v49, 4  ;;  %v1353_v57 = vrot.slane %v1351_v13, 5  ;;  %v3260_v29 = vld [vmem:[%s3935_s23 + $0x104] sm:$0x1] }
  0x95   : > { %v1341_v21 = vrot.slane %v1340_v1, 4  ;;  %v2736_v47 = vor.u32 %v2735_v51, %v2732_v38  ;;  %v2741_v61 = vrot.slane %v2739_v41, 5  ;;  %v1359_v26 = vrot.slane %v1357_v52, 5  ;;  %v3425_v38 = vld [vmem:[%s3935_s23 + $0x100] sm:$0xf] }
  0x96   : > { %3608 = vmatmul.mubr.msk.bf16.gmra.mrb[4].mxu1 %vm190_vm1, %v3244_v14  ;;  %v1354_v2 = vor.u32 %v1353_v57, %v1350_v55  ;;  %v1364_v3 = vrot.slane %v1362_v53, 4  ;;  %v1365_v4 = vshll.u32 %v3255_v25, 16  ;;  %v1371_v35 = vshll.u32 %v3256_v27, 16  ;;  %v3426_v13 = vld [vmem:[%s3935_s23 + $0x104] sm:$0x1] }
  0x97   : > { %v1346_v54 = vsel %vm4011_vm4, %v1341_v21, %v1345_v30  ;;  %v2728_v60 = vsel %vm4011_vm4, %v2723_v50, %v2727_v37  ;;  %v2737_v5 = vrot.slane %v2736_v47, 4  ;;  %v2744_v6 = vshrl.u32 %v3421_v39, 16  ;;  %v3428_v57 = vld [vmem:[%s3935_s23 + $0x10c] sm:$0x1] }
  0x98   : > { %v3266_v58 = vcombine.low %v1332_v19, %v1346_v54  ;;  %v2747_v7 = vshll.u32 %v3421_v39, 16  ;;  %v1355_v8 = vrot.slane %v1354_v2, 4  ;;  %v1367_v9 = vrot.slane %v1365_v4, 5 }
  0x99   : > { %v2753_v34 = vshll.u32 %v3422_v62, 16  ;;  %v2758_v10 = vshrl.u32 %v3423_v63, 16  ;;  %v2742_v12 = vsel %vm4011_vm4, %v2737_v5, %v2741_v61  ;;  %v1373_v14 = vrot.slane %v1371_v35, 5  ;;  %v3261_v62 = vld [vmem:[%s3935_s23 + $0x108] sm:$0xf] }
  0x9a   : > { %3613 = vmatprep.mubr.msk.bf16.mxu1 %vm190_vm1, %v3266_v58  ;;  %v2746_v15 = vrot.slane %v2744_v6, 4  ;;  %v2749_v56 = vrot.slane %v2747_v7, 5  ;;  %v3434_v17 = vcombine.low %v2728_v60, %v2742_v12  ;;  %v1360_v18 = vsel %vm4011_vm4, %v1355_v8, %v1359_v26  ;;  %v3263_v35 = vld [vmem:[%s3935_s23 + $0x110] sm:$0xf]  ;;  %v3262_v7 = vld [vmem:[%s3935_s23 + $0x10c] sm:$0x1] }
  0x9b   : > { %3688 = vmatmul.mubr.msk.bf16.gmra.mrb[4].mxu0 %vm190_vm1, %v3412_v42  ;;  %v1368_v48 = vor.u32 %v1367_v9, %v1364_v3  ;;  %v2760_v22 = vrot.slane %v2758_v10, 4  ;;  %v2761_v20 = vshll.u32 %v3423_v63, 16  ;;  %v2767_v24 = vshll.u32 %v3424_v0, 16 }
  0x9c   : > { %v2750_v23 = vor.u32 %v2749_v56, %v2746_v15  ;;  %v1376_v28 = vshrl.u32 %v3257_v44, 16  ;;  %3693 = vmatprep.mubr.msk.bf16.mxu0 %vm190_vm1, %v3434_v17  ;;  %v1379_v30 = vshll.u32 %v3257_v44, 16  ;;  %v1385_v31 = vshll.u32 %v3258_v11, 16 }
  0x9d   : > { %v1369_v43 = vrot.slane %v1368_v48, 4  ;;  %v1390_v32 = vshrl.u32 %v3259_v16, 16  ;;  %v2755_v36 = vrot.slane %v2753_v34, 5  ;;  %v2763_v1 = vrot.slane %v2761_v20, 5  ;;  %v3429_v48 = vld [vmem:[%s3935_s23 + $0x110] sm:$0xf] }
  0x9e   : > { %v2751_v33 = vrot.slane %v2750_v23, 4  ;;  %v1378_v37 = vrot.slane %v1376_v28, 4  ;;  %v2769_v25 = vrot.slane %v2767_v24, 5  ;;  %v1381_v42 = vrot.slane %v1379_v30, 5  ;;  %v3431_v24 = vld [vmem:[%s3935_s23 + $0x118] sm:$0xf] }
  0x9f   : > { %v1374_v40 = vsel %vm4011_vm4, %v1369_v43, %v1373_v14  ;;  %v1387_v19 = vrot.slane %v1385_v31, 5  ;;  %v2764_v21 = vor.u32 %v2763_v1, %v2760_v22  ;;  %v1392_v41 = vrot.slane %v1390_v32, 4  ;;  %v3264_v14 = vld [vmem:[%s3935_s23 + $0x114] sm:$0x1] }
  0xa0   : > { %v3267_v46 = vcombine.low %v1360_v18, %v1374_v40  ;;  %v1393_v49 = vshll.u32 %v3259_v16, 16  ;;  %v1382_v50 = vor.u32 %v1381_v42, %v1378_v37  ;;  %v1399_v51 = vshll.u32 %v3260_v29, 16  ;;  %v3430_v31 = vld [vmem:[%s3935_s23 + $0x114] sm:$0x1] }
  0xa1   : > { %v2772_v27 = vshrl.u32 %v3425_v38, 16  ;;  %v2775_v52 = vshll.u32 %v3425_v38, 16  ;;  %v2756_v53 = vsel %vm4011_vm4, %v2751_v33, %v2755_v36  ;;  %v2765_v54 = vrot.slane %v2764_v21, 4 }
  0xa2   : > { %3614 = vmatmul.mubr.msk.bf16.vlgmr.msra.gmra.mrb[0].mxu1 %vm190_vm1, %v3267_v46  ;;  %v1395_v55 = vrot.slane %v1393_v49, 5  ;;  %v2786_v39 = vshrl.u32 %v3427_v45, 16  ;;  %v1383_v58 = vrot.slane %v1382_v50, 4  ;;  %v2781_v26 = vshll.u32 %v3426_v13, 16 }
  0xa3   : > { %v2774_v47 = vrot.slane %v2772_v27, 4  ;;  %v2777_v61 = vrot.slane %v2775_v52, 5  ;;  %v2770_v63 = vsel %vm4011_vm4, %v2765_v54, %v2769_v25  ;;  %v1401_v3 = vrot.slane %v1399_v51, 5  ;;  %v3432_v25 = vld [vmem:[%s3935_s23 + $0x11c] sm:$0x1] }
  0xa4   : > { %v1396_v2 = vor.u32 %v1395_v55, %v1392_v41  ;;  %v2788_v4 = vrot.slane %v2786_v39, 4  ;;  %v3435_v0 = vcombine.low %v2756_v53, %v2770_v63  ;;  %v1388_v60 = vsel %vm4011_vm4, %v1383_v58, %v1387_v19 }
  0xa5   : > { %v2778_v5 = vor.u32 %v2777_v61, %v2774_v47  ;;  %v2789_v6 = vshll.u32 %v3427_v45, 16  ;;  %v2795_v8 = vshll.u32 %v3428_v57, 16  ;;  %v1404_v9 = vshrl.u32 %v3261_v62, 16 }
  0xa6   : > { %v1397_v44 = vrot.slane %v1396_v2, 4  ;;  %v1407_v34 = vshll.u32 %v3261_v62, 16  ;;  %3694 = vmatmul.mubr.msk.bf16.vlgmr.msra.gmra.mrb[0].mxu0 %vm190_vm1, %v3435_v0  ;;  %v2783_v11 = vrot.slane %v2781_v26, 5  ;;  %v1418_v15 = vshrl.u32 %v3263_v35, 16 }
  0xa7   : > { %v2779_v10 = vrot.slane %v2778_v5, 4  ;;  %v2791_v12 = vrot.slane %v2789_v6, 5  ;;  %v1406_v16 = vrot.slane %v1404_v9, 4  ;;  %v1413_v18 = vshll.u32 %v3262_v7, 16 }
  0xa8   : > { %v1402_v56 = vsel %vm4011_vm4, %v1397_v44, %v1401_v3  ;;  %v1409_v17 = vrot.slane %v1407_v34, 5  ;;  %v2797_v20 = vrot.slane %v2795_v8, 5  ;;  %v1420_v43 = vrot.slane %v1418_v15, 4 }
  0xa9   : > { %v3268_v22 = vcombine.low %v1388_v60, %v1402_v56  ;;  %v2792_v23 = vor.u32 %v2791_v12, %v2788_v4  ;;  %v1421_v29 = vshll.u32 %v3263_v35, 16  ;;  %v1427_v30 = vshll.u32 %v3264_v14, 16 }
  0xaa   : > { %v1410_v28 = vor.u32 %v1409_v17, %v1406_v16  ;;  %v2784_v32 = vsel %vm4011_vm4, %v2779_v10, %v2783_v11  ;;  %v2800_v36 = vshrl.u32 %v3429_v48, 16  ;;  %v2803_v1 = vshll.u32 %v3429_v48, 16 }
  0xab   : > { %3617 = vmatprep.mubr.msk.bf16.mxu1 %vm190_vm1, %v3268_v22  ;;  %v2793_v33 = vrot.slane %v2792_v23, 4  ;;  %v1415_v38 = vrot.slane %v1413_v18, 5  ;;  %v1423_v40 = vrot.slane %v1421_v29, 5  ;;  %v2814_v42 = vshrl.u32 %v3431_v24, 16 }
  0xac   : > { %v1411_v37 = vrot.slane %v1410_v28, 4  ;;  %v2802_v45 = vrot.slane %v2800_v36, 4  ;;  %v2805_v46 = vrot.slane %v2803_v1, 5  ;;  %v2809_v21 = vshll.u32 %v3430_v31, 16 }
  0xad   : > { %v2798_v19 = vsel %vm4011_vm4, %v2793_v33, %v2797_v20  ;;  %v1424_v49 = vor.u32 %v1423_v40, %v1420_v43  ;;  %v1429_v13 = vrot.slane %v1427_v30, 5  ;;  %v2816_v51 = vrot.slane %v2814_v42, 4 }
  0xae   : > { %v3436_v41 = vcombine.low %v2784_v32, %v2798_v19  ;;  %v2806_v50 = vor.u32 %v2805_v46, %v2802_v45  ;;  %v2817_v27 = vshll.u32 %v3431_v24, 16  ;;  %v2823_v52 = vshll.u32 %v3432_v25, 16 }
  0xaf   : > { %v1416_v53 = vsel %vm4011_vm4, %v1411_v37, %v1415_v38  ;;  %v1425_v54 = vrot.slane %v1424_v49, 4  ;;  %v2811_v57 = vrot.slane %v2809_v21, 5 }
  0xb0   : > { %3697 = vmatprep.mubr.msk.bf16.mxu0 %vm190_vm1, %v3436_v41  ;;  %v2807_v55 = vrot.slane %v2806_v50, 4  ;;  %v2819_v39 = vrot.slane %v2817_v27, 5  ;;  %v2825_v26 = vrot.slane %v2823_v52, 5 }
  0xb1   : > { %v1430_v58 = vsel %vm4011_vm4, %v1425_v54, %v1429_v13 }
  0xb2   : > { %v3269_v47 = vcombine.low %v1416_v53, %v1430_v58  ;;  %v2820_v61 = vor.u32 %v2819_v39, %v2816_v51  ;;  %v2812_v62 = vsel %vm4011_vm4, %v2807_v55, %v2811_v57 }
  0xb4   : > { %3618 = vmatmul.mubr.msk.bf16.gmra.mrb[4].mxu1 %vm190_vm1, %v3269_v47  ;;  %v2821_v63 = vrot.slane %v2820_v61, 4 }
  0xb6   : > { %v2826_v2 = vsel %vm4011_vm4, %v2821_v63, %v2825_v26 }
  0xb7   : > { %v3437_v3 = vcombine.low %v2812_v62, %v2826_v2 }
  0xb9   : > { %3698 = vmatmul.mubr.msk.bf16.gmra.mrb[4].mxu0 %vm190_vm1, %v3437_v3 }
 0x175   : > { %v3615_v4 = vpop.f32.mrb[0].mxu1 }
 0x176   : > { %v1494_v35 = vpop.f32.mrb[1].mxu1 }
 0x177   : > { %v3616_v0 = vpop.f32.mrb[2].mxu1 }
 0x178   : > { %v1497_v60 = vpop.f32.mrb[3].mxu1 }
 0x179   : > { %v3695_v5 = vpop.f32.mrb[0].mxu0 }
 0x17a   : > { %v4428_v6 = vadd.f32 %v3695_v5, %v3615_v4  ;;  %v2890_v7 = vpop.f32.mrb[1].mxu0 }
 0x17b   : > { %v4430_v44 = vadd.f32 %v2890_v7, %v1494_v35  ;;  %v3696_v8 = vpop.f32.mrb[2].mxu0 }
 0x17c   : > { %v4432_v9 = vadd.f32 %v3696_v8, %v3616_v0  ;;  %v2893_v34 = vpop.f32.mrb[3].mxu0  ;;  %v2953_v11 = vmul.f32 %v4428_v6, %v4428_v6  ;;  %v2933_v16 = vsel %vm2929_vm5, %v4428_v6, 0.0 }
 0x17d   : > { %v2951_v59 = vmul.f32 %v4430_v44, %v4430_v44  ;;  %v4436_v10 = vadd.f32 %v2893_v34, %v1497_v60  ;;  %v2930_v12 = vsel %vm2929_vm5, %v4430_v44, 0.0 }
 0x17e   : > { %v2954_v18 = vmul.f32 %v4432_v9, %v4432_v9  ;;  %v2962_v20 = vsel %vm2929_vm5, %v2953_v11, 0.0  ;;  %v2935_v24 = vsel %vm2929_vm5, %v4432_v9, 0.0 }
 0x17f   : > { %v2931_v14 = vsel %vm2929_vm5, %v4436_v10, 0.0  ;;  %v2952_v15 = vmul.f32 %v4436_v10, %v4436_v10  ;;  %v2959_v17 = vsel %vm2929_vm5, %v2951_v59, 0.0 }
 0x180   : > { %v2932_v56 = vadd.f32 %v2931_v14, %v2930_v12  ;;  %v2964_v29 = vsel %vm2929_vm5, %v2954_v18, 0.0 }
 0x181   : > { %v2960_v48 = vsel %vm2929_vm5, %v2952_v15, 0.0 }
 0x182   : > { %v2934_v22 = vadd.f32 %v2933_v16, %v2932_v56  ;;  %v2961_v23 = vadd.f32 %v2960_v48, %v2959_v17 }
 0x184   : > { %v2963_v28 = vadd.f32 %v2962_v20, %v2961_v23  ;;  %v2936_v43 = vadd.f32 %v2935_v24, %v2934_v22 }
 0x186   : > { %v2965_v30 = vadd.f32 %v2964_v29, %v2963_v28 }
 0x187   : > { %v3619_v31 = vpop.f32.mrb[4].mxu1 }
 0x188   : > { %v1510_v32 = vpop.f32.mrb[5].mxu1 }
 0x189   : > { %v3620_v33 = vpop.f32.mrb[6].mxu1 }
 0x18a   : > { %v1513_v36 = vpop.f32.mrb[7].mxu1 }
 0x18c   : > { %v3699_v1 = vpop.f32.mrb[4].mxu0 }
 0x18d   : > { %v4456_v37 = vadd.f32 %v3699_v1, %v3619_v31  ;;  %v2906_v38 = vpop.f32.mrb[5].mxu0 }
 0x18e   : > { %v3706_v40 = vadd.f32 %v2906_v38, %v1510_v32  ;;  %v3700_v25 = vpop.f32.mrb[6].mxu0 }
 0x18f   : > { %v3707_v42 = vadd.f32 %v3700_v25, %v3620_v33  ;;  %v2909_v19 = vpop.f32.mrb[7].mxu0  ;;  %v2957_v49 = vmul.f32 %v4456_v37, %v4456_v37  ;;  %v2941_v53 = vsel %vm2929_vm5, %v4456_v37, 0.0 }
 0x190   : > { %v2937_v45 = vsel %vm2929_vm5, %v3706_v40, 0.0  ;;  %v2955_v46 = vmul.f32 %v3706_v40, %v3706_v40  ;;  %v3708_v21 = vadd.f32 %v2909_v19, %v1513_v36 }
 0x191   : > { %v2938_v41 = vadd.f32 %v2937_v45, %v2936_v43  ;;  %v2958_v54 = vmul.f32 %v3707_v42, %v3707_v42  ;;  %v2970_v58 = vsel %vm2929_vm5, %v2957_v49, 0.0  ;;  %v2943_v47 = vsel %vm2929_vm5, %v3707_v42, 0.0 }
 0x192   : > { %v2966_v13 = vsel %vm2929_vm5, %v2955_v46, 0.0  ;;  %v2939_v50 = vsel %vm2929_vm5, %v3708_v21, 0.0  ;;  %v2956_v51 = vmul.f32 %v3708_v21, %v3708_v21 }
 0x193   : > { %v2967_v27 = vadd.f32 %v2966_v13, %v2965_v30  ;;  %v2940_v52 = vadd.f32 %v2939_v50, %v2938_v41  ;;  %v2972_v62 = vsel %vm2929_vm5, %v2958_v54, 0.0 }
 0x194   : > { %v2968_v55 = vsel %vm2929_vm5, %v2956_v51, 0.0 }
 0x195   : > { %v2942_v57 = vadd.f32 %v2941_v53, %v2940_v52  ;;  %v2969_v39 = vadd.f32 %v2968_v55, %v2967_v27 }
 0x197   : > { %v2944_v61 = vadd.f32 %v2943_v47, %v2942_v57  ;;  %v2971_v26 = vadd.f32 %v2970_v58, %v2969_v39 }
 0x199   : > { %v2945_v63 = vrot.slane %v2944_v61, 4  ;;  %v2973_v2 = vadd.f32 %v2972_v62, %v2971_v26 }
 0x19b   : > { %v2946_v3 = vadd.f32 %v2945_v63, %v2944_v61  ;;  %v2974_v4 = vrot.slane %v2973_v2, 4 }
 0x19d   : > { %v2947_v35 = vrot.slane %v2946_v3, 2  ;;  %v2975_v0 = vadd.f32 %v2974_v4, %v2973_v2 }
 0x19f   : > { %v2948_v60 = vadd.f32 %v2947_v35, %v2946_v3  ;;  %v2976_v5 = vrot.slane %v2975_v0, 2 }
 0x1a1   : > { %v2949_v7 = vrot.slane %v2948_v60, 1  ;;  %v2977_v8 = vadd.f32 %v2976_v5, %v2975_v0 }
 0x1a3   : > { %v2950_v34 = vadd.f32 %v2949_v7, %v2948_v60  ;;  %v2978_v59 = vrot.slane %v2977_v8, 1 }
 0x1a5   : > { %v2979_v11 = vadd.f32 %v2978_v59, %v2977_v8  ;;  %v2980_v12 = vmul.f32 0.015625, %v2950_v34 }
 0x1a7   : > { %v2981_v14 = vmul.f32 0.015625, %v2979_v11  ;;  %v2982_v15 = vmul.f32 %v2980_v12, %v2980_v12  ;;  %v2984_v56 = vsub.f32 %v4430_v44, %v2980_v12  ;;  %v2985_v16 = vsub.f32 %v4436_v10, %v2980_v12 }
 0x1a8   : > { %v2986_v17 = vsub.f32 %v4428_v6, %v2980_v12  ;;  %v2987_v18 = vsub.f32 %v4432_v9, %v2980_v12  ;;  %v2988_v48 = vsub.f32 %v3706_v40, %v2980_v12  ;;  %v2989_v22 = vsub.f32 %v3708_v21, %v2980_v12 }
 0x1a9   : > { %v2983_v23 = vsub.f32 %v2981_v14, %v2982_v15  ;;  %v2990_v20 = vsub.f32 %v4456_v37, %v2980_v12  ;;  %v2991_v24 = vsub.f32 %v3707_v42, %v2980_v12 }
 0x1ab   : > { %v2992_v28 = vadd.f32 1e-05, %v2983_v23 }
 0x1ad   : > { %3878 = vrsqrt.f32 %v2992_v28 }
 0x1b7   : > { %v3879_v43 = vpop.eup %3878 }
 0x1b8   : > { %v2994_v44 = vmul.f32 %v3879_v43, %v2984_v56  ;;  %v2995_v10 = vmul.f32 %v3879_v43, %v2985_v16  ;;  %v2996_v29 = vmul.f32 %v3879_v43, %v2986_v17  ;;  %v2997_v6 = vmul.f32 %v3879_v43, %v2987_v18 }
 0x1b9   : > { %v2998_v30 = vmul.f32 %v3879_v43, %v2988_v48  ;;  %v2999_v9 = vmul.f32 %v3879_v43, %v2989_v22  ;;  %v3000_v31 = vmul.f32 %v3879_v43, %v2990_v20  ;;  %v3001_v32 = vmul.f32 %v3879_v43, %v2991_v24 }
 0x1ba   : > { %vm3002_vm7 = vcmp.ge.f32.partialorder %v2994_v44, 0.0  ;;  %vm3003_vm8 = vcmp.ge.f32.partialorder %v2995_v10, 0.0  ;;  %vm3004_vm9 = vcmp.ge.f32.partialorder %v2996_v29, 0.0  ;;  %vm3005_vm10 = vcmp.ge.f32.partialorder %v2997_v6, 0.0 }
 0x1bb   : > { %vm3006_vm11 = vcmp.ge.f32.partialorder %v2998_v30, 0.0  ;;  %vm3007_vm12 = vcmp.ge.f32.partialorder %v2999_v9, 0.0  ;;  %vm3008_vm13 = vcmp.ge.f32.partialorder %v3000_v31, 0.0  ;;  %vm3009_vm14 = vcmp.ge.f32.partialorder %v3001_v32, 0.0 }
 0x1bc   : > { %v3010_v33 = vmul.f32 0.2, %v2994_v44  ;;  %v3011_v36 = vmul.f32 0.2, %v2995_v10  ;;  %v3012_v1 = vmul.f32 0.2, %v2996_v29 }
 0x1bd   : > { %v3013_v37 = vmul.f32 0.2, %v2997_v6  ;;  %v3014_v38 = vmul.f32 0.2, %v2998_v30  ;;  %v3015_v40 = vmul.f32 0.2, %v2999_v9 }
 0x1be   : > { %v3016_v25 = vmul.f32 0.2, %v3000_v31  ;;  %v3017_v42 = vmul.f32 0.2, %v3001_v32  ;;  %v3018_v19 = vsel %vm3002_vm7, %v2994_v44, %v3010_v33  ;;  %v3019_v45 = vsel %vm3003_vm8, %v2995_v10, %v3011_v36 }
 0x1bf   : > { %v3020_v46 = vsel %vm3004_vm9, %v2996_v29, %v3012_v1  ;;  %v3021_v21 = vsel %vm3005_vm10, %v2997_v6, %v3013_v37  ;;  %v3022_v41 = vsel %vm3006_vm11, %v2998_v30, %v3014_v38  ;;  %v3023_v49 = vsel %vm3007_vm12, %v2999_v9, %v3015_v40 }
 0x1c0   : > { %v3024_v13 = vsel %vm3008_vm13, %v3000_v31, %v3016_v25  ;;  %v3025_v50 = vsel %vm3009_vm14, %v3001_v32, %v3017_v42  ;;  %v3453_v51 = vpack.c.bf16 %v3018_v19, %v3018_v19  ;;  %v3454_v27 = vpack.c.bf16 %v3019_v45, %v3019_v45 }
 0x1c1   : > { %v3455_v52 = vpack.c.bf16 %v3020_v46, %v3020_v46  ;;  %v3456_v53 = vpack.c.bf16 %v3021_v21, %v3021_v21  ;;  %v3457_v54 = vpack.c.bf16 %v3022_v41, %v3022_v41  ;;  %v3458_v55 = vpack.c.bf16 %v3023_v49, %v3023_v49 }
 0x1c2   : > { %v3459_v57 = vpack.c.bf16 %v3024_v13, %v3024_v13  ;;  %v3460_v39 = vpack.c.bf16 %v3025_v50, %v3025_v50  ;;  %3059 = vst.msk [vmem:[%s148_s10] sm:$0xf] %vm3058_vm6, %v3453_v51  ;;  %3060 = vst.msk [vmem:[%s148_s10 + $0x4] sm:$0xf] %vm3058_vm6, %v3454_v27 }
 0x1c3   : > { %3061 = vst.msk [vmem:[%s148_s10 + $0x8] sm:$0xf] %vm3058_vm6, %v3455_v52  ;;  %3062 = vst.msk [vmem:[%s148_s10 + $0xc] sm:$0xf] %vm3058_vm6, %v3456_v53 }
 0x1c4   : > { %3063 = vst.msk [vmem:[%s148_s10 + $0x10] sm:$0xf] %vm3058_vm6, %v3457_v54  ;;  %3064 = vst.msk [vmem:[%s148_s10 + $0x14] sm:$0xf] %vm3058_vm6, %v3458_v55 }
 0x1c5   : > { %3065 = vst.msk [vmem:[%s148_s10 + $0x18] sm:$0xf] %vm3058_vm6, %v3459_v57  ;;  %3066 = vst.msk [vmem:[%s148_s10 + $0x1c] sm:$0xf] %vm3058_vm6, %v3460_v39 }
 0x1c6 PF: > { %s12_s9 = sadd.s32 1, %s3886_s9  }
 0x1c7   : > { %p9_p5 = scmp.ge.s32.totalorder %s12_s9, 4  }
 0x1c9   :  { %11 = sbr.rel (!%p9_p5) target bundleno = 1 (0x1), region = 80 }

// kernel: discriminator_forward.3
= control target key start
LH: loop header
LB: loop body
LE: loop exit
PB: predicated region body
PF: predicated region fallthrough
CT: control target
= control target key end

     0   :  { %s11790_s12 = smov 0   ;;  %s13546_s0 = inlined_call_operand.vmem [shape: bf16[8,17,17,8], index: 0, kind: input, shape index: {}]   ;;  %s13547_s1 = inlined_call_operand.vmem [shape: bf16[16,8,8], index: 1, kind: input, shape index: {}]   ;;  %s13548_s2 = inlined_call_operand.vmem [shape: f32[1,8], index: 2, kind: input, shape index: {}]   ;;  %s13549_s3 = inlined_call_operand.vmem [shape: bf16[2,256,8], index: 3, kind: output, shape index: {}]  }
   0x1 LB: > { %s11796_s13 = sadd.s32 4294967295, %s11768_s12   ;;  %p9151_p0 = scmp.ge.s32.totalorder %s11768_s12, 1  ;;  %s11768_s12 = sphi %s11790_s12, %s13_s12  }
   0x2   : > { %p139_p1 = scmp.lt.s32.totalorder %s11768_s12, 3 }
   0x4   : > { %p140_p2 = pnand %p9151_p0, %p139_p1 }
   0x5   : > { %v9188_v0 = vld [vmem:[%s13547_s1 + $0x4] sm:$0xf] (!%p140_p2)  ;;  %vm374_vm0 = vcmask (!%p140_p2), 1043456   ;;  %v9691_v1 = vld [vmem:[%s13547_s1 + $0x20] sm:$0xf] (!%p140_p2)  ;;  %s9152_s18 = sshll.u32 (!%p140_p2), %s11796_s13, 2 }
   0x6   : > { %143 = sbr.rel (%p140_p2) target bundleno = 851 (0x353), region = 32  ;;  %11607 = vmatprep.subr.msk.bf16.mxu1 (!%p140_p2), %vm374_vm0, %v9188_v0  ;;  %11615 = vmatprep.subr.msk.bf16.mxu0 (!%p140_p2), %vm374_vm0, %v9691_v1  ;;  %v376_v2 = vsel (!%p140_p2), %vm374_vm0, %v9188_v0, 0  ;;  %v4620_v3 = vsel (!%p140_p2), %vm374_vm0, %v9691_v1, 0  ;;  %p165_p3 = scmp.lt.s32.totalorder (!%p140_p2), %s9152_s18, 7  ;;  %v209_v4 = vld [vmem:[%s13547_s1] sm:$0xf] (!%p140_p2) }
   0x7   : > { %10584 = vmatpush3.bf16.msra.mxu1 (!%p140_p2), %v376_v2  ;;  %10856 = vmatpush3.bf16.msra.mxu0 (!%p140_p2), %v4620_v3  ;;  %v9756_v5 = vld [vmem:[%s13547_s1 + $0x24] sm:$0xf] (!%p140_p2)  ;;  %vm325_vm1 = vcmask (!%p140_p2), 64512   ;;  %v668_v9 = vsel (!%p140_p2), %vm374_vm0, %v209_v4, 0  ;;  %v11832_v10 = vld [vmem:[%s13547_s1 + $0x8] sm:$0xf] (!%p140_p2) }
   0x8   : > { %11608 = vmatprep.subr.msk.bf16.mxu1 (!%p140_p2), %vm374_vm0, %v209_v4  ;;  %11616 = vmatprep.subr.msk.bf16.mxu0 (!%p140_p2), %vm374_vm0, %v9756_v5  ;;  %v4979_v12 = vsel (!%p140_p2), %vm374_vm0, %v9756_v5, 0  ;;  %v11840_v13 = vld [vmem:[%s13547_s1 + $0x28] sm:$0xf] (!%p140_p2)  ;;  %v1365_v43 = vsel (!%p140_p2), %vm374_vm0, %v11832_v10, 0  ;;  %vm879_vm2 = vsmask.f32 (!%p140_p2), 3328 }
   0x9   : > { %v5705_v45 = vsel (!%p140_p2), %vm374_vm0, %v11840_v13, 0  ;;  %v9334_v46 = vld [vmem:[%s13547_s1 + $0xc] sm:$0xf] (!%p140_p2)  ;;  %vm880_vm3 = vsmask.f32 (!%p140_p2), 7440  ;;  %p171_p4 = scmp.lt.s32.totalorder (!%p140_p2), %s11796_s13, 1 }
   0xa   : > { %v9918_v47 = vld [vmem:[%s13547_s1 + $0x2c] sm:$0xf] (!%p140_p2)  ;;  %v11920_v49 = vsel (!%p140_p2), %vm374_vm0, %v9334_v46, 0  ;;  %vm11941_vm4 = vmor (!%p140_p2), %vm879_vm2, %vm880_vm3  ;;  %vm9059_vm7 = vcmask (!%p140_p2), 60416  }
   0xb   : > { %v11924_v51 = vsel (!%p140_p2), %vm374_vm0, %v9918_v47, 0 }
   0xd   : > { %s13553_s18 = smov (!%p165_p3, %s9152_s18), 7  ;;  %s13555_s13 = smov (!%p171_p4, %s11796_s13), 1 }
   0xe   : > { %s11623_s23 = smul.u32 204, %s13553_s18  ;;  %s10278_s5 = sshll.u32 %s13555_s13, 7 }
   0xf   : > { %s13449_s8 = scalar_lea.vmem %s13549_s3, %s10278_s5 }
  0x10   : > { %s11822_s26 = scalar_lea.vmem %s13546_s0, %s11623_s23 }
  0x11   : > { %v11632_v6 = vld [vmem:[%s11822_s26 + $0xcc] sm:$0xff]   ;;  %v11634_v8 = vld [vmem:[%s11822_s26 + $0xd8] sm:$0xff]   ;;  %v11636_v14 = vld [vmem:[%s11822_s26 + $0xe4] sm:$0xff]  }
  0x12   : > { %v11633_v7 = vld [vmem:[%s11822_s26 + $0xc] sm:$0xff]   ;;  %10585 = vmatprep.mubr.msk.bf16.mxu1 %vm325_vm1, %v11632_v6  ;;  %v11635_v11 = vld [vmem:[%s11822_s26 + $0x18] sm:$0xff]   ;;  %v11637_v15 = vld [vmem:[%s11822_s26 + $0x24] sm:$0xff]  }
  0x13   : > { %10857 = vmatprep.mubr.msk.bf16.mxu0 %vm325_vm1, %v11633_v7  ;;  %10586 = vmatmul.mubr.msk.bf16.vlgmr.msra.gmra.mrb[0].mxu1 %vm325_vm1, %v11634_v8  ;;  %v11638_v16 = vld [vmem:[%s11822_s26 + $0xf0] sm:$0xff]   ;;  %v11640_v18 = vld [vmem:[%s11822_s26 + $0xfc] sm:$0xff]   ;;  %v11642_v20 = vld [vmem:[%s11822_s26 + $0x108] sm:$0xff]  }
  0x14   : > { %10618 = vmatpush3.bf16.msra.mxu1 %v668_v9  ;;  %10858 = vmatmul.mubr.msk.bf16.vlgmr.msra.gmra.mrb[0].mxu0 %vm325_vm1, %v11635_v11  ;;  %v11639_v17 = vld [vmem:[%s11822_s26 + $0x30] sm:$0xff]   ;;  %v11641_v19 = vld [vmem:[%s11822_s26 + $0x3c] sm:$0xff]   ;;  %v11643_v21 = vld [vmem:[%s11822_s26 + $0x48] sm:$0xff]  }
  0x15   : > { %10890 = vmatpush3.bf16.msra.mxu0 %v4979_v12  ;;  %10589 = vmatprep.mubr.msk.bf16.mxu1 %vm325_vm1, %v11636_v14  ;;  %v11644_v22 = vld [vmem:[%s11822_s26 + $0x114] sm:$0xff]   ;;  %v11646_v24 = vld [vmem:[%s11822_s26 + $0x120] sm:$0xff]   ;;  %v11648_v26 = vld [vmem:[%s11822_s26 + $0x12c] sm:$0xff]  }
  0x16   : > { %10861 = vmatprep.mubr.msk.bf16.mxu0 %vm325_vm1, %v11637_v15  ;;  %11609 = vmatprep.subr.msk.bf16.mxu1 %vm374_vm0, %v11832_v10  ;;  %v11645_v23 = vld [vmem:[%s11822_s26 + $0x54] sm:$0xff]   ;;  %v11647_v25 = vld [vmem:[%s11822_s26 + $0x60] sm:$0xff]   ;;  %v11649_v27 = vld [vmem:[%s11822_s26 + $0x6c] sm:$0xff]  }
  0x17   : > { %11617 = vmatprep.subr.msk.bf16.mxu0 %vm374_vm0, %v11840_v13  ;;  %v11650_v28 = vld [vmem:[%s11822_s26 + $0x138] sm:$0xff]   ;;  %v11652_v30 = vld [vmem:[%s11822_s26 + $0x144] sm:$0xff]   ;;  %v11654_v32 = vld [vmem:[%s11822_s26 + $0x150] sm:$0xff]  }
  0x18   : > { %v11651_v29 = vld [vmem:[%s11822_s26 + $0x78] sm:$0xff]   ;;  %v11653_v31 = vld [vmem:[%s11822_s26 + $0x84] sm:$0xff]   ;;  %v11655_v33 = vld [vmem:[%s11822_s26 + $0x90] sm:$0xff]  }
  0x19   : > { %v11656_v34 = vld [vmem:[%s11822_s26 + $0x15c] sm:$0xff]   ;;  %v11658_v36 = vld [vmem:[%s11822_s26 + $0x168] sm:$0xff]   ;;  %v11660_v38 = vld [vmem:[%s11822_s26 + $0x174] sm:$0xff]  }
  0x1a   : > { %v11657_v35 = vld [vmem:[%s11822_s26 + $0x9c] sm:$0xff]   ;;  %v11659_v37 = vld [vmem:[%s11822_s26 + $0xa8] sm:$0xff]   ;;  %v11661_v39 = vld [vmem:[%s11822_s26 + $0xb4] sm:$0xff]  }
  0x1b   : > { %10590 = vmatmul.mubr.msk.bf16.gmra.mrb[4].mxu1 %vm325_vm1, %v11638_v16  ;;  %v11662_v40 = vld [vmem:[%s11822_s26 + $0x180] sm:$0xff]   ;;  %v11665_v44 = vld [vmem:[%s11822_s26 + $0xd8] sm:$0xff]   ;;  %v11666_v48 = vld [vmem:[%s11822_s26 + $0xc] sm:$0xff]  }
  0x1c   : > { %10862 = vmatmul.mubr.msk.bf16.gmra.mrb[4].mxu0 %vm325_vm1, %v11639_v17  ;;  %10593 = vmatprep.mubr.msk.bf16.mxu1 %vm325_vm1, %v11640_v18  ;;  %v11663_v41 = vld [vmem:[%s11822_s26 + $0xc0] sm:$0xff]   ;;  %v11668_v52 = vld [vmem:[%s11822_s26 + $0x18] sm:$0xff]   ;;  %v833_v55 = vld [vmem:[%s11822_s26 + $0x8] sm:$0x1] }
  0x1d   : > { %10865 = vmatprep.mubr.msk.bf16.mxu0 %vm325_vm1, %v11641_v19  ;;  %v11664_v42 = vld [vmem:[%s11822_s26] sm:$0xff]   ;;  %v11669_v56 = vld [vmem:[%s11822_s26 + $0xf0] sm:$0xff]   ;;  %v9789_v61 = vld [vmem:[%s11822_s26 + $0xc] sm:$0xf]  ;;  %v902_v62 = vshll.u32 %v833_v55, 16 }
  0x1e   : > { %v11667_v50 = vld [vmem:[%s11822_s26 + $0xe4] sm:$0xff]   ;;  %v831_v53 = vld [vmem:[%s11822_s26] sm:$0xf]  ;;  %v9790_v63 = vld [vmem:[%s11822_s26 + $0x10] sm:$0xf]  ;;  %v5223_v1 = vshrl.u32 %v9789_v61, 16 }
  0x1f   : > { %v832_v54 = vld [vmem:[%s11822_s26 + $0x4] sm:$0xf]  ;;  %v883_v57 = vshrl.u32 %v831_v53, 16  ;;  %v886_v58 = vshll.u32 %v831_v53, 16  ;;  %v9791_v0 = vld [vmem:[%s11822_s26 + $0x14] sm:$0x1] }
  0x20   : > { %v892_v59 = vshll.u32 %v832_v54, 16  ;;  %v896_v60 = vshrl.u32 %v832_v54, 16  ;;  %v834_v6 = vld [vmem:[%s11822_s26 + $0xc] sm:$0xf]  ;;  %v904_v7 = vrot.slane %v902_v62, 5  ;;  %v5225_v8 = vrot.slane %v5223_v1, 4 }
  0x21   : > { %v885_v2 = vrot.slane %v883_v57, 4  ;;  %v888_v3 = vrot.slane %v886_v58, 5  ;;  %v5226_v9 = vshll.u32 %v9789_v61, 16  ;;  %v5232_v10 = vshll.u32 %v9790_v63, 16  ;;  %v835_v15 = vld [vmem:[%s11822_s26 + $0x10] sm:$0xf] }
  0x22   : > { %v894_v4 = vrot.slane %v892_v59, 5  ;;  %v898_v5 = vrot.slane %v896_v60, 4  ;;  %v5236_v13 = vshrl.u32 %v9790_v63, 16  ;;  %v5242_v14 = vshll.u32 %v9791_v0, 16  ;;  %v837_v55 = vld [vmem:[%s11822_s26 + $0x18] sm:$0xf] }
  0x23   : > { %10594 = vmatmul.mubr.msk.bf16.gmra.mrb[8].mxu1 %vm325_vm1, %v11642_v20  ;;  %v889_v11 = vor.u32 %v888_v3, %v885_v2  ;;  %v5228_v17 = vrot.slane %v5226_v9, 5  ;;  %v5234_v18 = vrot.slane %v5232_v10, 5  ;;  %v907_v19 = vshrl.u32 %v834_v6, 16  ;;  %v838_v60 = vld [vmem:[%s11822_s26 + $0x1c] sm:$0xf] }
  0x24   : > { %10866 = vmatmul.mubr.msk.bf16.gmra.mrb[8].mxu0 %vm325_vm1, %v11643_v21  ;;  %10597 = vmatprep.mubr.msk.bf16.mxu1 %vm325_vm1, %v11644_v22  ;;  %v899_v12 = vor.u32 %v898_v5, %v894_v4  ;;  %v910_v20 = vshll.u32 %v834_v6, 16  ;;  %v11674_v61 = vld [vmem:[%s11822_s26 + $0x3c] sm:$0xff]   ;;  %v931_v6 = vshrl.u32 %v837_v55, 16  ;;  %v934_v9 = vshll.u32 %v837_v55, 16 }
  0x25   : > { %10869 = vmatprep.mubr.msk.bf16.mxu0 %vm325_vm1, %v11645_v23  ;;  %v890_v21 = vrot.slane %v889_v11, 4  ;;  %v5238_v23 = vrot.slane %v5236_v13, 4  ;;  %v839_v5 = vld [vmem:[%s11822_s26 + $0x20] sm:$0x1]  ;;  %v940_v10 = vshll.u32 %v838_v60, 16  ;;  %v944_v11 = vshrl.u32 %v838_v60, 16 }
  0x26   : > { %v900_v22 = vrot.slane %v899_v12, 4  ;;  %v9795_v12 = vld [vmem:[%s11822_s26 + $0x24] sm:$0xf]  ;;  %v11676_v13 = vld [vmem:[%s11822_s26 + $0x48] sm:$0xff]  }
  0x2b   : > { %10598 = vmatmul.mubr.msk.bf16.gmra.mrb[12].mxu1 %vm325_vm1, %v11646_v24  ;;  %v5244_v24 = vrot.slane %v5242_v14, 5 }
  0x2c   : > { %10870 = vmatmul.mubr.msk.bf16.gmra.mrb[12].mxu0 %vm325_vm1, %v11647_v25  ;;  %10601 = vmatprep.mubr.msk.bf16.mxu1 %vm325_vm1, %v11648_v26  ;;  %v836_v25 = vld [vmem:[%s11822_s26 + $0x14] sm:$0x1]  ;;  %v11670_v26 = vld [vmem:[%s11822_s26 + $0x24] sm:$0xff]  }
  0x2d   : > { %10873 = vmatprep.mubr.msk.bf16.mxu0 %vm325_vm1, %v11649_v27  ;;  %v5229_v27 = vor.u32 %v5228_v17, %v5225_v8 }
  0x33   : > { %10602 = vmatmul.mubr.msk.bf16.gmra.mrb[16].mxu1 %vm325_vm1, %v11650_v28  ;;  %v909_v28 = vrot.slane %v907_v19, 4  ;;  %v9796_v19 = vld [vmem:[%s11822_s26 + $0x28] sm:$0xf] }
  0x34   : > { %10874 = vmatmul.mubr.msk.bf16.gmra.mrb[16].mxu0 %vm325_vm1, %v11651_v29  ;;  %10605 = vmatprep.mubr.msk.bf16.mxu1 %vm325_vm1, %v11652_v30  ;;  %v912_v29 = vrot.slane %v910_v20, 5  ;;  %v916_v30 = vshll.u32 %v835_v15, 16  ;;  %v11677_v20 = vld [vmem:[%s11822_s26 + $0x120] sm:$0xff]  }
  0x35   : > { %10877 = vmatprep.mubr.msk.bf16.mxu0 %vm325_vm1, %v11653_v31  ;;  %v9792_v31 = vld [vmem:[%s11822_s26 + $0x18] sm:$0xf] }
  0x36   : > { %v5250_v53 = vshll.u32 %v9792_v31, 16 }
  0x38   : > { %v5252_v0 = vrot.slane %v5250_v53, 5 }
  0x3b   : > { %10606 = vmatmul.mubr.msk.bf16.gmra.mrb[20].mxu1 %vm325_vm1, %v11654_v32  ;;  %v11671_v32 = vld [vmem:[%s11822_s26 + $0xfc] sm:$0xff]  }
  0x3c   : > { %10878 = vmatmul.mubr.msk.bf16.gmra.mrb[20].mxu0 %vm325_vm1, %v11655_v33  ;;  %10609 = vmatprep.mubr.msk.bf16.mxu1 %vm325_vm1, %v11656_v34  ;;  %v11672_v33 = vld [vmem:[%s11822_s26 + $0x30] sm:$0xff]   ;;  %v895_v34 = vsel %vm11941_vm4, %v890_v21, %v894_v4 }
  0x3d   : > { %10881 = vmatprep.mubr.msk.bf16.mxu0 %vm325_vm1, %v11657_v35  ;;  %v905_v35 = vsel %vm11941_vm4, %v900_v22, %v904_v7  ;;  %v11675_v7 = vld [vmem:[%s11822_s26 + $0x114] sm:$0xff]  }
  0x43   : > { %10610 = vmatmul.mubr.msk.bf16.gmra.mrb[24].mxu1 %vm325_vm1, %v11658_v36  ;;  %v5239_v36 = vor.u32 %v5238_v23, %v5234_v18  ;;  %v936_v23 = vrot.slane %v934_v9, 5  ;;  %v9799_v9 = vld [vmem:[%s11822_s26 + $0x34] sm:$0xf] }
  0x44   : > { %10882 = vmatmul.mubr.msk.bf16.gmra.mrb[24].mxu0 %vm325_vm1, %v11659_v37  ;;  %10613 = vmatprep.mubr.msk.bf16.mxu1 %vm325_vm1, %v11660_v38  ;;  %v920_v37 = vshrl.u32 %v835_v15, 16  ;;  %v9793_v38 = vld [vmem:[%s11822_s26 + $0x1c] sm:$0xf] }
  0x45   : > { %10885 = vmatprep.mubr.msk.bf16.mxu0 %vm325_vm1, %v11661_v39  ;;  %v11673_v39 = vld [vmem:[%s11822_s26 + $0x108] sm:$0xff]   ;;  %v5256_v54 = vshll.u32 %v9793_v38, 16  ;;  %v5260_v3 = vshrl.u32 %v9793_v38, 16 }
  0x47   : > { %v5258_v1 = vrot.slane %v5256_v54, 5  ;;  %v5262_v15 = vrot.slane %v5260_v3, 4 }
  0x4b   : > { %10614 = vmatmul.mubr.msk.bf16.gmra.mrb[28].mxu1 %vm325_vm1, %v11662_v40  ;;  %v11959_v40 = vcombine.low %v895_v34, %v905_v35  ;;  %v840_v34 = vld [vmem:[%s11822_s26 + $0x24] sm:$0xf] }
  0x4c   : > { %10886 = vmatmul.mubr.msk.bf16.gmra.mrb[28].mxu0 %vm325_vm1, %v11663_v41  ;;  %10619 = vmatprep.mubr.msk.bf16.mxu1 %vm325_vm1, %v11664_v42  ;;  %v5230_v41 = vrot.slane %v5229_v27, 4  ;;  %v913_v42 = vor.u32 %v912_v29, %v909_v28  ;;  %v950_v27 = vshll.u32 %v839_v5, 16  ;;  %v5271_v28 = vshrl.u32 %v9795_v12, 16 }
  0x4d   : > { %10891 = vmatprep.mubr.msk.bf16.mxu0 %vm325_vm1, %v11665_v44  ;;  %v5240_v44 = vrot.slane %v5239_v36, 4 }
  0x4e   : > { %v5273_v38 = vrot.slane %v5271_v28, 4 }
  0x53   : > { %10620 = vmatmul.mubr.msk.bf16.vlgmr.msra.gmra.mrb[0].mxu1 %vm325_vm1, %v11666_v48  ;;  %v5247_v48 = vshrl.u32 %v9792_v31, 16  ;;  %v9797_v31 = vld [vmem:[%s11822_s26 + $0x2c] sm:$0x1] }
  0x54   : > { %10652 = vmatpush3.bf16.msra.mxu1 %v1365_v43  ;;  %10892 = vmatmul.mubr.msk.bf16.vlgmr.msra.gmra.mrb[0].mxu0 %vm325_vm1, %v11667_v50  ;;  %v918_v43 = vrot.slane %v916_v30, 5  ;;  %v5235_v50 = vsel %vm11941_vm4, %v5230_v41, %v5234_v18  ;;  %v933_v18 = vrot.slane %v931_v6, 4 }
  0x55   : > { %10924 = vmatpush3.bf16.msra.mxu0 %v5705_v45  ;;  %10623 = vmatprep.mubr.msk.bf16.mxu1 %vm325_vm1, %v11668_v52  ;;  %v922_v45 = vrot.slane %v920_v37, 4  ;;  %v914_v52 = vrot.slane %v913_v42, 4  ;;  %v5249_v59 = vrot.slane %v5247_v48, 4  ;;  %v952_v37 = vrot.slane %v950_v27, 5 }
  0x56   : > { %10895 = vmatprep.mubr.msk.bf16.mxu0 %vm325_vm1, %v11669_v56  ;;  %11610 = vmatprep.subr.msk.bf16.mxu1 %vm374_vm0, %v9334_v46  ;;  %v926_v46 = vshll.u32 %v836_v25, 16  ;;  %v5245_v56 = vsel %vm11941_vm4, %v5240_v44, %v5244_v24  ;;  %v942_v24 = vrot.slane %v940_v10, 5  ;;  %v5263_v25 = vor.u32 %v5262_v15, %v5258_v1 }
  0x57   : > { %11618 = vmatprep.subr.msk.bf16.mxu0 %vm374_vm0, %v9918_v47  ;;  %v9794_v47 = vld [vmem:[%s11822_s26 + $0x20] sm:$0x1]  ;;  %v923_v57 = vor.u32 %v922_v45, %v918_v43  ;;  %v11973_v62 = vcombine.low %v5235_v50, %v5245_v56  ;;  %v919_v63 = vsel %vm11941_vm4, %v914_v52, %v918_v43  ;;  %v5253_v8 = vor.u32 %v5252_v0, %v5249_v59  ;;  %v11678_v50 = vld [vmem:[%s11822_s26 + $0x54] sm:$0xff]   ;;  %v842_v56 = vld [vmem:[%s11822_s26 + $0x2c] sm:$0x1] }
  0x58   : > { %v928_v58 = vrot.slane %v926_v46, 5  ;;  %v5266_v4 = vshll.u32 %v9794_v47, 16  ;;  %v937_v30 = vor.u32 %v936_v23, %v933_v18  ;;  %v5264_v35 = vrot.slane %v5263_v25, 4  ;;  %v841_v47 = vld [vmem:[%s11822_s26 + $0x28] sm:$0xf]  ;;  %v11680_v59 = vld [vmem:[%s11822_s26 + $0x60] sm:$0xff]  }
  0x59   : > { %v924_v2 = vrot.slane %v923_v57, 4  ;;  %v5254_v22 = vrot.slane %v5253_v8, 4  ;;  %v5284_v43 = vshrl.u32 %v9796_v19, 16  ;;  %v5290_v46 = vshll.u32 %v9797_v31, 16  ;;  %v9798_v57 = vld [vmem:[%s11822_s26 + $0x30] sm:$0xf] }
  0x5a   : > { %v5268_v17 = vrot.slane %v5266_v4, 5  ;;  %v955_v48 = vshrl.u32 %v840_v34, 16  ;;  %v958_v0 = vshll.u32 %v840_v34, 16  ;;  %v964_v5 = vshll.u32 %v841_v47, 16  ;;  %v844_v31 = vld [vmem:[%s11822_s26 + $0x34] sm:$0xf] }
  0x5b   : > { %10624 = vmatmul.mubr.msk.bf16.gmra.mrb[4].mxu1 %vm325_vm1, %v11670_v26  ;;  %v929_v14 = vsel %vm11941_vm4, %v924_v2, %v928_v58  ;;  %v946_v26 = vrot.slane %v944_v11, 4  ;;  %v5259_v29 = vsel %vm11941_vm4, %v5254_v22, %v5258_v1  ;;  %v5286_v55 = vrot.slane %v5284_v43, 4  ;;  %v11679_v58 = vld [vmem:[%s11822_s26 + $0x12c] sm:$0xff]   ;;  %v11681_v1 = vld [vmem:[%s11822_s26 + $0x138] sm:$0xff]  }
  0x5c   : > { %10896 = vmatmul.mubr.msk.bf16.gmra.mrb[4].mxu0 %vm325_vm1, %v11671_v32  ;;  %10627 = vmatprep.mubr.msk.bf16.mxu1 %vm325_vm1, %v11672_v33  ;;  %v11985_v21 = vcombine.low %v919_v63, %v929_v14  ;;  %v5274_v32 = vshll.u32 %v9795_v12, 16  ;;  %v5280_v33 = vshll.u32 %v9796_v19, 16  ;;  %v5269_v44 = vsel %vm11941_vm4, %v5264_v35, %v5268_v17  ;;  %v9800_v14 = vld [vmem:[%s11822_s26 + $0x38] sm:$0x1]  ;;  %v843_v22 = vld [vmem:[%s11822_s26 + $0x30] sm:$0xf] }
  0x5d   : > { %10899 = vmatprep.mubr.msk.bf16.mxu0 %vm325_vm1, %v11673_v39  ;;  %v947_v36 = vor.u32 %v946_v26, %v942_v24  ;;  %v938_v39 = vrot.slane %v937_v30, 4  ;;  %v11999_v52 = vcombine.low %v5259_v29, %v5269_v44  ;;  %v957_v63 = vrot.slane %v955_v48, 4 }
  0x5e   : > { %v5276_v41 = vrot.slane %v5274_v32, 5  ;;  %v5282_v42 = vrot.slane %v5280_v33, 5  ;;  %v960_v6 = vrot.slane %v958_v0, 5  ;;  %v974_v8 = vshll.u32 %v842_v56, 16  ;;  %v11682_v32 = vld [vmem:[%s11822_s26 + $0x6c] sm:$0xff]  }
  0x5f   : > { %v948_v45 = vrot.slane %v947_v36, 4  ;;  %v943_v53 = vsel %vm11941_vm4, %v938_v39, %v942_v24  ;;  %v5295_v10 = vshrl.u32 %v9798_v57, 16  ;;  %v5298_v15 = vshll.u32 %v9798_v57, 16  ;;  %v845_v36 = vld [vmem:[%s11822_s26 + $0x38] sm:$0x1] }
  0x60   : > { %v5277_v54 = vor.u32 %v5276_v41, %v5273_v38  ;;  %v5287_v4 = vor.u32 %v5286_v55, %v5282_v42  ;;  %v961_v17 = vor.u32 %v960_v6, %v957_v63  ;;  %v976_v19 = vrot.slane %v974_v8, 5  ;;  %v11683_v38 = vld [vmem:[%s11822_s26 + $0x144] sm:$0xff]   ;;  %v11684_v39 = vld [vmem:[%s11822_s26 + $0x78] sm:$0xff]  }
  0x61   : > { %v953_v60 = vsel %vm11941_vm4, %v948_v45, %v952_v37  ;;  %v5300_v24 = vrot.slane %v5298_v15, 5  ;;  %v5304_v25 = vshll.u32 %v9799_v9, 16  ;;  %v5308_v26 = vshrl.u32 %v9799_v9, 16  ;;  %v11685_v45 = vld [vmem:[%s11822_s26 + $0x150] sm:$0xff]   ;;  %v847_v15 = vld [vmem:[%s11822_s26 + $0x40] sm:$0xf] }
  0x62   : > { %v12010_v2 = vcombine.low %v943_v53, %v953_v60  ;;  %v5278_v3 = vrot.slane %v5277_v54, 4  ;;  %v5288_v12 = vrot.slane %v5287_v4, 4  ;;  %v962_v28 = vrot.slane %v961_v17, 4  ;;  %v9801_v53 = vld [vmem:[%s11822_s26 + $0x3c] sm:$0xf]  ;;  %v11686_v17 = vld [vmem:[%s11822_s26 + $0x84] sm:$0xff]  }
  0x63   : > { %10628 = vmatmul.mubr.msk.bf16.gmra.mrb[8].mxu1 %vm325_vm1, %v11674_v61  ;;  %v5292_v61 = vrot.slane %v5290_v46, 5  ;;  %v5314_v30 = vshll.u32 %v9800_v14, 16  ;;  %v5306_v34 = vrot.slane %v5304_v25, 5  ;;  %v5310_v35 = vrot.slane %v5308_v26, 4  ;;  %v9803_v4 = vld [vmem:[%s11822_s26 + $0x44] sm:$0x1] }
  0x64   : > { %10900 = vmatmul.mubr.msk.bf16.gmra.mrb[8].mxu0 %vm325_vm1, %v11675_v7  ;;  %10631 = vmatprep.mubr.msk.bf16.mxu1 %vm325_vm1, %v11676_v13  ;;  %v968_v7 = vshrl.u32 %v841_v47, 16  ;;  %v5283_v11 = vsel %vm11941_vm4, %v5278_v3, %v5282_v42  ;;  %v966_v13 = vrot.slane %v964_v5, 5  ;;  %v979_v37 = vshrl.u32 %v843_v22, 16  ;;  %v11689_v25 = vld [vmem:[%s11822_s26 + $0x168] sm:$0xff]  }
  0x65   : > { %10903 = vmatprep.mubr.msk.bf16.mxu0 %vm325_vm1, %v11677_v20  ;;  %v5297_v20 = vrot.slane %v5295_v10, 4  ;;  %v5293_v23 = vsel %vm11941_vm4, %v5288_v12, %v5292_v61  ;;  %v5316_v43 = vrot.slane %v5314_v30, 5  ;;  %v982_v44 = vshll.u32 %v843_v22, 16  ;;  %v846_v10 = vld [vmem:[%s11822_s26 + $0x3c] sm:$0xf] }
  0x66   : > { %v970_v18 = vrot.slane %v968_v7, 4  ;;  %v12023_v27 = vcombine.low %v5283_v11, %v5293_v23  ;;  %v967_v41 = vsel %vm11941_vm4, %v962_v28, %v966_v13  ;;  %v5311_v47 = vor.u32 %v5310_v35, %v5306_v34  ;;  %v11687_v23 = vld [vmem:[%s11822_s26 + $0x15c] sm:$0xff]  }
  0x67   : > { %v5301_v33 = vor.u32 %v5300_v24, %v5297_v20  ;;  %v981_v48 = vrot.slane %v979_v37, 4  ;;  %v984_v55 = vrot.slane %v982_v44, 5  ;;  %v992_v56 = vshrl.u32 %v844_v31, 16  ;;  %v11688_v24 = vld [vmem:[%s11822_s26 + $0x90] sm:$0xff]  }
  0x68   : > { %v971_v29 = vor.u32 %v970_v18, %v966_v13  ;;  %v998_v57 = vshll.u32 %v845_v36, 16  ;;  %v5312_v61 = vrot.slane %v5311_v47, 4  ;;  %v5319_v5 = vshrl.u32 %v9801_v53, 16  ;;  %v9804_v36 = vld [vmem:[%s11822_s26 + $0x48] sm:$0xf] }
  0x69   : > { %v5302_v46 = vrot.slane %v5301_v33, 4  ;;  %v985_v0 = vor.u32 %v984_v55, %v981_v48  ;;  %v5322_v7 = vshll.u32 %v9801_v53, 16  ;;  %v5338_v22 = vshll.u32 %v9803_v4, 16  ;;  %v11690_v4 = vld [vmem:[%s11822_s26 + $0x9c] sm:$0xff]  }
  0x6a   : > { %v972_v42 = vrot.slane %v971_v29, 4  ;;  %v1000_v3 = vrot.slane %v998_v57, 5  ;;  %v5317_v6 = vsel %vm11941_vm4, %v5312_v61, %v5316_v43  ;;  %v5321_v14 = vrot.slane %v5319_v5, 4  ;;  %v11691_v5 = vld [vmem:[%s11822_s26 + $0x174] sm:$0xff]  }
  0x6b   : > { %10632 = vmatmul.mubr.msk.bf16.gmra.mrb[12].mxu1 %vm325_vm1, %v11678_v50  ;;  %v988_v50 = vshll.u32 %v844_v31, 16  ;;  %v5307_v60 = vsel %vm11941_vm4, %v5302_v46, %v5306_v34  ;;  %v986_v12 = vrot.slane %v985_v0, 4  ;;  %v5324_v18 = vrot.slane %v5322_v7, 5  ;;  %v848_v34 = vld [vmem:[%s11822_s26 + $0x44] sm:$0x1] }
  0x6c   : > { %10904 = vmatmul.mubr.msk.bf16.gmra.mrb[12].mxu0 %vm325_vm1, %v11679_v58  ;;  %10635 = vmatprep.mubr.msk.bf16.mxu1 %vm325_vm1, %v11680_v59  ;;  %v977_v54 = vsel %vm11941_vm4, %v972_v42, %v976_v19  ;;  %v9802_v58 = vld [vmem:[%s11822_s26 + $0x40] sm:$0xf]  ;;  %v12049_v11 = vcombine.low %v5307_v60, %v5317_v6  ;;  %v1003_v29 = vshrl.u32 %v846_v10, 16  ;;  %v1006_v30 = vshll.u32 %v846_v10, 16  ;;  %v9805_v42 = vld [vmem:[%s11822_s26 + $0x4c] sm:$0xf] }
  0x6d   : > { %10907 = vmatprep.mubr.msk.bf16.mxu0 %vm325_vm1, %v11681_v1  ;;  %v12038_v59 = vcombine.low %v967_v41, %v977_v54  ;;  %v990_v63 = vrot.slane %v988_v50, 5  ;;  %v994_v1 = vrot.slane %v992_v56, 4  ;;  %v5328_v8 = vshll.u32 %v9802_v58, 16  ;;  %v9806_v56 = vld [vmem:[%s11822_s26 + $0x50] sm:$0x1]  ;;  %v11692_v10 = vld [vmem:[%s11822_s26 + $0xa8] sm:$0xff]  }
  0x6e   : > { %v5332_v9 = vshrl.u32 %v9802_v58, 16  ;;  %v5325_v31 = vor.u32 %v5324_v18, %v5321_v14  ;;  %v5340_v33 = vrot.slane %v5338_v22, 5  ;;  %v1012_v35 = vshll.u32 %v847_v15, 16  ;;  %v849_v60 = vld [vmem:[%s11822_s26 + $0x48] sm:$0xf]  ;;  %v11693_v18 = vld [vmem:[%s11822_s26 + $0x180] sm:$0xff]  }
  0x6f   : > { %v995_v13 = vor.u32 %v994_v1, %v990_v63  ;;  %v5330_v19 = vrot.slane %v5328_v8, 5  ;;  %v991_v26 = vsel %vm11941_vm4, %v986_v12, %v990_v63  ;;  %v1016_v41 = vshrl.u32 %v847_v15, 16  ;;  %v851_v15 = vld [vmem:[%s11822_s26 + $0x50] sm:$0x1] }
  0x70   : > { %v5334_v20 = vrot.slane %v5332_v9, 4  ;;  %v5326_v44 = vrot.slane %v5325_v31, 4  ;;  %v1014_v46 = vrot.slane %v1012_v35, 5  ;;  %v1022_v50 = vshll.u32 %v848_v34, 16  ;;  %v9808_v34 = vld [vmem:[%s11822_s26 + $0x58] sm:$0xf] }
  0x71   : > { %v996_v28 = vrot.slane %v995_v13, 4  ;;  %v1018_v48 = vrot.slane %v1016_v41, 4  ;;  %v5343_v53 = vshrl.u32 %v9804_v36, 16  ;;  %v5346_v57 = vshll.u32 %v9804_v36, 16 }
  0x72   : > { %v5331_v54 = vsel %vm11941_vm4, %v5326_v44, %v5330_v19  ;;  %v5352_v58 = vshll.u32 %v9805_v42, 16  ;;  %v1024_v1 = vrot.slane %v1022_v50, 5  ;;  %v5356_v9 = vshrl.u32 %v9805_v42, 16  ;;  %v9809_v44 = vld [vmem:[%s11822_s26 + $0x5c] sm:$0x1] }
  0x73   : > { %10636 = vmatmul.mubr.msk.bf16.gmra.mrb[16].mxu1 %vm325_vm1, %v11682_v32  ;;  %v5335_v32 = vor.u32 %v5334_v20, %v5330_v19  ;;  %v1001_v37 = vsel %vm11941_vm4, %v996_v28, %v1000_v3  ;;  %v1019_v0 = vor.u32 %v1018_v48, %v1014_v46  ;;  %v850_v3 = vld [vmem:[%s11822_s26 + $0x4c] sm:$0xf]  ;;  %v5345_v6 = vrot.slane %v5343_v53, 4  ;;  %v852_v53 = vld [vmem:[%s11822_s26 + $0x54] sm:$0xf] }
  0x74   : > { %10908 = vmatmul.mubr.msk.bf16.gmra.mrb[16].mxu0 %vm325_vm1, %v11683_v38  ;;  %10639 = vmatprep.mubr.msk.bf16.mxu1 %vm325_vm1, %v11684_v39  ;;  %v1005_v38 = vrot.slane %v1003_v29, 4  ;;  %v1008_v39 = vrot.slane %v1006_v30, 5  ;;  %v12064_v43 = vcombine.low %v991_v26, %v1001_v37  ;;  %v5348_v7 = vrot.slane %v5346_v57, 5 }
  0x75   : > { %10911 = vmatprep.mubr.msk.bf16.mxu0 %vm325_vm1, %v11685_v45  ;;  %v5336_v45 = vrot.slane %v5335_v32, 4  ;;  %v5354_v8 = vrot.slane %v5352_v58, 5  ;;  %v1020_v13 = vrot.slane %v1019_v0, 4  ;;  %v5362_v14 = vshll.u32 %v9806_v56, 16 }
  0x76   : > { %v1009_v47 = vor.u32 %v1008_v39, %v1005_v38  ;;  %v5349_v19 = vor.u32 %v5348_v7, %v5345_v6  ;;  %v5358_v20 = vrot.slane %v5356_v9, 4  ;;  %v1030_v22 = vshll.u32 %v849_v60, 16 }
  0x77   : > { %v5341_v55 = vsel %vm11941_vm4, %v5336_v45, %v5340_v33  ;;  %v5364_v26 = vrot.slane %v5362_v14, 5  ;;  %v1040_v29 = vshrl.u32 %v850_v3, 16  ;;  %v1046_v37 = vshll.u32 %v851_v15, 16  ;;  %v9810_v15 = vld [vmem:[%s11822_s26 + $0x60] sm:$0xf] }
  0x78   : > { %v12075_v61 = vcombine.low %v5331_v54, %v5341_v55  ;;  %v1010_v63 = vrot.slane %v1009_v47, 4  ;;  %v5350_v31 = vrot.slane %v5349_v19, 4  ;;  %v5359_v32 = vor.u32 %v5358_v20, %v5354_v8  ;;  %v11694_v54 = vld [vmem:[%s11822_s26 + $0xb4] sm:$0xff]  }
  0x79   : > { %v1032_v33 = vrot.slane %v1030_v22, 5  ;;  %v1042_v36 = vrot.slane %v1040_v29, 4  ;;  %v1048_v47 = vrot.slane %v1046_v37, 5  ;;  %v5376_v50 = vshll.u32 %v9808_v34, 16  ;;  %v9811_v22 = vld [vmem:[%s11822_s26 + $0x64] sm:$0xf] }
  0x7a   : > { %v1015_v12 = vsel %vm11941_vm4, %v1010_v63, %v1014_v46  ;;  %v5355_v39 = vsel %vm11941_vm4, %v5350_v31, %v5354_v8  ;;  %v5360_v41 = vrot.slane %v5359_v32, 4  ;;  %v5380_v58 = vshrl.u32 %v9808_v34, 16  ;;  %v11695_v63 = vld [vmem:[%s11822_s26 + $0x18c] sm:$0xff]   ;;  %v854_v8 = vld [vmem:[%s11822_s26 + $0x5c] sm:$0x1] }
  0x7b   : > { %10640 = vmatmul.mubr.msk.bf16.gmra.mrb[20].mxu1 %vm325_vm1, %v11686_v17  ;;  %v1027_v17 = vshrl.u32 %v849_v60, 16  ;;  %v853_v60 = vld [vmem:[%s11822_s26 + $0x58] sm:$0xf]  ;;  %v1051_v9 = vshrl.u32 %v852_v53, 16  ;;  %v9812_v31 = vld [vmem:[%s11822_s26 + $0x68] sm:$0x1] }
  0x7c   : > { %10912 = vmatmul.mubr.msk.bf16.gmra.mrb[20].mxu0 %vm325_vm1, %v11687_v23  ;;  %10643 = vmatprep.mubr.msk.bf16.mxu1 %vm325_vm1, %v11688_v24  ;;  %v1036_v23 = vshll.u32 %v850_v3, 16  ;;  %v9807_v24 = vld [vmem:[%s11822_s26 + $0x54] sm:$0xf]  ;;  %v5365_v55 = vsel %vm11941_vm4, %v5360_v41, %v5364_v26  ;;  %v5378_v3 = vrot.slane %v5376_v50, 5  ;;  %v5382_v7 = vrot.slane %v5380_v58, 4 }
  0x7d   : > { %10915 = vmatprep.mubr.msk.bf16.mxu0 %vm325_vm1, %v11689_v25  ;;  %v1025_v25 = vsel %vm11941_vm4, %v1020_v13, %v1024_v1  ;;  %v1029_v28 = vrot.slane %v1027_v17, 4  ;;  %v5367_v38 = vshrl.u32 %v9807_v24, 16  ;;  %v5370_v45 = vshll.u32 %v9807_v24, 16 }
  0x7e   : > { %v12089_v30 = vcombine.low %v1015_v12, %v1025_v25  ;;  %v1038_v35 = vrot.slane %v1036_v23, 5  ;;  %v12104_v0 = vcombine.low %v5355_v39, %v5365_v55  ;;  %v1054_v13 = vshll.u32 %v852_v53, 16 }
  0x7f   : > { %v1033_v42 = vor.u32 %v1032_v33, %v1029_v28  ;;  %v5369_v48 = vrot.slane %v5367_v38, 4  ;;  %v5372_v57 = vrot.slane %v5370_v45, 5  ;;  %v1060_v14 = vshll.u32 %v853_v60, 16 }
  0x80   : > { %v1043_v46 = vor.u32 %v1042_v36, %v1038_v35  ;;  %v5383_v19 = vor.u32 %v5382_v7, %v5378_v3  ;;  %v1053_v20 = vrot.slane %v1051_v9, 4  ;;  %v1056_v23 = vrot.slane %v1054_v13, 5 }
  0x81   : > { %v1034_v56 = vrot.slane %v1033_v42, 4  ;;  %v5373_v6 = vor.u32 %v5372_v57, %v5369_v48  ;;  %v1062_v24 = vrot.slane %v1060_v14, 5  ;;  %v1064_v25 = vshrl.u32 %v853_v60, 16  ;;  %v857_v57 = vld [vmem:[%s11822_s26 + $0x68] sm:$0x1] }
  0x82   : > { %v1044_v1 = vrot.slane %v1043_v46, 4  ;;  %v1070_v26 = vshll.u32 %v854_v8, 16  ;;  %v5384_v29 = vrot.slane %v5383_v19, 4  ;;  %v5391_v32 = vshrl.u32 %v9810_v15, 16 }
  0x83   : > { %10644 = vmatmul.mubr.msk.bf16.gmra.mrb[24].mxu1 %vm325_vm1, %v11690_v4  ;;  %v5386_v4 = vshll.u32 %v9809_v44, 16  ;;  %v5394_v33 = vshll.u32 %v9810_v15, 16  ;;  %v1057_v34 = vor.u32 %v1056_v23, %v1053_v20  ;;  %v5400_v37 = vshll.u32 %v9811_v22, 16  ;;  %v9815_v15 = vld [vmem:[%s11822_s26 + $0x74] sm:$0x1] }
  0x84   : > { %10916 = vmatmul.mubr.msk.bf16.gmra.mrb[24].mxu0 %vm325_vm1, %v11691_v5  ;;  %10647 = vmatprep.mubr.msk.bf16.mxu1 %vm325_vm1, %v11692_v10  ;;  %v1039_v5 = vsel %vm11941_vm4, %v1034_v56, %v1038_v35  ;;  %v1049_v10 = vsel %vm11941_vm4, %v1044_v1, %v1048_v47  ;;  %v1066_v35 = vrot.slane %v1064_v25, 4  ;;  %v1072_v36 = vrot.slane %v1070_v26, 5  ;;  %v858_v23 = vld [vmem:[%s11822_s26 + $0x6c] sm:$0xf] }
  0x85   : > { %10919 = vmatprep.mubr.msk.bf16.mxu0 %vm325_vm1, %v11693_v18  ;;  %v5388_v12 = vrot.slane %v5386_v4, 5  ;;  %v12113_v17 = vcombine.low %v1039_v5, %v1049_v10  ;;  %v5374_v18 = vrot.slane %v5373_v6, 4  ;;  %v5393_v39 = vrot.slane %v5391_v32, 4  ;;  %v9813_v5 = vld [vmem:[%s11822_s26 + $0x6c] sm:$0xf] }
  0x86   : > { %v5396_v41 = vrot.slane %v5394_v33, 5  ;;  %v5404_v42 = vshrl.u32 %v9811_v22, 16  ;;  %v1058_v45 = vrot.slane %v1057_v34, 4  ;;  %v1067_v46 = vor.u32 %v1066_v35, %v1062_v24  ;;  %v9814_v10 = vld [vmem:[%s11822_s26 + $0x70] sm:$0xf] }
  0x87   : > { %v5379_v28 = vsel %vm11941_vm4, %v5374_v18, %v5378_v3  ;;  %v5389_v38 = vsel %vm11941_vm4, %v5384_v29, %v5388_v12  ;;  %v5402_v47 = vrot.slane %v5400_v37, 5  ;;  %v5410_v53 = vshll.u32 %v9812_v31, 16  ;;  %v859_v29 = vld [vmem:[%s11822_s26 + $0x70] sm:$0xf] }
  0x88   : > { %v12128_v44 = vcombine.low %v5379_v28, %v5389_v38  ;;  %v5397_v48 = vor.u32 %v5396_v41, %v5393_v39  ;;  %v5406_v50 = vrot.slane %v5404_v42, 4  ;;  %v1063_v55 = vsel %vm11941_vm4, %v1058_v45, %v1062_v24  ;;  %v860_v42 = vld [vmem:[%s11822_s26 + $0x74] sm:$0x1]  ;;  %v9816_v45 = vld [vmem:[%s11822_s26 + $0x78] sm:$0xf] }
  0x89   : > { %v1068_v56 = vrot.slane %v1067_v46, 4  ;;  %v5412_v3 = vrot.slane %v5410_v53, 5  ;;  %v5415_v18 = vshrl.u32 %v9813_v5, 16  ;;  %v5424_v20 = vshll.u32 %v9814_v10, 16 }
  0x8a   : > { %v5407_v1 = vor.u32 %v5406_v50, %v5402_v47  ;;  %v5428_v22 = vshrl.u32 %v9814_v10, 16  ;;  %v5434_v33 = vshll.u32 %v9815_v15, 16  ;;  %v1102_v37 = vshll.u32 %v858_v23, 16  ;;  %v9817_v50 = vld [vmem:[%s11822_s26 + $0x7c] sm:$0xf] }
  0x8b   : > { %10648 = vmatmul.mubr.msk.bf16.gmra.mrb[28].mxu1 %vm325_vm1, %v11694_v54  ;;  %v1073_v6 = vsel %vm11941_vm4, %v1068_v56, %v1072_v36  ;;  %v5417_v28 = vrot.slane %v5415_v18, 4  ;;  %v5426_v31 = vrot.slane %v5424_v20, 5  ;;  %v1099_v36 = vshrl.u32 %v858_v23, 16  ;;  %v862_v10 = vld [vmem:[%s11822_s26 + $0x7c] sm:$0xf] }
  0x8c   : > { %10920 = vmatmul.mubr.msk.bf16.gmra.mrb[28].mxu0 %vm325_vm1, %v11695_v63  ;;  %10653 = vmatprep.mubr.msk.bf16.mxu1 %vm325_vm1, %v11959_v40  ;;  %v855_v40 = vld [vmem:[%s11822_s26 + $0x60] sm:$0xf]  ;;  %v5398_v63 = vrot.slane %v5397_v48, 4  ;;  %v5408_v12 = vrot.slane %v5407_v1, 4  ;;  %v5430_v32 = vrot.slane %v5428_v22, 4  ;;  %v5436_v41 = vrot.slane %v5434_v33, 5 }
  0x8d   : > { %10925 = vmatprep.mubr.msk.bf16.mxu0 %vm325_vm1, %v11973_v62  ;;  %v856_v62 = vld [vmem:[%s11822_s26 + $0x64] sm:$0xf]  ;;  %v1075_v54 = vshrl.u32 %v855_v40, 16  ;;  %v1078_v58 = vshll.u32 %v855_v40, 16  ;;  %v12163_v40 = vld [vmem:[%s13547_s1 + $0x10] sm:$0xf] }
  0x8e   : > { %v1084_v60 = vshll.u32 %v856_v62, 16  ;;  %v1088_v9 = vshrl.u32 %v856_v62, 16  ;;  %v5413_v19 = vsel %vm11941_vm4, %v5408_v12, %v5412_v3  ;;  %v5431_v39 = vor.u32 %v5430_v32, %v5426_v31  ;;  %v9818_v1 = vld [vmem:[%s11822_s26 + $0x80] sm:$0x1] }
  0x8f   : > { %v1077_v4 = vrot.slane %v1075_v54, 4  ;;  %v1080_v7 = vrot.slane %v1078_v58, 5  ;;  %v1108_v62 = vshll.u32 %v859_v29, 16  ;;  %v1112_v48 = vshrl.u32 %v859_v29, 16 }
  0x90   : > { %v1086_v8 = vrot.slane %v1084_v60, 5  ;;  %v1090_v14 = vrot.slane %v1088_v9, 4  ;;  %v1118_v58 = vshll.u32 %v860_v42, 16  ;;  %v5439_v60 = vshrl.u32 %v9816_v45, 16 }
  0x91   : > { %v1081_v13 = vor.u32 %v1080_v7, %v1077_v4  ;;  %v5442_v3 = vshll.u32 %v9816_v45, 16  ;;  %v5448_v4 = vshll.u32 %v9817_v50, 16  ;;  %v5458_v18 = vshll.u32 %v9818_v1, 16  ;;  %v866_v1 = vld [vmem:[%s11822_s26 + $0x8c] sm:$0x1] }
  0x92   : > { %v1091_v26 = vor.u32 %v1090_v14, %v1086_v8  ;;  %v1120_v9 = vrot.slane %v1118_v58, 5  ;;  %v1132_v23 = vshll.u32 %v862_v10, 16 }
  0x93   : > { %10654 = vmatmul.mubr.msk.bf16.vlgmr.msra.gmra.mrb[0].mxu1 %vm325_vm1, %v11985_v21  ;;  %v12145_v21 = vcombine.low %v1063_v55, %v1073_v6  ;;  %v1082_v25 = vrot.slane %v1081_v13, 4  ;;  %v5432_v55 = vrot.slane %v5431_v39, 4  ;;  %v5444_v12 = vrot.slane %v5442_v3, 5 }
  0x94   : > { %10686 = vmatpush3.bf16.msra.mxu1 %v11920_v49  ;;  %10926 = vmatmul.mubr.msk.bf16.vlgmr.msra.gmra.mrb[0].mxu0 %vm325_vm1, %v11999_v52  ;;  %v5403_v49 = vsel %vm11941_vm4, %v5398_v63, %v5402_v47  ;;  %v1094_v52 = vshll.u32 %v857_v57, 16  ;;  %v1092_v35 = vrot.slane %v1091_v26, 4  ;;  %v1101_v47 = vrot.slane %v1099_v36, 4 }
  0x95   : > { %10958 = vmatpush3.bf16.msra.mxu0 %v11924_v51  ;;  %10657 = vmatprep.mubr.msk.bf16.mxu1 %vm325_vm1, %v12010_v2  ;;  %v5418_v51 = vshll.u32 %v9813_v5, 16  ;;  %v12155_v24 = vcombine.low %v5403_v49, %v5413_v19  ;;  %v1087_v34 = vsel %vm11941_vm4, %v1082_v25, %v1086_v8  ;;  %v1114_v57 = vrot.slane %v1112_v48, 4  ;;  %v861_v5 = vld [vmem:[%s11822_s26 + $0x78] sm:$0xf]  ;;  %v9819_v25 = vld [vmem:[%s11822_s26 + $0x84] sm:$0xf] }
  0x96   : > { %10929 = vmatprep.mubr.msk.bf16.mxu0 %vm325_vm1, %v12023_v27  ;;  %v1096_v2 = vrot.slane %v1094_v52, 5  ;;  %11611 = vmatprep.subr.msk.bf16.mxu1 %vm374_vm0, %v12163_v40  ;;  %v5437_v63 = vsel %vm11941_vm4, %v5432_v55, %v5436_v41  ;;  %v5441_v49 = vrot.slane %v5439_v60, 4  ;;  %v5450_v52 = vrot.slane %v5448_v4, 5  ;;  %v9821_v41 = vld [vmem:[%s11822_s26 + $0x8c] sm:$0x1] }
  0x97   : > { %v5420_v27 = vrot.slane %v5418_v51, 5  ;;  %v5452_v13 = vshrl.u32 %v9817_v50, 16  ;;  %v863_v51 = vld [vmem:[%s11822_s26 + $0x80] sm:$0x1]  ;;  %v1123_v19 = vshrl.u32 %v861_v5, 16  ;;  %v1126_v22 = vshll.u32 %v861_v5, 16 }
  0x98   : > { %v1097_v46 = vsel %vm11941_vm4, %v1092_v35, %v1096_v2  ;;  %v5445_v2 = vor.u32 %v5444_v12, %v5441_v49  ;;  %v5463_v36 = vshrl.u32 %v9819_v25, 16  ;;  %v5466_v42 = vshll.u32 %v9819_v25, 16  ;;  %v865_v55 = vld [vmem:[%s11822_s26 + $0x88] sm:$0xf]  ;;  %v867_v25 = vld [vmem:[%s11822_s26 + $0x90] sm:$0xf] }
  0x99   : > { %v5421_v38 = vor.u32 %v5420_v27, %v5417_v28  ;;  %v12180_v53 = vcombine.low %v1087_v34, %v1097_v46  ;;  %v5454_v20 = vrot.slane %v5452_v13, 4  ;;  %v5460_v28 = vrot.slane %v5458_v18, 5 }
  0x9a   : > { %v1125_v29 = vrot.slane %v1123_v19, 4  ;;  %v1136_v27 = vshrl.u32 %v862_v10, 16  ;;  %v1128_v33 = vrot.slane %v1126_v22, 5  ;;  %v1134_v34 = vrot.slane %v1132_v23, 5 }
  0x9b   : > { %10658 = vmatmul.mubr.msk.bf16.gmra.mrb[4].mxu1 %vm325_vm1, %v12038_v59  ;;  %v1104_v59 = vrot.slane %v1102_v37, 5  ;;  %v5422_v54 = vrot.slane %v5421_v38, 4  ;;  %v5455_v32 = vor.u32 %v5454_v20, %v5450_v52  ;;  %v5465_v45 = vrot.slane %v5463_v36, 4 }
  0x9c   : > { %10930 = vmatmul.mubr.msk.bf16.gmra.mrb[4].mxu0 %vm325_vm1, %v12049_v11  ;;  %10661 = vmatprep.mubr.msk.bf16.mxu1 %vm325_vm1, %v12064_v43  ;;  %v1110_v11 = vrot.slane %v1108_v62, 5  ;;  %v12185_v43 = vld [vmem:[%s13547_s1 + $0x30] sm:$0xf]  ;;  %v1138_v35 = vrot.slane %v1136_v27, 4  ;;  %v1129_v39 = vor.u32 %v1128_v33, %v1125_v29  ;;  %v5468_v50 = vrot.slane %v5466_v42, 5 }
  0x9d   : > { %10933 = vmatprep.mubr.msk.bf16.mxu0 %vm325_vm1, %v12075_v61  ;;  %v1105_v56 = vor.u32 %v1104_v59, %v1101_v47  ;;  %11619 = vmatprep.subr.msk.bf16.mxu0 %vm374_vm0, %v12185_v43  ;;  %v5427_v61 = vsel %vm11941_vm4, %v5422_v54, %v5426_v31  ;;  %v5446_v31 = vrot.slane %v5445_v2, 4  ;;  %v5456_v38 = vrot.slane %v5455_v32, 4  ;;  %v864_v47 = vld [vmem:[%s11822_s26 + $0x84] sm:$0xf] }
  0x9e   : > { %v12195_v6 = vcombine.low %v5427_v61, %v5437_v63  ;;  %v1115_v8 = vor.u32 %v1114_v57, %v1110_v11  ;;  %v1130_v48 = vrot.slane %v1129_v39, 4  ;;  %v5482_v58 = vshll.u32 %v9821_v41, 16  ;;  %v869_v41 = vld [vmem:[%s11822_s26 + $0x98] sm:$0x1] }
  0x9f   : > { %v1106_v7 = vrot.slane %v1105_v56, 4  ;;  %v5451_v37 = vsel %vm11941_vm4, %v5446_v31, %v5450_v52  ;;  %v5461_v59 = vsel %vm11941_vm4, %v5456_v38, %v5460_v28  ;;  %v5469_v61 = vor.u32 %v5468_v50, %v5465_v45  ;;  %v868_v31 = vld [vmem:[%s11822_s26 + $0x94] sm:$0xf] }
  0xa0   : > { %v1116_v15 = vrot.slane %v1115_v8, 4  ;;  %v1135_v60 = vsel %vm11941_vm4, %v1130_v48, %v1134_v34  ;;  %v1147_v3 = vshrl.u32 %v864_v47, 16  ;;  %v5484_v5 = vrot.slane %v5482_v58, 5  ;;  %v9822_v8 = vld [vmem:[%s11822_s26 + $0x90] sm:$0xf] }
  0xa1   : > { %v1111_v14 = vsel %vm11941_vm4, %v1106_v7, %v1110_v11  ;;  %v9847_v11 = vcombine.low %v5451_v37, %v5461_v59  ;;  %v1156_v7 = vshll.u32 %v865_v55, 16  ;;  %v5470_v10 = vrot.slane %v5469_v61, 4 }
  0xa2   : > { %v1121_v26 = vsel %vm11941_vm4, %v1116_v15, %v1120_v9  ;;  %v1149_v12 = vrot.slane %v1147_v3, 4  ;;  %v5487_v19 = vshrl.u32 %v9822_v8, 16  ;;  %v5490_v2 = vshll.u32 %v9822_v8, 16  ;;  %v870_v8 = vld [vmem:[%s11822_s26 + $0x9c] sm:$0xf] }
  0xa3   : > { %10662 = vmatmul.mubr.msk.bf16.gmra.mrb[8].mxu1 %vm325_vm1, %v12089_v30  ;;  %v12212_v30 = vcombine.low %v1111_v14, %v1121_v26  ;;  %v1158_v13 = vrot.slane %v1156_v7, 5  ;;  %v1166_v14 = vshll.u32 %v866_v1, 16  ;;  %v1171_v37 = vshrl.u32 %v867_v25, 16 }
  0xa4   : > { %10934 = vmatmul.mubr.msk.bf16.gmra.mrb[8].mxu0 %vm325_vm1, %v12104_v0  ;;  %10665 = vmatprep.mubr.msk.bf16.mxu1 %vm325_vm1, %v12113_v17  ;;  %v9820_v0 = vld [vmem:[%s11822_s26 + $0x88] sm:$0xf]  ;;  %v1142_v17 = vshll.u32 %v863_v51, 16  ;;  %v9824_v51 = vld [vmem:[%s11822_s26 + $0x98] sm:$0x1]  ;;  %v5489_v28 = vrot.slane %v5487_v19, 4 }
  0xa5   : > { %10937 = vmatprep.mubr.msk.bf16.mxu0 %vm325_vm1, %v12128_v44  ;;  %v1139_v44 = vor.u32 %v1138_v35, %v1134_v34  ;;  %v5472_v46 = vshll.u32 %v9820_v0, 16  ;;  %v5476_v54 = vshrl.u32 %v9820_v0, 16  ;;  %v1168_v22 = vrot.slane %v1166_v14, 5 }
  0xa6   : > { %v1144_v62 = vrot.slane %v1142_v17, 5  ;;  %v5492_v29 = vrot.slane %v5490_v2, 5  ;;  %v5506_v36 = vshll.u32 %v9824_v51, 16  ;;  %v1174_v42 = vshll.u32 %v867_v25, 16  ;;  %v9828_v25 = vld [vmem:[%s11822_s26 + $0xa8] sm:$0xf] }
  0xa7   : > { %v1140_v56 = vrot.slane %v1139_v44, 4  ;;  %v5474_v57 = vrot.slane %v5472_v46, 5  ;;  %v5478_v63 = vrot.slane %v5476_v54, 4  ;;  %v1180_v44 = vshll.u32 %v868_v31, 16 }
  0xa8   : > { %v5493_v35 = vor.u32 %v5492_v29, %v5489_v28  ;;  %v5508_v45 = vrot.slane %v5506_v36, 5  ;;  %v1173_v46 = vrot.slane %v1171_v37, 4  ;;  %v1176_v48 = vrot.slane %v1174_v42, 5 }
  0xa9   : > { %v1145_v4 = vsel %vm11941_vm4, %v1140_v56, %v1144_v62  ;;  %v5479_v49 = vor.u32 %v5478_v63, %v5474_v57  ;;  %v5475_v15 = vsel %vm11941_vm4, %v5470_v10, %v5474_v57  ;;  %v1182_v50 = vrot.slane %v1180_v44, 5  ;;  %v9827_v63 = vld [vmem:[%s11822_s26 + $0xa4] sm:$0x1] }
  0xaa   : > { %v9264_v9 = vcombine.low %v1135_v60, %v1145_v4  ;;  %v1184_v54 = vshrl.u32 %v868_v31, 16  ;;  %v1190_v58 = vshll.u32 %v869_v41, 16  ;;  %v1177_v60 = vor.u32 %v1176_v48, %v1173_v46  ;;  %v9829_v31 = vld [vmem:[%s11822_s26 + $0xac] sm:$0xf]  ;;  %v9830_v41 = vld [vmem:[%s11822_s26 + $0xb0] sm:$0x1] }
  0xab   : > { %10666 = vmatmul.mubr.msk.bf16.gmra.mrb[12].mxu1 %vm325_vm1, %v12145_v21  ;;  %v1150_v21 = vshll.u32 %v864_v47, 16  ;;  %v5480_v18 = vrot.slane %v5479_v49, 4  ;;  %v9825_v47 = vld [vmem:[%s11822_s26 + $0x9c] sm:$0xf]  ;;  %v5530_v14 = vshll.u32 %v9827_v63, 16  ;;  %v1195_v51 = vshrl.u32 %v870_v8, 16 }
  0xac   : > { %10938 = vmatmul.mubr.msk.bf16.gmra.mrb[12].mxu0 %vm325_vm1, %v12155_v24  ;;  %10669 = vmatprep.mubr.msk.bf16.mxu1 %vm325_vm1, %v12180_v53  ;;  %v9823_v24 = vld [vmem:[%s11822_s26 + $0x94] sm:$0xf]  ;;  %v1160_v53 = vshrl.u32 %v865_v55, 16  ;;  %v9826_v55 = vld [vmem:[%s11822_s26 + $0xa0] sm:$0xf]  ;;  %v1186_v61 = vrot.slane %v1184_v54, 4 }
  0xad   : > { %10941 = vmatprep.mubr.msk.bf16.mxu0 %vm325_vm1, %v12195_v6  ;;  %v1152_v52 = vrot.slane %v1150_v21, 5  ;;  %v5496_v23 = vshll.u32 %v9823_v24, 16  ;;  %v5485_v26 = vsel %vm11941_vm4, %v5480_v18, %v5484_v5  ;;  %v5500_v27 = vshrl.u32 %v9823_v24, 16  ;;  %v871_v24 = vld [vmem:[%s11822_s26 + $0xa0] sm:$0xf] }
  0xae   : > { %v1162_v6 = vrot.slane %v1160_v53, 4  ;;  %v9848_v32 = vcombine.low %v5475_v15, %v5485_v26  ;;  %v5511_v1 = vshrl.u32 %v9825_v47, 16  ;;  %v5514_v3 = vshll.u32 %v9825_v47, 16 }
  0xaf   : > { %v1153_v20 = vor.u32 %v1152_v52, %v1149_v12  ;;  %v5498_v34 = vrot.slane %v5496_v23, 5  ;;  %v5502_v17 = vrot.slane %v5500_v27, 4  ;;  %v1192_v5 = vrot.slane %v1190_v58, 5  ;;  %v875_v58 = vld [vmem:[%s11822_s26 + $0xb0] sm:$0x1] }
  0xb0   : > { %v1163_v0 = vor.u32 %v1162_v6, %v1158_v13  ;;  %v5520_v21 = vshll.u32 %v9826_v55, 16  ;;  %v5524_v7 = vshrl.u32 %v9826_v55, 16  ;;  %v1178_v10 = vrot.slane %v1177_v60, 4 }
  0xb1   : > { %v1154_v33 = vrot.slane %v1153_v20, 4  ;;  %v5503_v62 = vor.u32 %v5502_v17, %v5498_v34  ;;  %v1187_v49 = vor.u32 %v1186_v61, %v1182_v50  ;;  %v5513_v12 = vrot.slane %v5511_v1, 4 }
  0xb2   : > { %v1164_v39 = vrot.slane %v1163_v0, 4  ;;  %v5516_v52 = vrot.slane %v5514_v3, 5  ;;  %v5526_v53 = vrot.slane %v5524_v7, 4  ;;  %v1183_v15 = vsel %vm11941_vm4, %v1178_v10, %v1182_v50 }
  0xb3   : > { %10670 = vmatmul.mubr.msk.bf16.gmra.mrb[16].mxu1 %vm325_vm1, %v12212_v30  ;;  %v1159_v38 = vsel %vm11941_vm4, %v1154_v33, %v1158_v13  ;;  %v5494_v30 = vrot.slane %v5493_v35, 4  ;;  %v5504_v57 = vrot.slane %v5503_v62, 4  ;;  %v5522_v13 = vrot.slane %v5520_v21, 5 }
  0xb4   : > { %10942 = vmatmul.mubr.msk.bf16.gmra.mrb[16].mxu0 %vm325_vm1, %v9847_v11  ;;  %10673 = vmatprep.mubr.msk.bf16.mxu1 %vm325_vm1, %v9264_v9  ;;  %v1169_v59 = vsel %vm11941_vm4, %v1164_v39, %v1168_v22  ;;  %v1188_v18 = vrot.slane %v1187_v49, 4  ;;  %v1198_v19 = vshll.u32 %v870_v8, 16  ;;  %v5517_v2 = vor.u32 %v5516_v52, %v5513_v12  ;;  %v872_v22 = vld [vmem:[%s11822_s26 + $0xa4] sm:$0x1] }
  0xb5   : > { %10945 = vmatprep.mubr.msk.bf16.mxu0 %vm325_vm1, %v9848_v32  ;;  %v9265_v11 = vcombine.low %v1159_v38, %v1169_v59  ;;  %v5499_v56 = vsel %vm11941_vm4, %v5494_v30, %v5498_v34  ;;  %v5509_v4 = vsel %vm11941_vm4, %v5504_v57, %v5508_v45  ;;  %v5527_v20 = vor.u32 %v5526_v53, %v5522_v13  ;;  %v873_v30 = vld [vmem:[%s11822_s26 + $0xa8] sm:$0xf]  ;;  %v874_v59 = vld [vmem:[%s11822_s26 + $0xac] sm:$0xf] }
  0xb6   : > { %v9849_v9 = vcombine.low %v5499_v56, %v5509_v4  ;;  %v5532_v6 = vrot.slane %v5530_v14, 5  ;;  %v1204_v23 = vshll.u32 %v871_v24, 16  ;;  %v1193_v26 = vsel %vm11941_vm4, %v1188_v18, %v1192_v5  ;;  %v9831_v4 = vld [vmem:[%s11822_s26 + $0xb4] sm:$0xf] }
  0xb7   : > { %v1197_v28 = vrot.slane %v1195_v51, 4  ;;  %v1200_v29 = vrot.slane %v1198_v19, 5  ;;  %v1208_v27 = vshrl.u32 %v871_v24, 16  ;;  %v9266_v32 = vcombine.low %v1183_v15, %v1193_v26  ;;  %v9832_v24 = vld [vmem:[%s11822_s26 + $0xb8] sm:$0xf] }
  0xb8   : > { %v5518_v33 = vrot.slane %v5517_v2, 4  ;;  %v5528_v0 = vrot.slane %v5527_v20, 4  ;;  %v1206_v34 = vrot.slane %v1204_v23, 5  ;;  %v1214_v36 = vshll.u32 %v872_v22, 16  ;;  %v9833_v19 = vld [vmem:[%s11822_s26 + $0xbc] sm:$0x1] }
  0xb9   : > { %v1201_v35 = vor.u32 %v1200_v29, %v1197_v28  ;;  %v1210_v17 = vrot.slane %v1208_v27, 4  ;;  %v5535_v37 = vshrl.u32 %v9828_v25, 16  ;;  %v5538_v42 = vshll.u32 %v9828_v25, 16  ;;  %v876_v25 = vld [vmem:[%s11822_s26 + $0xb4] sm:$0xf] }
  0xba   : > { %v5523_v38 = vsel %vm11941_vm4, %v5518_v33, %v5522_v13  ;;  %v5533_v39 = vsel %vm11941_vm4, %v5528_v0, %v5532_v6  ;;  %v5544_v44 = vshll.u32 %v9829_v31, 16  ;;  %v1216_v47 = vrot.slane %v1214_v36, 5 }
  0xbb   : > { %10674 = vmatmul.mubr.msk.bf16.gmra.mrb[20].mxu1 %vm325_vm1, %v9265_v11  ;;  %v9850_v62 = vcombine.low %v5523_v38, %v5533_v39  ;;  %v1202_v45 = vrot.slane %v1201_v35, 4  ;;  %v1211_v46 = vor.u32 %v1210_v17, %v1206_v34  ;;  %v5537_v48 = vrot.slane %v5535_v37, 4  ;;  %v878_v37 = vld [vmem:[%s11822_s26 + $0xbc] sm:$0x1] }
  0xbc   : > { %10946 = vmatmul.mubr.msk.bf16.gmra.mrb[20].mxu0 %vm325_vm1, %v9849_v9  ;;  %10677 = vmatprep.mubr.msk.bf16.mxu1 %vm325_vm1, %v9266_v32  ;;  %v5540_v50 = vrot.slane %v5538_v42, 5  ;;  %v5546_v54 = vrot.slane %v5544_v44, 5  ;;  %v5548_v55 = vshrl.u32 %v9829_v31, 16  ;;  %v5554_v57 = vshll.u32 %v9830_v41, 16  ;;  %v877_v31 = vld [vmem:[%s11822_s26 + $0xb8] sm:$0xf] }
  0xbd   : > { %10949 = vmatprep.mubr.msk.bf16.mxu0 %vm325_vm1, %v9850_v62  ;;  %v1207_v11 = vsel %vm11941_vm4, %v1202_v45, %v1206_v34  ;;  %v1212_v56 = vrot.slane %v1211_v46, 4  ;;  %v1219_v60 = vshrl.u32 %v873_v30, 16  ;;  %v1222_v1 = vshll.u32 %v873_v30, 16  ;;  %v9834_v30 = vld [vmem:[%s11822_s26 + $0xc0] sm:$0xf] }
  0xbe   : > { %v5541_v61 = vor.u32 %v5540_v50, %v5537_v48  ;;  %v5550_v63 = vrot.slane %v5548_v55, 4  ;;  %v1228_v3 = vshll.u32 %v874_v59, 16  ;;  %v5556_v21 = vrot.slane %v5554_v57, 5  ;;  %v9836_v57 = vld [vmem:[%s11822_s26 + $0xc8] sm:$0x1] }
  0xbf   : > { %v1217_v5 = vsel %vm11941_vm4, %v1212_v56, %v1216_v47  ;;  %v1221_v7 = vrot.slane %v1219_v60, 4  ;;  %v1232_v8 = vshrl.u32 %v874_v59, 16  ;;  %v1224_v12 = vrot.slane %v1222_v1, 5  ;;  %v9835_v59 = vld [vmem:[%s11822_s26 + $0xc4] sm:$0xf] }
  0xc0   : > { %v9267_v9 = vcombine.low %v1207_v11, %v1217_v5  ;;  %v5542_v10 = vrot.slane %v5541_v61, 4  ;;  %v5551_v49 = vor.u32 %v5550_v63, %v5546_v54  ;;  %v1230_v52 = vrot.slane %v1228_v3, 5 }
  0xc1   : > { %v1234_v13 = vrot.slane %v1232_v8, 4  ;;  %v1238_v53 = vshll.u32 %v875_v58, 16  ;;  %v5559_v14 = vshrl.u32 %v9831_v4, 16  ;;  %v1225_v51 = vor.u32 %v1224_v12, %v1221_v7 }
  0xc2   : > { %v5547_v15 = vsel %vm11941_vm4, %v5542_v10, %v5546_v54  ;;  %v5552_v18 = vrot.slane %v5551_v49, 4  ;;  %v5562_v2 = vshll.u32 %v9831_v4, 16  ;;  %v5568_v23 = vshll.u32 %v9832_v24, 16  ;;  %v9286_v4 = vld [vmem:[%s11822_s26 + $0xcc] sm:$0xf] }
  0xc3   : > { %10678 = vmatmul.mubr.msk.bf16.gmra.mrb[24].mxu1 %vm325_vm1, %v9267_v9  ;;  %v1235_v20 = vor.u32 %v1234_v13, %v1230_v52  ;;  %v1240_v6 = vrot.slane %v1238_v53, 5  ;;  %v5561_v22 = vrot.slane %v5559_v14, 4  ;;  %v1226_v28 = vrot.slane %v1225_v51, 4  ;;  %v9287_v9 = vld [vmem:[%s11822_s26 + $0xd0] sm:$0xf] }
  0xc4   : > { %v5557_v26 = vsel %vm11941_vm4, %v5552_v18, %v5556_v21  ;;  %v5564_v29 = vrot.slane %v5562_v2, 5  ;;  %v5572_v27 = vshrl.u32 %v9832_v24, 16  ;;  %v5570_v0 = vrot.slane %v5568_v23, 5  ;;  %v9288_v51 = vld [vmem:[%s11822_s26 + $0xd4] sm:$0x1] }
  0xc5   : > { %v9851_v32 = vcombine.low %v5547_v15, %v5557_v26  ;;  %v1236_v33 = vrot.slane %v1235_v20, 4  ;;  %v5578_v34 = vshll.u32 %v9833_v19, 16  ;;  %v1231_v35 = vsel %vm11941_vm4, %v1226_v28, %v1230_v52 }
  0xc6   : > { %v5565_v17 = vor.u32 %v5564_v29, %v5561_v22  ;;  %v5574_v36 = vrot.slane %v5572_v27, 4  ;;  %v1243_v38 = vshrl.u32 %v876_v25, 16  ;;  %v1246_v42 = vshll.u32 %v876_v25, 16  ;;  %v9870_v25 = vld [vmem:[%s11822_s26 + $0xd8] sm:$0xf] }
  0xc7   : > { %10950 = vmatmul.mubr.msk.bf16.gmra.mrb[24].mxu0 %vm325_vm1, %v9851_v32  ;;  %v1241_v39 = vsel %vm11941_vm4, %v1236_v33, %v1240_v6  ;;  %v5580_v41 = vrot.slane %v5578_v34, 5  ;;  %v1252_v44 = vshll.u32 %v877_v31, 16  ;;  %v1256_v54 = vshrl.u32 %v877_v31, 16  ;;  %v9871_v31 = vld [vmem:[%s11822_s26 + $0xdc] sm:$0xf] }
  0xc8   : > { %v9268_v62 = vcombine.low %v1231_v35, %v1241_v39  ;;  %v5566_v45 = vrot.slane %v5565_v17, 4  ;;  %v5575_v46 = vor.u32 %v5574_v36, %v5570_v0  ;;  %v1245_v47 = vrot.slane %v1243_v38, 4  ;;  %v9872_v36 = vld [vmem:[%s11822_s26 + $0xe0] sm:$0x1] }
  0xc9   : > { %v1248_v48 = vrot.slane %v1246_v42, 5  ;;  %v1254_v50 = vrot.slane %v1252_v44, 5  ;;  %v1262_v55 = vshll.u32 %v878_v37, 16  ;;  %v5583_v58 = vshrl.u32 %v9834_v30, 16 }
  0xca   : > { %10681 = vmatprep.mubr.msk.bf16.mxu1 %vm325_vm1, %v9268_v62  ;;  %v5571_v11 = vsel %vm11941_vm4, %v5566_v45, %v5570_v0  ;;  %v5576_v56 = vrot.slane %v5575_v46, 4  ;;  %v5586_v60 = vshll.u32 %v9834_v30, 16  ;;  %v1258_v63 = vrot.slane %v1256_v54, 4  ;;  %v9289_v30 = vld [vmem:[%s11822_s26 + $0xd8] sm:$0xf] }
  0xcb   : > { %v1249_v61 = vor.u32 %v1248_v48, %v1245_v47  ;;  %v1264_v1 = vrot.slane %v1262_v55, 5  ;;  %v5592_v3 = vshll.u32 %v9835_v59, 16  ;;  %v5585_v21 = vrot.slane %v5583_v58, 4 }
  0xcc   : > { %v5581_v5 = vsel %vm11941_vm4, %v5576_v56, %v5580_v41  ;;  %v5588_v7 = vrot.slane %v5586_v60, 5  ;;  %v5596_v8 = vshrl.u32 %v9835_v59, 16  ;;  %v1259_v12 = vor.u32 %v1258_v63, %v1254_v50  ;;  %v9290_v59 = vld [vmem:[%s11822_s26 + $0xdc] sm:$0xf] }
  0xcd   : > { %v9852_v10 = vcombine.low %v5571_v11, %v5581_v5  ;;  %v1250_v49 = vrot.slane %v1249_v61, 4  ;;  %v5594_v24 = vrot.slane %v5592_v3, 5  ;;  %v5602_v53 = vshll.u32 %v9836_v57, 16 }
  0xce   : > { %v5589_v52 = vor.u32 %v5588_v7, %v5585_v21  ;;  %v5598_v13 = vrot.slane %v5596_v8, 4  ;;  %v1609_v14 = vshrl.u32 %v9286_v4, 16  ;;  %v1260_v18 = vrot.slane %v1259_v12, 4 }
  0xcf   : > { %10953 = vmatprep.mubr.msk.bf16.mxu0 %vm325_vm1, %v9852_v10  ;;  %v1255_v15 = vsel %vm11941_vm4, %v1250_v49, %v1254_v50  ;;  %v1612_v19 = vshll.u32 %v9286_v4, 16  ;;  %v1618_v2 = vshll.u32 %v9287_v9, 16  ;;  %v5604_v22 = vrot.slane %v5602_v53, 5  ;;  %v9873_v4 = vld [vmem:[%s11822_s26 + $0xe4] sm:$0xf] }
  0xd0   : > { %v5590_v20 = vrot.slane %v5589_v52, 4  ;;  %v5599_v6 = vor.u32 %v5598_v13, %v5594_v24  ;;  %v1611_v23 = vrot.slane %v1609_v14, 4  ;;  %v1265_v26 = vsel %vm11941_vm4, %v1260_v18, %v1264_v1  ;;  %v9291_v1 = vld [vmem:[%s11822_s26 + $0xe0] sm:$0x1]  ;;  %v9875_v52 = vld [vmem:[%s11822_s26 + $0xec] sm:$0x1] }
  0xd1   : > { %v1614_v28 = vrot.slane %v1612_v19, 5  ;;  %v1620_v29 = vrot.slane %v1618_v2, 5  ;;  %v1622_v27 = vshrl.u32 %v9287_v9, 16  ;;  %v9269_v32 = vcombine.low %v1255_v15, %v1265_v26  ;;  %v9874_v9 = vld [vmem:[%s11822_s26 + $0xe8] sm:$0xf] }
  0xd2   : > { %v5595_v33 = vsel %vm11941_vm4, %v5590_v20, %v5594_v24  ;;  %v5600_v0 = vrot.slane %v5599_v6, 4  ;;  %v1628_v34 = vshll.u32 %v9288_v51, 16  ;;  %v5949_v37 = vshrl.u32 %v9870_v25, 16  ;;  %v9292_v18 = vld [vmem:[%s11822_s26 + $0xe4] sm:$0xf] }
  0xd3   : > { %v1615_v35 = vor.u32 %v1614_v28, %v1611_v23  ;;  %v1624_v17 = vrot.slane %v1622_v27, 4  ;;  %v5952_v38 = vshll.u32 %v9870_v25, 16  ;;  %10682 = vmatmul.mubr.msk.bf16.gmra.mrb[28].mxu1 %vm325_vm1, %v9269_v32  ;;  %v5958_v42 = vshll.u32 %v9871_v31, 16  ;;  %v9293_v6 = vld [vmem:[%s11822_s26 + $0xe8] sm:$0xf] }
  0xd4   : > { %v5605_v39 = vsel %vm11941_vm4, %v5600_v0, %v5604_v22  ;;  %v1630_v41 = vrot.slane %v1628_v34, 5  ;;  %v5962_v44 = vshrl.u32 %v9871_v31, 16  ;;  %v5951_v47 = vrot.slane %v5949_v37, 4  ;;  %v9294_v31 = vld [vmem:[%s11822_s26 + $0xec] sm:$0x1] }
  0xd5   : > { %v9853_v62 = vcombine.low %v5595_v33, %v5605_v39  ;;  %v1616_v45 = vrot.slane %v1615_v35, 4  ;;  %v1625_v46 = vor.u32 %v1624_v17, %v1620_v29  ;;  %v5954_v48 = vrot.slane %v5952_v38, 5  ;;  %v9876_v35 = vld [vmem:[%s11822_s26 + $0xf0] sm:$0xf]  ;;  %v9877_v39 = vld [vmem:[%s11822_s26 + $0xf4] sm:$0xf] }
  0xd6   : > { %v5960_v50 = vrot.slane %v5958_v42, 5  ;;  %v5964_v54 = vrot.slane %v5962_v44, 4  ;;  %v5968_v55 = vshll.u32 %v9872_v36, 16  ;;  %v1633_v57 = vshrl.u32 %v9289_v30, 16 }
  0xd7   : > { %10954 = vmatmul.mubr.msk.bf16.gmra.mrb[28].mxu0 %vm325_vm1, %v9853_v62  ;;  %v1621_v11 = vsel %vm11941_vm4, %v1616_v45, %v1620_v29  ;;  %v1626_v56 = vrot.slane %v1625_v46, 4  ;;  %v1636_v58 = vshll.u32 %v9289_v30, 16  ;;  %v5955_v60 = vor.u32 %v5954_v48, %v5951_v47  ;;  %v9464_v62 = vld [vmem:[%s13547_s1 + $0x14] sm:$0xf] }
  0xd8   : > { %v5965_v61 = vor.u32 %v5964_v54, %v5960_v50  ;;  %v5970_v63 = vrot.slane %v5968_v55, 5  ;;  %v1642_v3 = vshll.u32 %v9290_v59, 16  ;;  %v1635_v21 = vrot.slane %v1633_v57, 4  ;;  %v9878_v55 = vld [vmem:[%s11822_s26 + $0xf8] sm:$0x1] }
  0xd9   : > { %v1631_v5 = vsel %vm11941_vm4, %v1626_v56, %v1630_v41  ;;  %v1638_v7 = vrot.slane %v1636_v58, 5  ;;  %v1646_v8 = vshrl.u32 %v9290_v59, 16  ;;  %v5956_v49 = vrot.slane %v5955_v60, 4 }
  0xda   : > { %v9335_v10 = vcombine.low %v1621_v11, %v1631_v5  ;;  %v5966_v12 = vrot.slane %v5965_v61, 4  ;;  %v1644_v24 = vrot.slane %v1642_v3, 5  ;;  %v1652_v14 = vshll.u32 %v9291_v1, 16  ;;  %v9295_v11 = vld [vmem:[%s11822_s26 + $0xf0] sm:$0xf] }
  0xdb   : > { %v1639_v13 = vor.u32 %v1638_v7, %v1635_v21  ;;  %v1648_v53 = vrot.slane %v1646_v8, 4  ;;  %v2450_v15 = vsel %vm374_vm0, %v12163_v40, 0  ;;  %v5961_v51 = vsel %vm11941_vm4, %v5956_v49, %v5960_v50  ;;  %v9296_v61 = vld [vmem:[%s11822_s26 + $0xf4] sm:$0xf] }
  0xdc   : > { %10687 = vmatprep.mubr.msk.bf16.mxu1 %vm325_vm1, %v9335_v10  ;;  %v5971_v19 = vsel %vm11941_vm4, %v5966_v12, %v5970_v63  ;;  %v5973_v2 = vshrl.u32 %v9873_v4, 16  ;;  %v5976_v20 = vshll.u32 %v9873_v4, 16  ;;  %v1654_v26 = vrot.slane %v1652_v14, 5 }
  0xdd   : > { %v9919_v22 = vcombine.low %v5961_v51, %v5971_v19  ;;  %v1640_v23 = vrot.slane %v1639_v13, 4  ;;  %v1649_v25 = vor.u32 %v1648_v53, %v1644_v24  ;;  %v5982_v29 = vshll.u32 %v9874_v9, 16 }
  0xde   : > { %v5975_v40 = vrot.slane %v5973_v2, 4  ;;  %v5978_v28 = vrot.slane %v5976_v20, 5  ;;  %v5986_v27 = vshrl.u32 %v9874_v9, 16  ;;  %v5992_v0 = vshll.u32 %v9875_v52, 16 }
  0xdf   : > { %10959 = vmatprep.mubr.msk.bf16.mxu0 %vm325_vm1, %v9919_v22  ;;  %v1645_v32 = vsel %vm11941_vm4, %v1640_v23, %v1644_v24  ;;  %v1650_v33 = vrot.slane %v1649_v25, 4  ;;  %v6790_v34 = vsel %vm374_vm0, %v12185_v43, 0  ;;  %v5984_v36 = vrot.slane %v5982_v29, 5  ;;  %v9297_v24 = vld [vmem:[%s11822_s26 + $0xf8] sm:$0x1] }
  0xe0   : > { %v5979_v17 = vor.u32 %v5978_v28, %v5975_v40  ;;  %v5988_v37 = vrot.slane %v5986_v27, 4  ;;  %v1657_v38 = vshrl.u32 %v9292_v18, 16  ;;  %v5994_v42 = vrot.slane %v5992_v0, 5 }
  0xe1   : > { %v1655_v41 = vsel %vm11941_vm4, %v1650_v33, %v1654_v26  ;;  %v1660_v44 = vshll.u32 %v9292_v18, 16  ;;  %v1666_v30 = vshll.u32 %v9293_v6, 16  ;;  %v1670_v50 = vshrl.u32 %v9293_v6, 16  ;;  %v10048_v18 = vld [vmem:[%s13547_s1 + $0x34] sm:$0xf] }
  0xe2   : > { %v9336_v43 = vcombine.low %v1645_v32, %v1655_v41  ;;  %v5980_v45 = vrot.slane %v5979_v17, 4  ;;  %v5989_v46 = vor.u32 %v5988_v37, %v5984_v36  ;;  %v1659_v47 = vrot.slane %v1657_v38, 4  ;;  %v9880_v6 = vld [vmem:[%s11822_s26 + $0x100] sm:$0xf] }
  0xe3   : > { %v1662_v59 = vrot.slane %v1660_v44, 5  ;;  %v1668_v48 = vrot.slane %v1666_v30, 5  ;;  %v1676_v54 = vshll.u32 %v9294_v31, 16  ;;  %v5997_v58 = vshrl.u32 %v9876_v35, 16  ;;  %v9881_v31 = vld [vmem:[%s11822_s26 + $0x104] sm:$0x1] }
  0xe4   : > { %10688 = vmatmul.mubr.msk.bf16.vlgmr.msra.gmra.mrb[0].mxu1 %vm325_vm1, %v9336_v43  ;;  %v5985_v56 = vsel %vm11941_vm4, %v5980_v45, %v5984_v36  ;;  %v5990_v57 = vrot.slane %v5989_v46, 4  ;;  %v6000_v60 = vshll.u32 %v9876_v35, 16  ;;  %v1672_v1 = vrot.slane %v1670_v50, 4  ;;  %v9298_v35 = vld [vmem:[%s11822_s26 + $0xfc] sm:$0xf] }
  0xe5   : > { %10720 = vmatpush3.bf16.msra.mxu1 %v2450_v15  ;;  %v1663_v63 = vor.u32 %v1662_v59, %v1659_v47  ;;  %v1678_v3 = vrot.slane %v1676_v54, 5  ;;  %v6006_v4 = vshll.u32 %v9877_v39, 16  ;;  %v5999_v21 = vrot.slane %v5997_v58, 4  ;;  %v9879_v15 = vld [vmem:[%s11822_s26 + $0xfc] sm:$0xf] }
  0xe6   : > { %v5995_v5 = vsel %vm11941_vm4, %v5990_v57, %v5994_v42  ;;  %v6002_v7 = vrot.slane %v6000_v60, 5  ;;  %v6010_v8 = vshrl.u32 %v9877_v39, 16  ;;  %11612 = vmatprep.subr.msk.bf16.mxu1 %vm374_vm0, %v9464_v62  ;;  %v1673_v49 = vor.u32 %v1672_v1, %v1668_v48  ;;  %v9299_v46 = vld [vmem:[%s11822_s26 + $0x100] sm:$0xf]  ;;  %v9300_v54 = vld [vmem:[%s11822_s26 + $0x104] sm:$0x1] }
  0xe7   : > { %v9920_v9 = vcombine.low %v5985_v56, %v5995_v5  ;;  %v1664_v10 = vrot.slane %v1663_v63, 4  ;;  %v6008_v12 = vrot.slane %v6006_v4, 5  ;;  %v6016_v53 = vshll.u32 %v9878_v55, 16  ;;  %v9882_v55 = vld [vmem:[%s11822_s26 + $0x108] sm:$0xf] }
  0xe8   : > { %v6003_v52 = vor.u32 %v6002_v7, %v5999_v21  ;;  %v6012_v13 = vrot.slane %v6010_v8, 4  ;;  %v1681_v14 = vshrl.u32 %v9295_v11, 16  ;;  %v1674_v19 = vrot.slane %v1673_v49, 4  ;;  %v9883_v60 = vld [vmem:[%s11822_s26 + $0x10c] sm:$0xf] }
  0xe9   : > { %10960 = vmatmul.mubr.msk.bf16.vlgmr.msra.gmra.mrb[0].mxu0 %vm325_vm1, %v9920_v9  ;;  %v1669_v51 = vsel %vm11941_vm4, %v1664_v10, %v1668_v48  ;;  %v1684_v2 = vshll.u32 %v9295_v11, 16  ;;  %v1690_v20 = vshll.u32 %v9296_v61, 16  ;;  %v6018_v25 = vrot.slane %v6016_v53, 5 }
  0xea   : > { %10992 = vmatpush3.bf16.msra.mxu0 %v6790_v34  ;;  %v6004_v22 = vrot.slane %v6003_v52, 4  ;;  %v6013_v23 = vor.u32 %v6012_v13, %v6008_v12  ;;  %v1683_v26 = vrot.slane %v1681_v14, 4  ;;  %v1679_v40 = vsel %vm11941_vm4, %v1674_v19, %v1678_v3 }
  0xeb   : > { %v1686_v28 = vrot.slane %v1684_v2, 5  ;;  %v1692_v29 = vrot.slane %v1690_v20, 5  ;;  %v1694_v27 = vshrl.u32 %v9296_v61, 16  ;;  %11620 = vmatprep.subr.msk.bf16.mxu0 %vm374_vm0, %v10048_v18  ;;  %v9337_v32 = vcombine.low %v1669_v51, %v1679_v40 }
  0xec   : > { %v6009_v33 = vsel %vm11941_vm4, %v6004_v22, %v6008_v12  ;;  %v6014_v0 = vrot.slane %v6013_v23, 4  ;;  %v1700_v34 = vshll.u32 %v9297_v24, 16  ;;  %v6021_v37 = vshrl.u32 %v9879_v15, 16  ;;  %v9884_v12 = vld [vmem:[%s11822_s26 + $0x110] sm:$0x1] }
  0xed   : > { %v1687_v17 = vor.u32 %v1686_v28, %v1683_v26  ;;  %v1696_v36 = vrot.slane %v1694_v27, 4  ;;  %v6024_v38 = vshll.u32 %v9879_v15, 16  ;;  %10691 = vmatprep.mubr.msk.bf16.mxu1 %vm325_vm1, %v9337_v32  ;;  %v6030_v42 = vshll.u32 %v9880_v6, 16  ;;  %v9301_v24 = vld [vmem:[%s11822_s26 + $0x108] sm:$0xf] }
  0xee   : > { %v6019_v39 = vsel %vm11941_vm4, %v6014_v0, %v6018_v25  ;;  %v1702_v41 = vrot.slane %v1700_v34, 5  ;;  %v6034_v44 = vshrl.u32 %v9880_v6, 16  ;;  %v6023_v45 = vrot.slane %v6021_v37, 4  ;;  %v9302_v23 = vld [vmem:[%s11822_s26 + $0x10c] sm:$0xf] }
  0xef   : > { %v9921_v30 = vcombine.low %v6009_v33, %v6019_v39  ;;  %v1688_v62 = vrot.slane %v1687_v17, 4  ;;  %v1697_v43 = vor.u32 %v1696_v36, %v1692_v29  ;;  %v6026_v47 = vrot.slane %v6024_v38, 5  ;;  %v9885_v27 = vld [vmem:[%s11822_s26 + $0x114] sm:$0xf]  ;;  %v9886_v37 = vld [vmem:[%s11822_s26 + $0x118] sm:$0xf] }
  0xf0   : > { %v6032_v59 = vrot.slane %v6030_v42, 5  ;;  %v6036_v48 = vrot.slane %v6034_v44, 4  ;;  %v6040_v50 = vshll.u32 %v9881_v31, 16  ;;  %v1705_v57 = vshrl.u32 %v9298_v35, 16 }
  0xf1   : > { %10963 = vmatprep.mubr.msk.bf16.mxu0 %vm325_vm1, %v9921_v30  ;;  %v1693_v11 = vsel %vm11941_vm4, %v1688_v62, %v1692_v29  ;;  %v1698_v56 = vrot.slane %v1697_v43, 4  ;;  %v1708_v58 = vshll.u32 %v9298_v35, 16  ;;  %v6027_v61 = vor.u32 %v6026_v47, %v6023_v45  ;;  %v9303_v29 = vld [vmem:[%s11822_s26 + $0x110] sm:$0x1]  ;;  %v9887_v45 = vld [vmem:[%s11822_s26 + $0x11c] sm:$0x1] }
  0xf2   : > { %v6037_v63 = vor.u32 %v6036_v48, %v6032_v59  ;;  %v6042_v1 = vrot.slane %v6040_v50, 5  ;;  %v1714_v3 = vshll.u32 %v9299_v46, 16  ;;  %v1707_v5 = vrot.slane %v1705_v57, 4  ;;  %v9304_v50 = vld [vmem:[%s11822_s26 + $0x114] sm:$0xf] }
  0xf3   : > { %v1703_v4 = vsel %vm11941_vm4, %v1698_v56, %v1702_v41  ;;  %v1710_v21 = vrot.slane %v1708_v58, 5  ;;  %v1718_v7 = vshrl.u32 %v9299_v46, 16  ;;  %v6028_v9 = vrot.slane %v6027_v61, 4 }
  0xf4   : > { %v9338_v8 = vcombine.low %v1693_v11, %v1703_v4  ;;  %v6038_v10 = vrot.slane %v6037_v63, 4  ;;  %v1716_v49 = vrot.slane %v1714_v3, 5  ;;  %v1724_v53 = vshll.u32 %v9300_v54, 16  ;;  %v9305_v63 = vld [vmem:[%s11822_s26 + $0x118] sm:$0xf] }
  0xf5   : > { %v1711_v52 = vor.u32 %v1710_v21, %v1707_v5  ;;  %v1720_v13 = vrot.slane %v1718_v7, 4  ;;  %v6045_v14 = vshrl.u32 %v9882_v55, 16  ;;  %v6033_v15 = vsel %vm11941_vm4, %v6028_v9, %v6032_v59  ;;  %v9306_v21 = vld [vmem:[%s11822_s26 + $0x11c] sm:$0x1] }
  0xf6   : > { %10692 = vmatmul.mubr.msk.bf16.gmra.mrb[4].mxu1 %vm325_vm1, %v9338_v8  ;;  %v6043_v18 = vsel %vm11941_vm4, %v6038_v10, %v6042_v1  ;;  %v6048_v51 = vshll.u32 %v9882_v55, 16  ;;  %v6054_v19 = vshll.u32 %v9883_v60, 16  ;;  %v1726_v22 = vrot.slane %v1724_v53, 5 }
  0xf7   : > { %v9922_v2 = vcombine.low %v6033_v15, %v6043_v18  ;;  %v1712_v20 = vrot.slane %v1711_v52, 4  ;;  %v1721_v6 = vor.u32 %v1720_v13, %v1716_v49  ;;  %v6047_v25 = vrot.slane %v6045_v14, 4 }
  0xf8   : > { %v6050_v26 = vrot.slane %v6048_v51, 5  ;;  %v6056_v40 = vrot.slane %v6054_v19, 5  ;;  %v6058_v28 = vshrl.u32 %v9883_v60, 16  ;;  %v6064_v33 = vshll.u32 %v9884_v12, 16 }
  0xf9   : > { %10964 = vmatmul.mubr.msk.bf16.gmra.mrb[4].mxu0 %vm325_vm1, %v9922_v2  ;;  %v1717_v31 = vsel %vm11941_vm4, %v1712_v20, %v1716_v49  ;;  %v1722_v32 = vrot.slane %v1721_v6, 4  ;;  %v1729_v0 = vshrl.u32 %v9301_v24, 16  ;;  %v1732_v17 = vshll.u32 %v9301_v24, 16  ;;  %v9888_v49 = vld [vmem:[%s11822_s26 + $0x120] sm:$0xf] }
  0xfa   : > { %v6051_v34 = vor.u32 %v6050_v26, %v6047_v25  ;;  %v6060_v35 = vrot.slane %v6058_v28, 4  ;;  %v1738_v36 = vshll.u32 %v9302_v23, 16  ;;  %v6066_v39 = vrot.slane %v6064_v33, 5  ;;  %v9889_v6 = vld [vmem:[%s11822_s26 + $0x124] sm:$0xf] }
  0xfb   : > { %v1727_v38 = vsel %vm11941_vm4, %v1722_v32, %v1726_v22  ;;  %v1731_v41 = vrot.slane %v1729_v0, 4  ;;  %v1742_v42 = vshrl.u32 %v9302_v23, 16  ;;  %v1734_v43 = vrot.slane %v1732_v17, 5  ;;  %v9307_v28 = vld [vmem:[%s11822_s26 + $0x120] sm:$0xf] }
  0xfc   : > { %v9339_v44 = vcombine.low %v1717_v31, %v1727_v38  ;;  %v6052_v30 = vrot.slane %v6051_v34, 4  ;;  %v6061_v62 = vor.u32 %v6060_v35, %v6056_v40  ;;  %v1740_v46 = vrot.slane %v1738_v36, 5  ;;  %v9308_v17 = vld [vmem:[%s11822_s26 + $0x124] sm:$0xf] }
  0xfd   : > { %v1744_v47 = vrot.slane %v1742_v42, 4  ;;  %v1748_v59 = vshll.u32 %v9303_v29, 16  ;;  %v6069_v48 = vshrl.u32 %v9885_v27, 16  ;;  %v1735_v11 = vor.u32 %v1734_v43, %v1731_v41 }
  0xfe   : > { %10695 = vmatprep.mubr.msk.bf16.mxu1 %vm325_vm1, %v9339_v44  ;;  %v6057_v54 = vsel %vm11941_vm4, %v6052_v30, %v6056_v40  ;;  %v6062_v55 = vrot.slane %v6061_v62, 4  ;;  %v6072_v56 = vshll.u32 %v9885_v27, 16  ;;  %v6078_v61 = vshll.u32 %v9886_v37, 16  ;;  %v9890_v40 = vld [vmem:[%s11822_s26 + $0x128] sm:$0x1] }
  0xff   : > { %v1745_v57 = vor.u32 %v1744_v47, %v1740_v46  ;;  %v1750_v58 = vrot.slane %v1748_v59, 5  ;;  %v6071_v60 = vrot.slane %v6069_v48, 4  ;;  %v1736_v3 = vrot.slane %v1735_v11, 4  ;;  %v9309_v62 = vld [vmem:[%s11822_s26 + $0x128] sm:$0x1] }
 0x100   : > { %v6067_v1 = vsel %vm11941_vm4, %v6062_v55, %v6066_v39  ;;  %v6074_v4 = vrot.slane %v6072_v56, 5  ;;  %v6082_v5 = vshrl.u32 %v9886_v37, 16  ;;  %v6080_v9 = vrot.slane %v6078_v61, 5  ;;  %v9891_v59 = vld [vmem:[%s11822_s26 + $0x12c] sm:$0xf] }
 0x101   : > { %v9923_v7 = vcombine.low %v6057_v54, %v6067_v1  ;;  %v1746_v8 = vrot.slane %v1745_v57, 4  ;;  %v6088_v10 = vshll.u32 %v9887_v45, 16  ;;  %v1741_v12 = vsel %vm11941_vm4, %v1736_v3, %v1740_v46  ;;  %v9892_v11 = vld [vmem:[%s11822_s26 + $0x130] sm:$0xf] }
 0x102   : > { %v6075_v24 = vor.u32 %v6074_v4, %v6071_v60  ;;  %v6084_v52 = vrot.slane %v6082_v5, 4  ;;  %v1753_v13 = vshrl.u32 %v9304_v50, 16  ;;  %v1756_v15 = vshll.u32 %v9304_v50, 16  ;;  %v9893_v4 = vld [vmem:[%s11822_s26 + $0x134] sm:$0x1] }
 0x103   : > { %10967 = vmatprep.mubr.msk.bf16.mxu0 %vm325_vm1, %v9923_v7  ;;  %v1751_v53 = vsel %vm11941_vm4, %v1746_v8, %v1750_v58  ;;  %v6090_v14 = vrot.slane %v6088_v10, 5  ;;  %v1762_v18 = vshll.u32 %v9305_v63, 16  ;;  %v1766_v25 = vshrl.u32 %v9305_v63, 16 }
 0x104   : > { %v9340_v51 = vcombine.low %v1741_v12, %v1751_v53  ;;  %v6076_v19 = vrot.slane %v6075_v24, 4  ;;  %v6085_v2 = vor.u32 %v6084_v52, %v6080_v9  ;;  %v1755_v20 = vrot.slane %v1753_v13, 4  ;;  %v9311_v52 = vld [vmem:[%s11822_s26 + $0x130] sm:$0xf] }
 0x105   : > { %v1758_v22 = vrot.slane %v1756_v15, 5  ;;  %v1764_v23 = vrot.slane %v1762_v18, 5  ;;  %v1772_v26 = vshll.u32 %v9306_v21, 16  ;;  %v6093_v31 = vshrl.u32 %v9888_v49, 16 }
 0x106   : > { %10696 = vmatmul.mubr.msk.bf16.gmra.mrb[8].mxu1 %vm325_vm1, %v9340_v51  ;;  %v6081_v29 = vsel %vm11941_vm4, %v6076_v19, %v6080_v9  ;;  %v6086_v27 = vrot.slane %v6085_v2, 4  ;;  %v6096_v32 = vshll.u32 %v9888_v49, 16  ;;  %v1768_v0 = vrot.slane %v1766_v25, 4  ;;  %v9310_v9 = vld [vmem:[%s11822_s26 + $0x12c] sm:$0xf] }
 0x107   : > { %v1759_v33 = vor.u32 %v1758_v22, %v1755_v20  ;;  %v1774_v34 = vrot.slane %v1772_v26, 5  ;;  %v6102_v35 = vshll.u32 %v9889_v6, 16  ;;  %v6095_v37 = vrot.slane %v6093_v31, 4  ;;  %v9312_v25 = vld [vmem:[%s11822_s26 + $0x134] sm:$0x1] }
 0x108   : > { %v6091_v36 = vsel %vm11941_vm4, %v6086_v27, %v6090_v14  ;;  %v6098_v38 = vrot.slane %v6096_v32, 5  ;;  %v6106_v39 = vshrl.u32 %v9889_v6, 16  ;;  %v1769_v44 = vor.u32 %v1768_v0, %v1764_v23  ;;  %v9894_v26 = vld [vmem:[%s11822_s26 + $0x138] sm:$0xf] }
 0x109   : > { %v9924_v41 = vcombine.low %v6081_v29, %v6091_v36  ;;  %v1760_v42 = vrot.slane %v1759_v33, 4  ;;  %v6104_v30 = vrot.slane %v6102_v35, 5  ;;  %v6112_v46 = vshll.u32 %v9890_v40, 16 }
 0x10a   : > { %v6099_v43 = vor.u32 %v6098_v38, %v6095_v37  ;;  %v6108_v45 = vrot.slane %v6106_v39, 4  ;;  %v1777_v47 = vshrl.u32 %v9307_v28, 16  ;;  %v1770_v50 = vrot.slane %v1769_v44, 4  ;;  %v9896_v44 = vld [vmem:[%s11822_s26 + $0x140] sm:$0x1] }
 0x10b   : > { %10968 = vmatmul.mubr.msk.bf16.gmra.mrb[8].mxu0 %vm325_vm1, %v9924_v41  ;;  %v1765_v48 = vsel %vm11941_vm4, %v1760_v42, %v1764_v23  ;;  %v1780_v54 = vshll.u32 %v9307_v28, 16  ;;  %v1786_v55 = vshll.u32 %v9308_v17, 16  ;;  %v6114_v58 = vrot.slane %v6112_v46, 5  ;;  %v9313_v46 = vld [vmem:[%s11822_s26 + $0x138] sm:$0xf] }
 0x10c   : > { %v6100_v56 = vrot.slane %v6099_v43, 4  ;;  %v6109_v57 = vor.u32 %v6108_v45, %v6104_v30  ;;  %v1779_v60 = vrot.slane %v1777_v47, 4  ;;  %v1775_v61 = vsel %vm11941_vm4, %v1770_v50, %v1774_v34  ;;  %v9895_v34 = vld [vmem:[%s11822_s26 + $0x13c] sm:$0xf] }
 0x10d   : > { %v1782_v63 = vrot.slane %v1780_v54, 5  ;;  %v1788_v1 = vrot.slane %v1786_v55, 5  ;;  %v1790_v3 = vshrl.u32 %v9308_v17, 16  ;;  %v9341_v5 = vcombine.low %v1765_v48, %v1775_v61  ;;  %v9314_v54 = vld [vmem:[%s11822_s26 + $0x13c] sm:$0xf] }
 0x10e   : > { %v6105_v21 = vsel %vm11941_vm4, %v6100_v56, %v6104_v30  ;;  %v6110_v7 = vrot.slane %v6109_v57, 4  ;;  %v1796_v8 = vshll.u32 %v9309_v62, 16  ;;  %v6117_v12 = vshrl.u32 %v9891_v59, 16 }
 0x10f   : > { %v1783_v10 = vor.u32 %v1782_v63, %v1779_v60  ;;  %v1792_v49 = vrot.slane %v1790_v3, 4  ;;  %v6120_v24 = vshll.u32 %v9891_v59, 16  ;;  %10699 = vmatprep.mubr.msk.bf16.mxu1 %vm325_vm1, %v9341_v5  ;;  %v6126_v14 = vshll.u32 %v9892_v11, 16  ;;  %v9897_v3 = vld [vmem:[%s11822_s26 + $0x144] sm:$0xf] }
 0x110   : > { %v6115_v13 = vsel %vm11941_vm4, %v6110_v7, %v6114_v58  ;;  %v1798_v53 = vrot.slane %v1796_v8, 5  ;;  %v6130_v15 = vshrl.u32 %v9892_v11, 16  ;;  %v6119_v2 = vrot.slane %v6117_v12, 4  ;;  %v9898_v12 = vld [vmem:[%s11822_s26 + $0x148] sm:$0xf] }
 0x111   : > { %v9925_v18 = vcombine.low %v6105_v21, %v6115_v13  ;;  %v1784_v51 = vrot.slane %v1783_v10, 4  ;;  %v1793_v19 = vor.u32 %v1792_v49, %v1788_v1  ;;  %v6122_v20 = vrot.slane %v6120_v24, 5 }
 0x112   : > { %v6128_v6 = vrot.slane %v6126_v14, 5  ;;  %v6132_v22 = vrot.slane %v6130_v15, 4  ;;  %v6136_v23 = vshll.u32 %v9893_v4, 16  ;;  %v1801_v29 = vshrl.u32 %v9310_v9, 16 }
 0x113   : > { %10971 = vmatprep.mubr.msk.bf16.mxu0 %vm325_vm1, %v9925_v18  ;;  %v1789_v40 = vsel %vm11941_vm4, %v1784_v51, %v1788_v1  ;;  %v1794_v28 = vrot.slane %v1793_v19, 4  ;;  %v1804_v27 = vshll.u32 %v9310_v9, 16  ;;  %v6123_v31 = vor.u32 %v6122_v20, %v6119_v2  ;;  %v9315_v1 = vld [vmem:[%s11822_s26 + $0x140] sm:$0x1] }
 0x114   : > { %v6133_v32 = vor.u32 %v6132_v22, %v6128_v6  ;;  %v6138_v33 = vrot.slane %v6136_v23, 5  ;;  %v1810_v0 = vshll.u32 %v9311_v52, 16  ;;  %v1803_v17 = vrot.slane %v1801_v29, 4  ;;  %v9317_v29 = vld [vmem:[%s11822_s26 + $0x148] sm:$0xf] }
 0x115   : > { %v1799_v35 = vsel %vm11941_vm4, %v1794_v28, %v1798_v53  ;;  %v1806_v36 = vrot.slane %v1804_v27, 5  ;;  %v1814_v37 = vshrl.u32 %v9311_v52, 16  ;;  %v6124_v39 = vrot.slane %v6123_v31, 4  ;;  %v9316_v28 = vld [vmem:[%s11822_s26 + $0x144] sm:$0xf] }
 0x116   : > { %v9342_v38 = vcombine.low %v1789_v40, %v1799_v35  ;;  %v6134_v41 = vrot.slane %v6133_v32, 4  ;;  %v1812_v42 = vrot.slane %v1810_v0, 5  ;;  %v1820_v43 = vshll.u32 %v9312_v25, 16 }
 0x117   : > { %v1807_v30 = vor.u32 %v1806_v36, %v1803_v17  ;;  %v1816_v62 = vrot.slane %v1814_v37, 4  ;;  %v6141_v45 = vshrl.u32 %v9894_v26, 16  ;;  %v6129_v47 = vsel %vm11941_vm4, %v6124_v39, %v6128_v6  ;;  %v9899_v6 = vld [vmem:[%s11822_s26 + $0x14c] sm:$0x1] }
 0x118   : > { %10700 = vmatmul.mubr.msk.bf16.gmra.mrb[12].mxu1 %vm325_vm1, %v9342_v38  ;;  %v6139_v59 = vsel %vm11941_vm4, %v6134_v41, %v6138_v33  ;;  %v6144_v48 = vshll.u32 %v9894_v26, 16  ;;  %v6150_v50 = vshll.u32 %v9895_v34, 16  ;;  %v1822_v57 = vrot.slane %v1820_v43, 5  ;;  %v9318_v36 = vld [vmem:[%s11822_s26 + $0x14c] sm:$0x1] }
 0x119   : > { %v9926_v55 = vcombine.low %v6129_v47, %v6139_v59  ;;  %v1808_v11 = vrot.slane %v1807_v30, 4  ;;  %v1817_v56 = vor.u32 %v1816_v62, %v1812_v42  ;;  %v6143_v58 = vrot.slane %v6141_v45, 4  ;;  %v9901_v45 = vld [vmem:[%s11822_s26 + $0x154] sm:$0xf] }
 0x11a   : > { %v6146_v60 = vrot.slane %v6144_v48, 5  ;;  %v6152_v61 = vrot.slane %v6150_v50, 5  ;;  %v6154_v63 = vshrl.u32 %v9895_v34, 16  ;;  %v6160_v21 = vshll.u32 %v9896_v44, 16 }
 0x11b   : > { %10972 = vmatmul.mubr.msk.bf16.gmra.mrb[12].mxu0 %vm325_vm1, %v9926_v55  ;;  %v1813_v4 = vsel %vm11941_vm4, %v1808_v11, %v1812_v42  ;;  %v1818_v5 = vrot.slane %v1817_v56, 4  ;;  %v1825_v7 = vshrl.u32 %v9313_v46, 16  ;;  %v1828_v10 = vshll.u32 %v9313_v46, 16  ;;  %v9900_v42 = vld [vmem:[%s11822_s26 + $0x150] sm:$0xf] }
 0x11c   : > { %v6147_v8 = vor.u32 %v6146_v60, %v6143_v58  ;;  %v6156_v9 = vrot.slane %v6154_v63, 4  ;;  %v1834_v49 = vshll.u32 %v9314_v54, 16  ;;  %v6162_v52 = vrot.slane %v6160_v21, 5  ;;  %v9319_v63 = vld [vmem:[%s11822_s26 + $0x150] sm:$0xf] }
 0x11d   : > { %v1823_v24 = vsel %vm11941_vm4, %v1818_v5, %v1822_v57  ;;  %v1827_v13 = vrot.slane %v1825_v7, 4  ;;  %v1838_v53 = vshrl.u32 %v9314_v54, 16  ;;  %v1830_v51 = vrot.slane %v1828_v10, 5  ;;  %v9320_v21 = vld [vmem:[%s11822_s26 + $0x154] sm:$0xf] }
 0x11e   : > { %v9343_v14 = vcombine.low %v1813_v4, %v1823_v24  ;;  %v6148_v15 = vrot.slane %v6147_v8, 4  ;;  %v6157_v18 = vor.u32 %v6156_v9, %v6152_v61  ;;  %v1836_v19 = vrot.slane %v1834_v49, 5 }
 0x11f   : > { %v1840_v2 = vrot.slane %v1838_v53, 4  ;;  %v1844_v20 = vshll.u32 %v9315_v1, 16  ;;  %v6165_v22 = vshrl.u32 %v9897_v3, 16  ;;  %v1831_v26 = vor.u32 %v1830_v51, %v1827_v13 }
 0x120   : > { %10703 = vmatprep.mubr.msk.bf16.mxu1 %vm325_vm1, %v9343_v14  ;;  %v6153_v23 = vsel %vm11941_vm4, %v6148_v15, %v6152_v61  ;;  %v6158_v25 = vrot.slane %v6157_v18, 4  ;;  %v6168_v40 = vshll.u32 %v9897_v3, 16  ;;  %v6174_v33 = vshll.u32 %v9898_v12, 16  ;;  %v9902_v61 = vld [vmem:[%s11822_s26 + $0x158] sm:$0x1] }
 0x121   : > { %v1841_v27 = vor.u32 %v1840_v2, %v1836_v19  ;;  %v1846_v31 = vrot.slane %v1844_v20, 5  ;;  %v6167_v32 = vrot.slane %v6165_v22, 4  ;;  %v1832_v34 = vrot.slane %v1831_v26, 4  ;;  %v9321_v18 = vld [vmem:[%s11822_s26 + $0x158] sm:$0x1] }
 0x122   : > { %v6163_v0 = vsel %vm11941_vm4, %v6158_v25, %v6162_v52  ;;  %v6170_v35 = vrot.slane %v6168_v40, 5  ;;  %v6178_v17 = vshrl.u32 %v9898_v12, 16  ;;  %v6176_v39 = vrot.slane %v6174_v33, 5  ;;  %v9904_v40 = vld [vmem:[%s11822_s26 + $0x160] sm:$0xf] }
 0x123   : > { %v9927_v37 = vcombine.low %v6153_v23, %v6163_v0  ;;  %v1842_v38 = vrot.slane %v1841_v27, 4  ;;  %v6184_v41 = vshll.u32 %v9899_v6, 16  ;;  %v1837_v44 = vsel %vm11941_vm4, %v1832_v34, %v1836_v19  ;;  %v9903_v6 = vld [vmem:[%s11822_s26 + $0x15c] sm:$0xf] }
 0x124   : > { %v6171_v30 = vor.u32 %v6170_v35, %v6167_v32  ;;  %v6180_v62 = vrot.slane %v6178_v17, 4  ;;  %v1849_v43 = vshrl.u32 %v9316_v28, 16  ;;  %v1852_v59 = vshll.u32 %v9316_v28, 16  ;;  %v9905_v35 = vld [vmem:[%s11822_s26 + $0x164] sm:$0x1] }
 0x125   : > { %10975 = vmatprep.mubr.msk.bf16.mxu0 %vm325_vm1, %v9927_v37  ;;  %v1847_v46 = vsel %vm11941_vm4, %v1842_v38, %v1846_v31  ;;  %v6186_v47 = vrot.slane %v6184_v41, 5  ;;  %v1858_v48 = vshll.u32 %v9317_v29, 16  ;;  %v1862_v58 = vshrl.u32 %v9317_v29, 16 }
 0x126   : > { %v9344_v50 = vcombine.low %v1837_v44, %v1847_v46  ;;  %v6172_v54 = vrot.slane %v6171_v30, 4  ;;  %v6181_v55 = vor.u32 %v6180_v62, %v6176_v39  ;;  %v1851_v11 = vrot.slane %v1849_v43, 4  ;;  %v9323_v62 = vld [vmem:[%s11822_s26 + $0x160] sm:$0xf] }
 0x127   : > { %v1854_v56 = vrot.slane %v1852_v59, 5  ;;  %v1860_v57 = vrot.slane %v1858_v48, 5  ;;  %v1868_v60 = vshll.u32 %v9318_v36, 16  ;;  %v6189_v4 = vshrl.u32 %v9900_v42, 16 }
 0x128   : > { %10704 = vmatmul.mubr.msk.bf16.gmra.mrb[16].mxu1 %vm325_vm1, %v9344_v50  ;;  %v6177_v1 = vsel %vm11941_vm4, %v6172_v54, %v6176_v39  ;;  %v6182_v3 = vrot.slane %v6181_v55, 4  ;;  %v6192_v5 = vshll.u32 %v9900_v42, 16  ;;  %v1864_v8 = vrot.slane %v1862_v58, 4  ;;  %v9322_v39 = vld [vmem:[%s11822_s26 + $0x15c] sm:$0xf] }
 0x129   : > { %v1855_v7 = vor.u32 %v1854_v56, %v1851_v11  ;;  %v1870_v9 = vrot.slane %v1868_v60, 5  ;;  %v6198_v10 = vshll.u32 %v9901_v45, 16  ;;  %v6191_v12 = vrot.slane %v6189_v4, 4  ;;  %v9324_v58 = vld [vmem:[%s11822_s26 + $0x164] sm:$0x1] }
 0x12a   : > { %v6187_v49 = vsel %vm11941_vm4, %v6182_v3, %v6186_v47  ;;  %v6194_v24 = vrot.slane %v6192_v5, 5  ;;  %v6202_v52 = vshrl.u32 %v9901_v45, 16  ;;  %v1865_v14 = vor.u32 %v1864_v8, %v1860_v57  ;;  %v9906_v60 = vld [vmem:[%s11822_s26 + $0x168] sm:$0xf] }
 0x12b   : > { %v9928_v13 = vcombine.low %v6177_v1, %v6187_v49  ;;  %v1856_v53 = vrot.slane %v1855_v7, 4  ;;  %v6200_v15 = vrot.slane %v6198_v10, 5  ;;  %v6208_v2 = vshll.u32 %v9902_v61, 16 }
 0x12c   : > { %v6195_v51 = vor.u32 %v6194_v24, %v6191_v12  ;;  %v6204_v19 = vrot.slane %v6202_v52, 4  ;;  %v1873_v20 = vshrl.u32 %v9319_v63, 16  ;;  %v1866_v23 = vrot.slane %v1865_v14, 4  ;;  %v9907_v12 = vld [vmem:[%s11822_s26 + $0x16c] sm:$0xf] }
 0x12d   : > { %10976 = vmatmul.mubr.msk.bf16.gmra.mrb[16].mxu0 %vm325_vm1, %v9928_v13  ;;  %v1861_v22 = vsel %vm11941_vm4, %v1856_v53, %v1860_v57  ;;  %v1876_v25 = vshll.u32 %v9319_v63, 16  ;;  %v1882_v26 = vshll.u32 %v9320_v21, 16  ;;  %v6210_v27 = vrot.slane %v6208_v2, 5  ;;  %v9908_v14 = vld [vmem:[%s11822_s26 + $0x170] sm:$0x1] }
 0x12e   : > { %v6196_v28 = vrot.slane %v6195_v51, 4  ;;  %v6205_v29 = vor.u32 %v6204_v19, %v6200_v15  ;;  %v1875_v31 = vrot.slane %v1873_v20, 4  ;;  %v1871_v32 = vsel %vm11941_vm4, %v1866_v23, %v1870_v9  ;;  %v9326_v20 = vld [vmem:[%s11822_s26 + $0x16c] sm:$0xf] }
 0x12f   : > { %v1878_v33 = vrot.slane %v1876_v25, 5  ;;  %v1884_v0 = vrot.slane %v1882_v26, 5  ;;  %v1886_v34 = vshrl.u32 %v9320_v21, 16  ;;  %v9345_v17 = vcombine.low %v1861_v22, %v1871_v32 }
 0x130   : > { %v6201_v36 = vsel %vm11941_vm4, %v6196_v28, %v6200_v15  ;;  %v6206_v37 = vrot.slane %v6205_v29, 4  ;;  %v1892_v38 = vshll.u32 %v9321_v18, 16  ;;  %v6213_v44 = vshrl.u32 %v9903_v6, 16  ;;  %v9325_v15 = vld [vmem:[%s11822_s26 + $0x168] sm:$0xf] }
 0x131   : > { %v1879_v41 = vor.u32 %v1878_v33, %v1875_v31  ;;  %v1888_v42 = vrot.slane %v1886_v34, 4  ;;  %v6216_v30 = vshll.u32 %v9903_v6, 16  ;;  %10707 = vmatprep.mubr.msk.bf16.mxu1 %vm325_vm1, %v9345_v17  ;;  %v6222_v46 = vshll.u32 %v9904_v40, 16  ;;  %v9909_v34 = vld [vmem:[%s11822_s26 + $0x174] sm:$0xf] }
 0x132   : > { %v6211_v43 = vsel %vm11941_vm4, %v6206_v37, %v6210_v27  ;;  %v1894_v45 = vrot.slane %v1892_v38, 5  ;;  %v6226_v47 = vshrl.u32 %v9904_v40, 16  ;;  %v6215_v54 = vrot.slane %v6213_v44, 4 }
 0x133   : > { %v9929_v59 = vcombine.low %v6201_v36, %v6211_v43  ;;  %v1880_v48 = vrot.slane %v1879_v41, 4  ;;  %v1889_v50 = vor.u32 %v1888_v42, %v1884_v0  ;;  %v6218_v55 = vrot.slane %v6216_v30, 5 }
 0x134   : > { %v6224_v11 = vrot.slane %v6222_v46, 5  ;;  %v6228_v56 = vrot.slane %v6226_v47, 4  ;;  %v6232_v57 = vshll.u32 %v9905_v35, 16  ;;  %v1897_v1 = vshrl.u32 %v9322_v39, 16 }
 0x135   : > { %10979 = vmatprep.mubr.msk.bf16.mxu0 %vm325_vm1, %v9929_v59  ;;  %v1885_v61 = vsel %vm11941_vm4, %v1880_v48, %v1884_v0  ;;  %v1890_v63 = vrot.slane %v1889_v50, 4  ;;  %v1900_v3 = vshll.u32 %v9322_v39, 16  ;;  %v6219_v4 = vor.u32 %v6218_v55, %v6215_v54  ;;  %v9327_v0 = vld [vmem:[%s11822_s26 + $0x170] sm:$0x1]  ;;  %v9911_v50 = vld [vmem:[%s11822_s26 + $0x17c] sm:$0x1] }
 0x136   : > { %v6229_v5 = vor.u32 %v6228_v56, %v6224_v11  ;;  %v6234_v21 = vrot.slane %v6232_v57, 5  ;;  %v1906_v7 = vshll.u32 %v9323_v62, 16  ;;  %v1899_v9 = vrot.slane %v1897_v1, 4  ;;  %v9328_v57 = vld [vmem:[%s11822_s26 + $0x174] sm:$0xf] }
 0x137   : > { %v1895_v8 = vsel %vm11941_vm4, %v1890_v63, %v1894_v45  ;;  %v1902_v10 = vrot.slane %v1900_v3, 5  ;;  %v1910_v49 = vshrl.u32 %v9323_v62, 16  ;;  %v6220_v52 = vrot.slane %v6219_v4, 4  ;;  %v9910_v45 = vld [vmem:[%s11822_s26 + $0x178] sm:$0xf] }
 0x138   : > { %v9346_v24 = vcombine.low %v1885_v61, %v1895_v8  ;;  %v6230_v13 = vrot.slane %v6229_v5, 4  ;;  %v1908_v53 = vrot.slane %v1906_v7, 5  ;;  %v1916_v19 = vshll.u32 %v9324_v58, 16  ;;  %v9329_v1 = vld [vmem:[%s11822_s26 + $0x178] sm:$0xf] }
 0x139   : > { %v1903_v18 = vor.u32 %v1902_v10, %v1899_v9  ;;  %v1912_v51 = vrot.slane %v1910_v49, 4  ;;  %v6237_v2 = vshrl.u32 %v9906_v60, 16  ;;  %v6225_v6 = vsel %vm11941_vm4, %v6220_v52, %v6224_v11  ;;  %v9330_v49 = vld [vmem:[%s11822_s26 + $0x17c] sm:$0x1] }
 0x13a   : > { %10708 = vmatmul.mubr.msk.bf16.gmra.mrb[20].mxu1 %vm325_vm1, %v9346_v24  ;;  %v6235_v22 = vsel %vm11941_vm4, %v6230_v13, %v6234_v21  ;;  %v6240_v23 = vshll.u32 %v9906_v60, 16  ;;  %v6246_v25 = vshll.u32 %v9907_v12, 16  ;;  %v1918_v29 = vrot.slane %v1916_v19, 5 }
 0x13b   : > { %v9930_v26 = vcombine.low %v6225_v6, %v6235_v22  ;;  %v1904_v40 = vrot.slane %v1903_v18, 4  ;;  %v1913_v28 = vor.u32 %v1912_v51, %v1908_v53  ;;  %v6239_v27 = vrot.slane %v6237_v2, 4  ;;  %v9912_v6 = vld [vmem:[%s11822_s26 + $0x180] sm:$0xf] }
 0x13c   : > { %v6242_v31 = vrot.slane %v6240_v23, 5  ;;  %v6248_v32 = vrot.slane %v6246_v25, 5  ;;  %v6250_v33 = vshrl.u32 %v9907_v12, 16  ;;  %v6256_v36 = vshll.u32 %v9908_v14, 16 }
 0x13d   : > { %10980 = vmatmul.mubr.msk.bf16.gmra.mrb[20].mxu0 %vm325_vm1, %v9930_v26  ;;  %v1909_v35 = vsel %vm11941_vm4, %v1904_v40, %v1908_v53  ;;  %v1914_v17 = vrot.slane %v1913_v28, 4  ;;  %v1921_v37 = vshrl.u32 %v9325_v15, 16  ;;  %v1924_v41 = vshll.u32 %v9325_v15, 16  ;;  %v9913_v40 = vld [vmem:[%s11822_s26 + $0x184] sm:$0xf] }
 0x13e   : > { %v6243_v38 = vor.u32 %v6242_v31, %v6239_v27  ;;  %v6252_v39 = vrot.slane %v6250_v33, 4  ;;  %v1930_v42 = vshll.u32 %v9326_v20, 16  ;;  %v6258_v30 = vrot.slane %v6256_v36, 5  ;;  %v9331_v33 = vld [vmem:[%s11822_s26 + $0x180] sm:$0xf] }
 0x13f   : > { %v1919_v44 = vsel %vm11941_vm4, %v1914_v17, %v1918_v29  ;;  %v1923_v62 = vrot.slane %v1921_v37, 4  ;;  %v1934_v43 = vshrl.u32 %v9326_v20, 16  ;;  %v1926_v48 = vrot.slane %v1924_v41, 5  ;;  %v9332_v36 = vld [vmem:[%s11822_s26 + $0x184] sm:$0xf] }
 0x140   : > { %v9347_v46 = vcombine.low %v1909_v35, %v1919_v44  ;;  %v6244_v47 = vrot.slane %v6243_v38, 4  ;;  %v6253_v59 = vor.u32 %v6252_v39, %v6248_v32  ;;  %v1932_v54 = vrot.slane %v1930_v42, 5 }
 0x141   : > { %v1936_v55 = vrot.slane %v1934_v43, 4  ;;  %v1940_v11 = vshll.u32 %v9327_v0, 16  ;;  %v6261_v56 = vshrl.u32 %v9909_v34, 16  ;;  %v1927_v61 = vor.u32 %v1926_v48, %v1923_v62 }
 0x142   : > { %10711 = vmatprep.mubr.msk.bf16.mxu1 %vm325_vm1, %v9347_v46  ;;  %v6249_v58 = vsel %vm11941_vm4, %v6244_v47, %v6248_v32  ;;  %v6254_v60 = vrot.slane %v6253_v59, 4  ;;  %v6264_v63 = vshll.u32 %v9909_v34, 16  ;;  %v6270_v21 = vshll.u32 %v9910_v45, 16  ;;  %v9914_v32 = vld [vmem:[%s11822_s26 + $0x188] sm:$0x1] }
 0x143   : > { %v1937_v3 = vor.u32 %v1936_v55, %v1932_v54  ;;  %v1942_v4 = vrot.slane %v1940_v11, 5  ;;  %v6263_v5 = vrot.slane %v6261_v56, 4  ;;  %v1928_v8 = vrot.slane %v1927_v61, 4  ;;  %v9333_v59 = vld [vmem:[%s11822_s26 + $0x188] sm:$0x1] }
 0x144   : > { %v6259_v7 = vsel %vm11941_vm4, %v6254_v60, %v6258_v30  ;;  %v6266_v9 = vrot.slane %v6264_v63, 5  ;;  %v6274_v10 = vshrl.u32 %v9910_v45, 16  ;;  %v6272_v52 = vrot.slane %v6270_v21, 5  ;;  %v9915_v11 = vld [vmem:[%s11822_s26 + $0x18c] sm:$0xf] }
 0x145   : > { %v9931_v12 = vcombine.low %v6249_v58, %v6259_v7  ;;  %v1938_v24 = vrot.slane %v1937_v3, 4  ;;  %v6280_v13 = vshll.u32 %v9911_v50, 16  ;;  %v1933_v53 = vsel %vm11941_vm4, %v1928_v8, %v1932_v54  ;;  %v9916_v61 = vld [vmem:[%s11822_s26 + $0x190] sm:$0xf] }
 0x146   : > { %v6267_v14 = vor.u32 %v6266_v9, %v6263_v5  ;;  %v6276_v15 = vrot.slane %v6274_v10, 4  ;;  %v1945_v18 = vshrl.u32 %v9328_v57, 16  ;;  %v1948_v2 = vshll.u32 %v9328_v57, 16  ;;  %v9917_v9 = vld [vmem:[%s11822_s26 + $0x194] sm:$0x1] }
 0x147   : > { %10983 = vmatprep.mubr.msk.bf16.mxu0 %vm325_vm1, %v9931_v12  ;;  %v1943_v51 = vsel %vm11941_vm4, %v1938_v24, %v1942_v4  ;;  %v6282_v19 = vrot.slane %v6280_v13, 5  ;;  %v1954_v20 = vshll.u32 %v9329_v1, 16  ;;  %v1958_v27 = vshrl.u32 %v9329_v1, 16 }
 0x148   : > { %v9348_v22 = vcombine.low %v1933_v53, %v1943_v51  ;;  %v6268_v23 = vrot.slane %v6267_v14, 4  ;;  %v6277_v25 = vor.u32 %v6276_v15, %v6272_v52  ;;  %v1947_v26 = vrot.slane %v1945_v18, 4 }
 0x149   : > { %v1950_v28 = vrot.slane %v1948_v2, 5  ;;  %v1956_v29 = vrot.slane %v1954_v20, 5  ;;  %v1964_v31 = vshll.u32 %v9330_v49, 16  ;;  %v6285_v35 = vshrl.u32 %v9912_v6, 16 }
 0x14a   : > { %10712 = vmatmul.mubr.msk.bf16.gmra.mrb[24].mxu1 %vm325_vm1, %v9348_v22  ;;  %v6273_v0 = vsel %vm11941_vm4, %v6268_v23, %v6272_v52  ;;  %v6278_v34 = vrot.slane %v6277_v25, 4  ;;  %v6288_v17 = vshll.u32 %v9912_v6, 16  ;;  %v1960_v38 = vrot.slane %v1958_v27, 4 }
 0x14b   : > { %v1951_v37 = vor.u32 %v1950_v28, %v1947_v26  ;;  %v1966_v39 = vrot.slane %v1964_v31, 5  ;;  %v6294_v41 = vshll.u32 %v9913_v40, 16  ;;  %v6287_v44 = vrot.slane %v6285_v35, 4  ;;  %v12581_v28 = vld [vmem:[%s13547_s1 + $0x18] sm:$0xf] }
 0x14c   : > { %v6283_v42 = vsel %vm11941_vm4, %v6278_v34, %v6282_v19  ;;  %v6290_v30 = vrot.slane %v6288_v17, 5  ;;  %v6298_v62 = vshrl.u32 %v9913_v40, 16  ;;  %v1961_v46 = vor.u32 %v1960_v38, %v1956_v29  ;;  %v11696_v34 = vld [vmem:[%s11822_s26 + $0x198] sm:$0xff]   ;;  %v11760_v35 = vld [vmem:[%s13547_s1 + $0x14] sm:$0xf] }
 0x14d   : > { %v9932_v43 = vcombine.low %v6273_v0, %v6283_v42  ;;  %v1952_v45 = vrot.slane %v1951_v37, 4  ;;  %v6296_v47 = vrot.slane %v6294_v41, 5  ;;  %v6304_v54 = vshll.u32 %v9914_v32, 16 }
 0x14e   : > { %v6291_v48 = vor.u32 %v6290_v30, %v6287_v44  ;;  %v6300_v50 = vrot.slane %v6298_v62, 4  ;;  %v1969_v55 = vshrl.u32 %v9331_v33, 16  ;;  %v1962_v57 = vrot.slane %v1961_v46, 4  ;;  %v9497_v44 = vld [vmem:[%s11822_s26 + $0x198] sm:$0xf] }
 0x14f   : > { %10984 = vmatmul.mubr.msk.bf16.gmra.mrb[24].mxu0 %vm325_vm1, %v9932_v43  ;;  %v1957_v56 = vsel %vm11941_vm4, %v1952_v45, %v1956_v29  ;;  %v1972_v58 = vshll.u32 %v9331_v33, 16  ;;  %v1978_v60 = vshll.u32 %v9332_v36, 16  ;;  %v6306_v3 = vrot.slane %v6304_v54, 5  ;;  %v9498_v30 = vld [vmem:[%s11822_s26 + $0x19c] sm:$0xf] }
 0x150   : > { %v6292_v63 = vrot.slane %v6291_v48, 4  ;;  %v6301_v1 = vor.u32 %v6300_v50, %v6296_v47  ;;  %v1971_v4 = vrot.slane %v1969_v55, 4  ;;  %v1967_v5 = vsel %vm11941_vm4, %v1962_v57, %v1966_v39  ;;  %v11697_v50 = vld [vmem:[%s11822_s26 + $0x1a4] sm:$0xff]   ;;  %v12619_v57 = vld [vmem:[%s13547_s1 + $0x38] sm:$0xf] }
 0x151   : > { %v1974_v21 = vrot.slane %v1972_v58, 5  ;;  %v1980_v7 = vrot.slane %v1978_v60, 5  ;;  %v1982_v8 = vshrl.u32 %v9332_v36, 16  ;;  %v9349_v10 = vcombine.low %v1957_v56, %v1967_v5  ;;  %v11761_v36 = vld [vmem:[%s13547_s1 + $0x34] sm:$0xf] }
 0x152   : > { %v6297_v49 = vsel %vm11941_vm4, %v6292_v63, %v6296_v47  ;;  %v6302_v12 = vrot.slane %v6301_v1, 4  ;;  %v1988_v24 = vshll.u32 %v9333_v59, 16  ;;  %v6309_v53 = vshrl.u32 %v9915_v11, 16  ;;  %v10081_v47 = vld [vmem:[%s11822_s26 + $0x1a4] sm:$0xf] }
 0x153   : > { %v1975_v52 = vor.u32 %v1974_v21, %v1971_v4  ;;  %v1984_v13 = vrot.slane %v1982_v8, 4  ;;  %v6312_v14 = vshll.u32 %v9915_v11, 16  ;;  %10715 = vmatprep.mubr.msk.bf16.mxu1 %vm325_vm1, %v9349_v10  ;;  %v6318_v51 = vshll.u32 %v9916_v61, 16  ;;  %v10082_v54 = vld [vmem:[%s11822_s26 + $0x1a8] sm:$0xf] }
 0x154   : > { %v6307_v15 = vsel %vm11941_vm4, %v6302_v12, %v6306_v3  ;;  %v1990_v18 = vrot.slane %v1988_v24, 5  ;;  %v6322_v19 = vshrl.u32 %v9916_v61, 16  ;;  %v6311_v22 = vrot.slane %v6309_v53, 4  ;;  %v9499_v63 = vld [vmem:[%s11822_s26 + $0x1a0] sm:$0x1]  ;;  %v11698_v10 = vld [vmem:[%s11822_s26 + $0x1a4] sm:$0xff]  }
 0x155   : > { %v9933_v2 = vcombine.low %v6297_v49, %v6307_v15  ;;  %v1976_v20 = vrot.slane %v1975_v52, 4  ;;  %v1985_v6 = vor.u32 %v1984_v13, %v1980_v7  ;;  %v6314_v23 = vrot.slane %v6312_v14, 5  ;;  %v10083_v3 = vld [vmem:[%s11822_s26 + $0x1ac] sm:$0x1]  ;;  %v9501_v13 = vld [vmem:[%s11822_s26 + $0x1a8] sm:$0xf] }
 0x156   : > { %v6320_v25 = vrot.slane %v6318_v51, 5  ;;  %v6324_v26 = vrot.slane %v6322_v19, 4  ;;  %v6328_v40 = vshll.u32 %v9917_v9, 16  ;;  %v12593_v17 = vsel %vm374_vm0, %v11760_v35, 0  ;;  %v9500_v9 = vld [vmem:[%s11822_s26 + $0x1a4] sm:$0xf] }
 0x157   : > { %10987 = vmatprep.mubr.msk.bf16.mxu0 %vm325_vm1, %v9933_v2  ;;  %v1981_v29 = vsel %vm11941_vm4, %v1976_v20, %v1980_v7  ;;  %v1986_v27 = vrot.slane %v1985_v6, 4  ;;  %v6315_v31 = vor.u32 %v6314_v23, %v6311_v22  ;;  %v12599_v37 = vsel %vm374_vm0, %v11761_v36, 0  ;;  %v11699_v53 = vld [vmem:[%s11822_s26 + $0x1b0] sm:$0xff]   ;;  %v12637_v20 = vld [vmem:[%s13547_s1 + $0x1c] sm:$0xf] }
 0x158   : > { %v6325_v32 = vor.u32 %v6324_v26, %v6320_v25  ;;  %v6330_v33 = vrot.slane %v6328_v40, 5  ;;  %v12603_v38 = vsel %vm374_vm0, %v12581_v28, 0  ;;  %v3053_v62 = vshrl.u32 %v9497_v44, 16  ;;  %v11700_v14 = vld [vmem:[%s11822_s26 + $0x1b0] sm:$0xff]  }
 0x159   : > { %v1991_v0 = vsel %vm11941_vm4, %v1986_v27, %v1990_v18  ;;  %v6316_v41 = vrot.slane %v6315_v31, 4  ;;  %v3056_v43 = vshll.u32 %v9497_v44, 16  ;;  %v3062_v45 = vshll.u32 %v9498_v30, 16  ;;  %v10084_v35 = vld [vmem:[%s11822_s26 + $0x1b0] sm:$0xf] }
 0x15a   : > { %v9350_v39 = vcombine.low %v1981_v29, %v1991_v0  ;;  %v6326_v42 = vrot.slane %v6325_v32, 4  ;;  %v3066_v46 = vshrl.u32 %v9498_v30, 16  ;;  %v7393_v55 = vshrl.u32 %v10081_v47, 16  ;;  %v9502_v29 = vld [vmem:[%s11822_s26 + $0x1ac] sm:$0x1] }
 0x15b   : > { %v6321_v59 = vsel %vm11941_vm4, %v6316_v41, %v6320_v25  ;;  %v7396_v11 = vshll.u32 %v10081_v47, 16  ;;  %v3055_v58 = vrot.slane %v3053_v62, 4  ;;  %v3058_v60 = vrot.slane %v3056_v43, 5  ;;  %v11701_v25 = vld [vmem:[%s11822_s26 + $0x1bc] sm:$0xff]   ;;  %v10085_v36 = vld [vmem:[%s11822_s26 + $0x1b4] sm:$0xf] }
 0x15c   : > { %10716 = vmatmul.mubr.msk.bf16.gmra.mrb[28].mxu1 %vm325_vm1, %v9350_v39  ;;  %v6331_v48 = vsel %vm11941_vm4, %v6326_v42, %v6330_v33  ;;  %v3064_v61 = vrot.slane %v3062_v45, 5  ;;  %v3068_v1 = vrot.slane %v3066_v46, 4  ;;  %v7395_v4 = vrot.slane %v7393_v55, 4  ;;  %v10086_v47 = vld [vmem:[%s11822_s26 + $0x1b8] sm:$0x1] }
 0x15d   : > { %v9934_v56 = vcombine.low %v6321_v59, %v6331_v48  ;;  %10721 = vmatprep.mubr.msk.bf16.mxu1 %vm325_vm1, %v11696_v34  ;;  %v3059_v5 = vor.u32 %v3058_v60, %v3055_v58  ;;  %v3072_v21 = vshll.u32 %v9499_v63, 16  ;;  %v7398_v7 = vrot.slane %v7396_v11, 5  ;;  %v9503_v58 = vld [vmem:[%s11822_s26 + $0x1b0] sm:$0xf]  ;;  %v11704_v60 = vld [vmem:[%s11822_s26 + $0x1c8] sm:$0xff]  }
 0x15e   : > { %v7402_v8 = vshll.u32 %v10082_v54, 16  ;;  %v12629_v49 = vsel %vm374_vm0, %v12619_v57, 0  ;;  %v3069_v12 = vor.u32 %v3068_v1, %v3064_v61  ;;  %v7406_v24 = vshrl.u32 %v10082_v54, 16  ;;  %v12670_v54 = vld [vmem:[%s13547_s1 + $0x3c] sm:$0xf] }
 0x15f   : > { %10988 = vmatmul.mubr.msk.bf16.gmra.mrb[28].mxu0 %vm325_vm1, %v9934_v56  ;;  %v7412_v52 = vshll.u32 %v10083_v3, 16  ;;  %v3060_v15 = vrot.slane %v3059_v5, 4  ;;  %v3074_v18 = vrot.slane %v3072_v21, 5  ;;  %v7399_v51 = vor.u32 %v7398_v7, %v7395_v4  ;;  %v9504_v7 = vld [vmem:[%s11822_s26 + $0x1b4] sm:$0xf] }
 0x160   : > { %10993 = vmatprep.mubr.msk.bf16.mxu0 %vm325_vm1, %v11697_v50  ;;  %v7404_v19 = vrot.slane %v7402_v8, 5  ;;  %v3070_v2 = vrot.slane %v3069_v12, 4  ;;  %v7408_v6 = vrot.slane %v7406_v24, 4  ;;  %v3077_v23 = vshrl.u32 %v9500_v9, 16  ;;  %v11703_v8 = vld [vmem:[%s11822_s26 + $0x1c8] sm:$0xff]  }
 0x161   : > { %v7414_v22 = vrot.slane %v7412_v52, 5  ;;  %v3065_v26 = vsel %vm11941_vm4, %v3060_v15, %v3064_v61  ;;  %v7400_v40 = vrot.slane %v7399_v51, 4  ;;  %v3080_v27 = vshll.u32 %v9500_v9, 16  ;;  %v9505_v12 = vld [vmem:[%s11822_s26 + $0x1b8] sm:$0x1] }
 0x162   : > { %v3086_v31 = vshll.u32 %v9501_v13, 16  ;;  %v3075_v32 = vsel %vm11941_vm4, %v3070_v2, %v3074_v18  ;;  %v7409_v33 = vor.u32 %v7408_v6, %v7404_v19  ;;  %v3079_v0 = vrot.slane %v3077_v23, 4  ;;  %v11705_v52 = vld [vmem:[%s11822_s26 + $0x1d4] sm:$0xff]   ;;  %v10087_v18 = vld [vmem:[%s11822_s26 + $0x1bc] sm:$0xf] }
 0x163   : > { %v3090_v34 = vshrl.u32 %v9501_v13, 16  ;;  %v12650_v39 = vcombine.low %v3065_v26, %v3075_v32  ;;  %v7405_v41 = vsel %vm11941_vm4, %v7400_v40, %v7404_v19  ;;  %v3082_v42 = vrot.slane %v3080_v27, 5  ;;  %v10088_v40 = vld [vmem:[%s11822_s26 + $0x1c0] sm:$0xf] }
 0x164   : > { %10722 = vmatmul.mubr.msk.bf16.vlgmr.msra.gmra.mrb[0].mxu1 %vm325_vm1, %v11698_v10  ;;  %v3088_v44 = vrot.slane %v3086_v31, 5  ;;  %v7410_v30 = vrot.slane %v7409_v33, 4  ;;  %v3096_v43 = vshll.u32 %v9502_v29, 16  ;;  %v12658_v45 = vsel %vm374_vm0, %v12637_v20, 0  ;;  %v10089_v31 = vld [vmem:[%s11822_s26 + $0x1c4] sm:$0x1] }
 0x165   : > { %10754 = vmatpush3.bf16.msra.mxu1 %v12593_v17  ;;  %10725 = vmatprep.mubr.msk.bf16.mxu1 %vm325_vm1, %v11700_v14  ;;  %v3092_v62 = vrot.slane %v3090_v34, 4  ;;  %v11702_v17 = vld [vmem:[%s11822_s26 + $0x1bc] sm:$0xff]   ;;  %v3083_v46 = vor.u32 %v3082_v42, %v3079_v0  ;;  %v7417_v59 = vshrl.u32 %v10084_v35, 16  ;;  %v7420_v48 = vshll.u32 %v10084_v35, 16  ;;  %v11706_v0 = vld [vmem:[%s11822_s26 + $0x1d4] sm:$0xff]  }
 0x166   : > { %11613 = vmatprep.subr.msk.bf16.mxu1 %vm374_vm0, %v12581_v28  ;;  %v7426_v50 = vshll.u32 %v10085_v36, 16  ;;  %v7415_v28 = vsel %vm11941_vm4, %v7410_v30, %v7414_v22  ;;  %v3098_v11 = vrot.slane %v3096_v43, 5  ;;  %v7430_v56 = vshrl.u32 %v10085_v36, 16  ;;  %v9506_v42 = vld [vmem:[%s11822_s26 + $0x1bc] sm:$0xf] }
 0x167   : > { %10994 = vmatmul.mubr.msk.bf16.vlgmr.msra.gmra.mrb[0].mxu0 %vm325_vm1, %v11699_v53  ;;  %v3093_v55 = vor.u32 %v3092_v62, %v3088_v44  ;;  %v3084_v61 = vrot.slane %v3083_v46, 4  ;;  %v7419_v63 = vrot.slane %v7417_v59, 4  ;;  %v7422_v1 = vrot.slane %v7420_v48, 5 }
 0x168   : > { %11026 = vmatpush3.bf16.msra.mxu0 %v12599_v37  ;;  %10997 = vmatprep.mubr.msk.bf16.mxu0 %vm325_vm1, %v11701_v25  ;;  %v12676_v37 = vcombine.low %v7405_v41, %v7415_v28  ;;  %v7428_v4 = vrot.slane %v7426_v50, 5  ;;  %v7432_v5 = vrot.slane %v7430_v56, 4  ;;  %v7436_v21 = vshll.u32 %v10086_v47, 16  ;;  %v9507_v50 = vld [vmem:[%s11822_s26 + $0x1c0] sm:$0xf] }
 0x169   : > { %11621 = vmatprep.subr.msk.bf16.mxu0 %vm374_vm0, %v12619_v57  ;;  %v3094_v3 = vrot.slane %v3093_v55, 4  ;;  %v3089_v9 = vsel %vm11941_vm4, %v3084_v61, %v3088_v44  ;;  %v7423_v10 = vor.u32 %v7422_v1, %v7419_v63  ;;  %v12684_v57 = vsel %vm374_vm0, %v12670_v54, 0  ;;  %v11708_v44 = vld [vmem:[%s11822_s26 + $0x1e0] sm:$0xff]   ;;  %v11709_v61 = vld [vmem:[%s11822_s26 + $0x1ec] sm:$0xff]  }
 0x16a   : > { %v3101_v24 = vshrl.u32 %v9503_v58, 16  ;;  %v7433_v53 = vor.u32 %v7432_v5, %v7428_v4  ;;  %v7438_v14 = vrot.slane %v7436_v21, 5  ;;  %v3104_v15 = vshll.u32 %v9503_v58, 16  ;;  %v11707_v28 = vld [vmem:[%s11822_s26 + $0x1e0] sm:$0xff]  }
 0x16b   : > { %v3099_v13 = vsel %vm11941_vm4, %v3094_v3, %v3098_v11  ;;  %v7424_v19 = vrot.slane %v7423_v10, 4  ;;  %v3110_v6 = vshll.u32 %v9504_v7, 16  ;;  %v3114_v25 = vshrl.u32 %v9504_v7, 16  ;;  %v9508_v56 = vld [vmem:[%s11822_s26 + $0x1c4] sm:$0x1] }
 0x16c   : > { %10726 = vmatmul.mubr.msk.bf16.gmra.mrb[4].mxu1 %vm325_vm1, %v11702_v17  ;;  %v12693_v51 = vcombine.low %v3089_v9, %v3099_v13  ;;  %v3103_v2 = vrot.slane %v3101_v24, 4  ;;  %v7434_v22 = vrot.slane %v7433_v53, 4  ;;  %v3106_v23 = vrot.slane %v3104_v15, 5  ;;  %v10090_v9 = vld [vmem:[%s11822_s26 + $0x1c8] sm:$0xf] }
 0x16d   : > { %10729 = vmatprep.mubr.msk.bf16.mxu1 %vm325_vm1, %v11704_v60  ;;  %v3120_v26 = vshll.u32 %v9505_v12, 16  ;;  %v7429_v29 = vsel %vm11941_vm4, %v7424_v19, %v7428_v4  ;;  %v3112_v27 = vrot.slane %v3110_v6, 5  ;;  %v7441_v32 = vshrl.u32 %v10087_v18, 16  ;;  %v10091_v13 = vld [vmem:[%s11822_s26 + $0x1cc] sm:$0xf]  ;;  %v11712_v6 = vld [vmem:[%s11822_s26 + $0x1f8] sm:$0xff]  }
 0x16e   : > { %v7444_v33 = vshll.u32 %v10087_v18, 16  ;;  %v7439_v34 = vsel %vm11941_vm4, %v7434_v22, %v7438_v14  ;;  %v3107_v35 = vor.u32 %v3106_v23, %v3103_v2  ;;  %v3116_v36 = vrot.slane %v3114_v25, 4  ;;  %v10092_v19 = vld [vmem:[%s11822_s26 + $0x1d0] sm:$0x1] }
 0x16f   : > { %10998 = vmatmul.mubr.msk.bf16.gmra.mrb[4].mxu0 %vm325_vm1, %v11703_v8  ;;  %v3122_v41 = vrot.slane %v3120_v26, 5  ;;  %v12706_v30 = vcombine.low %v7429_v29, %v7439_v34  ;;  %v7443_v62 = vrot.slane %v7441_v32, 4  ;;  %v7450_v17 = vshll.u32 %v10088_v40, 16  ;;  %v11710_v2 = vld [vmem:[%s11822_s26 + $0x1ec] sm:$0xff]   ;;  %v9509_v32 = vld [vmem:[%s11822_s26 + $0x1c8] sm:$0xf] }
 0x170   : > { %11001 = vmatprep.mubr.msk.bf16.mxu0 %vm325_vm1, %v11705_v52  ;;  %v7446_v43 = vrot.slane %v7444_v33, 5  ;;  %v3108_v46 = vrot.slane %v3107_v35, 4  ;;  %v3117_v47 = vor.u32 %v3116_v36, %v3112_v27  ;;  %v7454_v59 = vshrl.u32 %v10088_v40, 16  ;;  %v9510_v36 = vld [vmem:[%s11822_s26 + $0x1cc] sm:$0xf] }
 0x171   : > { %v7460_v48 = vshll.u32 %v10089_v31, 16  ;;  %v7452_v11 = vrot.slane %v7450_v17, 5  ;;  %v3125_v58 = vshrl.u32 %v9506_v42, 16  ;;  %v3128_v60 = vshll.u32 %v9506_v42, 16  ;;  %v9511_v17 = vld [vmem:[%s11822_s26 + $0x1d0] sm:$0x1] }
 0x172   : > { %v7447_v55 = vor.u32 %v7446_v43, %v7443_v62  ;;  %v3113_v63 = vsel %vm11941_vm4, %v3108_v46, %v3112_v27  ;;  %v3118_v1 = vrot.slane %v3117_v47, 4  ;;  %v7456_v3 = vrot.slane %v7454_v59, 4  ;;  %v11713_v46 = vld [vmem:[%s11822_s26 + $0x204] sm:$0xff]  }
 0x173   : > { %v7462_v4 = vrot.slane %v7460_v48, 5  ;;  %v3127_v21 = vrot.slane %v3125_v58, 4  ;;  %v3130_v7 = vrot.slane %v3128_v60, 5  ;;  %v3134_v8 = vshll.u32 %v9507_v50, 16  ;;  %v10093_v58 = vld [vmem:[%s11822_s26 + $0x1d4] sm:$0xf] }
 0x174   : > { %10730 = vmatmul.mubr.msk.bf16.gmra.mrb[8].mxu1 %vm325_vm1, %v11706_v0  ;;  %v7448_v5 = vrot.slane %v7447_v55, 4  ;;  %v3123_v10 = vsel %vm11941_vm4, %v3118_v1, %v3122_v41  ;;  %v7457_v12 = vor.u32 %v7456_v3, %v7452_v11  ;;  %v3138_v24 = vshrl.u32 %v9507_v50, 16  ;;  %v11711_v41 = vld [vmem:[%s11822_s26 + $0x1f8] sm:$0xff]  }
 0x175   : > { %10733 = vmatprep.mubr.msk.bf16.mxu1 %vm325_vm1, %v11708_v44  ;;  %v3144_v52 = vshll.u32 %v9508_v56, 16  ;;  %v12721_v53 = vcombine.low %v3113_v63, %v3123_v10  ;;  %v3131_v15 = vor.u32 %v3130_v7, %v3127_v21  ;;  %v3136_v18 = vrot.slane %v3134_v8, 5  ;;  %v10094_v3 = vld [vmem:[%s11822_s26 + $0x1d8] sm:$0xf]  ;;  %v11714_v8 = vld [vmem:[%s11822_s26 + $0x204] sm:$0xff]  }
 0x176   : > { %v7453_v14 = vsel %vm11941_vm4, %v7448_v5, %v7452_v11  ;;  %v7458_v22 = vrot.slane %v7457_v12, 4  ;;  %v3140_v23 = vrot.slane %v3138_v24, 4  ;;  %v7465_v26 = vshrl.u32 %v10090_v9, 16 }
 0x177   : > { %11002 = vmatmul.mubr.msk.bf16.gmra.mrb[8].mxu0 %vm325_vm1, %v11707_v28  ;;  %v3146_v25 = vrot.slane %v3144_v52, 5  ;;  %v3132_v40 = vrot.slane %v3131_v15, 4  ;;  %v7468_v29 = vshll.u32 %v10090_v9, 16  ;;  %v7474_v27 = vshll.u32 %v10091_v13, 16  ;;  %v11716_v9 = vld [vmem:[%s11822_s26 + $0x210] sm:$0xff]  }
 0x178   : > { %11005 = vmatprep.mubr.msk.bf16.mxu0 %vm325_vm1, %v11709_v61  ;;  %v7478_v31 = vshrl.u32 %v10091_v13, 16  ;;  %v7463_v33 = vsel %vm11941_vm4, %v7458_v22, %v7462_v4  ;;  %v3141_v0 = vor.u32 %v3140_v23, %v3136_v18  ;;  %v7467_v34 = vrot.slane %v7465_v26, 4  ;;  %v10095_v15 = vld [vmem:[%s11822_s26 + $0x1dc] sm:$0x1]  ;;  %v9513_v26 = vld [vmem:[%s11822_s26 + $0x1d8] sm:$0xf] }
 0x179   : > { %v7484_v35 = vshll.u32 %v10092_v19, 16  ;;  %v12734_v42 = vcombine.low %v7453_v14, %v7463_v33  ;;  %v3137_v44 = vsel %vm11941_vm4, %v3132_v40, %v3136_v18  ;;  %v7470_v62 = vrot.slane %v7468_v29, 5  ;;  %v11715_v40 = vld [vmem:[%s11822_s26 + $0x210] sm:$0xff]   ;;  %v11717_v33 = vld [vmem:[%s11822_s26 + $0x21c] sm:$0xff]  }
 0x17a   : > { %v7476_v43 = vrot.slane %v7474_v27, 5  ;;  %v3142_v47 = vrot.slane %v3141_v0, 4  ;;  %v7480_v59 = vrot.slane %v7478_v31, 4  ;;  %v3149_v50 = vshrl.u32 %v9509_v32, 16 }
 0x17b   : > { %v7486_v48 = vrot.slane %v7484_v35, 5  ;;  %v7471_v28 = vor.u32 %v7470_v62, %v7467_v34  ;;  %v3152_v55 = vshll.u32 %v9509_v32, 16  ;;  %v3158_v11 = vshll.u32 %v9510_v36, 16  ;;  %v9514_v62 = vld [vmem:[%s11822_s26 + $0x1dc] sm:$0x1] }
 0x17c   : > { %10734 = vmatmul.mubr.msk.bf16.gmra.mrb[12].mxu1 %vm325_vm1, %v11710_v2  ;;  %v3162_v56 = vshrl.u32 %v9510_v36, 16  ;;  %v3147_v60 = vsel %vm11941_vm4, %v3142_v47, %v3146_v25  ;;  %v7481_v61 = vor.u32 %v7480_v59, %v7476_v43  ;;  %v3151_v63 = vrot.slane %v3149_v50, 4  ;;  %v9512_v2 = vld [vmem:[%s11822_s26 + $0x1d4] sm:$0xf] }
 0x17d   : > { %10737 = vmatprep.mubr.msk.bf16.mxu1 %vm325_vm1, %v11712_v6  ;;  %v3168_v1 = vshll.u32 %v9511_v17, 16  ;;  %v12747_v4 = vcombine.low %v3137_v44, %v3147_v60  ;;  %v7472_v5 = vrot.slane %v7471_v28, 4  ;;  %v3154_v21 = vrot.slane %v3152_v55, 5  ;;  %v10097_v28 = vld [vmem:[%s11822_s26 + $0x1e4] sm:$0xf]  ;;  %v11718_v60 = vld [vmem:[%s11822_s26 + $0x21c] sm:$0xff]  }
 0x17e   : > { %v3160_v7 = vrot.slane %v3158_v11, 5  ;;  %v7482_v10 = vrot.slane %v7481_v61, 4  ;;  %v3164_v12 = vrot.slane %v3162_v56, 4  ;;  %v7489_v52 = vshrl.u32 %v10093_v58, 16  ;;  %v11720_v61 = vld [vmem:[%s11822_s26 + $0x228] sm:$0xff]  }
 0x17f   : > { %11006 = vmatmul.mubr.msk.bf16.gmra.mrb[12].mxu0 %vm325_vm1, %v11711_v41  ;;  %v3170_v24 = vrot.slane %v3168_v1, 5  ;;  %v7477_v13 = vsel %vm11941_vm4, %v7472_v5, %v7476_v43  ;;  %v3155_v14 = vor.u32 %v3154_v21, %v3151_v63  ;;  %v7492_v18 = vshll.u32 %v10093_v58, 16 }
 0x180   : > { %11009 = vmatprep.mubr.msk.bf16.mxu0 %vm325_vm1, %v11713_v46  ;;  %v7498_v19 = vshll.u32 %v10094_v3, 16  ;;  %v7487_v6 = vsel %vm11941_vm4, %v7482_v10, %v7486_v48  ;;  %v3165_v22 = vor.u32 %v3164_v12, %v3160_v7  ;;  %v7491_v23 = vrot.slane %v7489_v52, 4  ;;  %v10096_v46 = vld [vmem:[%s11822_s26 + $0x1e0] sm:$0xf] }
 0x181   : > { %v7502_v25 = vshrl.u32 %v10094_v3, 16  ;;  %v12760_v29 = vcombine.low %v7477_v13, %v7487_v6  ;;  %v3156_v27 = vrot.slane %v3155_v14, 4  ;;  %v7494_v31 = vrot.slane %v7492_v18, 5  ;;  %v9515_v12 = vld [vmem:[%s11822_s26 + $0x1e0] sm:$0xf]  ;;  %v11719_v18 = vld [vmem:[%s11822_s26 + $0x228] sm:$0xff]  }
 0x182   : > { %v7500_v32 = vrot.slane %v7498_v19, 5  ;;  %v3166_v0 = vrot.slane %v3165_v22, 4  ;;  %v7508_v35 = vshll.u32 %v10095_v15, 16  ;;  %v3173_v36 = vshrl.u32 %v9512_v2, 16  ;;  %v9516_v15 = vld [vmem:[%s11822_s26 + $0x1e4] sm:$0xf] }
 0x183   : > { %v7504_v34 = vrot.slane %v7502_v25, 4  ;;  %v3161_v41 = vsel %vm11941_vm4, %v3156_v27, %v3160_v7  ;;  %v7495_v44 = vor.u32 %v7494_v31, %v7491_v23  ;;  %v3176_v43 = vshll.u32 %v9512_v2, 16  ;;  %v11721_v23 = vld [vmem:[%s11822_s26 + $0x234] sm:$0xff]  }
 0x184   : > { %10738 = vmatmul.mubr.msk.bf16.gmra.mrb[16].mxu1 %vm325_vm1, %v11714_v8  ;;  %v3182_v17 = vshll.u32 %v9513_v26, 16  ;;  %v3171_v47 = vsel %vm11941_vm4, %v3166_v0, %v3170_v24  ;;  %v7510_v48 = vrot.slane %v7508_v35, 5  ;;  %v3175_v50 = vrot.slane %v3173_v36, 4  ;;  %v10098_v8 = vld [vmem:[%s11822_s26 + $0x1e8] sm:$0x1] }
 0x185   : > { %10741 = vmatprep.mubr.msk.bf16.mxu1 %vm325_vm1, %v11716_v9  ;;  %v7505_v59 = vor.u32 %v7504_v34, %v7500_v32  ;;  %v12773_v55 = vcombine.low %v3161_v41, %v3171_v47  ;;  %v7496_v11 = vrot.slane %v7495_v44, 4  ;;  %v3178_v56 = vrot.slane %v3176_v43, 5  ;;  %v10099_v35 = vld [vmem:[%s11822_s26 + $0x1ec] sm:$0xf] }
 0x186   : > { %v3184_v58 = vrot.slane %v3182_v17, 5  ;;  %v3186_v1 = vshrl.u32 %v9513_v26, 16  ;;  %v3192_v3 = vshll.u32 %v9514_v62, 16  ;;  %v7513_v5 = vshrl.u32 %v10096_v46, 16 }
 0x187   : > { %11010 = vmatmul.mubr.msk.bf16.gmra.mrb[16].mxu0 %vm325_vm1, %v11715_v40  ;;  %v7506_v63 = vrot.slane %v7505_v59, 4  ;;  %v7501_v21 = vsel %vm11941_vm4, %v7496_v11, %v7500_v32  ;;  %v3179_v7 = vor.u32 %v3178_v56, %v3175_v50  ;;  %v7516_v9 = vshll.u32 %v10096_v46, 16  ;;  %v11722_v59 = vld [vmem:[%s11822_s26 + $0x234] sm:$0xff]   ;;  %v10100_v11 = vld [vmem:[%s11822_s26 + $0x1f0] sm:$0xf] }
 0x188   : > { %11013 = vmatprep.mubr.msk.bf16.mxu0 %vm325_vm1, %v11717_v33  ;;  %v7522_v10 = vshll.u32 %v10097_v28, 16  ;;  %v3188_v52 = vrot.slane %v3186_v1, 4  ;;  %v3194_v13 = vrot.slane %v3192_v3, 5  ;;  %v7515_v14 = vrot.slane %v7513_v5, 4  ;;  %v9517_v33 = vld [vmem:[%s11822_s26 + $0x1e8] sm:$0x1] }
 0x189   : > { %v7511_v24 = vsel %vm11941_vm4, %v7506_v63, %v7510_v48  ;;  %v3180_v2 = vrot.slane %v3179_v7, 4  ;;  %v7518_v6 = vrot.slane %v7516_v9, 5  ;;  %v7526_v26 = vshrl.u32 %v10097_v28, 16  ;;  %v10101_v3 = vld [vmem:[%s11822_s26 + $0x1f4] sm:$0x1] }
 0x18a   : > { %v12786_v19 = vcombine.low %v7501_v21, %v7511_v24  ;;  %v7524_v22 = vrot.slane %v7522_v10, 5  ;;  %v3189_v25 = vor.u32 %v3188_v52, %v3184_v58  ;;  %v7532_v40 = vshll.u32 %v10098_v8, 16  ;;  %v9518_v5 = vld [vmem:[%s11822_s26 + $0x1ec] sm:$0xf]  ;;  %v11723_v10 = vld [vmem:[%s11822_s26 + $0x240] sm:$0xff]  }
 0x18b   : > { %v3197_v27 = vshrl.u32 %v9515_v12, 16  ;;  %v3185_v31 = vsel %vm11941_vm4, %v3180_v2, %v3184_v58  ;;  %v7519_v32 = vor.u32 %v7518_v6, %v7515_v14  ;;  %v3200_v0 = vshll.u32 %v9515_v12, 16  ;;  %v11724_v58 = vld [vmem:[%s11822_s26 + $0x240] sm:$0xff]   ;;  %v11725_v14 = vld [vmem:[%s11822_s26 + $0x24c] sm:$0xff]  }
 0x18c   : > { %10742 = vmatmul.mubr.msk.bf16.gmra.mrb[20].mxu1 %vm325_vm1, %v11718_v60  ;;  %v3206_v34 = vshll.u32 %v9516_v15, 16  ;;  %v3190_v36 = vrot.slane %v3189_v25, 4  ;;  %v7528_v41 = vrot.slane %v7526_v26, 4  ;;  %v7534_v44 = vrot.slane %v7532_v40, 5  ;;  %v9519_v6 = vld [vmem:[%s11822_s26 + $0x1f0] sm:$0xf] }
 0x18d   : > { %10745 = vmatprep.mubr.msk.bf16.mxu1 %vm325_vm1, %v11720_v61  ;;  %v3199_v62 = vrot.slane %v3197_v27, 4  ;;  %v7520_v43 = vrot.slane %v7519_v32, 4  ;;  %v3202_v17 = vrot.slane %v3200_v0, 5  ;;  %v3210_v47 = vshrl.u32 %v9516_v15, 16  ;;  %v9520_v27 = vld [vmem:[%s11822_s26 + $0x1f4] sm:$0x1] }
 0x18e   : > { %v3208_v46 = vrot.slane %v3206_v34, 5  ;;  %v3195_v48 = vsel %vm11941_vm4, %v3190_v36, %v3194_v13  ;;  %v7529_v50 = vor.u32 %v7528_v41, %v7524_v22  ;;  %v3216_v28 = vshll.u32 %v9517_v33, 16  ;;  %v10102_v34 = vld [vmem:[%s11822_s26 + $0x1f8] sm:$0xf] }
 0x18f   : > { %11014 = vmatmul.mubr.msk.bf16.gmra.mrb[20].mxu0 %vm325_vm1, %v11719_v18  ;;  %v7537_v56 = vshrl.u32 %v10099_v35, 16  ;;  %v12802_v60 = vcombine.low %v3185_v31, %v3195_v48  ;;  %v7525_v61 = vsel %vm11941_vm4, %v7520_v43, %v7524_v22  ;;  %v3203_v63 = vor.u32 %v3202_v17, %v3199_v62  ;;  %v11726_v62 = vld [vmem:[%s11822_s26 + $0x24c] sm:$0xff]   ;;  %v11728_v43 = vld [vmem:[%s11822_s26 + $0x264] sm:$0xff]   ;;  %v10103_v48 = vld [vmem:[%s11822_s26 + $0x1fc] sm:$0xf] }
 0x190   : > { %11017 = vmatprep.mubr.msk.bf16.mxu0 %vm325_vm1, %v11721_v23  ;;  %v3212_v1 = vrot.slane %v3210_v47, 4  ;;  %v7530_v21 = vrot.slane %v7529_v50, 4  ;;  %v3218_v7 = vrot.slane %v3216_v28, 5  ;;  %v7540_v9 = vshll.u32 %v10099_v35, 16 }
 0x191   : > { %v7539_v8 = vrot.slane %v7537_v56, 4  ;;  %v3204_v12 = vrot.slane %v3203_v63, 4  ;;  %v7546_v52 = vshll.u32 %v10100_v11, 16  ;;  %v7550_v13 = vshrl.u32 %v10100_v11, 16  ;;  %v10104_v56 = vld [vmem:[%s11822_s26 + $0x200] sm:$0x1] }
 0x192   : > { %v3213_v24 = vor.u32 %v3212_v1, %v3208_v46  ;;  %v7535_v15 = vsel %vm11941_vm4, %v7530_v21, %v7534_v44  ;;  %v7542_v18 = vrot.slane %v7540_v9, 5  ;;  %v7556_v2 = vshll.u32 %v10101_v3, 16 }
 0x193   : > { %v3221_v22 = vshrl.u32 %v9518_v5, 16  ;;  %v12815_v23 = vcombine.low %v7525_v61, %v7535_v15  ;;  %v3209_v25 = vsel %vm11941_vm4, %v3204_v12, %v3208_v46  ;;  %v7548_v40 = vrot.slane %v7546_v52, 5  ;;  %v11729_v12 = vld [vmem:[%s11822_s26 + $0x270] sm:$0xff]   ;;  %v9522_v15 = vld [vmem:[%s11822_s26 + $0x1fc] sm:$0xf] }
 0x194   : > { %10746 = vmatmul.mubr.msk.bf16.gmra.mrb[24].mxu1 %vm325_vm1, %v11722_v59  ;;  %v3214_v26 = vrot.slane %v3213_v24, 4  ;;  %v7543_v31 = vor.u32 %v7542_v18, %v7539_v8  ;;  %v7552_v32 = vrot.slane %v7550_v13, 4  ;;  %v7558_v33 = vrot.slane %v7556_v2, 5 }
 0x195   : > { %10749 = vmatprep.mubr.msk.bf16.mxu1 %vm325_vm1, %v11724_v58  ;;  %v3223_v0 = vrot.slane %v3221_v22, 4  ;;  %v3224_v36 = vshll.u32 %v9518_v5, 16  ;;  %v3230_v41 = vshll.u32 %v9519_v6, 16  ;;  %v3234_v44 = vshrl.u32 %v9519_v6, 16  ;;  %v11727_v5 = vld [vmem:[%s11822_s26 + $0x258] sm:$0xff]  }
 0x196   : > { %v3219_v35 = vsel %vm11941_vm4, %v3214_v26, %v3218_v7  ;;  %v7544_v46 = vrot.slane %v7543_v31, 4  ;;  %v7553_v47 = vor.u32 %v7552_v32, %v7548_v40  ;;  %v3240_v59 = vshll.u32 %v9520_v27, 16  ;;  %v9523_v27 = vld [vmem:[%s11822_s26 + $0x200] sm:$0x1] }
 0x197   : > { %11018 = vmatmul.mubr.msk.bf16.gmra.mrb[24].mxu0 %vm325_vm1, %v11723_v10  ;;  %v12827_v17 = vcombine.low %v3209_v25, %v3219_v35  ;;  %v3226_v50 = vrot.slane %v3224_v36, 5  ;;  %v3232_v28 = vrot.slane %v3230_v41, 5  ;;  %v3236_v11 = vrot.slane %v3234_v44, 4  ;;  %v9521_v10 = vld [vmem:[%s11822_s26 + $0x1f8] sm:$0xf]  ;;  %v11730_v36 = vld [vmem:[%s11822_s26 + $0x270] sm:$0xff]  }
 0x198   : > { %11021 = vmatprep.mubr.msk.bf16.mxu0 %vm325_vm1, %v11725_v14  ;;  %v7561_v58 = vshrl.u32 %v10102_v34, 16  ;;  %v7549_v61 = vsel %vm11941_vm4, %v7544_v46, %v7548_v40  ;;  %v7554_v63 = vrot.slane %v7553_v47, 4  ;;  %v3242_v1 = vrot.slane %v3240_v59, 5  ;;  %v10105_v35 = vld [vmem:[%s11822_s26 + $0x204] sm:$0xf]  ;;  %v11732_v47 = vld [vmem:[%s11822_s26 + $0x27c] sm:$0xff]  }
 0x199   : > { %v7564_v3 = vshll.u32 %v10102_v34, 16  ;;  %v3227_v21 = vor.u32 %v3226_v50, %v3223_v0  ;;  %v3237_v7 = vor.u32 %v3236_v11, %v3232_v28  ;;  %v7570_v9 = vshll.u32 %v10103_v48, 16  ;;  %v10106_v46 = vld [vmem:[%s11822_s26 + $0x208] sm:$0xf] }
 0x19a   : > { %v7563_v8 = vrot.slane %v7561_v58, 4  ;;  %v7559_v24 = vsel %vm11941_vm4, %v7554_v63, %v7558_v33  ;;  %v7574_v13 = vshrl.u32 %v10103_v48, 16  ;;  %v7580_v14 = vshll.u32 %v10104_v56, 16  ;;  %v10107_v58 = vld [vmem:[%s11822_s26 + $0x20c] sm:$0x1] }
 0x19b   : > { %v7566_v52 = vrot.slane %v7564_v3, 5  ;;  %v12841_v18 = vcombine.low %v7549_v61, %v7559_v24  ;;  %v3228_v2 = vrot.slane %v3227_v21, 4  ;;  %v3238_v6 = vrot.slane %v3237_v7, 4 }
 0x19c   : > { %10750 = vmatmul.mubr.msk.bf16.gmra.mrb[28].mxu1 %vm325_vm1, %v11726_v62  ;;  %v7572_v22 = vrot.slane %v7570_v9, 5  ;;  %v7576_v26 = vrot.slane %v7574_v13, 4  ;;  %v7582_v40 = vrot.slane %v7580_v14, 5  ;;  %v3245_v31 = vshrl.u32 %v9521_v10, 16  ;;  %v11733_v9 = vld [vmem:[%s11822_s26 + $0x288] sm:$0xff]  }
 0x19d   : > { %10755 = vmatprep.mubr.msk.bf16.mxu1 %vm325_vm1, %v11728_v43  ;;  %v7567_v25 = vor.u32 %v7566_v52, %v7563_v8  ;;  %v3233_v32 = vsel %vm11941_vm4, %v3228_v2, %v3232_v28  ;;  %v3243_v33 = vsel %vm11941_vm4, %v3238_v6, %v3242_v1  ;;  %v3248_v0 = vshll.u32 %v9521_v10, 16  ;;  %v11731_v1 = vld [vmem:[%s11822_s26 + $0x27c] sm:$0xff]   ;;  %v9524_v8 = vld [vmem:[%s11822_s26 + $0x204] sm:$0xf]  ;;  %v9525_v13 = vld [vmem:[%s11822_s26 + $0x208] sm:$0xf] }
 0x19e   : > { %v3254_v34 = vshll.u32 %v9522_v15, 16  ;;  %v12852_v41 = vcombine.low %v3233_v32, %v3243_v33  ;;  %v7577_v62 = vor.u32 %v7576_v26, %v7572_v22  ;;  %v3247_v43 = vrot.slane %v3245_v31, 4  ;;  %v9526_v31 = vld [vmem:[%s11822_s26 + $0x20c] sm:$0x1] }
 0x19f   : > { %11022 = vmatmul.mubr.msk.bf16.gmra.mrb[28].mxu0 %vm325_vm1, %v11727_v5  ;;  %v7568_v44 = vrot.slane %v7567_v25, 4  ;;  %v3250_v59 = vrot.slane %v3248_v0, 5  ;;  %v3258_v50 = vshrl.u32 %v9522_v15, 16  ;;  %v3264_v28 = vshll.u32 %v9523_v27, 16 }
 0x1a0   : > { %11027 = vmatprep.mubr.msk.bf16.mxu0 %vm325_vm1, %v11729_v12  ;;  %v3256_v48 = vrot.slane %v3254_v34, 5  ;;  %v7578_v56 = vrot.slane %v7577_v62, 4  ;;  %v7585_v61 = vshrl.u32 %v10105_v35, 16  ;;  %v7588_v63 = vshll.u32 %v10105_v35, 16  ;;  %v11736_v62 = vld [vmem:[%s11822_s26 + $0x294] sm:$0xff]  }
 0x1a1   : > { %v7573_v11 = vsel %vm11941_vm4, %v7568_v44, %v7572_v22  ;;  %v3251_v3 = vor.u32 %v3250_v59, %v3247_v43  ;;  %v3260_v5 = vrot.slane %v3258_v50, 4  ;;  %v3266_v21 = vrot.slane %v3264_v28, 5  ;;  %v10108_v44 = vld [vmem:[%s11822_s26 + $0x210] sm:$0xf]  ;;  %v10109_v59 = vld [vmem:[%s11822_s26 + $0x214] sm:$0xf] }
 0x1a2   : > { %v7594_v7 = vshll.u32 %v10106_v46, 16  ;;  %v7583_v10 = vsel %vm11941_vm4, %v7578_v56, %v7582_v40  ;;  %v7587_v12 = vrot.slane %v7585_v61, 4  ;;  %v7590_v24 = vrot.slane %v7588_v63, 5  ;;  %v11735_v56 = vld [vmem:[%s11822_s26 + $0x294] sm:$0xff]  }
 0x1a3   : > { %v7598_v52 = vshrl.u32 %v10106_v46, 16  ;;  %v12868_v14 = vcombine.low %v7573_v11, %v7583_v10  ;;  %v3252_v15 = vrot.slane %v3251_v3, 4  ;;  %v3261_v2 = vor.u32 %v3260_v5, %v3256_v48  ;;  %v11737_v3 = vld [vmem:[%s11822_s26 + $0x2a0] sm:$0xff]  }
 0x1a4   : > { %10756 = vmatmul.mubr.msk.bf16.vlgmr.msra.gmra.mrb[0].mxu1 %vm325_vm1, %v11730_v36  ;;  %v7596_v6 = vrot.slane %v7594_v7, 5  ;;  %v7591_v22 = vor.u32 %v7590_v24, %v7587_v12  ;;  %v7604_v26 = vshll.u32 %v10107_v58, 16  ;;  %v3269_v40 = vshrl.u32 %v9524_v8, 16 }
 0x1a5   : > { %10788 = vmatpush3.bf16.msra.mxu1 %v12603_v38  ;;  %10759 = vmatprep.mubr.msk.bf16.mxu1 %vm325_vm1, %v11732_v47  ;;  %v7600_v25 = vrot.slane %v7598_v52, 4  ;;  %v3257_v38 = vsel %vm11941_vm4, %v3252_v15, %v3256_v48  ;;  %v3262_v27 = vrot.slane %v3261_v2, 4  ;;  %v3272_v32 = vshll.u32 %v9524_v8, 16 }
 0x1a6   : > { %11614 = vmatprep.subr.msk.bf16.mxu1 %vm374_vm0, %v12637_v20  ;;  %v3278_v33 = vshll.u32 %v9525_v13, 16  ;;  %v11734_v20 = vld [vmem:[%s11822_s26 + $0x288] sm:$0xff]   ;;  %v7592_v0 = vrot.slane %v7591_v22, 4  ;;  %v7606_v35 = vrot.slane %v7604_v26, 5  ;;  %v3271_v36 = vrot.slane %v3269_v40, 4 }
 0x1a7   : > { %11028 = vmatmul.mubr.msk.bf16.vlgmr.msra.gmra.mrb[0].mxu0 %vm325_vm1, %v11731_v1  ;;  %v7601_v34 = vor.u32 %v7600_v25, %v7596_v6  ;;  %v3267_v43 = vsel %vm11941_vm4, %v3262_v27, %v3266_v21  ;;  %v3274_v46 = vrot.slane %v3272_v32, 5  ;;  %v3282_v47 = vshrl.u32 %v9525_v13, 16  ;;  %v9528_v13 = vld [vmem:[%s11822_s26 + $0x214] sm:$0xf]  ;;  %v11738_v25 = vld [vmem:[%s11822_s26 + $0x2a0] sm:$0xff]  }
 0x1a8   : > { %11060 = vmatpush3.bf16.msra.mxu0 %v12629_v49  ;;  %11031 = vmatprep.mubr.msk.bf16.mxu0 %vm325_vm1, %v11733_v9  ;;  %v3280_v49 = vrot.slane %v3278_v33, 5  ;;  %v12886_v48 = vcombine.low %v3257_v38, %v3267_v43  ;;  %v7597_v50 = vsel %vm11941_vm4, %v7592_v0, %v7596_v6  ;;  %v3288_v11 = vshll.u32 %v9526_v31, 16  ;;  %v9527_v9 = vld [vmem:[%s11822_s26 + $0x210] sm:$0xf] }
 0x1a9   : > { %11622 = vmatprep.subr.msk.bf16.mxu0 %vm374_vm0, %v12670_v54  ;;  %v7602_v28 = vrot.slane %v7601_v34, 4  ;;  %v3275_v58 = vor.u32 %v3274_v46, %v3271_v36  ;;  %v3284_v61 = vrot.slane %v3282_v47, 4  ;;  %v10110_v54 = vld [vmem:[%s11822_s26 + $0x218] sm:$0x1]  ;;  %v7609_v63 = vshrl.u32 %v10108_v44, 16 }
 0x1aa   : > { %v7612_v1 = vshll.u32 %v10108_v44, 16  ;;  %v3290_v21 = vrot.slane %v3288_v11, 5  ;;  %v7618_v7 = vshll.u32 %v10109_v59, 16  ;;  %v7622_v8 = vshrl.u32 %v10109_v59, 16  ;;  %v10111_v34 = vld [vmem:[%s11822_s26 + $0x21c] sm:$0xf] }
 0x1ab   : > { %v7607_v5 = vsel %vm11941_vm4, %v7602_v28, %v7606_v35  ;;  %v3276_v12 = vrot.slane %v3275_v58, 4  ;;  %v3285_v24 = vor.u32 %v3284_v61, %v3280_v49  ;;  %v7611_v52 = vrot.slane %v7609_v63, 4  ;;  %v11740_v35 = vld [vmem:[%s11822_s26 + $0x2ac] sm:$0xff]   ;;  %v10112_v46 = vld [vmem:[%s11822_s26 + $0x220] sm:$0xf]  ;;  %v11741_v11 = vld [vmem:[%s11822_s26 + $0x2b8] sm:$0xff]  }
 0x1ac   : > { %10760 = vmatmul.mubr.msk.bf16.gmra.mrb[4].mxu1 %vm325_vm1, %v11734_v20  ;;  %v12898_v10 = vcombine.low %v7597_v50, %v7607_v5  ;;  %v7614_v15 = vrot.slane %v7612_v1, 5  ;;  %v7620_v2 = vrot.slane %v7618_v7, 5  ;;  %v7624_v6 = vrot.slane %v7622_v8, 4  ;;  %v9529_v20 = vld [vmem:[%s11822_s26 + $0x218] sm:$0x1]  ;;  %v11739_v28 = vld [vmem:[%s11822_s26 + $0x2ac] sm:$0xff]  }
 0x1ad   : > { %10763 = vmatprep.mubr.msk.bf16.mxu1 %vm325_vm1, %v11736_v62  ;;  %v7628_v22 = vshll.u32 %v10110_v54, 16  ;;  %v3281_v26 = vsel %vm11941_vm4, %v3276_v12, %v3280_v49  ;;  %v3286_v40 = vrot.slane %v3285_v24, 4  ;;  %v3293_v38 = vshrl.u32 %v9527_v9, 16  ;;  %v9530_v7 = vld [vmem:[%s11822_s26 + $0x21c] sm:$0xf] }
 0x1ae   : > { %v3296_v27 = vshll.u32 %v9527_v9, 16  ;;  %v7615_v31 = vor.u32 %v7614_v15, %v7611_v52  ;;  %v7625_v32 = vor.u32 %v7624_v6, %v7620_v2  ;;  %v3302_v0 = vshll.u32 %v9528_v13, 16  ;;  %v9531_v52 = vld [vmem:[%s11822_s26 + $0x220] sm:$0xf] }
 0x1af   : > { %11032 = vmatmul.mubr.msk.bf16.gmra.mrb[4].mxu0 %vm325_vm1, %v11735_v56  ;;  %v7630_v33 = vrot.slane %v7628_v22, 5  ;;  %v3291_v36 = vsel %vm11941_vm4, %v3286_v40, %v3290_v21  ;;  %v3295_v44 = vrot.slane %v3293_v38, 4  ;;  %v3306_v43 = vshrl.u32 %v9528_v13, 16  ;;  %v9532_v40 = vld [vmem:[%s11822_s26 + $0x224] sm:$0x1] }
 0x1b0   : > { %11035 = vmatprep.mubr.msk.bf16.mxu0 %vm325_vm1, %v11737_v3  ;;  %v3298_v62 = vrot.slane %v3296_v27, 5  ;;  %v12912_v49 = vcombine.low %v3281_v26, %v3291_v36  ;;  %v7616_v47 = vrot.slane %v7615_v31, 4  ;;  %v7626_v59 = vrot.slane %v7625_v32, 4  ;;  %v10113_v3 = vld [vmem:[%s11822_s26 + $0x224] sm:$0x1]  ;;  %v11742_v27 = vld [vmem:[%s11822_s26 + $0x2b8] sm:$0xff]  }
 0x1b1   : > { %v3304_v50 = vrot.slane %v3302_v0, 5  ;;  %v3308_v58 = vrot.slane %v3306_v43, 4  ;;  %v3312_v61 = vshll.u32 %v9529_v20, 16  ;;  %v7633_v54 = vshrl.u32 %v10111_v34, 16  ;;  %v10114_v0 = vld [vmem:[%s11822_s26 + $0x228] sm:$0xf] }
 0x1b2   : > { %v3299_v56 = vor.u32 %v3298_v62, %v3295_v44  ;;  %v7621_v63 = vsel %vm11941_vm4, %v7616_v47, %v7620_v2  ;;  %v7631_v1 = vsel %vm11941_vm4, %v7626_v59, %v7630_v33  ;;  %v7636_v5 = vshll.u32 %v10111_v34, 16  ;;  %v11744_v34 = vld [vmem:[%s11822_s26 + $0x2c4] sm:$0xff]  }
 0x1b3   : > { %v7642_v21 = vshll.u32 %v10112_v46, 16  ;;  %v12924_v8 = vcombine.low %v7621_v63, %v7631_v1  ;;  %v3309_v12 = vor.u32 %v3308_v58, %v3304_v50  ;;  %v3314_v24 = vrot.slane %v3312_v61, 5 }
 0x1b4   : > { %10764 = vmatmul.mubr.msk.bf16.gmra.mrb[8].mxu1 %vm325_vm1, %v11738_v25  ;;  %v3300_v9 = vrot.slane %v3299_v56, 4  ;;  %v7635_v13 = vrot.slane %v7633_v54, 4  ;;  %v7638_v15 = vrot.slane %v7636_v5, 5  ;;  %v7646_v6 = vshrl.u32 %v10112_v46, 16  ;;  %v11745_v54 = vld [vmem:[%s11822_s26 + $0x2d0] sm:$0xff]  }
 0x1b5   : > { %10767 = vmatprep.mubr.msk.bf16.mxu1 %vm325_vm1, %v11740_v35  ;;  %v7644_v2 = vrot.slane %v7642_v21, 5  ;;  %v3310_v25 = vrot.slane %v3309_v12, 4  ;;  %v7652_v26 = vshll.u32 %v10113_v3, 16  ;;  %v3317_v38 = vshrl.u32 %v9530_v7, 16  ;;  %v10116_v5 = vld [vmem:[%s11822_s26 + $0x230] sm:$0x1] }
 0x1b6   : > { %v3305_v22 = vsel %vm11941_vm4, %v3300_v9, %v3304_v50  ;;  %v7639_v31 = vor.u32 %v7638_v15, %v7635_v13  ;;  %v7648_v32 = vrot.slane %v7646_v6, 4  ;;  %v3320_v33 = vshll.u32 %v9530_v7, 16  ;;  %v10115_v50 = vld [vmem:[%s11822_s26 + $0x22c] sm:$0xf] }
 0x1b7   : > { %11036 = vmatmul.mubr.msk.bf16.gmra.mrb[8].mxu0 %vm325_vm1, %v11739_v28  ;;  %v3326_v20 = vshll.u32 %v9531_v52, 16  ;;  %v3315_v35 = vsel %vm11941_vm4, %v3310_v25, %v3314_v24  ;;  %v7654_v36 = vrot.slane %v7652_v26, 5  ;;  %v3319_v44 = vrot.slane %v3317_v38, 4  ;;  %v11743_v28 = vld [vmem:[%s11822_s26 + $0x2c4] sm:$0xff]  }
 0x1b8   : > { %11039 = vmatprep.mubr.msk.bf16.mxu0 %vm325_vm1, %v11741_v11  ;;  %v3330_v62 = vshrl.u32 %v9531_v52, 16  ;;  %v12937_v43 = vcombine.low %v3305_v22, %v3315_v35  ;;  %v7640_v46 = vrot.slane %v7639_v31, 4  ;;  %v7649_v47 = vor.u32 %v7648_v32, %v7644_v2  ;;  %v9533_v52 = vld [vmem:[%s11822_s26 + $0x228] sm:$0xf]  ;;  %v9534_v22 = vld [vmem:[%s11822_s26 + $0x22c] sm:$0xf] }
 0x1b9   : > { %v3322_v59 = vrot.slane %v3320_v33, 5  ;;  %v3328_v11 = vrot.slane %v3326_v20, 5  ;;  %v3336_v58 = vshll.u32 %v9532_v40, 16  ;;  %v7657_v61 = vshrl.u32 %v10114_v0, 16  ;;  %v9535_v20 = vld [vmem:[%s11822_s26 + $0x230] sm:$0x1] }
 0x1ba   : > { %v3332_v56 = vrot.slane %v3330_v62, 4  ;;  %v7645_v63 = vsel %vm11941_vm4, %v7640_v46, %v7644_v2  ;;  %v7650_v1 = vrot.slane %v7649_v47, 4  ;;  %v7660_v21 = vshll.u32 %v10114_v0, 16  ;;  %v10117_v46 = vld [vmem:[%s11822_s26 + $0x234] sm:$0xf] }
 0x1bb   : > { %v3323_v3 = vor.u32 %v3322_v59, %v3319_v44  ;;  %v3338_v9 = vrot.slane %v3336_v58, 5  ;;  %v7659_v12 = vrot.slane %v7657_v61, 4  ;;  %v7666_v24 = vshll.u32 %v10115_v50, 16 }
 0x1bc   : > { %10768 = vmatmul.mubr.msk.bf16.gmra.mrb[12].mxu1 %vm325_vm1, %v11742_v27  ;;  %v3333_v7 = vor.u32 %v3332_v56, %v3328_v11  ;;  %v7655_v13 = vsel %vm11941_vm4, %v7650_v1, %v7654_v36  ;;  %v7662_v6 = vrot.slane %v7660_v21, 5  ;;  %v7670_v2 = vshrl.u32 %v10115_v50, 16  ;;  %v11746_v27 = vld [vmem:[%s11822_s26 + $0x2d0] sm:$0xff]   ;;  %v11747_v56 = vld [vmem:[%s11822_s26 + $0x2dc] sm:$0xff]   ;;  %v11749_v1 = vld [vmem:[%s11822_s26 + $0x2e8] sm:$0xff]  }
 0x1bd   : > { %10771 = vmatprep.mubr.msk.bf16.mxu1 %vm325_vm1, %v11744_v34  ;;  %v3324_v15 = vrot.slane %v3323_v3, 4  ;;  %v12952_v25 = vcombine.low %v7645_v63, %v7655_v13  ;;  %v7668_v40 = vrot.slane %v7666_v24, 5  ;;  %v7676_v38 = vshll.u32 %v10116_v5, 16  ;;  %v11748_v34 = vld [vmem:[%s11822_s26 + $0x2dc] sm:$0xff]  }
 0x1be   : > { %v3334_v26 = vrot.slane %v3333_v7, 4  ;;  %v7663_v32 = vor.u32 %v7662_v6, %v7659_v12  ;;  %v7672_v33 = vrot.slane %v7670_v2, 4  ;;  %v3341_v0 = vshrl.u32 %v9533_v52, 16  ;;  %v10119_v21 = vld [vmem:[%s11822_s26 + $0x23c] sm:$0x1] }
 0x1bf   : > { %11040 = vmatmul.mubr.msk.bf16.gmra.mrb[12].mxu0 %vm325_vm1, %v11743_v28  ;;  %v3329_v31 = vsel %vm11941_vm4, %v3324_v15, %v3328_v11  ;;  %v7678_v36 = vrot.slane %v7676_v38, 5  ;;  %v3344_v44 = vshll.u32 %v9533_v52, 16  ;;  %v3350_v62 = vshll.u32 %v9534_v22, 16  ;;  %v10118_v11 = vld [vmem:[%s11822_s26 + $0x238] sm:$0xf] }
 0x1c0   : > { %11043 = vmatprep.mubr.msk.bf16.mxu0 %vm325_vm1, %v11745_v54  ;;  %v3339_v35 = vsel %vm11941_vm4, %v3334_v26, %v3338_v9  ;;  %v7664_v59 = vrot.slane %v7663_v32, 4  ;;  %v7673_v50 = vor.u32 %v7672_v33, %v7668_v40  ;;  %v3343_v28 = vrot.slane %v3341_v0, 4  ;;  %v9536_v15 = vld [vmem:[%s11822_s26 + $0x234] sm:$0xf]  ;;  %v11750_v33 = vld [vmem:[%s11822_s26 + $0x2e8] sm:$0xff]  }
 0x1c1   : > { %v12963_v47 = vcombine.low %v3329_v31, %v3339_v35  ;;  %v3346_v58 = vrot.slane %v3344_v44, 5  ;;  %v3352_v61 = vrot.slane %v3350_v62, 5  ;;  %v3354_v54 = vshrl.u32 %v9534_v22, 16 }
 0x1c2   : > { %v3360_v63 = vshll.u32 %v9535_v20, 16  ;;  %v7669_v3 = vsel %vm11941_vm4, %v7664_v59, %v7668_v40  ;;  %v7674_v5 = vrot.slane %v7673_v50, 4  ;;  %v7681_v7 = vshrl.u32 %v10117_v46, 16  ;;  %v9537_v40 = vld [vmem:[%s11822_s26 + $0x238] sm:$0xf] }
 0x1c3   : > { %v7684_v9 = vshll.u32 %v10117_v46, 16  ;;  %v3347_v12 = vor.u32 %v3346_v58, %v3343_v28  ;;  %v3356_v24 = vrot.slane %v3354_v54, 4  ;;  %v7690_v13 = vshll.u32 %v10118_v11, 16  ;;  %v9538_v46 = vld [vmem:[%s11822_s26 + $0x23c] sm:$0x1] }
 0x1c4   : > { %10772 = vmatmul.mubr.msk.bf16.gmra.mrb[16].mxu1 %vm325_vm1, %v11746_v27  ;;  %v3362_v52 = vrot.slane %v3360_v63, 5  ;;  %v7679_v6 = vsel %vm11941_vm4, %v7674_v5, %v7678_v36  ;;  %v7683_v2 = vrot.slane %v7681_v7, 4  ;;  %v7694_v26 = vshrl.u32 %v10118_v11, 16  ;;  %v11752_v36 = vld [vmem:[%s11822_s26 + $0x2f4] sm:$0xff]   ;;  %v10120_v54 = vld [vmem:[%s11822_s26 + $0x240] sm:$0xf] }
 0x1c5   : > { %10775 = vmatprep.mubr.msk.bf16.mxu1 %vm325_vm1, %v11748_v34  ;;  %v7686_v22 = vrot.slane %v7684_v9, 5  ;;  %v12978_v38 = vcombine.low %v7669_v3, %v7679_v6  ;;  %v3348_v27 = vrot.slane %v3347_v12, 4  ;;  %v3357_v31 = vor.u32 %v3356_v24, %v3352_v61  ;;  %v11751_v63 = vld [vmem:[%s11822_s26 + $0x2f4] sm:$0xff]   ;;  %v10121_v7 = vld [vmem:[%s11822_s26 + $0x244] sm:$0xf] }
 0x1c6   : > { %v7692_v32 = vrot.slane %v7690_v13, 5  ;;  %v7696_v0 = vrot.slane %v7694_v26, 4  ;;  %v7700_v34 = vshll.u32 %v10119_v21, 16  ;;  %v3365_v35 = vshrl.u32 %v9536_v15, 16  ;;  %v10122_v6 = vld [vmem:[%s11822_s26 + $0x248] sm:$0x1] }
 0x1c7   : > { %11044 = vmatmul.mubr.msk.bf16.gmra.mrb[16].mxu0 %vm325_vm1, %v11747_v56  ;;  %v7687_v20 = vor.u32 %v7686_v22, %v7683_v2  ;;  %v3353_v44 = vsel %vm11941_vm4, %v3348_v27, %v3352_v61  ;;  %v3358_v62 = vrot.slane %v3357_v31, 4  ;;  %v3368_v59 = vshll.u32 %v9536_v15, 16  ;;  %v11753_v61 = vld [vmem:[%s11822_s26 + $0x300] sm:$0xff]  }
 0x1c8   : > { %11047 = vmatprep.mubr.msk.bf16.mxu0 %vm325_vm1, %v11749_v1  ;;  %v3374_v50 = vshll.u32 %v9537_v40, 16  ;;  %v7697_v11 = vor.u32 %v7696_v0, %v7692_v32  ;;  %v7702_v56 = vrot.slane %v7700_v34, 5  ;;  %v3367_v58 = vrot.slane %v3365_v35, 4  ;;  %v9540_v35 = vld [vmem:[%s11822_s26 + $0x244] sm:$0xf] }
 0x1c9   : > { %v7688_v28 = vrot.slane %v7687_v20, 4  ;;  %v3363_v1 = vsel %vm11941_vm4, %v3358_v62, %v3362_v52  ;;  %v3370_v3 = vrot.slane %v3368_v59, 5  ;;  %v3378_v21 = vshrl.u32 %v9537_v40, 16 }
 0x1ca   : > { %v3376_v5 = vrot.slane %v3374_v50, 5  ;;  %v12993_v9 = vcombine.low %v3353_v44, %v3363_v1  ;;  %v7698_v24 = vrot.slane %v7697_v11, 4  ;;  %v3384_v13 = vshll.u32 %v9538_v46, 16  ;;  %v11756_v50 = vld [vmem:[%s11822_s26 + $0x30c] sm:$0xff]  }
 0x1cb   : > { %v7693_v12 = vsel %vm11941_vm4, %v7688_v28, %v7692_v32  ;;  %v3371_v15 = vor.u32 %v3370_v3, %v3367_v58  ;;  %v3380_v52 = vrot.slane %v3378_v21, 4  ;;  %v7705_v2 = vshrl.u32 %v10120_v54, 16  ;;  %v9541_v3 = vld [vmem:[%s11822_s26 + $0x248] sm:$0x1] }
 0x1cc   : > { %10776 = vmatmul.mubr.msk.bf16.gmra.mrb[20].mxu1 %vm325_vm1, %v11750_v33  ;;  %v7708_v22 = vshll.u32 %v10120_v54, 16  ;;  %v7703_v26 = vsel %vm11941_vm4, %v7698_v24, %v7702_v56  ;;  %v3386_v40 = vrot.slane %v3384_v13, 5  ;;  %v7714_v27 = vshll.u32 %v10121_v7, 16  ;;  %v9539_v33 = vld [vmem:[%s11822_s26 + $0x240] sm:$0xf] }
 0x1cd   : > { %10779 = vmatprep.mubr.msk.bf16.mxu1 %vm325_vm1, %v11752_v36  ;;  %v7718_v31 = vshrl.u32 %v10121_v7, 16  ;;  %v13003_v32 = vcombine.low %v7693_v12, %v7703_v26  ;;  %v3372_v20 = vrot.slane %v3371_v15, 4  ;;  %v3381_v0 = vor.u32 %v3380_v52, %v3376_v5  ;;  %v11754_v36 = vld [vmem:[%s11822_s26 + $0x300] sm:$0xff]   ;;  %v10123_v7 = vld [vmem:[%s11822_s26 + $0x24c] sm:$0xf] }
 0x1ce   : > { %v7707_v34 = vrot.slane %v7705_v2, 4  ;;  %v7710_v44 = vrot.slane %v7708_v22, 5  ;;  %v7716_v62 = vrot.slane %v7714_v27, 5  ;;  %v7724_v59 = vshll.u32 %v10122_v6, 16  ;;  %v10124_v52 = vld [vmem:[%s11822_s26 + $0x250] sm:$0xf] }
 0x1cf   : > { %11048 = vmatmul.mubr.msk.bf16.gmra.mrb[20].mxu0 %vm325_vm1, %v11751_v63  ;;  %v7720_v46 = vrot.slane %v7718_v31, 4  ;;  %v3377_v28 = vsel %vm11941_vm4, %v3372_v20, %v3376_v5  ;;  %v3382_v11 = vrot.slane %v3381_v0, 4  ;;  %v3389_v56 = vshrl.u32 %v9539_v33, 16  ;;  %v11757_v5 = vld [vmem:[%s11822_s26 + $0x318] sm:$0xff]  }
 0x1d0   : > { %11051 = vmatprep.mubr.msk.bf16.mxu0 %vm325_vm1, %v11753_v61  ;;  %v3392_v58 = vshll.u32 %v9539_v33, 16  ;;  %v7711_v54 = vor.u32 %v7710_v44, %v7707_v34  ;;  %v7726_v1 = vrot.slane %v7724_v59, 5  ;;  %v3398_v21 = vshll.u32 %v9540_v35, 16  ;;  %v11755_v61 = vld [vmem:[%s11822_s26 + $0x30c] sm:$0xff]   ;;  %v10125_v34 = vld [vmem:[%s11822_s26 + $0x254] sm:$0x1] }
 0x1d1   : > { %v7721_v63 = vor.u32 %v7720_v46, %v7716_v62  ;;  %v3387_v12 = vsel %vm11941_vm4, %v3382_v11, %v3386_v40  ;;  %v3391_v24 = vrot.slane %v3389_v56, 4  ;;  %v3402_v15 = vshrl.u32 %v9540_v35, 16  ;;  %v9542_v44 = vld [vmem:[%s11822_s26 + $0x24c] sm:$0xf]  ;;  %v9543_v11 = vld [vmem:[%s11822_s26 + $0x250] sm:$0xf] }
 0x1d2   : > { %v3394_v13 = vrot.slane %v3392_v58, 5  ;;  %v13019_v6 = vcombine.low %v3377_v28, %v3387_v12  ;;  %v7712_v2 = vrot.slane %v7711_v54, 4  ;;  %v3400_v26 = vrot.slane %v3398_v21, 5 }
 0x1d3   : > { %v7722_v22 = vrot.slane %v7721_v63, 4  ;;  %v3404_v31 = vrot.slane %v3402_v15, 4  ;;  %v3408_v40 = vshll.u32 %v9541_v3, 16  ;;  %v7729_v33 = vshrl.u32 %v10123_v7, 16 }
 0x1d4   : > { %10780 = vmatmul.mubr.msk.bf16.gmra.mrb[24].mxu1 %vm325_vm1, %v11754_v36  ;;  %v3395_v27 = vor.u32 %v3394_v13, %v3391_v24  ;;  %v7717_v20 = vsel %vm11941_vm4, %v7712_v2, %v7716_v62  ;;  %v7732_v35 = vshll.u32 %v10123_v7, 16  ;;  %v7738_v36 = vshll.u32 %v10124_v52, 16  ;;  %v11758_v62 = vld [vmem:[%s11822_s26 + $0x318] sm:$0xff]   ;;  %v9544_v7 = vld [vmem:[%s11822_s26 + $0x254] sm:$0x1] }
 0x1d5   : > { %10783 = vmatprep.mubr.msk.bf16.mxu1 %vm325_vm1, %v11756_v50  ;;  %v7727_v0 = vsel %vm11941_vm4, %v7722_v22, %v7726_v1  ;;  %v3405_v50 = vor.u32 %v3404_v31, %v3400_v26  ;;  %v3410_v28 = vrot.slane %v3408_v40, 5  ;;  %v7731_v56 = vrot.slane %v7729_v33, 4  ;;  %v10126_v2 = vld [vmem:[%s11822_s26 + $0x258] sm:$0xf] }
 0x1d6   : > { %v13029_v46 = vcombine.low %v7717_v20, %v7727_v0  ;;  %v3396_v59 = vrot.slane %v3395_v27, 4  ;;  %v7734_v58 = vrot.slane %v7732_v35, 5  ;;  %v7740_v54 = vrot.slane %v7738_v36, 5  ;;  %v10127_v0 = vld [vmem:[%s11822_s26 + $0x25c] sm:$0xf] }
 0x1d7   : > { %11052 = vmatmul.mubr.msk.bf16.gmra.mrb[24].mxu0 %vm325_vm1, %v11755_v61  ;;  %v7742_v63 = vshrl.u32 %v10124_v52, 16  ;;  %v3406_v3 = vrot.slane %v3405_v50, 4  ;;  %v7748_v21 = vshll.u32 %v10125_v34, 16  ;;  %v3413_v61 = vshrl.u32 %v9542_v44, 16 }
 0x1d8   : > { %11055 = vmatprep.mubr.msk.bf16.mxu0 %vm325_vm1, %v11757_v5  ;;  %v3401_v1 = vsel %vm11941_vm4, %v3396_v59, %v3400_v26  ;;  %v7735_v12 = vor.u32 %v7734_v58, %v7731_v56  ;;  %v3416_v13 = vshll.u32 %v9542_v44, 16  ;;  %v3422_v15 = vshll.u32 %v9543_v11, 16  ;;  %v11759_v5 = vld [vmem:[%s11822_s26 + $0x324] sm:$0xff]  }
 0x1d9   : > { %v7744_v24 = vrot.slane %v7742_v63, 4  ;;  %v3411_v22 = vsel %vm11941_vm4, %v3406_v3, %v3410_v28  ;;  %v7750_v27 = vrot.slane %v7748_v21, 5  ;;  %v3415_v31 = vrot.slane %v3413_v61, 4  ;;  %v9579_v61 = vld [vmem:[%s11822_s26 + $0x268] sm:$0xf] }
 0x1da   : > { %v3426_v52 = vshrl.u32 %v9543_v11, 16  ;;  %v13042_v26 = vcombine.low %v3401_v1, %v3411_v22  ;;  %v7736_v40 = vrot.slane %v7735_v12, 4  ;;  %v3418_v20 = vrot.slane %v3416_v13, 5  ;;  %v10128_v11 = vld [vmem:[%s11822_s26 + $0x260] sm:$0x1] }
 0x1db   : > { %v7745_v33 = vor.u32 %v7744_v24, %v7740_v54  ;;  %v3424_v34 = vrot.slane %v3422_v15, 5  ;;  %v3432_v36 = vshll.u32 %v9544_v7, 16  ;;  %v7753_v44 = vshrl.u32 %v10126_v2, 16 }
 0x1dc   : > { %10784 = vmatmul.mubr.msk.bf16.gmra.mrb[28].mxu1 %vm325_vm1, %v11758_v62  ;;  %v3428_v35 = vrot.slane %v3426_v52, 4  ;;  %v7741_v59 = vsel %vm11941_vm4, %v7736_v40, %v7740_v54  ;;  %v3419_v28 = vor.u32 %v3418_v20, %v3415_v31  ;;  %v7756_v62 = vshll.u32 %v10126_v2, 16  ;;  %v10162_v20 = vld [vmem:[%s11822_s26 + $0x270] sm:$0xf] }
 0x1dd   : > { %10789 = vmatprep.mubr.msk.bf16.mxu1 %vm325_vm1, %v12650_v39  ;;  %v7746_v50 = vrot.slane %v7745_v33, 4  ;;  %v3434_v58 = vrot.slane %v3432_v36, 5  ;;  %v7755_v63 = vrot.slane %v7753_v44, 4  ;;  %v7762_v1 = vshll.u32 %v10127_v0, 16  ;;  %v9578_v39 = vld [vmem:[%s11822_s26 + $0x264] sm:$0xf] }
 0x1de   : > { %v3429_v56 = vor.u32 %v3428_v35, %v3424_v34  ;;  %v3420_v54 = vrot.slane %v3419_v28, 4  ;;  %v7758_v21 = vrot.slane %v7756_v62, 5  ;;  %v7766_v7 = vshrl.u32 %v10127_v0, 16  ;;  %v10163_v44 = vld [vmem:[%s11822_s26 + $0x274] sm:$0xf] }
 0x1df   : > { %11056 = vmatmul.mubr.msk.bf16.gmra.mrb[28].mxu0 %vm325_vm1, %v11759_v5  ;;  %v7751_v3 = vsel %vm11941_vm4, %v7746_v50, %v7750_v27  ;;  %v7764_v13 = vrot.slane %v7762_v1, 5  ;;  %v7772_v15 = vshll.u32 %v10128_v11, 16  ;;  %v3779_v31 = vshrl.u32 %v9578_v39, 16 }
 0x1e0   : > { %11061 = vmatprep.mubr.msk.bf16.mxu0 %vm325_vm1, %v12676_v37  ;;  %v13057_v12 = vcombine.low %v7741_v59, %v7751_v3  ;;  %v3430_v24 = vrot.slane %v3429_v56, 4  ;;  %v3425_v2 = vsel %vm11941_vm4, %v3420_v54, %v3424_v34  ;;  %v7759_v5 = vor.u32 %v7758_v21, %v7755_v63  ;;  %v9580_v37 = vld [vmem:[%s11822_s26 + $0x26c] sm:$0x1]  ;;  %v10164_v56 = vld [vmem:[%s11822_s26 + $0x278] sm:$0x1] }
 0x1e1   : > { %v7768_v22 = vrot.slane %v7766_v7, 4  ;;  %v7774_v52 = vrot.slane %v7772_v15, 5  ;;  %v3782_v40 = vshll.u32 %v9578_v39, 16  ;;  %v3788_v33 = vshll.u32 %v9579_v61, 16 }
 0x1e2   : > { %v3435_v27 = vsel %vm11941_vm4, %v3430_v24, %v3434_v58  ;;  %v7760_v35 = vrot.slane %v7759_v5, 4  ;;  %v3781_v34 = vrot.slane %v3779_v31, 4  ;;  %v3792_v28 = vshrl.u32 %v9579_v61, 16  ;;  %v9582_v24 = vld [vmem:[%s11822_s26 + $0x274] sm:$0xf] }
 0x1e3   : > { %v13067_v0 = vcombine.low %v3425_v2, %v3435_v27  ;;  %v7769_v36 = vor.u32 %v7768_v22, %v7764_v13  ;;  %v3784_v59 = vrot.slane %v3782_v40, 5  ;;  %v3790_v50 = vrot.slane %v3788_v33, 5  ;;  %v9583_v27 = vld [vmem:[%s11822_s26 + $0x278] sm:$0x1] }
 0x1e4   : > { %10790 = vmatmul.mubr.msk.bf16.vlgmr.msra.gmra.mrb[0].mxu1 %vm325_vm1, %v12693_v51  ;;  %v3798_v11 = vshll.u32 %v9580_v37, 16  ;;  %v7765_v62 = vsel %vm11941_vm4, %v7760_v35, %v7764_v13  ;;  %v8119_v58 = vshrl.u32 %v10162_v20, 16  ;;  %v8122_v63 = vshll.u32 %v10162_v20, 16 }
 0x1e5   : > { %10822 = vmatpush3.bf16.msra.mxu1 %v12658_v45  ;;  %10793 = vmatprep.mubr.msk.bf16.mxu1 %vm325_vm1, %v12721_v53  ;;  %v7770_v51 = vrot.slane %v7769_v36, 4  ;;  %v3785_v45 = vor.u32 %v3784_v59, %v3781_v34  ;;  %v3794_v1 = vrot.slane %v3792_v28, 4  ;;  %v8128_v3 = vshll.u32 %v10163_v44, 16  ;;  %v9581_v53 = vld [vmem:[%s11822_s26 + $0x270] sm:$0xf] }
 0x1e6   : > { %v3800_v39 = vrot.slane %v3798_v11, 5  ;;  %v8121_v21 = vrot.slane %v8119_v58, 4  ;;  %v8124_v7 = vrot.slane %v8122_v63, 5  ;;  %v8132_v61 = vshrl.u32 %v10163_v44, 16  ;;  %v10165_v34 = vld [vmem:[%s11822_s26 + $0x27c] sm:$0xf] }
 0x1e7   : > { %11062 = vmatmul.mubr.msk.bf16.vlgmr.msra.gmra.mrb[0].mxu0 %vm325_vm1, %v12706_v30  ;;  %v7775_v54 = vsel %vm11941_vm4, %v7770_v51, %v7774_v52  ;;  %v3786_v30 = vrot.slane %v3785_v45, 4  ;;  %v3795_v15 = vor.u32 %v3794_v1, %v3790_v50  ;;  %v8130_v2 = vrot.slane %v8128_v3, 5  ;;  %v10166_v11 = vld [vmem:[%s11822_s26 + $0x280] sm:$0xf]  ;;  %v10167_v63 = vld [vmem:[%s11822_s26 + $0x284] sm:$0x1] }
 0x1e8   : > { %11094 = vmatpush3.bf16.msra.mxu0 %v12684_v57  ;;  %11065 = vmatprep.mubr.msk.bf16.mxu0 %vm325_vm1, %v12734_v42  ;;  %v13085_v13 = vcombine.low %v7765_v62, %v7775_v54  ;;  %v8125_v5 = vor.u32 %v8124_v7, %v8121_v21  ;;  %v8134_v22 = vrot.slane %v8132_v61, 4  ;;  %v8138_v57 = vshll.u32 %v10164_v56, 16  ;;  %v9584_v21 = vld [vmem:[%s11822_s26 + $0x27c] sm:$0xf] }
 0x1e9   : > { %v3803_v37 = vshrl.u32 %v9581_v53, 16  ;;  %v3791_v42 = vsel %vm11941_vm4, %v3786_v30, %v3790_v50  ;;  %v3796_v31 = vrot.slane %v3795_v15, 4  ;;  %v3806_v52 = vshll.u32 %v9581_v53, 16  ;;  %v9585_v30 = vld [vmem:[%s11822_s26 + $0x280] sm:$0xf] }
 0x1ea   : > { %v3812_v40 = vshll.u32 %v9582_v24, 16  ;;  %v8126_v33 = vrot.slane %v8125_v5, 4  ;;  %v8135_v20 = vor.u32 %v8134_v22, %v8130_v2  ;;  %v8140_v35 = vrot.slane %v8138_v57, 5 }
 0x1eb   : > { %v3805_v36 = vrot.slane %v3803_v37, 4  ;;  %v3801_v44 = vsel %vm11941_vm4, %v3796_v31, %v3800_v39  ;;  %v3808_v59 = vrot.slane %v3806_v52, 5  ;;  %v3816_v28 = vshrl.u32 %v9582_v24, 16 }
 0x1ec   : > { %10794 = vmatmul.mubr.msk.bf16.gmra.mrb[4].mxu1 %vm325_vm1, %v12747_v4  ;;  %v3814_v50 = vrot.slane %v3812_v40, 5  ;;  %v13098_v62 = vcombine.low %v3791_v42, %v3801_v44  ;;  %v8131_v4 = vsel %vm11941_vm4, %v8126_v33, %v8130_v2  ;;  %v8136_v51 = vrot.slane %v8135_v20, 4  ;;  %v9586_v40 = vld [vmem:[%s11822_s26 + $0x284] sm:$0x1]  ;;  %v10168_v20 = vld [vmem:[%s11822_s26 + $0x288] sm:$0xf] }
 0x1ed   : > { %10797 = vmatprep.mubr.msk.bf16.mxu1 %vm325_vm1, %v12773_v55  ;;  %v3822_v56 = vshll.u32 %v9583_v27, 16  ;;  %v3809_v55 = vor.u32 %v3808_v59, %v3805_v36  ;;  %v3818_v58 = vrot.slane %v3816_v28, 4  ;;  %v8143_v45 = vshrl.u32 %v10165_v34, 16  ;;  %v10169_v59 = vld [vmem:[%s11822_s26 + $0x28c] sm:$0xf] }
 0x1ee   : > { %v8146_v1 = vshll.u32 %v10165_v34, 16  ;;  %v8141_v39 = vsel %vm11941_vm4, %v8136_v51, %v8140_v35  ;;  %v8152_v53 = vshll.u32 %v10166_v11, 16  ;;  %v8156_v54 = vshrl.u32 %v10166_v11, 16 }
 0x1ef   : > { %11066 = vmatmul.mubr.msk.bf16.gmra.mrb[4].mxu0 %vm325_vm1, %v12760_v29  ;;  %v3824_v3 = vrot.slane %v3822_v56, 5  ;;  %v13110_v7 = vcombine.low %v8131_v4, %v8141_v39  ;;  %v3810_v61 = vrot.slane %v3809_v55, 4  ;;  %v3819_v29 = vor.u32 %v3818_v58, %v3814_v50  ;;  %v9587_v39 = vld [vmem:[%s11822_s26 + $0x288] sm:$0xf] }
 0x1f0   : > { %11069 = vmatprep.mubr.msk.bf16.mxu0 %vm325_vm1, %v12786_v19  ;;  %v8145_v24 = vrot.slane %v8143_v45, 4  ;;  %v8148_v15 = vrot.slane %v8146_v1, 5  ;;  %v8154_v2 = vrot.slane %v8152_v53, 5  ;;  %v8158_v5 = vrot.slane %v8156_v54, 4 }
 0x1f1   : > { %v8162_v22 = vshll.u32 %v10167_v63, 16  ;;  %v3815_v19 = vsel %vm11941_vm4, %v3810_v61, %v3814_v50  ;;  %v3820_v57 = vrot.slane %v3819_v29, 4  ;;  %v3827_v37 = vshrl.u32 %v9584_v21, 16  ;;  %v10170_v63 = vld [vmem:[%s11822_s26 + $0x290] sm:$0x1] }
 0x1f2   : > { %v3830_v42 = vshll.u32 %v9584_v21, 16  ;;  %v8149_v31 = vor.u32 %v8148_v15, %v8145_v24  ;;  %v8159_v27 = vor.u32 %v8158_v5, %v8154_v2  ;;  %v3836_v33 = vshll.u32 %v9585_v30, 16  ;;  %v9588_v21 = vld [vmem:[%s11822_s26 + $0x28c] sm:$0xf]  ;;  %v9589_v5 = vld [vmem:[%s11822_s26 + $0x290] sm:$0x1] }
 0x1f3   : > { %v8164_v52 = vrot.slane %v8162_v22, 5  ;;  %v3825_v35 = vsel %vm11941_vm4, %v3820_v57, %v3824_v3  ;;  %v3829_v36 = vrot.slane %v3827_v37, 4  ;;  %v3840_v44 = vshrl.u32 %v9585_v30, 16 }
 0x1f4   : > { %10798 = vmatmul.mubr.msk.bf16.gmra.mrb[8].mxu1 %vm325_vm1, %v12802_v60  ;;  %v3832_v34 = vrot.slane %v3830_v42, 5  ;;  %v13124_v50 = vcombine.low %v3815_v19, %v3825_v35  ;;  %v8150_v60 = vrot.slane %v8149_v31, 4  ;;  %v8160_v28 = vrot.slane %v8159_v27, 4  ;;  %v10171_v31 = vld [vmem:[%s11822_s26 + $0x294] sm:$0xf] }
 0x1f5   : > { %10801 = vmatprep.mubr.msk.bf16.mxu1 %vm325_vm1, %v12827_v17  ;;  %v3838_v11 = vrot.slane %v3836_v33, 5  ;;  %v3842_v17 = vrot.slane %v3840_v44, 4  ;;  %v3846_v51 = vshll.u32 %v9586_v40, 16  ;;  %v8167_v56 = vshrl.u32 %v10168_v20, 16 }
 0x1f6   : > { %v3833_v4 = vor.u32 %v3832_v34, %v3829_v36  ;;  %v8155_v55 = vsel %vm11941_vm4, %v8150_v60, %v8154_v2  ;;  %v8165_v58 = vsel %vm11941_vm4, %v8160_v28, %v8164_v52  ;;  %v8170_v45 = vshll.u32 %v10168_v20, 16  ;;  %v10172_v34 = vld [vmem:[%s11822_s26 + $0x298] sm:$0xf] }
 0x1f7   : > { %11070 = vmatmul.mubr.msk.bf16.gmra.mrb[8].mxu0 %vm325_vm1, %v12815_v23  ;;  %v8176_v1 = vshll.u32 %v10169_v59, 16  ;;  %v13136_v23 = vcombine.low %v8155_v55, %v8165_v58  ;;  %v3843_v53 = vor.u32 %v3842_v17, %v3838_v11  ;;  %v3848_v54 = vrot.slane %v3846_v51, 5  ;;  %v10173_v17 = vld [vmem:[%s11822_s26 + $0x29c] sm:$0x1] }
 0x1f8   : > { %11073 = vmatprep.mubr.msk.bf16.mxu0 %vm325_vm1, %v12841_v18  ;;  %v3834_v3 = vrot.slane %v3833_v4, 4  ;;  %v8169_v61 = vrot.slane %v8167_v56, 4  ;;  %v8172_v18 = vrot.slane %v8170_v45, 5  ;;  %v8180_v24 = vshrl.u32 %v10169_v59, 16 }
 0x1f9   : > { %v8178_v29 = vrot.slane %v8176_v1, 5  ;;  %v3844_v15 = vrot.slane %v3843_v53, 4  ;;  %v8186_v2 = vshll.u32 %v10170_v63, 16  ;;  %v3851_v22 = vshrl.u32 %v9587_v39, 16  ;;  %v9590_v63 = vld [vmem:[%s11822_s26 + $0x294] sm:$0xf] }
 0x1fa   : > { %v3839_v30 = vsel %vm11941_vm4, %v3834_v3, %v3838_v11  ;;  %v8173_v19 = vor.u32 %v8172_v18, %v8169_v61  ;;  %v8182_v57 = vrot.slane %v8180_v24, 4  ;;  %v3854_v37 = vshll.u32 %v9587_v39, 16 }
 0x1fb   : > { %v3860_v42 = vshll.u32 %v9588_v21, 16  ;;  %v3849_v27 = vsel %vm11941_vm4, %v3844_v15, %v3848_v54  ;;  %v8188_v52 = vrot.slane %v8186_v2, 5  ;;  %v3853_v40 = vrot.slane %v3851_v22, 4 }
 0x1fc   : > { %10802 = vmatmul.mubr.msk.bf16.gmra.mrb[12].mxu1 %vm325_vm1, %v12852_v41  ;;  %v3864_v33 = vshrl.u32 %v9588_v21, 16  ;;  %v13149_v20 = vcombine.low %v3839_v30, %v3849_v27  ;;  %v8174_v35 = vrot.slane %v8173_v19, 4  ;;  %v8183_v36 = vor.u32 %v8182_v57, %v8178_v29  ;;  %v9592_v30 = vld [vmem:[%s11822_s26 + $0x29c] sm:$0x1]  ;;  %v10174_v57 = vld [vmem:[%s11822_s26 + $0x2a0] sm:$0xf] }
 0x1fd   : > { %10805 = vmatprep.mubr.msk.bf16.mxu1 %vm325_vm1, %v12886_v48  ;;  %v3856_v41 = vrot.slane %v3854_v37, 5  ;;  %v3862_v44 = vrot.slane %v3860_v42, 5  ;;  %v3870_v48 = vshll.u32 %v9589_v5, 16  ;;  %v8191_v60 = vshrl.u32 %v10171_v31, 16  ;;  %v10175_v27 = vld [vmem:[%s11822_s26 + $0x2a4] sm:$0xf] }
 0x1fe   : > { %v3866_v59 = vrot.slane %v3864_v33, 4  ;;  %v8179_v28 = vsel %vm11941_vm4, %v8174_v35, %v8178_v29  ;;  %v8184_v11 = vrot.slane %v8183_v36, 4  ;;  %v8194_v51 = vshll.u32 %v10171_v31, 16 }
 0x1ff   : > { %11074 = vmatmul.mubr.msk.bf16.gmra.mrb[12].mxu0 %vm325_vm1, %v12868_v14  ;;  %v3857_v4 = vor.u32 %v3856_v41, %v3853_v40  ;;  %v3872_v55 = vrot.slane %v3870_v48, 5  ;;  %v8193_v58 = vrot.slane %v8191_v60, 4  ;;  %v8200_v14 = vshll.u32 %v10172_v34, 16  ;;  %v10176_v41 = vld [vmem:[%s11822_s26 + $0x2a8] sm:$0x1] }
 0x200   : > { %11077 = vmatprep.mubr.msk.bf16.mxu0 %vm325_vm1, %v12898_v10  ;;  %v3867_v56 = vor.u32 %v3866_v59, %v3862_v44  ;;  %v8189_v45 = vsel %vm11941_vm4, %v8184_v11, %v8188_v52  ;;  %v8196_v39 = vrot.slane %v8194_v51, 5  ;;  %v8204_v3 = vshrl.u32 %v10172_v34, 16  ;;  %v9591_v10 = vld [vmem:[%s11822_s26 + $0x298] sm:$0xf] }
 0x201   : > { %v3858_v1 = vrot.slane %v3857_v4, 4  ;;  %v13163_v53 = vcombine.low %v8179_v28, %v8189_v45  ;;  %v8202_v21 = vrot.slane %v8200_v14, 5  ;;  %v8210_v61 = vshll.u32 %v10173_v17, 16 }
 0x202   : > { %v3868_v54 = vrot.slane %v3867_v56, 4  ;;  %v8197_v29 = vor.u32 %v8196_v39, %v8193_v58  ;;  %v8206_v24 = vrot.slane %v8204_v3, 4  ;;  %v3875_v15 = vshrl.u32 %v9590_v63, 16 }
 0x203   : > { %v3863_v18 = vsel %vm11941_vm4, %v3858_v1, %v3862_v44  ;;  %v8212_v5 = vrot.slane %v8210_v61, 5  ;;  %v3878_v22 = vshll.u32 %v9590_v63, 16  ;;  %v3884_v19 = vshll.u32 %v9591_v10, 16 }
 0x204   : > { %10806 = vmatmul.mubr.msk.bf16.gmra.mrb[16].mxu1 %vm325_vm1, %v12912_v49  ;;  %v3873_v2 = vsel %vm11941_vm4, %v3868_v54, %v3872_v55  ;;  %v8198_v37 = vrot.slane %v8197_v29, 4  ;;  %v8207_v42 = vor.u32 %v8206_v24, %v8202_v21  ;;  %v3877_v31 = vrot.slane %v3875_v15, 4  ;;  %v9595_v54 = vld [vmem:[%s11822_s26 + $0x2a8] sm:$0x1] }
 0x205   : > { %10809 = vmatprep.mubr.msk.bf16.mxu1 %vm325_vm1, %v12937_v43  ;;  %v13175_v49 = vcombine.low %v3863_v18, %v3873_v2  ;;  %v3880_v52 = vrot.slane %v3878_v22, 5  ;;  %v3886_v43 = vrot.slane %v3884_v19, 5  ;;  %v3888_v40 = vshrl.u32 %v9591_v10, 16  ;;  %v10178_v22 = vld [vmem:[%s11822_s26 + $0x2b0] sm:$0xf] }
 0x206   : > { %v3894_v33 = vshll.u32 %v9592_v30, 16  ;;  %v8203_v35 = vsel %vm11941_vm4, %v8198_v37, %v8202_v21  ;;  %v8208_v36 = vrot.slane %v8207_v42, 4  ;;  %v8215_v34 = vshrl.u32 %v10174_v57, 16  ;;  %v10177_v30 = vld [vmem:[%s11822_s26 + $0x2ac] sm:$0xf] }
 0x207   : > { %11078 = vmatmul.mubr.msk.bf16.gmra.mrb[16].mxu0 %vm325_vm1, %v12924_v8  ;;  %v8218_v44 = vshll.u32 %v10174_v57, 16  ;;  %v3881_v59 = vor.u32 %v3880_v52, %v3877_v31  ;;  %v3890_v48 = vrot.slane %v3888_v40, 4  ;;  %v8224_v28 = vshll.u32 %v10175_v27, 16  ;;  %v9593_v8 = vld [vmem:[%s11822_s26 + $0x2a0] sm:$0xf] }
 0x208   : > { %11081 = vmatprep.mubr.msk.bf16.mxu0 %vm325_vm1, %v12952_v25  ;;  %v3896_v60 = vrot.slane %v3894_v33, 5  ;;  %v8213_v11 = vsel %vm11941_vm4, %v8208_v36, %v8212_v5  ;;  %v8217_v4 = vrot.slane %v8215_v34, 4  ;;  %v8228_v51 = vshrl.u32 %v10175_v27, 16  ;;  %v9594_v25 = vld [vmem:[%s11822_s26 + $0x2a4] sm:$0xf] }
 0x209   : > { %v8220_v17 = vrot.slane %v8218_v44, 5  ;;  %v13189_v56 = vcombine.low %v8203_v35, %v8213_v11  ;;  %v3882_v55 = vrot.slane %v3881_v59, 4  ;;  %v3891_v58 = vor.u32 %v3890_v48, %v3886_v43  ;;  %v10179_v27 = vld [vmem:[%s11822_s26 + $0x2b4] sm:$0x1]  ;;  %v9597_v48 = vld [vmem:[%s11822_s26 + $0x2b0] sm:$0xf] }
 0x20a   : > { %v8226_v14 = vrot.slane %v8224_v28, 5  ;;  %v8230_v45 = vrot.slane %v8228_v51, 4  ;;  %v8234_v1 = vshll.u32 %v10176_v41, 16  ;;  %v3899_v39 = vshrl.u32 %v9593_v8, 16 }
 0x20b   : > { %v8221_v63 = vor.u32 %v8220_v17, %v8217_v4  ;;  %v3887_v3 = vsel %vm11941_vm4, %v3882_v55, %v3886_v43  ;;  %v3892_v10 = vrot.slane %v3891_v58, 4  ;;  %v3902_v21 = vshll.u32 %v9593_v8, 16 }
 0x20c   : > { %10810 = vmatmul.mubr.msk.bf16.gmra.mrb[20].mxu1 %vm325_vm1, %v12963_v47  ;;  %v3908_v61 = vshll.u32 %v9594_v25, 16  ;;  %v8231_v29 = vor.u32 %v8230_v45, %v8226_v14  ;;  %v8236_v24 = vrot.slane %v8234_v1, 5  ;;  %v3901_v47 = vrot.slane %v3899_v39, 4 }
 0x20d   : > { %10813 = vmatprep.mubr.msk.bf16.mxu1 %vm325_vm1, %v12993_v9  ;;  %v8222_v18 = vrot.slane %v8221_v63, 4  ;;  %v3897_v9 = vsel %vm11941_vm4, %v3892_v10, %v3896_v60  ;;  %v3904_v15 = vrot.slane %v3902_v21, 5  ;;  %v3912_v5 = vshrl.u32 %v9594_v25, 16  ;;  %v9598_v63 = vld [vmem:[%s11822_s26 + $0x2b4] sm:$0x1] }
 0x20e   : > { %v3910_v2 = vrot.slane %v3908_v61, 5  ;;  %v13206_v19 = vcombine.low %v3887_v3, %v3897_v9  ;;  %v8232_v37 = vrot.slane %v8231_v29, 4  ;;  %v3918_v42 = vshll.u32 %v9595_v54, 16  ;;  %v10181_v10 = vld [vmem:[%s11822_s26 + $0x2bc] sm:$0xf] }
 0x20f   : > { %11082 = vmatmul.mubr.msk.bf16.gmra.mrb[20].mxu0 %vm325_vm1, %v12978_v38  ;;  %v8227_v57 = vsel %vm11941_vm4, %v8222_v18, %v8226_v14  ;;  %v3905_v38 = vor.u32 %v3904_v15, %v3901_v47  ;;  %v3914_v31 = vrot.slane %v3912_v5, 4  ;;  %v8239_v52 = vshrl.u32 %v10177_v30, 16  ;;  %v10182_v15 = vld [vmem:[%s11822_s26 + $0x2c0] sm:$0x1] }
 0x210   : > { %11085 = vmatprep.mubr.msk.bf16.mxu0 %vm325_vm1, %v13003_v32  ;;  %v8242_v43 = vshll.u32 %v10177_v30, 16  ;;  %v8237_v40 = vsel %vm11941_vm4, %v8232_v37, %v8236_v24  ;;  %v3920_v33 = vrot.slane %v3918_v42, 5  ;;  %v8248_v35 = vshll.u32 %v10178_v22, 16  ;;  %v9596_v32 = vld [vmem:[%s11822_s26 + $0x2ac] sm:$0xf] }
 0x211   : > { %v8252_v36 = vshrl.u32 %v10178_v22, 16  ;;  %v13214_v41 = vcombine.low %v8227_v57, %v8237_v40  ;;  %v3906_v34 = vrot.slane %v3905_v38, 4  ;;  %v3915_v44 = vor.u32 %v3914_v31, %v3910_v2  ;;  %v9600_v38 = vld [vmem:[%s11822_s26 + $0x2bc] sm:$0xf] }
 0x212   : > { %v8241_v59 = vrot.slane %v8239_v52, 4  ;;  %v8244_v60 = vrot.slane %v8242_v43, 5  ;;  %v8250_v28 = vrot.slane %v8248_v35, 5  ;;  %v8258_v11 = vshll.u32 %v10179_v27, 16 }
 0x213   : > { %v8254_v8 = vrot.slane %v8252_v36, 4  ;;  %v3911_v4 = vsel %vm11941_vm4, %v3906_v34, %v3910_v2  ;;  %v3916_v17 = vrot.slane %v3915_v44, 4  ;;  %v3923_v51 = vshrl.u32 %v9596_v32, 16  ;;  %v9601_v36 = vld [vmem:[%s11822_s26 + $0x2c0] sm:$0x1] }
 0x214   : > { %10814 = vmatmul.mubr.msk.bf16.gmra.mrb[24].mxu1 %vm325_vm1, %v13019_v6  ;;  %v3926_v25 = vshll.u32 %v9596_v32, 16  ;;  %v8245_v55 = vor.u32 %v8244_v60, %v8241_v59  ;;  %v8260_v14 = vrot.slane %v8258_v11, 5  ;;  %v3932_v45 = vshll.u32 %v9597_v48, 16  ;;  %v10180_v6 = vld [vmem:[%s11822_s26 + $0x2b8] sm:$0xf] }
 0x215   : > { %10817 = vmatprep.mubr.msk.bf16.mxu1 %vm325_vm1, %v13042_v26  ;;  %v8255_v58 = vor.u32 %v8254_v8, %v8250_v28  ;;  %v3921_v1 = vsel %vm11941_vm4, %v3916_v17, %v3920_v33  ;;  %v3925_v26 = vrot.slane %v3923_v51, 4  ;;  %v3936_v3 = vshrl.u32 %v9597_v48, 16 }
 0x216   : > { %v3928_v39 = vrot.slane %v3926_v25, 5  ;;  %v13232_v54 = vcombine.low %v3911_v4, %v3921_v1  ;;  %v8246_v21 = vrot.slane %v8245_v55, 4  ;;  %v3934_v18 = vrot.slane %v3932_v45, 5  ;;  %v10184_v25 = vld [vmem:[%s11822_s26 + $0x2c8] sm:$0xf] }
 0x217   : > { %11086 = vmatmul.mubr.msk.bf16.gmra.mrb[24].mxu0 %vm325_vm1, %v13029_v46  ;;  %v8256_v61 = vrot.slane %v8255_v58, 4  ;;  %v3938_v46 = vrot.slane %v3936_v3, 4  ;;  %v3942_v24 = vshll.u32 %v9598_v63, 16  ;;  %v8263_v47 = vshrl.u32 %v10180_v6, 16  ;;  %v10185_v1 = vld [vmem:[%s11822_s26 + $0x2cc] sm:$0x1] }
 0x218   : > { %11089 = vmatprep.mubr.msk.bf16.mxu0 %vm325_vm1, %v13057_v12  ;;  %v3929_v29 = vor.u32 %v3928_v39, %v3925_v26  ;;  %v8251_v30 = vsel %vm11941_vm4, %v8246_v21, %v8250_v28  ;;  %v8266_v2 = vshll.u32 %v10180_v6, 16  ;;  %v8272_v5 = vshll.u32 %v10181_v10, 16  ;;  %v9599_v12 = vld [vmem:[%s11822_s26 + $0x2b8] sm:$0xf]  ;;  %v9602_v21 = vld [vmem:[%s11822_s26 + $0x2c4] sm:$0xf] }
 0x219   : > { %v8261_v9 = vsel %vm11941_vm4, %v8256_v61, %v8260_v14  ;;  %v3939_v37 = vor.u32 %v3938_v46, %v3934_v18  ;;  %v3944_v42 = vrot.slane %v3942_v24, 5  ;;  %v8265_v31 = vrot.slane %v8263_v47, 4  ;;  %v9603_v24 = vld [vmem:[%s11822_s26 + $0x2c8] sm:$0xf] }
 0x21a   : > { %v13240_v22 = vcombine.low %v8251_v30, %v8261_v9  ;;  %v3930_v57 = vrot.slane %v3929_v29, 4  ;;  %v8268_v27 = vrot.slane %v8266_v2, 5  ;;  %v8274_v52 = vrot.slane %v8272_v5, 5 }
 0x21b   : > { %v8276_v43 = vshrl.u32 %v10181_v10, 16  ;;  %v3940_v33 = vrot.slane %v3939_v37, 4  ;;  %v8282_v35 = vshll.u32 %v10182_v15, 16  ;;  %v3947_v32 = vshrl.u32 %v9599_v12, 16 }
 0x21c   : > { %10818 = vmatmul.mubr.msk.bf16.gmra.mrb[28].mxu1 %vm325_vm1, %v13067_v0  ;;  %v3935_v40 = vsel %vm11941_vm4, %v3930_v57, %v3934_v18  ;;  %v8269_v34 = vor.u32 %v8268_v27, %v8265_v31  ;;  %v3950_v59 = vshll.u32 %v9599_v12, 16  ;;  %v3956_v48 = vshll.u32 %v9600_v38, 16  ;;  %v10183_v0 = vld [vmem:[%s11822_s26 + $0x2c4] sm:$0xf]  ;;  %v9604_v12 = vld [vmem:[%s11822_s26 + $0x2cc] sm:$0x1] }
 0x21d   : > { %10823 = vmatprep.mubr.msk.bf16.mxu1 %vm325_vm1, %v13098_v62  ;;  %v8278_v44 = vrot.slane %v8276_v43, 4  ;;  %v3945_v60 = vsel %vm11941_vm4, %v3940_v33, %v3944_v42  ;;  %v8284_v62 = vrot.slane %v8282_v35, 5  ;;  %v3949_v28 = vrot.slane %v3947_v32, 4  ;;  %v10186_v31 = vld [vmem:[%s11822_s26 + $0x2d0] sm:$0xf] }
 0x21e   : > { %v3960_v8 = vshrl.u32 %v9600_v38, 16  ;;  %v13257_v11 = vcombine.low %v3935_v40, %v3945_v60  ;;  %v8270_v4 = vrot.slane %v8269_v34, 4  ;;  %v3952_v51 = vrot.slane %v3950_v59, 5  ;;  %v10187_v33 = vld [vmem:[%s11822_s26 + $0x2d4] sm:$0xf] }
 0x21f   : > { %11090 = vmatmul.mubr.msk.bf16.gmra.mrb[28].mxu0 %vm325_vm1, %v13085_v13  ;;  %v8279_v17 = vor.u32 %v8278_v44, %v8274_v52  ;;  %v3958_v55 = vrot.slane %v3956_v48, 5  ;;  %v3966_v13 = vshll.u32 %v9601_v36, 16  ;;  %v8287_v14 = vshrl.u32 %v10183_v0, 16  ;;  %v10188_v59 = vld [vmem:[%s11822_s26 + $0x2d8] sm:$0x1] }
 0x220   : > { %11095 = vmatprep.mubr.msk.bf16.mxu0 %vm325_vm1, %v13110_v7  ;;  %v3962_v58 = vrot.slane %v3960_v8, 4  ;;  %v8275_v63 = vsel %vm11941_vm4, %v8270_v4, %v8274_v52  ;;  %v3953_v6 = vor.u32 %v3952_v51, %v3949_v28  ;;  %v8290_v26 = vshll.u32 %v10183_v0, 16  ;;  %v9605_v8 = vld [vmem:[%s11822_s26 + $0x2d0] sm:$0xf] }
 0x221   : > { %v8280_v45 = vrot.slane %v8279_v17, 4  ;;  %v3968_v39 = vrot.slane %v3966_v13, 5  ;;  %v8289_v3 = vrot.slane %v8287_v14, 4  ;;  %v8296_v10 = vshll.u32 %v10184_v25, 16 }
 0x222   : > { %v3963_v7 = vor.u32 %v3962_v58, %v3958_v55  ;;  %v3954_v18 = vrot.slane %v3953_v6, 4  ;;  %v8292_v29 = vrot.slane %v8290_v26, 5  ;;  %v8300_v46 = vshrl.u32 %v10184_v25, 16 }
 0x223   : > { %v8285_v61 = vsel %vm11941_vm4, %v8280_v45, %v8284_v62  ;;  %v8298_v9 = vrot.slane %v8296_v10, 5  ;;  %v8306_v15 = vshll.u32 %v10185_v1, 16  ;;  %v3971_v57 = vshrl.u32 %v9602_v21, 16 }
 0x224   : > { %10824 = vmatmul.mubr.msk.bf16.vlgmr.msra.gmra.mrb[0].mxu1 %vm325_vm1, %v13124_v50  ;;  %v13271_v47 = vcombine.low %v8275_v63, %v8285_v61  ;;  %v3964_v30 = vrot.slane %v3963_v7, 4  ;;  %v3959_v2 = vsel %vm11941_vm4, %v3954_v18, %v3958_v55  ;;  %v8293_v50 = vor.u32 %v8292_v29, %v8289_v3  ;;  %v9606_v55 = vld [vmem:[%s11822_s26 + $0x2d4] sm:$0xf]  ;;  %v10189_v29 = vld [vmem:[%s11822_s26 + $0x2dc] sm:$0xf] }
 0x225   : > { %10827 = vmatprep.mubr.msk.bf16.mxu1 %vm325_vm1, %v13149_v20  ;;  %v8302_v5 = vrot.slane %v8300_v46, 4  ;;  %v8308_v20 = vrot.slane %v8306_v15, 5  ;;  %v3974_v42 = vshll.u32 %v9602_v21, 16  ;;  %v3980_v38 = vshll.u32 %v9603_v24, 16 }
 0x226   : > { %v3969_v37 = vsel %vm11941_vm4, %v3964_v30, %v3968_v39  ;;  %v8294_v52 = vrot.slane %v8293_v50, 4  ;;  %v3973_v40 = vrot.slane %v3971_v57, 4  ;;  %v3984_v36 = vshrl.u32 %v9603_v24, 16  ;;  %v9607_v39 = vld [vmem:[%s11822_s26 + $0x2d8] sm:$0x1] }
 0x227   : > { %11096 = vmatmul.mubr.msk.bf16.vlgmr.msra.gmra.mrb[0].mxu0 %vm325_vm1, %v13136_v23  ;;  %v13283_v27 = vcombine.low %v3959_v2, %v3969_v37  ;;  %v8303_v43 = vor.u32 %v8302_v5, %v8298_v9  ;;  %v3976_v35 = vrot.slane %v3974_v42, 5  ;;  %v3982_v23 = vrot.slane %v3980_v38, 5  ;;  %v10191_v57 = vld [vmem:[%s11822_s26 + $0x2e4] sm:$0x1] }
 0x228   : > { %11099 = vmatprep.mubr.msk.bf16.mxu0 %vm325_vm1, %v13163_v53  ;;  %v3990_v32 = vshll.u32 %v9604_v12, 16  ;;  %v8299_v34 = vsel %vm11941_vm4, %v8294_v52, %v8298_v9  ;;  %v8311_v48 = vshrl.u32 %v10186_v31, 16  ;;  %v8314_v0 = vshll.u32 %v10186_v31, 16  ;;  %v10190_v9 = vld [vmem:[%s11822_s26 + $0x2e0] sm:$0xf] }
 0x229   : > { %v8304_v44 = vrot.slane %v8303_v43, 4  ;;  %v3977_v53 = vor.u32 %v3976_v35, %v3973_v40  ;;  %v3986_v60 = vrot.slane %v3984_v36, 4  ;;  %v8320_v28 = vshll.u32 %v10187_v33, 16  ;;  %v9608_v43 = vld [vmem:[%s11822_s26 + $0x2dc] sm:$0xf] }
 0x22a   : > { %v3992_v62 = vrot.slane %v3990_v32, 5  ;;  %v8313_v17 = vrot.slane %v8311_v48, 4  ;;  %v8316_v51 = vrot.slane %v8314_v0, 5  ;;  %v8324_v25 = vshrl.u32 %v10187_v33, 16  ;;  %v9609_v36 = vld [vmem:[%s11822_s26 + $0x2e0] sm:$0xf] }
 0x22b   : > { %v8309_v4 = vsel %vm11941_vm4, %v8304_v44, %v8308_v20  ;;  %v3978_v13 = vrot.slane %v3977_v53, 4  ;;  %v3987_v14 = vor.u32 %v3986_v60, %v3982_v23  ;;  %v8322_v63 = vrot.slane %v8320_v28, 5  ;;  %v9610_v28 = vld [vmem:[%s11822_s26 + $0x2e4] sm:$0x1] }
 0x22c   : > { %10828 = vmatmul.mubr.msk.bf16.gmra.mrb[4].mxu1 %vm325_vm1, %v13175_v49  ;;  %v13297_v58 = vcombine.low %v8299_v34, %v8309_v4  ;;  %v8317_v45 = vor.u32 %v8316_v51, %v8313_v17  ;;  %v8326_v6 = vrot.slane %v8324_v25, 4  ;;  %v8330_v49 = vshll.u32 %v10188_v59, 16  ;;  %v10192_v4 = vld [vmem:[%s11822_s26 + $0x2e8] sm:$0xf] }
 0x22d   : > { %10831 = vmatprep.mubr.msk.bf16.mxu1 %vm325_vm1, %v13206_v19  ;;  %v3995_v1 = vshrl.u32 %v9605_v8, 16  ;;  %v3983_v26 = vsel %vm11941_vm4, %v3978_v13, %v3982_v23  ;;  %v3988_v7 = vrot.slane %v3987_v14, 4  ;;  %v3998_v19 = vshll.u32 %v9605_v8, 16 }
 0x22e   : > { %v4004_v3 = vshll.u32 %v9606_v55, 16  ;;  %v8318_v10 = vrot.slane %v8317_v45, 4  ;;  %v8327_v21 = vor.u32 %v8326_v6, %v8322_v63  ;;  %v8332_v61 = vrot.slane %v8330_v49, 5 }
 0x22f   : > { %11100 = vmatmul.mubr.msk.bf16.gmra.mrb[4].mxu0 %vm325_vm1, %v13189_v56  ;;  %v3997_v18 = vrot.slane %v3995_v1, 4  ;;  %v3993_v56 = vsel %vm11941_vm4, %v3988_v7, %v3992_v62  ;;  %v4000_v46 = vrot.slane %v3998_v19, 5  ;;  %v4008_v30 = vshrl.u32 %v9606_v55, 16  ;;  %v10193_v55 = vld [vmem:[%s11822_s26 + $0x2ec] sm:$0xf] }
 0x230   : > { %11103 = vmatprep.mubr.msk.bf16.mxu0 %vm325_vm1, %v13214_v41  ;;  %v4006_v24 = vrot.slane %v4004_v3, 5  ;;  %v9635_v15 = vcombine.low %v3983_v26, %v3993_v56  ;;  %v8323_v2 = vsel %vm11941_vm4, %v8318_v10, %v8322_v63  ;;  %v8328_v50 = vrot.slane %v8327_v21, 4  ;;  %v9611_v10 = vld [vmem:[%s11822_s26 + $0x2e8] sm:$0xf]  ;;  %v9612_v56 = vld [vmem:[%s11822_s26 + $0x2ec] sm:$0xf] }
 0x231   : > { %v4014_v41 = vshll.u32 %v9607_v39, 16  ;;  %v4001_v5 = vor.u32 %v4000_v46, %v3997_v18  ;;  %v4010_v12 = vrot.slane %v4008_v30, 4  ;;  %v8335_v37 = vshrl.u32 %v10189_v29, 16  ;;  %v10194_v39 = vld [vmem:[%s11822_s26 + $0x2f0] sm:$0x1] }
 0x232   : > { %v8338_v20 = vshll.u32 %v10189_v29, 16  ;;  %v8333_v42 = vsel %vm11941_vm4, %v8328_v50, %v8332_v61  ;;  %v8344_v31 = vshll.u32 %v10190_v9, 16  ;;  %v8348_v52 = vshrl.u32 %v10190_v9, 16 }
 0x233   : > { %v4016_v38 = vrot.slane %v4014_v41, 5  ;;  %v10219_v40 = vcombine.low %v8323_v2, %v8333_v42  ;;  %v4002_v33 = vrot.slane %v4001_v5, 4  ;;  %v4011_v35 = vor.u32 %v4010_v12, %v4006_v24  ;;  %v9613_v41 = vld [vmem:[%s11822_s26 + $0x2f0] sm:$0x1] }
 0x234   : > { %10832 = vmatmul.mubr.msk.bf16.gmra.mrb[8].mxu1 %vm325_vm1, %v13232_v54  ;;  %v8337_v23 = vrot.slane %v8335_v37, 4  ;;  %v8340_v32 = vrot.slane %v8338_v20, 5  ;;  %v8346_v34 = vrot.slane %v8344_v31, 5  ;;  %v8350_v54 = vrot.slane %v8348_v52, 4  ;;  %v10195_v20 = vld [vmem:[%s11822_s26 + $0x2f4] sm:$0xf] }
 0x235   : > { %10835 = vmatprep.mubr.msk.bf16.mxu1 %vm325_vm1, %v13257_v11  ;;  %v8354_v44 = vshll.u32 %v10191_v57, 16  ;;  %v4007_v59 = vsel %vm11941_vm4, %v4002_v33, %v4006_v24  ;;  %v4012_v48 = vrot.slane %v4011_v35, 4  ;;  %v4019_v11 = vshrl.u32 %v9608_v43, 16 }
 0x236   : > { %v4022_v0 = vshll.u32 %v9608_v43, 16  ;;  %v8341_v53 = vor.u32 %v8340_v32, %v8337_v23  ;;  %v8351_v60 = vor.u32 %v8350_v54, %v8346_v34  ;;  %v4028_v8 = vshll.u32 %v9609_v36, 16  ;;  %v10196_v23 = vld [vmem:[%s11822_s26 + $0x2f8] sm:$0xf] }
 0x237   : > { %11104 = vmatmul.mubr.msk.bf16.gmra.mrb[8].mxu0 %vm325_vm1, %v13240_v22  ;;  %v8356_v62 = vrot.slane %v8354_v44, 5  ;;  %v4017_v17 = vsel %vm11941_vm4, %v4012_v48, %v4016_v38  ;;  %v4021_v22 = vrot.slane %v4019_v11, 4  ;;  %v4032_v25 = vshrl.u32 %v9609_v36, 16  ;;  %v10197_v48 = vld [vmem:[%s11822_s26 + $0x2fc] sm:$0x1] }
 0x238   : > { %11107 = vmatprep.mubr.msk.bf16.mxu0 %vm325_vm1, %v13271_v47  ;;  %v4024_v51 = vrot.slane %v4022_v0, 5  ;;  %v9636_v13 = vcombine.low %v4007_v59, %v4017_v17  ;;  %v8342_v14 = vrot.slane %v8341_v53, 4  ;;  %v8352_v63 = vrot.slane %v8351_v60, 4 }
 0x239   : > { %v4030_v45 = vrot.slane %v4028_v8, 5  ;;  %v4034_v6 = vrot.slane %v4032_v25, 4  ;;  %v4038_v49 = vshll.u32 %v9610_v28, 16  ;;  %v8359_v1 = vshrl.u32 %v10192_v4, 16  ;;  %v9614_v28 = vld [vmem:[%s11822_s26 + $0x2f4] sm:$0xf] }
 0x23a   : > { %v4025_v47 = vor.u32 %v4024_v51, %v4021_v22  ;;  %v8347_v26 = vsel %vm11941_vm4, %v8342_v14, %v8346_v34  ;;  %v8357_v7 = vsel %vm11941_vm4, %v8352_v63, %v8356_v62  ;;  %v8362_v19 = vshll.u32 %v10192_v4, 16  ;;  %v9615_v51 = vld [vmem:[%s11822_s26 + $0x2f8] sm:$0xf] }
 0x23b   : > { %v8368_v3 = vshll.u32 %v10193_v55, 16  ;;  %v10220_v21 = vcombine.low %v8347_v26, %v8357_v7  ;;  %v4035_v18 = vor.u32 %v4034_v6, %v4030_v45  ;;  %v4040_v29 = vrot.slane %v4038_v49, 5  ;;  %v9616_v6 = vld [vmem:[%s11822_s26 + $0x2fc] sm:$0x1] }
 0x23c   : > { %10836 = vmatmul.mubr.msk.bf16.gmra.mrb[12].mxu1 %vm325_vm1, %v13283_v27  ;;  %v4026_v61 = vrot.slane %v4025_v47, 4  ;;  %v8361_v27 = vrot.slane %v8359_v1, 4  ;;  %v8364_v46 = vrot.slane %v8362_v19, 5  ;;  %v8372_v30 = vshrl.u32 %v10193_v55, 16  ;;  %v10198_v19 = vld [vmem:[%s11822_s26 + $0x300] sm:$0xf] }
 0x23d   : > { %10839 = vmatprep.mubr.msk.bf16.mxu1 %vm325_vm1, %v9635_v15  ;;  %v8370_v24 = vrot.slane %v8368_v3, 5  ;;  %v4036_v2 = vrot.slane %v4035_v18, 4  ;;  %v8378_v50 = vshll.u32 %v10194_v39, 16  ;;  %v4043_v15 = vshrl.u32 %v9611_v10, 16  ;;  %v10199_v18 = vld [vmem:[%s11822_s26 + $0x304] sm:$0xf] }
 0x23e   : > { %v4031_v9 = vsel %vm11941_vm4, %v4026_v61, %v4030_v45  ;;  %v8365_v5 = vor.u32 %v8364_v46, %v8361_v27  ;;  %v8374_v12 = vrot.slane %v8372_v30, 4  ;;  %v4046_v57 = vshll.u32 %v9611_v10, 16 }
 0x23f   : > { %11108 = vmatmul.mubr.msk.bf16.gmra.mrb[12].mxu0 %vm325_vm1, %v13297_v58  ;;  %v4052_v37 = vshll.u32 %v9612_v56, 16  ;;  %v4041_v42 = vsel %vm11941_vm4, %v4036_v2, %v4040_v29  ;;  %v8380_v38 = vrot.slane %v8378_v50, 5  ;;  %v4045_v58 = vrot.slane %v4043_v15, 4 }
 0x240   : > { %11111 = vmatprep.mubr.msk.bf16.mxu0 %vm325_vm1, %v10219_v40  ;;  %v4056_v31 = vshrl.u32 %v9612_v56, 16  ;;  %v9637_v52 = vcombine.low %v4031_v9, %v4041_v42  ;;  %v8366_v43 = vrot.slane %v8365_v5, 4  ;;  %v8375_v33 = vor.u32 %v8374_v12, %v8370_v24  ;;  %v10200_v9 = vld [vmem:[%s11822_s26 + $0x308] sm:$0x1] }
 0x241   : > { %v4048_v35 = vrot.slane %v4046_v57, 5  ;;  %v4054_v36 = vrot.slane %v4052_v37, 5  ;;  %v4062_v32 = vshll.u32 %v9613_v41, 16  ;;  %v8383_v34 = vshrl.u32 %v10195_v20, 16  ;;  %v9617_v57 = vld [vmem:[%s11822_s26 + $0x300] sm:$0xf] }
 0x242   : > { %v4058_v40 = vrot.slane %v4056_v31, 4  ;;  %v8371_v54 = vsel %vm11941_vm4, %v8366_v43, %v8370_v24  ;;  %v8376_v44 = vrot.slane %v8375_v33, 4  ;;  %v8386_v11 = vshll.u32 %v10195_v20, 16 }
 0x243   : > { %v4049_v59 = vor.u32 %v4048_v35, %v4045_v58  ;;  %v4064_v53 = vrot.slane %v4062_v32, 5  ;;  %v8385_v60 = vrot.slane %v8383_v34, 4  ;;  %v8392_v62 = vshll.u32 %v10196_v23, 16  ;;  %v9618_v58 = vld [vmem:[%s11822_s26 + $0x304] sm:$0xf] }
 0x244   : > { %10840 = vmatmul.mubr.msk.bf16.gmra.mrb[16].mxu1 %vm325_vm1, %v9636_v13  ;;  %v4059_v0 = vor.u32 %v4058_v40, %v4054_v36  ;;  %v8381_v8 = vsel %vm11941_vm4, %v8376_v44, %v8380_v38  ;;  %v8388_v17 = vrot.slane %v8386_v11, 5  ;;  %v8396_v22 = vshrl.u32 %v10196_v23, 16 }
 0x245   : > { %10843 = vmatprep.mubr.msk.bf16.mxu1 %vm325_vm1, %v9637_v52  ;;  %v4050_v4 = vrot.slane %v4049_v59, 4  ;;  %v10221_v25 = vcombine.low %v8371_v54, %v8381_v8  ;;  %v8394_v13 = vrot.slane %v8392_v62, 5  ;;  %v8402_v14 = vshll.u32 %v10197_v48, 16  ;;  %v9619_v54 = vld [vmem:[%s11822_s26 + $0x308] sm:$0x1] }
 0x246   : > { %v4060_v55 = vrot.slane %v4059_v0, 4  ;;  %v8389_v45 = vor.u32 %v8388_v17, %v8385_v60  ;;  %v8398_v47 = vrot.slane %v8396_v22, 4  ;;  %v4067_v49 = vshrl.u32 %v9614_v28, 16  ;;  %v10201_v60 = vld [vmem:[%s11822_s26 + $0x30c] sm:$0xf] }
 0x247   : > { %11112 = vmatmul.mubr.msk.bf16.gmra.mrb[16].mxu0 %vm325_vm1, %v10220_v21  ;;  %v4055_v63 = vsel %vm11941_vm4, %v4050_v4, %v4054_v36  ;;  %v8404_v26 = vrot.slane %v8402_v14, 5  ;;  %v4070_v7 = vshll.u32 %v9614_v28, 16  ;;  %v4076_v39 = vshll.u32 %v9615_v51, 16  ;;  %v10202_v17 = vld [vmem:[%s11822_s26 + $0x310] sm:$0xf] }
 0x248   : > { %11115 = vmatprep.mubr.msk.bf16.mxu0 %vm325_vm1, %v10221_v25  ;;  %v4065_v1 = vsel %vm11941_vm4, %v4060_v55, %v4064_v53  ;;  %v8390_v10 = vrot.slane %v8389_v45, 4  ;;  %v8399_v21 = vor.u32 %v8398_v47, %v8394_v13  ;;  %v4069_v61 = vrot.slane %v4067_v49, 4 }
 0x249   : > { %v9638_v3 = vcombine.low %v4055_v63, %v4065_v1  ;;  %v4072_v29 = vrot.slane %v4070_v7, 5  ;;  %v4078_v56 = vrot.slane %v4076_v39, 5  ;;  %v4080_v27 = vshrl.u32 %v9615_v51, 16  ;;  %v10203_v63 = vld [vmem:[%s11822_s26 + $0x314] sm:$0x1] }
 0x24a   : > { %v4086_v46 = vshll.u32 %v9616_v6, 16  ;;  %v8395_v24 = vsel %vm11941_vm4, %v8390_v10, %v8394_v13  ;;  %v8400_v30 = vrot.slane %v8399_v21, 4  ;;  %v8407_v2 = vshrl.u32 %v10198_v19, 16  ;;  %v9620_v7 = vld [vmem:[%s11822_s26 + $0x30c] sm:$0xf] }
 0x24b   : > { %v8410_v50 = vshll.u32 %v10198_v19, 16  ;;  %v4073_v41 = vor.u32 %v4072_v29, %v4069_v61  ;;  %v4082_v15 = vrot.slane %v4080_v27, 4  ;;  %v8416_v12 = vshll.u32 %v10199_v18, 16  ;;  %v9621_v21 = vld [vmem:[%s11822_s26 + $0x310] sm:$0xf] }
 0x24c   : > { %10844 = vmatmul.mubr.msk.bf16.gmra.mrb[20].mxu1 %vm325_vm1, %v9638_v3  ;;  %v4088_v5 = vrot.slane %v4086_v46, 5  ;;  %v8405_v37 = vsel %vm11941_vm4, %v8400_v30, %v8404_v26  ;;  %v8409_v20 = vrot.slane %v8407_v2, 4  ;;  %v8420_v38 = vshrl.u32 %v10199_v18, 16 }
 0x24d   : > { %v8412_v42 = vrot.slane %v8410_v50, 5  ;;  %v10222_v31 = vcombine.low %v8395_v24, %v8405_v37  ;;  %v4074_v52 = vrot.slane %v4073_v41, 4  ;;  %v4083_v43 = vor.u32 %v4082_v15, %v4078_v56  ;;  %v9622_v41 = vld [vmem:[%s11822_s26 + $0x314] sm:$0x1] }
 0x24e   : > { %v8418_v33 = vrot.slane %v8416_v12, 5  ;;  %v8422_v23 = vrot.slane %v8420_v38, 4  ;;  %v8426_v36 = vshll.u32 %v10200_v9, 16  ;;  %v4091_v40 = vshrl.u32 %v9617_v57, 16 }
 0x24f   : > { %v8413_v35 = vor.u32 %v8412_v42, %v8409_v20  ;;  %11116 = vmatmul.mubr.msk.bf16.gmra.mrb[20].mxu0 %vm325_vm1, %v10222_v31  ;;  %v4079_v32 = vsel %vm11941_vm4, %v4074_v52, %v4078_v56  ;;  %v4084_v34 = vrot.slane %v4083_v43, 4  ;;  %v4094_v44 = vshll.u32 %v9617_v57, 16  ;;  %v10205_v42 = vld [vmem:[%s11822_s26 + $0x31c] sm:$0xf] }
 0x250   : > { %v4100_v59 = vshll.u32 %v9618_v58, 16  ;;  %v8423_v11 = vor.u32 %v8422_v23, %v8418_v33  ;;  %v8428_v0 = vrot.slane %v8426_v36, 5  ;;  %v4093_v53 = vrot.slane %v4091_v40, 4 }
 0x251   : > { %v8414_v48 = vrot.slane %v8413_v35, 4  ;;  %v4089_v62 = vsel %vm11941_vm4, %v4084_v34, %v4088_v5  ;;  %v4096_v28 = vrot.slane %v4094_v44, 5  ;;  %v4104_v4 = vshrl.u32 %v9618_v58, 16  ;;  %v10204_v5 = vld [vmem:[%s11822_s26 + $0x318] sm:$0xf] }
 0x252   : > { %v4102_v8 = vrot.slane %v4100_v59, 5  ;;  %v9639_v22 = vcombine.low %v4079_v32, %v4089_v62  ;;  %v8424_v25 = vrot.slane %v8423_v11, 4  ;;  %v4110_v55 = vshll.u32 %v9619_v54, 16  ;;  %v10206_v32 = vld [vmem:[%s11822_s26 + $0x320] sm:$0x1] }
 0x253   : > { %v8419_v51 = vsel %vm11941_vm4, %v8414_v48, %v8418_v33  ;;  %v4097_v13 = vor.u32 %v4096_v28, %v4093_v53  ;;  %v4106_v14 = vrot.slane %v4104_v4, 4  ;;  %v8431_v45 = vshrl.u32 %v10201_v60, 16  ;;  %v9623_v44 = vld [vmem:[%s11822_s26 + $0x318] sm:$0xf]  ;;  %v9624_v53 = vld [vmem:[%s11822_s26 + $0x31c] sm:$0xf] }
 0x254   : > { %v8434_v47 = vshll.u32 %v10201_v60, 16  ;;  %10847 = vmatprep.mubr.msk.bf16.mxu1 %vm325_vm1, %v9639_v22  ;;  %v8429_v6 = vsel %vm11941_vm4, %v8424_v25, %v8428_v0  ;;  %v4112_v49 = vrot.slane %v4110_v55, 5  ;;  %v8440_v1 = vshll.u32 %v10202_v17, 16 }
 0x255   : > { %v8444_v26 = vshrl.u32 %v10202_v17, 16  ;;  %v10223_v39 = vcombine.low %v8419_v51, %v8429_v6  ;;  %v4098_v19 = vrot.slane %v4097_v13, 4  ;;  %v4107_v3 = vor.u32 %v4106_v14, %v4102_v8  ;;  %v9625_v51 = vld [vmem:[%s11822_s26 + $0x320] sm:$0x1] }
 0x256   : > { %v8433_v10 = vrot.slane %v8431_v45, 4  ;;  %v8436_v61 = vrot.slane %v8434_v47, 5  ;;  %v8442_v18 = vrot.slane %v8440_v1, 5  ;;  %v8450_v56 = vshll.u32 %v10203_v63, 16  ;;  %v10207_v45 = vld [vmem:[%s11822_s26 + $0x324] sm:$0xf] }
 0x257   : > { %v8446_v29 = vrot.slane %v8444_v26, 4  ;;  %11119 = vmatprep.mubr.msk.bf16.mxu0 %vm325_vm1, %v10223_v39  ;;  %v4103_v27 = vsel %vm11941_vm4, %v4098_v19, %v4102_v8  ;;  %v4108_v46 = vrot.slane %v4107_v3, 4  ;;  %v4115_v24 = vshrl.u32 %v9620_v7, 16  ;;  %v10208_v3 = vld [vmem:[%s11822_s26 + $0x328] sm:$0xf] }
 0x258   : > { %v4118_v30 = vshll.u32 %v9620_v7, 16  ;;  %v8437_v9 = vor.u32 %v8436_v61, %v8433_v10  ;;  %v8452_v50 = vrot.slane %v8450_v56, 5  ;;  %v4124_v15 = vshll.u32 %v9621_v21, 16 }
 0x259   : > { %v8447_v2 = vor.u32 %v8446_v29, %v8442_v18  ;;  %v4113_v12 = vsel %vm11941_vm4, %v4108_v46, %v4112_v49  ;;  %v4117_v57 = vrot.slane %v4115_v24, 4  ;;  %v4128_v20 = vshrl.u32 %v9621_v21, 16  ;;  %v10209_v46 = vld [vmem:[%s11822_s26 + $0x32c] sm:$0x1] }
 0x25a   : > { %v4120_v37 = vrot.slane %v4118_v30, 5  ;;  %v9640_v38 = vcombine.low %v4103_v27, %v4113_v12  ;;  %v8438_v58 = vrot.slane %v8437_v9, 4  ;;  %v4126_v52 = vrot.slane %v4124_v15, 5 }
 0x25b   : > { %v8448_v31 = vrot.slane %v8447_v2, 4  ;;  %v4130_v33 = vrot.slane %v4128_v20, 4  ;;  %v4134_v35 = vshll.u32 %v9622_v41, 16  ;;  %v8455_v23 = vshrl.u32 %v10204_v5, 16 }
 0x25c   : > { %v4121_v43 = vor.u32 %v4120_v37, %v4117_v57  ;;  %10848 = vmatmul.mubr.msk.bf16.gmra.mrb[24].mxu1 %vm325_vm1, %v9640_v38  ;;  %v8443_v36 = vsel %vm11941_vm4, %v8438_v58, %v8442_v18  ;;  %v8458_v34 = vshll.u32 %v10204_v5, 16  ;;  %v8464_v54 = vshll.u32 %v10205_v42, 16 }
 0x25d   : > { %v8453_v40 = vsel %vm11941_vm4, %v8448_v31, %v8452_v50  ;;  %v4131_v11 = vor.u32 %v4130_v33, %v4126_v52  ;;  %v4136_v0 = vrot.slane %v4134_v35, 5  ;;  %v8457_v60 = vrot.slane %v8455_v23, 4 }
 0x25e   : > { %v10224_v59 = vcombine.low %v8443_v36, %v8453_v40  ;;  %v4122_v48 = vrot.slane %v4121_v43, 4  ;;  %v8460_v62 = vrot.slane %v8458_v34, 5  ;;  %v8466_v28 = vrot.slane %v8464_v54, 5 }
 0x25f   : > { %v8468_v8 = vshrl.u32 %v10205_v42, 16  ;;  %v4132_v17 = vrot.slane %v4131_v11, 4  ;;  %v8474_v22 = vshll.u32 %v10206_v32, 16  ;;  %v4139_v25 = vshrl.u32 %v9623_v44, 16  ;;  %v13440_v11 = vld [vmem:[%s13548_s2] ss:$0 sm:$0xff] }
 0x260   : > { %11120 = vmatmul.mubr.msk.bf16.gmra.mrb[24].mxu0 %vm325_vm1, %v10224_v59  ;;  %v4127_v4 = vsel %vm11941_vm4, %v4122_v48, %v4126_v52  ;;  %v8461_v55 = vor.u32 %v8460_v62, %v8457_v60  ;;  %v4142_v14 = vshll.u32 %v9623_v44, 16  ;;  %v4148_v63 = vshll.u32 %v9624_v53, 16 }
 0x261   : > { %v8470_v13 = vrot.slane %v8468_v8, 4  ;;  %v4137_v47 = vsel %vm11941_vm4, %v4132_v17, %v4136_v0  ;;  %v8476_v6 = vrot.slane %v8474_v22, 5  ;;  %v4141_v49 = vrot.slane %v4139_v25, 4 }
 0x262   : > { %v4152_v1 = vshrl.u32 %v9624_v53, 16  ;;  %v9641_v26 = vcombine.low %v4127_v4, %v4137_v47  ;;  %v8462_v7 = vrot.slane %v8461_v55, 4  ;;  %v4144_v19 = vrot.slane %v4142_v14, 5 }
 0x263   : > { %v8471_v39 = vor.u32 %v8470_v13, %v8466_v28  ;;  %v4150_v10 = vrot.slane %v4148_v63, 5  ;;  %v4158_v61 = vshll.u32 %v9625_v51, 16  ;;  %v8479_v18 = vshrl.u32 %v10207_v45, 16 }
 0x264   : > { %v4154_v21 = vrot.slane %v4152_v1, 4  ;;  %10851 = vmatprep.mubr.msk.bf16.mxu1 %vm325_vm1, %v9641_v26  ;;  %v8467_v29 = vsel %vm11941_vm4, %v8462_v7, %v8466_v28  ;;  %v4145_v27 = vor.u32 %v4144_v19, %v4141_v49  ;;  %v8482_v24 = vshll.u32 %v10207_v45, 16 }
 0x265   : > { %v8472_v56 = vrot.slane %v8471_v39, 4  ;;  %v4160_v9 = vrot.slane %v4158_v61, 5  ;;  %v8481_v2 = vrot.slane %v8479_v18, 4  ;;  %v8488_v50 = vshll.u32 %v10208_v3, 16 }
 0x266   : > { %v4155_v30 = vor.u32 %v4154_v21, %v4150_v10  ;;  %v4146_v15 = vrot.slane %v4145_v27, 4  ;;  %v8484_v5 = vrot.slane %v8482_v24, 5  ;;  %v8492_v12 = vshrl.u32 %v10208_v3, 16 }
 0x267   : > { %v8477_v41 = vsel %vm11941_vm4, %v8472_v56, %v8476_v6  ;;  %v8490_v20 = vrot.slane %v8488_v50, 5  ;;  %v8498_v42 = vshll.u32 %v10209_v46, 16 }
 0x268   : > { %v10225_v57 = vcombine.low %v8467_v29, %v8477_v41  ;;  %v4156_v37 = vrot.slane %v4155_v30, 4  ;;  %v4151_v38 = vsel %vm11941_vm4, %v4146_v15, %v4150_v10  ;;  %v8485_v58 = vor.u32 %v8484_v5, %v8481_v2 }
 0x269   : > { %v8494_v31 = vrot.slane %v8492_v12, 4  ;;  %v8500_v23 = vrot.slane %v8498_v42, 5 }
 0x26a   : > { %11123 = vmatprep.mubr.msk.bf16.mxu0 %vm325_vm1, %v10225_v57  ;;  %v4161_v52 = vsel %vm11941_vm4, %v4156_v37, %v4160_v9  ;;  %v8486_v33 = vrot.slane %v8485_v58, 4 }
 0x26b   : > { %v9642_v43 = vcombine.low %v4151_v38, %v4161_v52  ;;  %v8495_v35 = vor.u32 %v8494_v31, %v8490_v20 }
 0x26c   : > { %v8491_v36 = vsel %vm11941_vm4, %v8486_v33, %v8490_v20 }
 0x26d   : > { %10852 = vmatmul.mubr.msk.bf16.gmra.mrb[28].mxu1 %vm325_vm1, %v9642_v43  ;;  %v8496_v40 = vrot.slane %v8495_v35, 4 }
 0x26f   : > { %v8501_v32 = vsel %vm11941_vm4, %v8496_v40, %v8500_v23 }
 0x270   : > { %v10226_v34 = vcombine.low %v8491_v36, %v8501_v32 }
 0x272   : > { %11124 = vmatmul.mubr.msk.bf16.gmra.mrb[28].mxu0 %vm325_vm1, %v10226_v34 }
 0x2f7   : > { %v10825_v54 = vpop.f32.mrb[0].mxu1 }
 0x2f8   : > { %v4297_v44 = vpop.f32.mrb[1].mxu1 }
 0x2f9   : > { %v10826_v59 = vpop.f32.mrb[2].mxu1 }
 0x2fa   : > { %v11097_v48 = vpop.f32.mrb[0].mxu0  ;;  %v4300_v0 = vpop.f32.mrb[3].mxu1 }
 0x2fb   : > { %v11127_v53 = vadd.f32 %v11097_v48, %v10825_v54  ;;  %v8637_v60 = vpop.f32.mrb[1].mxu0 }
 0x2fc   : > { %v11128_v62 = vadd.f32 %v8637_v60, %v4297_v44  ;;  %v11098_v16 = vpop.f32.mrb[2].mxu0 }
 0x2fd   : > { %v8805_v28 = vadd.f32 %v11127_v53, %v13440_v11  ;;  %v11129_v8 = vadd.f32 %v11098_v16, %v10826_v59  ;;  %v8640_v4 = vpop.f32.mrb[3].mxu0 }
 0x2fe   : > { %v8803_v17 = vadd.f32 %v11128_v62, %v13440_v11  ;;  %v11130_v22 = vadd.f32 %v8640_v4, %v4300_v0 }
 0x2ff   : > { %vm8837_vm5 = vcmp.ge.f32.partialorder %v8805_v28, 0.0  ;;  %v8869_v51 = vmul.f32 0.2, %v8805_v28  ;;  %v8806_v25 = vadd.f32 %v11129_v8, %v13440_v11  ;;  %v10829_v55 = vpop.f32.mrb[4].mxu1 }
 0x300   : > { %vm8835_vm6 = vcmp.ge.f32.partialorder %v8803_v17, 0.0  ;;  %v8867_v13 = vmul.f32 0.2, %v8803_v17  ;;  %v8804_v14 = vadd.f32 %v11130_v22, %v13440_v11  ;;  %v4313_v63 = vpop.f32.mrb[5].mxu1 }
 0x301   : > { %v8901_v45 = vsel %vm8837_vm5, %v8805_v28, %v8869_v51  ;;  %vm8838_vm8 = vcmp.ge.f32.partialorder %v8806_v25, 0.0  ;;  %v8870_v47 = vmul.f32 0.2, %v8806_v25  ;;  %v10830_v6 = vpop.f32.mrb[6].mxu1 }
 0x302   : > { %v10281_v49 = vpack.c.bf16 %v8901_v45, %v8901_v45  ;;  %v8899_v1 = vsel %vm8835_vm6, %v8803_v17, %v8867_v13  ;;  %vm8836_vm9 = vcmp.ge.f32.partialorder %v8804_v14, 0.0  ;;  %v8868_v26 = vmul.f32 0.2, %v8804_v14  ;;  %v11101_v7 = vpop.f32.mrb[4].mxu0  ;;  %v4316_v39 = vpop.f32.mrb[7].mxu1 }
 0x303   : > { %v10279_v19 = vpack.c.bf16 %v8899_v1, %v8899_v1  ;;  %v8902_v3 = vsel %vm8838_vm8, %v8806_v25, %v8870_v47  ;;  %v11131_v10 = vadd.f32 %v11101_v7, %v10829_v55  ;;  %v8653_v21 = vpop.f32.mrb[5].mxu0 }
 0x304   : > { %9062 = vst.msk [vmem:[%s13449_s8 + $0x8] sm:$0xf] %vm9059_vm7, %v10281_v49  ;;  %v10282_v61 = vpack.c.bf16 %v8902_v3, %v8902_v3  ;;  %v8900_v18 = vsel %vm8836_vm9, %v8804_v14, %v8868_v26  ;;  %v11132_v29 = vadd.f32 %v8653_v21, %v4313_v63  ;;  %v11102_v56 = vpop.f32.mrb[6].mxu0 }
 0x305   : > { %9060 = vst.msk [vmem:[%s13449_s8] sm:$0xf] %vm9059_vm7, %v10279_v19  ;;  %v10280_v27 = vpack.c.bf16 %v8900_v18, %v8900_v18  ;;  %v8809_v46 = vadd.f32 %v11131_v10, %v13440_v11  ;;  %v11133_v24 = vadd.f32 %v11102_v56, %v10830_v6  ;;  %v8656_v30 = vpop.f32.mrb[7].mxu0 }
 0x306   : > { %9063 = vst.msk [vmem:[%s13449_s8 + $0xc] sm:$0xf] %vm9059_vm7, %v10282_v61  ;;  %v8807_v9 = vadd.f32 %v11132_v29, %v13440_v11  ;;  %v11134_v2 = vadd.f32 %v8656_v30, %v4316_v39 }
 0x307   : > { %9061 = vst.msk [vmem:[%s13449_s8 + $0x4] sm:$0xf] %vm9059_vm7, %v10280_v27  ;;  %vm8841_vm10 = vcmp.ge.f32.partialorder %v8809_v46, 0.0  ;;  %v8873_v50 = vmul.f32 0.2, %v8809_v46  ;;  %v8810_v41 = vadd.f32 %v11133_v24, %v13440_v11  ;;  %v10833_v15 = vpop.f32.mrb[8].mxu1 }
 0x308   : > { %vm8839_vm11 = vcmp.ge.f32.partialorder %v8807_v9, 0.0  ;;  %v8871_v5 = vmul.f32 0.2, %v8807_v9  ;;  %v8808_v12 = vadd.f32 %v11134_v2, %v13440_v11  ;;  %v4329_v57 = vpop.f32.mrb[9].mxu1 }
 0x309   : > { %v8905_v37 = vsel %vm8841_vm10, %v8809_v46, %v8873_v50  ;;  %vm8842_vm12 = vcmp.ge.f32.partialorder %v8810_v41, 0.0  ;;  %v8874_v20 = vmul.f32 0.2, %v8810_v41  ;;  %v10834_v42 = vpop.f32.mrb[10].mxu1 }
 0x30a   : > { %v10285_v38 = vpack.c.bf16 %v8905_v37, %v8905_v37  ;;  %v8903_v58 = vsel %vm8839_vm11, %v8807_v9, %v8871_v5  ;;  %vm8840_vm13 = vcmp.ge.f32.partialorder %v8808_v12, 0.0  ;;  %v8872_v31 = vmul.f32 0.2, %v8808_v12  ;;  %v11105_v52 = vpop.f32.mrb[8].mxu0  ;;  %v4332_v43 = vpop.f32.mrb[11].mxu1 }
 0x30b   : > { %v10283_v33 = vpack.c.bf16 %v8903_v58, %v8903_v58  ;;  %v8906_v35 = vsel %vm8842_vm12, %v8810_v41, %v8874_v20  ;;  %v11135_v23 = vadd.f32 %v11105_v52, %v10833_v15  ;;  %v8669_v36 = vpop.f32.mrb[9].mxu0 }
 0x30c   : > { %9066 = vst.msk [vmem:[%s13449_s8 + $0x18] sm:$0xf] %vm9059_vm7, %v10285_v38  ;;  %v10286_v40 = vpack.c.bf16 %v8906_v35, %v8906_v35  ;;  %v8904_v32 = vsel %vm8840_vm13, %v8808_v12, %v8872_v31  ;;  %v11136_v34 = vadd.f32 %v8669_v36, %v4329_v57  ;;  %v11106_v54 = vpop.f32.mrb[10].mxu0 }
 0x30d   : > { %9064 = vst.msk [vmem:[%s13449_s8 + $0x10] sm:$0xf] %vm9059_vm7, %v10283_v33  ;;  %v10284_v44 = vpack.c.bf16 %v8904_v32, %v8904_v32  ;;  %v8813_v59 = vadd.f32 %v11135_v23, %v13440_v11  ;;  %v11137_v48 = vadd.f32 %v11106_v54, %v10834_v42  ;;  %v8672_v0 = vpop.f32.mrb[11].mxu0 }
 0x30e   : > { %9067 = vst.msk [vmem:[%s13449_s8 + $0x1c] sm:$0xf] %vm9059_vm7, %v10286_v40  ;;  %v8811_v53 = vadd.f32 %v11136_v34, %v13440_v11  ;;  %v11138_v60 = vadd.f32 %v8672_v0, %v4332_v43 }
 0x30f   : > { %9065 = vst.msk [vmem:[%s13449_s8 + $0x14] sm:$0xf] %vm9059_vm7, %v10284_v44  ;;  %vm8845_vm14 = vcmp.ge.f32.partialorder %v8813_v59, 0.0  ;;  %v8877_v62 = vmul.f32 0.2, %v8813_v59  ;;  %v8814_v16 = vadd.f32 %v11137_v48, %v13440_v11  ;;  %v10837_v28 = vpop.f32.mrb[12].mxu1 }
 0x310   : > { %vm8843_vm15 = vcmp.ge.f32.partialorder %v8811_v53, 0.0  ;;  %v8875_v8 = vmul.f32 0.2, %v8811_v53  ;;  %v8812_v4 = vadd.f32 %v11138_v60, %v13440_v11  ;;  %v4345_v17 = vpop.f32.mrb[13].mxu1 }
 0x311   : > { %v8909_v22 = vsel %vm8845_vm14, %v8813_v59, %v8877_v62  ;;  %vm8846_vm0 = vcmp.ge.f32.partialorder %v8814_v16, 0.0  ;;  %v8878_v51 = vmul.f32 0.2, %v8814_v16  ;;  %v10838_v25 = vpop.f32.mrb[14].mxu1 }
 0x312   : > { %v10289_v55 = vpack.c.bf16 %v8909_v22, %v8909_v22  ;;  %v8907_v13 = vsel %vm8843_vm15, %v8811_v53, %v8875_v8  ;;  %vm8844_vm1 = vcmp.ge.f32.partialorder %v8812_v4, 0.0  ;;  %v8876_v14 = vmul.f32 0.2, %v8812_v4  ;;  %v11109_v63 = vpop.f32.mrb[12].mxu0  ;;  %v4348_v45 = vpop.f32.mrb[15].mxu1 }
 0x313   : > { %v10287_v47 = vpack.c.bf16 %v8907_v13, %v8907_v13  ;;  %v8910_v6 = vsel %vm8846_vm0, %v8814_v16, %v8878_v51  ;;  %v11139_v49 = vadd.f32 %v11109_v63, %v10837_v28  ;;  %v8685_v1 = vpop.f32.mrb[13].mxu0 }
 0x314   : > { %9070 = vst.msk [vmem:[%s13449_s8 + $0x28] sm:$0xf] %vm9059_vm7, %v10289_v55  ;;  %v10290_v26 = vpack.c.bf16 %v8910_v6, %v8910_v6  ;;  %v8908_v7 = vsel %vm8844_vm1, %v8812_v4, %v8876_v14  ;;  %v11140_v39 = vadd.f32 %v8685_v1, %v4345_v17  ;;  %v11110_v19 = vpop.f32.mrb[14].mxu0 }
 0x315   : > { %9068 = vst.msk [vmem:[%s13449_s8 + $0x20] sm:$0xf] %vm9059_vm7, %v10287_v47  ;;  %v10288_v3 = vpack.c.bf16 %v8908_v7, %v8908_v7  ;;  %v8817_v10 = vadd.f32 %v11139_v49, %v13440_v11  ;;  %v11141_v21 = vadd.f32 %v11110_v19, %v10838_v25  ;;  %v8688_v61 = vpop.f32.mrb[15].mxu0 }
 0x316   : > { %9071 = vst.msk [vmem:[%s13449_s8 + $0x2c] sm:$0xf] %vm9059_vm7, %v10290_v26  ;;  %v8815_v18 = vadd.f32 %v11140_v39, %v13440_v11  ;;  %v11142_v29 = vadd.f32 %v8688_v61, %v4348_v45 }
 0x317   : > { %9069 = vst.msk [vmem:[%s13449_s8 + $0x24] sm:$0xf] %vm9059_vm7, %v10288_v3  ;;  %vm8849_vm2 = vcmp.ge.f32.partialorder %v8817_v10, 0.0  ;;  %v8881_v56 = vmul.f32 0.2, %v8817_v10  ;;  %v8818_v27 = vadd.f32 %v11141_v21, %v13440_v11  ;;  %v10841_v46 = vpop.f32.mrb[16].mxu1 }
 0x318   : > { %vm8847_vm3 = vcmp.ge.f32.partialorder %v8815_v18, 0.0  ;;  %v8879_v24 = vmul.f32 0.2, %v8815_v18  ;;  %v8816_v30 = vadd.f32 %v11142_v29, %v13440_v11  ;;  %v4361_v9 = vpop.f32.mrb[17].mxu1 }
 0x319   : > { %v8913_v2 = vsel %vm8849_vm2, %v8817_v10, %v8881_v56  ;;  %vm8850_vm4 = vcmp.ge.f32.partialorder %v8818_v27, 0.0  ;;  %v8882_v50 = vmul.f32 0.2, %v8818_v27  ;;  %v10842_v41 = vpop.f32.mrb[18].mxu1 }
 0x31a   : > { %v10293_v15 = vpack.c.bf16 %v8913_v2, %v8913_v2  ;;  %v8911_v5 = vsel %vm8847_vm3, %v8815_v18, %v8879_v24  ;;  %vm8848_vm5 = vcmp.ge.f32.partialorder %v8816_v30, 0.0  ;;  %v8880_v12 = vmul.f32 0.2, %v8816_v30  ;;  %v11113_v57 = vpop.f32.mrb[16].mxu0  ;;  %v4364_v37 = vpop.f32.mrb[19].mxu1 }
 0x31b   : > { %v10291_v20 = vpack.c.bf16 %v8911_v5, %v8911_v5  ;;  %v8914_v42 = vsel %vm8850_vm4, %v8818_v27, %v8882_v50  ;;  %v11143_v38 = vadd.f32 %v11113_v57, %v10841_v46  ;;  %v8701_v58 = vpop.f32.mrb[17].mxu0 }
 0x31c   : > { %9074 = vst.msk [vmem:[%s13449_s8 + $0x38] sm:$0xf] %vm9059_vm7, %v10293_v15  ;;  %v10294_v31 = vpack.c.bf16 %v8914_v42, %v8914_v42  ;;  %v8912_v52 = vsel %vm8848_vm5, %v8816_v30, %v8880_v12  ;;  %v11144_v43 = vadd.f32 %v8701_v58, %v4361_v9  ;;  %v11114_v33 = vpop.f32.mrb[18].mxu0 }
 0x31d   : > { %9072 = vst.msk [vmem:[%s13449_s8 + $0x30] sm:$0xf] %vm9059_vm7, %v10291_v20  ;;  %v10292_v35 = vpack.c.bf16 %v8912_v52, %v8912_v52  ;;  %v8821_v23 = vadd.f32 %v11143_v38, %v13440_v11  ;;  %v11145_v36 = vadd.f32 %v11114_v33, %v10842_v41  ;;  %v8704_v40 = vpop.f32.mrb[19].mxu0 }
 0x31e   : > { %9075 = vst.msk [vmem:[%s13449_s8 + $0x3c] sm:$0xf] %vm9059_vm7, %v10294_v31  ;;  %v8819_v32 = vadd.f32 %v11144_v43, %v13440_v11  ;;  %v11146_v34 = vadd.f32 %v8704_v40, %v4364_v37 }
 0x31f   : > { %9073 = vst.msk [vmem:[%s13449_s8 + $0x34] sm:$0xf] %vm9059_vm7, %v10292_v35  ;;  %vm8853_vm6 = vcmp.ge.f32.partialorder %v8821_v23, 0.0  ;;  %v8885_v54 = vmul.f32 0.2, %v8821_v23  ;;  %v8822_v44 = vadd.f32 %v11145_v36, %v13440_v11  ;;  %v10845_v59 = vpop.f32.mrb[20].mxu1 }
 0x320   : > { %vm8851_vm8 = vcmp.ge.f32.partialorder %v8819_v32, 0.0  ;;  %v8883_v48 = vmul.f32 0.2, %v8819_v32  ;;  %v8820_v0 = vadd.f32 %v11146_v34, %v13440_v11  ;;  %v4377_v53 = vpop.f32.mrb[21].mxu1 }
 0x321   : > { %v8917_v60 = vsel %vm8853_vm6, %v8821_v23, %v8885_v54  ;;  %vm8854_vm9 = vcmp.ge.f32.partialorder %v8822_v44, 0.0  ;;  %v8886_v62 = vmul.f32 0.2, %v8822_v44  ;;  %v10846_v16 = vpop.f32.mrb[22].mxu1 }
 0x322   : > { %v10297_v28 = vpack.c.bf16 %v8917_v60, %v8917_v60  ;;  %v8915_v8 = vsel %vm8851_vm8, %v8819_v32, %v8883_v48  ;;  %vm8852_vm10 = vcmp.ge.f32.partialorder %v8820_v0, 0.0  ;;  %v8884_v4 = vmul.f32 0.2, %v8820_v0  ;;  %v4380_v17 = vpop.f32.mrb[23].mxu1  ;;  %v11117_v13 = vpop.f32.mrb[20].mxu0 }
 0x323   : > { %v10295_v22 = vpack.c.bf16 %v8915_v8, %v8915_v8  ;;  %v8918_v51 = vsel %vm8854_vm9, %v8822_v44, %v8886_v62  ;;  %v11147_v63 = vadd.f32 %v11117_v13, %v10845_v59  ;;  %v8717_v45 = vpop.f32.mrb[21].mxu0 }
 0x324   : > { %9078 = vst.msk [vmem:[%s13449_s8 + $0x48] sm:$0xf] %vm9059_vm7, %v10297_v28  ;;  %v10298_v25 = vpack.c.bf16 %v8918_v51, %v8918_v51  ;;  %v8916_v55 = vsel %vm8852_vm10, %v8820_v0, %v8884_v4  ;;  %v11148_v47 = vadd.f32 %v8717_v45, %v4377_v53  ;;  %v11118_v6 = vpop.f32.mrb[22].mxu0 }
 0x325   : > { %9076 = vst.msk [vmem:[%s13449_s8 + $0x40] sm:$0xf] %vm9059_vm7, %v10295_v22  ;;  %v10296_v14 = vpack.c.bf16 %v8916_v55, %v8916_v55  ;;  %v8825_v49 = vadd.f32 %v11147_v63, %v13440_v11  ;;  %v11149_v1 = vadd.f32 %v11118_v6, %v10846_v16  ;;  %v8720_v26 = vpop.f32.mrb[23].mxu0 }
 0x326   : > { %9079 = vst.msk [vmem:[%s13449_s8 + $0x4c] sm:$0xf] %vm9059_vm7, %v10298_v25  ;;  %v8823_v7 = vadd.f32 %v11148_v47, %v13440_v11  ;;  %v11150_v39 = vadd.f32 %v8720_v26, %v4380_v17 }
 0x327   : > { %9077 = vst.msk [vmem:[%s13449_s8 + $0x44] sm:$0xf] %vm9059_vm7, %v10296_v14  ;;  %vm8857_vm11 = vcmp.ge.f32.partialorder %v8825_v49, 0.0  ;;  %v8889_v19 = vmul.f32 0.2, %v8825_v49  ;;  %v8826_v3 = vadd.f32 %v11149_v1, %v13440_v11 }
 0x328   : > { %vm8855_vm12 = vcmp.ge.f32.partialorder %v8823_v7, 0.0  ;;  %v8887_v10 = vmul.f32 0.2, %v8823_v7  ;;  %v8824_v21 = vadd.f32 %v11150_v39, %v13440_v11 }
 0x329   : > { %v8921_v61 = vsel %vm8857_vm11, %v8825_v49, %v8889_v19  ;;  %vm8858_vm13 = vcmp.ge.f32.partialorder %v8826_v3, 0.0  ;;  %v8890_v18 = vmul.f32 0.2, %v8826_v3 }
 0x32a   : > { %v10301_v29 = vpack.c.bf16 %v8921_v61, %v8921_v61  ;;  %v8919_v56 = vsel %vm8855_vm12, %v8823_v7, %v8887_v10  ;;  %vm8856_vm14 = vcmp.ge.f32.partialorder %v8824_v21, 0.0  ;;  %v8888_v27 = vmul.f32 0.2, %v8824_v21 }
 0x32b   : > { %v10299_v46 = vpack.c.bf16 %v8919_v56, %v8919_v56  ;;  %v8922_v24 = vsel %vm8858_vm13, %v8826_v3, %v8890_v18 }
 0x32c   : > { %9082 = vst.msk [vmem:[%s13449_s8 + $0x58] sm:$0xf] %vm9059_vm7, %v10301_v29  ;;  %v10302_v30 = vpack.c.bf16 %v8922_v24, %v8922_v24  ;;  %v8920_v9 = vsel %vm8856_vm14, %v8824_v21, %v8888_v27 }
 0x32d   : > { %9080 = vst.msk [vmem:[%s13449_s8 + $0x50] sm:$0xf] %vm9059_vm7, %v10299_v46  ;;  %v10300_v2 = vpack.c.bf16 %v8920_v9, %v8920_v9 }
 0x32e   : > { %9083 = vst.msk [vmem:[%s13449_s8 + $0x5c] sm:$0xf] %vm9059_vm7, %v10302_v30 }
 0x32f   : > { %9081 = vst.msk [vmem:[%s13449_s8 + $0x54] sm:$0xf] %vm9059_vm7, %v10300_v2  ;;  %v10849_v50 = vpop.f32.mrb[24].mxu1 }
 0x330   : > { %v4393_v41 = vpop.f32.mrb[25].mxu1 }
 0x331   : > { %v10850_v15 = vpop.f32.mrb[26].mxu1 }
 0x332   : > { %v4396_v12 = vpop.f32.mrb[27].mxu1 }
 0x333   : > { %v11121_v5 = vpop.f32.mrb[24].mxu0 }
 0x334   : > { %v11151_v57 = vadd.f32 %v11121_v5, %v10849_v50  ;;  %v8733_v37 = vpop.f32.mrb[25].mxu0 }
 0x335   : > { %v11152_v20 = vadd.f32 %v8733_v37, %v4393_v41  ;;  %v11122_v42 = vpop.f32.mrb[26].mxu0 }
 0x336   : > { %v8829_v38 = vadd.f32 %v11151_v57, %v13440_v11  ;;  %v11153_v58 = vadd.f32 %v11122_v42, %v10850_v15  ;;  %v8736_v31 = vpop.f32.mrb[27].mxu0 }
 0x337   : > { %v8827_v52 = vadd.f32 %v11152_v20, %v13440_v11  ;;  %v11154_v43 = vadd.f32 %v8736_v31, %v4396_v12 }
 0x338   : > { %vm8861_vm15 = vcmp.ge.f32.partialorder %v8829_v38, 0.0  ;;  %v8893_v33 = vmul.f32 0.2, %v8829_v38  ;;  %v8830_v35 = vadd.f32 %v11153_v58, %v13440_v11 }
 0x339   : > { %vm8859_vm0 = vcmp.ge.f32.partialorder %v8827_v52, 0.0  ;;  %v8891_v23 = vmul.f32 0.2, %v8827_v52  ;;  %v8828_v36 = vadd.f32 %v11154_v43, %v13440_v11 }
 0x33a   : > { %v8925_v40 = vsel %vm8861_vm15, %v8829_v38, %v8893_v33  ;;  %vm8862_vm1 = vcmp.ge.f32.partialorder %v8830_v35, 0.0  ;;  %v8894_v32 = vmul.f32 0.2, %v8830_v35 }
 0x33b   : > { %v10305_v34 = vpack.c.bf16 %v8925_v40, %v8925_v40  ;;  %v8923_v54 = vsel %vm8859_vm0, %v8827_v52, %v8891_v23  ;;  %vm8860_vm2 = vcmp.ge.f32.partialorder %v8828_v36, 0.0  ;;  %v8892_v44 = vmul.f32 0.2, %v8828_v36 }
 0x33c   : > { %v10303_v59 = vpack.c.bf16 %v8923_v54, %v8923_v54  ;;  %v8926_v48 = vsel %vm8862_vm1, %v8830_v35, %v8894_v32 }
 0x33d   : > { %9086 = vst.msk [vmem:[%s13449_s8 + $0x68] sm:$0xf] %vm9059_vm7, %v10305_v34  ;;  %v10306_v0 = vpack.c.bf16 %v8926_v48, %v8926_v48  ;;  %v8924_v53 = vsel %vm8860_vm2, %v8828_v36, %v8892_v44 }
 0x33e   : > { %9084 = vst.msk [vmem:[%s13449_s8 + $0x60] sm:$0xf] %vm9059_vm7, %v10303_v59  ;;  %v10304_v60 = vpack.c.bf16 %v8924_v53, %v8924_v53 }
 0x33f   : > { %9087 = vst.msk [vmem:[%s13449_s8 + $0x6c] sm:$0xf] %vm9059_vm7, %v10306_v0 }
 0x340   : > { %9085 = vst.msk [vmem:[%s13449_s8 + $0x64] sm:$0xf] %vm9059_vm7, %v10304_v60  ;;  %v10853_v62 = vpop.f32.mrb[28].mxu1 }
 0x341   : > { %v4409_v16 = vpop.f32.mrb[29].mxu1 }
 0x342   : > { %v10854_v28 = vpop.f32.mrb[30].mxu1 }
 0x343   : > { %v4412_v8 = vpop.f32.mrb[31].mxu1 }
 0x345   : > { %v11125_v4 = vpop.f32.mrb[28].mxu0 }
 0x346   : > { %v11155_v17 = vadd.f32 %v11125_v4, %v10853_v62  ;;  %v8749_v22 = vpop.f32.mrb[29].mxu0 }
 0x347   : > { %v11156_v51 = vadd.f32 %v8749_v22, %v4409_v16  ;;  %v11126_v25 = vpop.f32.mrb[30].mxu0 }
 0x348   : > { %v8833_v55 = vadd.f32 %v11155_v17, %v13440_v11  ;;  %v11157_v13 = vadd.f32 %v11126_v25, %v10854_v28  ;;  %v8752_v14 = vpop.f32.mrb[31].mxu0 }
 0x349   : > { %v8831_v63 = vadd.f32 %v11156_v51, %v13440_v11  ;;  %v11158_v45 = vadd.f32 %v8752_v14, %v4412_v8 }
 0x34a   : > { %vm8865_vm3 = vcmp.ge.f32.partialorder %v8833_v55, 0.0  ;;  %v8897_v47 = vmul.f32 0.2, %v8833_v55  ;;  %v8834_v6 = vadd.f32 %v11157_v13, %v13440_v11 }
 0x34b   : > { %vm8863_vm4 = vcmp.ge.f32.partialorder %v8831_v63, 0.0  ;;  %v8895_v49 = vmul.f32 0.2, %v8831_v63  ;;  %v8832_v1 = vadd.f32 %v11158_v45, %v13440_v11 }
 0x34c   : > { %v8929_v26 = vsel %vm8865_vm3, %v8833_v55, %v8897_v47  ;;  %vm8866_vm5 = vcmp.ge.f32.partialorder %v8834_v6, 0.0  ;;  %v8898_v7 = vmul.f32 0.2, %v8834_v6 }
 0x34d   : > { %v10309_v39 = vpack.c.bf16 %v8929_v26, %v8929_v26  ;;  %v8927_v19 = vsel %vm8863_vm4, %v8831_v63, %v8895_v49  ;;  %vm8864_vm6 = vcmp.ge.f32.partialorder %v8832_v1, 0.0  ;;  %v8896_v3 = vmul.f32 0.2, %v8832_v1 }
 0x34e   : > { %v10307_v10 = vpack.c.bf16 %v8927_v19, %v8927_v19  ;;  %v8930_v21 = vsel %vm8866_vm5, %v8834_v6, %v8898_v7 }
 0x34f   : > { %9090 = vst.msk [vmem:[%s13449_s8 + $0x78] sm:$0xf] %vm9059_vm7, %v10309_v39  ;;  %v10310_v61 = vpack.c.bf16 %v8930_v21, %v8930_v21  ;;  %v8928_v18 = vsel %vm8864_vm6, %v8832_v1, %v8896_v3 }
 0x350   : > { %9088 = vst.msk [vmem:[%s13449_s8 + $0x70] sm:$0xf] %vm9059_vm7, %v10307_v10  ;;  %v10308_v29 = vpack.c.bf16 %v8928_v18, %v8928_v18 }
 0x351   : > { %9091 = vst.msk [vmem:[%s13449_s8 + $0x7c] sm:$0xf] %vm9059_vm7, %v10310_v61 }
 0x352   : > { %9089 = vst.msk [vmem:[%s13449_s8 + $0x74] sm:$0xf] %vm9059_vm7, %v10308_v29 }
 0x353 PF: > { %s13_s12 = sadd.s32 1, %s11768_s12  }
 0x354   : > { %p10_p5 = scmp.ge.s32.totalorder %s13_s12, 4  }
 0x356   :  { %12 = sbr.rel (!%p10_p5) target bundleno = 1 (0x1), region = 84 }

// kernel: discriminator_forward.5
= control target key start
LH: loop header
LB: loop body
LE: loop exit
PB: predicated region body
PF: predicated region fallthrough
CT: control target
= control target key end

     0   :  { %s9284_s20 = smov 0   ;;  %s10587_s0 = inlined_call_operand.vmem [shape: bf16[8,5,5,16], index: 0, kind: input, shape index: {}]   ;;  %s10588_s1 = inlined_call_operand.vmem [shape: bf16[16,16,32], index: 1, kind: input, shape index: {}]   ;;  %s10589_s2 = inlined_call_operand.vmem [shape: bf16[16,32,64], index: 2, kind: input, shape index: {}]   ;;  %s10590_s3 = inlined_call_operand.vmem [shape: bf16[16,64,1], index: 3, kind: input, shape index: {}]   ;;  %s10591_s4 = inlined_call_operand.<no memory space> [shape: f32[1,1], index: 4, kind: input, shape index: {}]   ;;  %s10592_s5 = inlined_call_operand.vmem [shape: f32[2,1,4], index: 5, kind: output, shape index: {}]  }
   0x1   :  { %v10_v0 = vstv %s10591_s4 }
   0x2   :  { %11 = vst [vmem:[#allocation4] sm:$0x1] %v10_v0 }
   0x3 LB: > { %s9290_s21 = sadd.s32 4294967295, %s9243_s20   ;;  %p7779_p0 = scmp.ge.s32.totalorder %s9243_s20, 1  ;;  %s9243_s20 = sphi %s9284_s20, %s17_s20  }
   0x4   : > { %p191_p1 = scmp.lt.s32.totalorder %s9243_s20, 3 }
   0x6   : > { %p192_p2 = pnand %p7779_p0, %p191_p1 }
   0x7   : > { %v9077_v1 = vld [vmem:[%s10588_s1 + $0x8] sm:$0xff] (!%p192_p2)   ;;  %v252_v2 = vlaneseq (!%p192_p2)  ;;  %v9245_v3 = vmov (!%p192_p2), 0.0   ;;  %s7780_s4 = sshll.u32 (!%p192_p2), %s9290_s21, 2  ;;  %vm9246_vm0 = vmmov (!%p192_p2), 0   ;;  %v9247_v4 = vmov (!%p192_p2), 1983009808  }
   0x8   : > { %195 = sbr.rel (%p192_p2) target bundleno = 1455 (0x5af), region = 40  ;;  %8526 = vmatprep.subr.bf16.mxu0 (!%p192_p2), %v9245_v3  ;;  %8622 = vmatprep.subr.bf16.mxu1 (!%p192_p2), %v9245_v3  ;;  %p219_p3 = scmp.lt.s32.totalorder (!%p192_p2), %s7780_s4, 7  ;;  %v250_v5 = vunpack.c.l.s4 (!%p192_p2), %v9247_v4  ;;  %vm270_vm1 = vcmask (!%p192_p2), 130048   ;;  %vm426_vm2 = vsmask.f32 (!%p192_p2), 1280  ;;  %v9080_v11 = vld [vmem:[%s10588_s1] sm:$0xff] (!%p192_p2)  }
   0x9   : > { %8527 = vmatpush3.bf16.msra.mxu0 (!%p192_p2), %v9077_v1  ;;  %8528 = vmatprep.mubr.msk.bf16.mxu0 (!%p192_p2), %vm9246_vm0, %v9245_v3  ;;  %v9305_v7 = vshrl.u32 (!%p192_p2), %v252_v2, 7  ;;  %vm427_vm3 = vsmask.f32 (!%p192_p2), 3336  ;;  %vm429_vm4 = vsmask.f32 (!%p192_p2), 5392  ;;  %v9083_v50 = vld [vmem:[%s10588_s1 + $0x10] sm:$0xff] (!%p192_p2)  }
   0xa   : > { %8532 = vmatprep.subr.bf16.mxu0 (!%p192_p2), %v9245_v3  ;;  %8626 = vmatprep.mubr.msk.bf16.mxu1 (!%p192_p2), %vm9246_vm0, %v9245_v3  ;;  %v251_v6 = vunpack.c.0.s8 (!%p192_p2), %v250_v5  ;;  %vm431_vm5 = vsmask.f32 (!%p192_p2), 7448  ;;  %vm428_vm6 = vmor (!%p192_p2), %vm426_vm2, %vm427_vm3  ;;  %vm2261_vm9 = vcmask (!%p192_p2), 256000   ;;  %vm2223_vm10 = vcmask (!%p192_p2), 261120   ;;  %p225_p4 = scmp.lt.s32.totalorder (!%p192_p2), %s9290_s21, 1 }
   0xb   : > { %vm430_vm7 = vmor (!%p192_p2), %vm428_vm6, %vm429_vm4  ;;  %vm2348_vm13 = vsmask.f32 (!%p192_p2), 2306  ;;  %vm5352_vm15 = vcmask (!%p192_p2), 518144   ;;  %vm5313_vm3 = vcmask (!%p192_p2), 523264   ;;  %vm5315_vm4 = vcmask (!%p192_p2), 516096  }
   0xc   : > { %v9313_v8 = vsub.s32 (!%p192_p2), %v251_v6, %v9305_v7  ;;  %vm9337_vm8 = vmor (!%p192_p2), %vm430_vm7, %vm431_vm5  ;;  %vm5565_vm7 = vsmask.f32 (!%p192_p2), 256 }
   0xd   : > { %vm9661_vm14 = vmand (!%p192_p2), %vm2261_vm9, %vm2348_vm13 }
   0xf   : > { %s10602_s4 = smov (!%p219_p3, %s7780_s4), 7  ;;  %s10604_s21 = smov (!%p225_p4, %s9290_s21), 1 }
  0x10   : > { %s9062_s24 = smul.u32 20, %s10602_s4  ;;  %s227_s11 = scalar_lea.vmem %s10592_s5, %s10604_s21 }
  0x12   : > { %s9310_s27 = scalar_lea.vmem %s10587_s0, %s9062_s24 }
  0x13   : > { %v9217_v9 = vld.sshfl [vmem:[%s9310_s27 + $0x14] sm:$0xf pattern:$0x76325410] }
  0x14   : > { %v9218_v10 = vld.sshfl [vmem:[%s9310_s27 + $0x1c] sm:$0xf pattern:$0x76325410] }
  0x15   : > { %v9321_v12 = vld.sshfl [vmem:[%s9310_s27] sm:$0xf pattern:$0x76325410]  ;;  %v263_v15 = vcombine.low %v9217_v9, %v9218_v10 }
  0x16   : > { %v9324_v13 = vld.sshfl [vmem:[%s9310_s27 + $0x8] sm:$0xf pattern:$0x76325410] }
  0x17   : > { %v7792_v14 = vld.sshfl [vmem:[%s9310_s27] sm:$0x13 pattern:$0x76325410]  ;;  %8529 = vmatmul.mubr.msk.bf16.vlgmr.msra.gmra.mrb[0].mxu0 %vm270_vm1, %v263_v15  ;;  %v335_v46 = vcombine.low %v9321_v12, %v9324_v13 }
  0x18   : > { %v7793_v16 = vld.sshfl [vmem:[%s9310_s27 + $0x4] sm:$0x13 pattern:$0x76325410]  ;;  %v401_v17 = vcombine.high %v7792_v14, %v7792_v14  ;;  %v434_v20 = vshrl.u32 %v7792_v14, 16  ;;  %v437_v21 = vshll.u32 %v7792_v14, 16  ;;  %8533 = vmatpush3.bf16.msra.mxu0 %v9080_v11  ;;  %8534 = vmatprep.mubr.msk.bf16.mxu0 %vm9246_vm0, %v9245_v3 }
  0x19   : > { %v7794_v18 = vld.sshfl [vmem:[%s9310_s27 + $0x8] sm:$0x13 pattern:$0x76325410]  ;;  %v409_v19 = vcombine.high %v7793_v16, %v7793_v16  ;;  %v448_v25 = vshrl.u32 %v7793_v16, 16  ;;  %v451_v29 = vshll.u32 %v7793_v16, 16  ;;  %8538 = vmatprep.subr.bf16.mxu0 %v9245_v3 }
  0x1a   : > { %v7795_v22 = vld.sshfl [vmem:[%s9310_s27 + $0xc] sm:$0x13 pattern:$0x76325410]  ;;  %v417_v23 = vcombine.high %v7794_v18, %v7794_v18  ;;  %v443_v24 = vshll.u32 %v401_v17, 16  ;;  %v436_v27 = vrot.slane %v434_v20, 6 }
  0x1b   : > { %v425_v26 = vcombine.high %v7795_v22, %v7795_v22  ;;  %v439_v28 = vrot.slane %v437_v21, 7  ;;  %v450_v31 = vrot.slane %v448_v25, 6  ;;  %v457_v32 = vshll.u32 %v409_v19, 16 }
  0x1c   : > { %v445_v30 = vrot.slane %v443_v24, 7  ;;  %v462_v33 = vshrl.u32 %v7794_v18, 16  ;;  %v453_v35 = vrot.slane %v451_v29, 7  ;;  %v465_v36 = vshll.u32 %v7794_v18, 16 }
  0x1d   : > { %v440_v34 = vor.u32 %v439_v28, %v436_v27  ;;  %v471_v37 = vshll.u32 %v417_v23, 16  ;;  %v476_v40 = vshrl.u32 %v7795_v22, 16  ;;  %v479_v41 = vshll.u32 %v7795_v22, 16 }
  0x1e   : > { %v464_v39 = vrot.slane %v462_v33, 6  ;;  %v454_v43 = vor.u32 %v453_v35, %v450_v31  ;;  %v459_v44 = vrot.slane %v457_v32, 7  ;;  %v467_v45 = vrot.slane %v465_v36, 7 }
  0x1f   : > { %v441_v42 = vrot.slane %v440_v34, 2  ;;  %v478_v47 = vrot.slane %v476_v40, 6  ;;  %v481_v48 = vrot.slane %v479_v41, 7  ;;  %v485_v49 = vshll.u32 %v425_v26, 16 }
  0x20   : > { %v455_v52 = vrot.slane %v454_v43, 2  ;;  %v468_v53 = vor.u32 %v467_v45, %v464_v39  ;;  %v473_v54 = vrot.slane %v471_v37, 7  ;;  %v7804_v55 = vld.sshfl [vmem:[%s9310_s27 + $0x14] sm:$0x13 pattern:$0x76325410] }
  0x21   : > { %v446_v51 = vsel %vm9337_vm8, %v441_v42, %v445_v30  ;;  %v482_v56 = vor.u32 %v481_v48, %v478_v47  ;;  %v487_v57 = vrot.slane %v485_v49, 7  ;;  %v7805_v58 = vld.sshfl [vmem:[%s9310_s27 + $0x18] sm:$0x13 pattern:$0x76325410]  ;;  %v576_v59 = vcombine.high %v7804_v55, %v7804_v55 }
  0x22   : > { %v602_v60 = vshrl.u32 %v7804_v55, 16  ;;  %v9352_v61 = vsel %vm9337_vm8, %v455_v52, %v459_v44  ;;  %v469_v62 = vrot.slane %v468_v53, 2  ;;  %v7806_v63 = vld.sshfl [vmem:[%s9310_s27 + $0x1c] sm:$0x13 pattern:$0x76325410]  ;;  %v584_v0 = vcombine.high %v7805_v58, %v7805_v58 }
  0x23   : > { %v605_v1 = vshll.u32 %v7804_v55, 16  ;;  %v483_v2 = vrot.slane %v482_v56, 2  ;;  %v492_v4 = vcombine.low %v446_v51, %v9352_v61  ;;  %v7807_v5 = vld.sshfl [vmem:[%s9310_s27 + $0x20] sm:$0x13 pattern:$0x76325410]  ;;  %v592_v6 = vcombine.high %v7806_v63, %v7806_v63  ;;  %8535 = vmatmul.mubr.msk.bf16.vlgmr.msra.gmra.mrb[0].mxu0 %vm270_vm1, %v335_v46 }
  0x24   : > { %v604_v9 = vrot.slane %v602_v60, 6  ;;  %v9359_v10 = vsel %vm9337_vm8, %v469_v62, %v473_v54  ;;  %v600_v11 = vcombine.high %v7807_v5, %v7807_v5  ;;  %v611_v13 = vshll.u32 %v576_v59, 16  ;;  %8539 = vmatpush3.bf16.msra.mxu0 %v9083_v50  ;;  %8540 = vmatprep.mubr.msk.bf16.mxu0 %vm9246_vm0, %v9245_v3  ;;  %v7832_v42 = vld.sshfl [vmem:[%s9310_s27 + $0x28] sm:$0x13 pattern:$0x76325410] }
  0x25   : > { %v607_v12 = vrot.slane %v605_v1, 7  ;;  %v9364_v14 = vsel %vm9337_vm8, %v483_v2, %v487_v57  ;;  %v500_v15 = vrot.slane %v492_v4, %v9313_v8  ;;  %v616_v16 = vshrl.u32 %v7805_v58, 16  ;;  %8544 = vmatprep.subr.bf16.mxu0 %v9245_v3  ;;  %v7833_v47 = vld.sshfl [vmem:[%s9310_s27 + $0x2c] sm:$0x13 pattern:$0x76325410] }
  0x26   : > { %v619_v17 = vshll.u32 %v7805_v58, 16  ;;  %v493_v18 = vcombine.low %v9359_v10, %v9364_v14  ;;  %v613_v20 = vrot.slane %v611_v13, 7  ;;  %v625_v21 = vshll.u32 %v584_v0, 16  ;;  %v9084_v48 = vld [vmem:[%s10588_s1 + $0x18] sm:$0xff]  }
  0x27   : > { %v608_v19 = vor.u32 %v607_v12, %v604_v9  ;;  %v618_v22 = vrot.slane %v616_v16, 6  ;;  %v630_v24 = vshrl.u32 %v7806_v63, 16  ;;  %v633_v25 = vshll.u32 %v7806_v63, 16 }
  0x28   : > { %v621_v23 = vrot.slane %v619_v17, 7  ;;  %v507_v26 = vrot.slane %v493_v18, %v9313_v8  ;;  %v627_v28 = vrot.slane %v625_v21, 7  ;;  %v639_v29 = vshll.u32 %v592_v6, 16 }
  0x29   : > { %v609_v27 = vrot.slane %v608_v19, 2  ;;  %v632_v31 = vrot.slane %v630_v24, 6  ;;  %v635_v32 = vrot.slane %v633_v25, 7  ;;  %v644_v33 = vshrl.u32 %v7807_v5, 16 }
  0x2a   : > { %v622_v30 = vor.u32 %v621_v23, %v618_v22  ;;  %v647_v34 = vshll.u32 %v7807_v5, 16  ;;  %v653_v39 = vshll.u32 %v600_v11, 16  ;;  %v641_v40 = vrot.slane %v639_v29, 7  ;;  %v9085_v23 = vld [vmem:[%s10588_s1 + $0x20] sm:$0xff]  }
  0x2b   : > { %v636_v36 = vor.u32 %v635_v32, %v632_v31  ;;  %v646_v37 = vrot.slane %v644_v33, 6  ;;  %v508_v43 = vcombine.low %v500_v15, %v507_v26  ;;  %v614_v44 = vsel %vm9337_vm8, %v609_v27, %v613_v20  ;;  %v7834_v51 = vld.sshfl [vmem:[%s9310_s27 + $0x30] sm:$0x13 pattern:$0x76325410] }
  0x2c   : > { %v623_v35 = vrot.slane %v622_v30, 2  ;;  %v649_v41 = vrot.slane %v647_v34, 7  ;;  %v655_v50 = vrot.slane %v653_v39, 7  ;;  %v906_v56 = vcombine.high %v7832_v42, %v7832_v42 }
  0x2d   : > { %v637_v46 = vrot.slane %v636_v36, 2  ;;  %v7835_v55 = vld.sshfl [vmem:[%s9310_s27 + $0x34] sm:$0x13 pattern:$0x76325410]  ;;  %v932_v57 = vshrl.u32 %v7832_v42, 16  ;;  %v914_v2 = vcombine.high %v7833_v47, %v7833_v47  ;;  %v922_v19 = vcombine.high %v7834_v51, %v7834_v51 }
  0x2e   : > { %v9378_v45 = vsel %vm9337_vm8, %v623_v35, %v627_v28  ;;  %v650_v49 = vor.u32 %v649_v41, %v646_v37  ;;  %v935_v59 = vshll.u32 %v7832_v42, 16  ;;  %v946_v60 = vshrl.u32 %v7833_v47, 16  ;;  %v9403_v1 = vld.sshfl [vmem:[%s9310_s27 + $0x28] sm:$0xf pattern:$0x76325410] }
  0x2f   : > { %v9387_v52 = vsel %vm9337_vm8, %v637_v46, %v641_v40  ;;  %v660_v54 = vcombine.low %v614_v44, %v9378_v45  ;;  %8541 = vmatmul.mubr.msk.bf16.vlgmr.msra.gmra.mrb[0].mxu0 %vm270_vm1, %v508_v43  ;;  %v949_v62 = vshll.u32 %v7833_v47, 16  ;;  %v960_v4 = vshrl.u32 %v7834_v51, 16  ;;  %v9407_v9 = vld.sshfl [vmem:[%s9310_s27 + $0x30] sm:$0xf pattern:$0x76325410] }
  0x30   : > { %v651_v53 = vrot.slane %v650_v49, 2  ;;  %8545 = vmatpush3.bf16.msra.mxu0 %v9084_v48  ;;  %8546 = vmatprep.mubr.msk.bf16.mxu0 %vm9246_vm0, %v9245_v3  ;;  %v963_v5 = vshll.u32 %v7834_v51, 16  ;;  %v9409_v11 = vshll.u32 %v906_v56, 16  ;;  %v974_v12 = vshrl.u32 %v7835_v55, 16 }
  0x31   : > { %8550 = vmatprep.subr.bf16.mxu0 %v9245_v3  ;;  %v668_v0 = vrot.slane %v660_v54, %v9313_v8  ;;  %v977_v13 = vshll.u32 %v7835_v55, 16  ;;  %v934_v15 = vrot.slane %v932_v57, 6  ;;  %v937_v16 = vrot.slane %v935_v59, 7 }
  0x32   : > { %v9396_v58 = vsel %vm9337_vm8, %v651_v53, %v655_v50  ;;  %v948_v17 = vrot.slane %v946_v60, 6  ;;  %v951_v18 = vrot.slane %v949_v62, 7  ;;  %v930_v20 = vcombine.high %v7835_v55, %v7835_v55  ;;  %v7844_v21 = vld.sshfl [vmem:[%s9310_s27 + $0x3c] sm:$0x13 pattern:$0x76325410] }
  0x33   : > { %v661_v63 = vcombine.low %v9387_v52, %v9396_v58  ;;  %v7845_v22 = vld.sshfl [vmem:[%s9310_s27 + $0x40] sm:$0x13 pattern:$0x76325410]  ;;  %v962_v24 = vrot.slane %v960_v4, 6  ;;  %v965_v25 = vrot.slane %v963_v5, 7  ;;  %v1074_v32 = vcombine.high %v7844_v21, %v7844_v21 }
  0x34   : > { %v976_v26 = vrot.slane %v974_v12, 6  ;;  %v979_v27 = vrot.slane %v977_v13, 7  ;;  %v7846_v29 = vld.sshfl [vmem:[%s9310_s27 + $0x44] sm:$0x13 pattern:$0x76325410]  ;;  %v1082_v33 = vcombine.high %v7845_v22, %v7845_v22  ;;  %v938_v34 = vor.u32 %v937_v16, %v934_v15 }
  0x35   : > { %v675_v6 = vrot.slane %v661_v63, %v9313_v8  ;;  %v943_v30 = vrot.slane %v9409_v11, 7  ;;  %v955_v31 = vshll.u32 %v914_v2, 16  ;;  %v952_v35 = vor.u32 %v951_v18, %v948_v17  ;;  %v9419_v42 = vld.sshfl [vmem:[%s9310_s27 + $0x48] sm:$0x13 pattern:$0x76325410] }
  0x36   : > { %v969_v36 = vshll.u32 %v922_v19, 16  ;;  %v1114_v37 = vshrl.u32 %v7845_v22, 16  ;;  %v966_v39 = vor.u32 %v965_v25, %v962_v24  ;;  %v980_v40 = vor.u32 %v979_v27, %v976_v26  ;;  %v9430_v54 = vld.sshfl [vmem:[%s9310_s27 + $0x3c] sm:$0xf pattern:$0x76325410] }
  0x37   : > { %v676_v28 = vcombine.low %v668_v0, %v675_v6  ;;  %v983_v41 = vshll.u32 %v930_v20, 16  ;;  %v1117_v43 = vshll.u32 %v7845_v22, 16  ;;  %v1090_v44 = vcombine.high %v7846_v29, %v7846_v29  ;;  %v9433_v60 = vld.sshfl [vmem:[%s9310_s27 + $0x44] sm:$0xf pattern:$0x76325410] }
  0x38   : > { %v1100_v46 = vshrl.u32 %v7844_v21, 16  ;;  %v1103_v47 = vshll.u32 %v7844_v21, 16  ;;  %v1116_v48 = vrot.slane %v1114_v37, 6  ;;  %v9424_v49 = vshll.u32 %v1074_v32, 16  ;;  %v9088_v19 = vld [vmem:[%s10588_s1 + $0x28] sm:$0xff]  }
  0x39   : > { %v1119_v50 = vrot.slane %v1117_v43, 7  ;;  %v9426_v51 = vshll.u32 %v1082_v33, 16  ;;  %v1128_v53 = vshrl.u32 %v7846_v29, 16  ;;  %v939_v55 = vrot.slane %v938_v34, 2 }
  0x3a   : > { %v953_v56 = vrot.slane %v952_v35, 2  ;;  %v957_v57 = vrot.slane %v955_v31, 7  ;;  %v971_v59 = vrot.slane %v969_v36, 7  ;;  %v967_v62 = vrot.slane %v966_v39, 2 }
  0x3b   : > { %8547 = vmatmul.mubr.msk.bf16.vlgmr.msra.gmra.mrb[0].mxu0 %vm270_vm1, %v676_v28  ;;  %v985_v63 = vrot.slane %v983_v41, 7  ;;  %v1131_v0 = vshll.u32 %v7846_v29, 16  ;;  %v1142_v2 = vshrl.u32 %v9419_v42, 16  ;;  %v981_v4 = vrot.slane %v980_v40, 2 }
  0x3c   : > { %8551 = vmatpush3.bf16.msra.mxu0 %v9085_v23  ;;  %8552 = vmatprep.mubr.msk.bf16.mxu0 %vm9246_vm0, %v9245_v3  ;;  %v9436_v5 = vrot.slane %v1100_v46, 6  ;;  %v9438_v6 = vrot.slane %v1103_v47, 7  ;;  %v1120_v11 = vor.u32 %v1119_v50, %v1116_v48  ;;  %v1111_v12 = vrot.slane %v9424_v49, 7 }
  0x3d   : > { %8556 = vmatprep.subr.bf16.mxu0 %v9245_v3  ;;  %v1125_v13 = vrot.slane %v9426_v51, 7  ;;  %v1130_v15 = vrot.slane %v1128_v53, 6  ;;  %v1137_v16 = vshll.u32 %v1090_v44, 16  ;;  %v757_v18 = vcombine.low %v9403_v1, %v9407_v9 }
  0x3e   : > { %v7875_v17 = vld.sshfl [vmem:[%s9310_s27 + $0x10] sm:$0x13 pattern:$0x76325410]  ;;  %v1133_v20 = vrot.slane %v1131_v0, 7  ;;  %v9448_v21 = vrot.slane %v1142_v2, 6  ;;  %v9453_v24 = vsel %vm9337_vm8, %v939_v55, %v943_v30  ;;  %v9458_v1 = vsel %vm9337_vm8, %v953_v56, %v957_v57 }
  0x3f   : > { %v1121_v22 = vrot.slane %v1120_v11, 2  ;;  %v1145_v23 = vshll.u32 %v9419_v42, 16  ;;  %v1428_v25 = vcombine.high %v7875_v17, %v7875_v17  ;;  %v1472_v26 = vshrl.u32 %v7875_v17, 16 }
  0x40   : > { %v1475_v27 = vshll.u32 %v7875_v17, 16  ;;  %v7887_v28 = vld.sshfl [vmem:[%s9310_s27 + $0x24] sm:$0x13 pattern:$0x76325410]  ;;  %v9462_v9 = vsel %vm9337_vm8, %v967_v62, %v971_v59  ;;  %v1098_v29 = vcombine.high %v9419_v42, %v9419_v42  ;;  %v1488_v31 = vcombine.low %v9352_v61, %v9359_v10  ;;  %v9091_v17 = vld [vmem:[%s10588_s1 + $0x30] sm:$0xff]  }
  0x41   : > { %v1134_v30 = vor.u32 %v1133_v20, %v1130_v15  ;;  %v1474_v32 = vrot.slane %v1472_v26, 6  ;;  %v1481_v34 = vshll.u32 %v1428_v25, 16  ;;  %v9471_v35 = vsel %vm9337_vm8, %v981_v4, %v985_v63  ;;  %v7915_v56 = vld.sshfl [vmem:[%s9310_s27 + $0x38] sm:$0x13 pattern:$0x76325410] }
  0x42   : > { %v1477_v33 = vrot.slane %v1475_v27, 7  ;;  %v1596_v36 = vcombine.high %v7887_v28, %v7887_v28  ;;  %v1640_v37 = vshrl.u32 %v7887_v28, 16  ;;  %v1643_v39 = vshll.u32 %v7887_v28, 16 }
  0x43   : > { %v1147_v40 = vrot.slane %v1145_v23, 7  ;;  %v1483_v61 = vrot.slane %v1481_v34, 7  ;;  %v1656_v10 = vcombine.low %v9378_v45, %v9387_v52  ;;  %v1139_v42 = vrot.slane %v1137_v16, 7 }
  0x44   : > { %v1478_v41 = vor.u32 %v1477_v33, %v1474_v32  ;;  %v1642_v43 = vrot.slane %v1640_v37, 6  ;;  %v1645_v44 = vrot.slane %v1643_v39, 7  ;;  %v1649_v46 = vshll.u32 %v1596_v36, 16 }
  0x45   : > { %v838_v47 = vcombine.low %v9430_v54, %v9433_v60  ;;  %v990_v48 = vcombine.low %v9453_v24, %v9458_v1  ;;  %v1135_v50 = vrot.slane %v1134_v30, 2  ;;  %v991_v53 = vcombine.low %v9462_v9, %v9471_v35  ;;  %v7927_v62 = vld.sshfl [vmem:[%s9310_s27 + $0x4c] sm:$0x13 pattern:$0x76325410] }
  0x46   : > { %v1479_v51 = vrot.slane %v1478_v41, 2  ;;  %v1151_v55 = vshll.u32 %v1098_v29, 16  ;;  %v1646_v45 = vor.u32 %v1645_v44, %v1642_v43  ;;  %v1651_v52 = vrot.slane %v1649_v46, 7 }
  0x47   : > { %8553 = vmatmul.mubr.msk.bf16.vlgmr.msra.gmra.mrb[0].mxu0 %vm270_vm1, %v757_v18  ;;  %v9487_v57 = vsel %vm9337_vm8, %v1121_v22, %v1125_v13  ;;  %v1148_v59 = vor.u32 %v1147_v40, %v9448_v21  ;;  %v1926_v60 = vcombine.high %v7915_v56, %v7915_v56  ;;  %v9495_v0 = vrot.slane %v1488_v31, %v9313_v8 }
  0x48   : > { %8557 = vmatpush3.bf16.msra.mxu0 %v9088_v19  ;;  %8558 = vmatprep.mubr.msk.bf16.mxu0 %vm9246_vm0, %v9245_v3  ;;  %v1484_v54 = vsel %vm9337_vm8, %v1479_v51, %v1483_v61  ;;  %v1647_v2 = vrot.slane %v1646_v45, 2  ;;  %v1970_v4 = vshrl.u32 %v7915_v56, 16  ;;  %v1140_v11 = vsel %vm9337_vm8, %v1135_v50, %v1139_v42 }
  0x49   : > { %8562 = vmatprep.subr.bf16.mxu0 %v9245_v3  ;;  %v1489_v63 = vcombine.low %v9364_v14, %v1484_v54  ;;  %v1973_v15 = vshll.u32 %v7915_v56, 16  ;;  %v1979_v13 = vshll.u32 %v1926_v60, 16  ;;  %v1986_v16 = vcombine.low %v9458_v1, %v9462_v9  ;;  %v9225_v54 = vld.sshfl [vmem:[%s9310_s27 + $0x4] sm:$0xf pattern:$0x76325410] }
  0x4a   : > { %v1652_v14 = vsel %vm9337_vm8, %v1647_v2, %v1651_v52  ;;  %v1972_v19 = vrot.slane %v1970_v4, 6  ;;  %v2094_v20 = vcombine.high %v7927_v62, %v7927_v62  ;;  %v9511_v22 = vrot.slane %v1656_v10, %v9313_v8  ;;  %v9096_v60 = vld [vmem:[%s10588_s1 + $0x48] sm:$0xff]   ;;  %v9228_v2 = vld.sshfl [vmem:[%s9310_s27 + $0x20] sm:$0xf pattern:$0x76325410] }
  0x4b   : > { %v9505_v18 = vrot.slane %v1489_v63, %v9313_v8  ;;  %v1657_v21 = vcombine.low %v9396_v58, %v1652_v14  ;;  %v1975_v23 = vrot.slane %v1973_v15, 7  ;;  %v1981_v24 = vrot.slane %v1979_v13, 7  ;;  %v9227_v63 = vld.sshfl [vmem:[%s9310_s27 + $0x18] sm:$0xf pattern:$0x76325410] }
  0x4c   : > { %v2138_v26 = vshrl.u32 %v7927_v62, 16  ;;  %v2141_v27 = vshll.u32 %v7927_v62, 16  ;;  %v2147_v28 = vshll.u32 %v2094_v20, 16  ;;  %v1106_v1 = vor.u32 %v9438_v6, %v9436_v5  ;;  %v9099_v4 = vld [vmem:[%s10588_s1 + $0x50] sm:$0xff]   ;;  %v9100_v15 = vld [vmem:[%s10588_s1 + $0x58] sm:$0xff]   ;;  %v9101_v13 = vld [vmem:[%s10588_s1 + $0x60] sm:$0xff]  }
  0x4d   : > { %v1504_v25 = vcombine.low %v9495_v0, %v9505_v18  ;;  %v9518_v9 = vrot.slane %v1657_v21, %v9313_v8  ;;  %v1976_v29 = vor.u32 %v1975_v23, %v1972_v19  ;;  %v2154_v58 = vcombine.low %v9487_v57, %v1140_v11  ;;  %v9104_v18 = vld [vmem:[%s10588_s1 + $0x68] sm:$0xff]   ;;  %v9231_v14 = vld.sshfl [vmem:[%s9310_s27 + $0x40] sm:$0xf pattern:$0x76325410]  ;;  %v9107_v21 = vld [vmem:[%s10588_s1 + $0x70] sm:$0xff]  }
  0x4e   : > { %v1149_v31 = vrot.slane %v1148_v59, 2  ;;  %v1153_v30 = vrot.slane %v1151_v55, 7  ;;  %v2140_v32 = vrot.slane %v2138_v26, 6  ;;  %v2143_v33 = vrot.slane %v2141_v27, 7 }
  0x4f   : > { %v1672_v34 = vcombine.low %v9511_v22, %v9518_v9  ;;  %v1977_v5 = vrot.slane %v1976_v29, 2  ;;  %v2149_v6 = vrot.slane %v2147_v28, 7  ;;  %v998_v37 = vrot.slane %v990_v48, %v9313_v8  ;;  %v9232_v19 = vld.sshfl [vmem:[%s9310_s27 + $0x48] sm:$0xf pattern:$0x76325410] }
  0x50   : > { %v2144_v36 = vor.u32 %v2143_v33, %v2140_v32  ;;  %v1005_v39 = vrot.slane %v991_v53, %v9313_v8  ;;  %v1107_v41 = vrot.slane %v1106_v1, 2  ;;  %v9533_v10 = vrot.slane %v1986_v16, %v9313_v8  ;;  %v9229_v16 = vld.sshfl [vmem:[%s9310_s27 + $0x2c] sm:$0xf pattern:$0x76325410]  ;;  %v9108_v22 = vld [vmem:[%s10588_s1 + $0x78] sm:$0xff]  }
  0x51   : > { %v1982_v40 = vsel %vm9337_vm8, %v1977_v5, %v1981_v24  ;;  %v1154_v43 = vsel %vm9337_vm8, %v1149_v31, %v1153_v30  ;;  %v1834_v20 = vcombine.low %v9231_v14, %v9232_v19  ;;  %v9248_v23 = vmov 0   ;;  %v9109_v24 = vld [vmem:[%s10589_s2 + $0x10] sm:$0xff]  }
  0x52   : > { %v1987_v61 = vcombine.low %v9471_v35, %v1982_v40  ;;  %v2145_v42 = vrot.slane %v2144_v36, 2  ;;  %v9546_v35 = vrot.slane %v2154_v58, %v9313_v8  ;;  %v1006_v50 = vcombine.low %v998_v37, %v1005_v39  ;;  %2262 = vst.msk [vmem:[#allocation2] sm:$0x7] %vm2261_vm9, %v9248_v23  ;;  %2263 = vst.msk [vmem:[#allocation2 + $0x4] sm:$0x7] %vm2261_vm9, %v9248_v23 }
  0x53   : > { %8559 = vmatmul.mubr.msk.bf16.vlgmr.msra.gmra.mrb[0].mxu0 %vm270_vm1, %v838_v47  ;;  %v9092_v47 = vld [vmem:[%s10588_s1 + $0x38] sm:$0xff]   ;;  %v1112_v53 = vsel %vm9337_vm8, %v1107_v41, %v1111_v12  ;;  %v1159_v56 = vcombine.low %v1140_v11, %v1154_v43  ;;  %v9093_v12 = vld [vmem:[%s10588_s1 + $0x40] sm:$0xff]   ;;  %v1336_v11 = vcombine.low %v9227_v63, %v9228_v2  ;;  %2264 = vst.msk [vmem:[#allocation2 + $0x8] sm:$0x7] %vm2261_vm9, %v9248_v23  ;;  %2265 = vst.msk [vmem:[#allocation2 + $0xc] sm:$0x7] %vm2261_vm9, %v9248_v23 }
  0x54   : > { %8563 = vmatpush3.bf16.msra.mxu0 %v9091_v17  ;;  %8564 = vmatprep.mubr.msk.bf16.mxu0 %vm9246_vm0, %v9245_v3  ;;  %v9538_v44 = vrot.slane %v1987_v61, %v9313_v8  ;;  %v2150_v46 = vsel %vm9337_vm8, %v2145_v42, %v2149_v6  ;;  %v1158_v52 = vcombine.low %v1112_v53, %v9487_v57  ;;  %v9226_v57 = vld.sshfl [vmem:[%s9310_s27 + $0xc] sm:$0xf pattern:$0x76325410]  ;;  %vm5566_vm8 = vsmask.f32 1284 }
  0x55   : > { %8568 = vmatprep.subr.bf16.mxu0 %v9245_v3  ;;  %v2155_v48 = vcombine.low %v1154_v43, %v2150_v46  ;;  %v1173_v49 = vrot.slane %v1159_v56, %v9313_v8  ;;  %v1255_v62 = vcombine.low %v9225_v54, %v9226_v57  ;;  %v9230_v17 = vld.sshfl [vmem:[%s9310_s27 + $0x34] sm:$0xf pattern:$0x76325410]  ;;  %2266 = vst.msk [vmem:[#allocation2 + $0x10] sm:$0x7] %vm2261_vm9, %v9248_v23 }
  0x56   : > { %v2002_v51 = vcombine.low %v9533_v10, %v9538_v44  ;;  %v1166_v38 = vrot.slane %v1158_v52, %v9313_v8  ;;  %v1753_v0 = vcombine.low %v9229_v16, %v9230_v17  ;;  %2267 = vst.msk [vmem:[#allocation2 + $0x14] sm:$0x7] %vm2261_vm9, %v9248_v23  ;;  %8623 = vmatpush3.bf16.msra.mxu1 %v9109_v24  ;;  %vm5568_vm9 = vsmask.f32 2312 }
  0x57   : > { %v9555_v55 = vrot.slane %v2155_v48, %v9313_v8  ;;  %8624 = vmatprep.subr.bf16.mxu1 %v9245_v3 }
  0x58   : > { %v1174_v59 = vcombine.low %v1166_v38, %v1173_v49 }
  0x59   : > { %v2170_v45 = vcombine.low %v9546_v35, %v9555_v55 }
  0x5f   : > { %8565 = vmatmul.mubr.msk.bf16.vlgmr.msra.gmra.mrb[0].mxu0 %vm270_vm1, %v1006_v50 }
  0x60   : > { %8569 = vmatpush3.bf16.msra.mxu0 %v9092_v47  ;;  %8570 = vmatprep.mubr.msk.bf16.mxu0 %vm9246_vm0, %v9245_v3 }
  0x61   : > { %8574 = vmatprep.subr.bf16.mxu0 %v9245_v3 }
  0x6b   : > { %8571 = vmatmul.mubr.msk.bf16.vlgmr.msra.gmra.mrb[0].mxu0 %vm270_vm1, %v1174_v59 }
  0x6c   : > { %8575 = vmatpush3.bf16.msra.mxu0 %v9093_v12  ;;  %8576 = vmatprep.mubr.msk.bf16.mxu0 %vm9246_vm0, %v9245_v3 }
  0x6d   : > { %8580 = vmatprep.subr.bf16.mxu0 %v9245_v3 }
  0x77   : > { %8577 = vmatmul.mubr.msk.bf16.vlgmr.msra.gmra.mrb[0].mxu0 %vm270_vm1, %v1255_v62  ;;  %v9249_v62 = vmov 1966171168  }
  0x78   : > { %8581 = vmatpush3.bf16.msra.mxu0 %v9096_v60  ;;  %8582 = vmatprep.mubr.msk.bf16.mxu0 %vm9246_vm0, %v9245_v3  ;;  %v2377_v63 = vunpack.c.l.s4 %v9249_v62 }
  0x79   : > { %8586 = vmatprep.subr.bf16.mxu0 %v9245_v3 }
  0x83   : > { %8583 = vmatmul.mubr.msk.bf16.vlgmr.msra.gmra.mrb[0].mxu0 %vm270_vm1, %v1336_v11 }
  0x84   : > { %8587 = vmatpush3.bf16.msra.mxu0 %v9099_v4  ;;  %8588 = vmatprep.mubr.msk.bf16.mxu0 %vm9246_vm0, %v9245_v3 }
  0x85   : > { %8592 = vmatprep.subr.bf16.mxu0 %v9245_v3 }
  0x8f   : > { %8589 = vmatmul.mubr.msk.bf16.vlgmr.msra.gmra.mrb[0].mxu0 %vm270_vm1, %v1504_v25  ;;  %v9110_v25 = vld [vmem:[%s10589_s2 + $0x18] sm:$0xff]  }
  0x90   : > { %8593 = vmatpush3.bf16.msra.mxu0 %v9100_v15  ;;  %8594 = vmatprep.mubr.msk.bf16.mxu0 %vm9246_vm0, %v9245_v3 }
  0x91   : > { %8598 = vmatprep.subr.bf16.mxu0 %v9245_v3  ;;  %8625 = vmatpush3.bf16.msra.mxu1 %v9110_v25 }
  0x92   : > { %8630 = vmatprep.subr.bf16.mxu1 %v9245_v3 }
  0x9b   : > { %8595 = vmatmul.mubr.msk.bf16.vlgmr.msra.gmra.mrb[0].mxu0 %vm270_vm1, %v1672_v34 }
  0x9c   : > { %8599 = vmatpush3.bf16.msra.mxu0 %v9101_v13  ;;  %8600 = vmatprep.mubr.msk.bf16.mxu0 %vm9246_vm0, %v9245_v3 }
  0x9d   : > { %8604 = vmatprep.subr.bf16.mxu0 %v9245_v3 }
  0xa7   : > { %8601 = vmatmul.mubr.msk.bf16.vlgmr.msra.gmra.mrb[0].mxu0 %vm270_vm1, %v1753_v0  ;;  %v2378_v0 = vunpack.c.0.s8 %v2377_v63 }
  0xa8   : > { %8605 = vmatpush3.bf16.msra.mxu0 %v9104_v18  ;;  %8606 = vmatprep.mubr.msk.bf16.mxu0 %vm9246_vm0, %v9245_v3 }
  0xa9   : > { %8610 = vmatprep.subr.bf16.mxu0 %v9245_v3 }
  0xb3   : > { %8607 = vmatmul.mubr.msk.bf16.vlgmr.msra.gmra.mrb[0].mxu0 %vm270_vm1, %v1834_v20 }
  0xb4   : > { %8611 = vmatpush3.bf16.msra.mxu0 %v9107_v21  ;;  %8612 = vmatprep.mubr.msk.bf16.mxu0 %vm9246_vm0, %v9245_v3 }
  0xb5   : > { %8616 = vmatprep.subr.bf16.mxu0 %v9245_v3 }
  0xbf   : > { %8613 = vmatmul.mubr.msk.bf16.vlgmr.msra.gmra.mrb[0].mxu0 %vm270_vm1, %v2002_v51 }
  0xc0   : > { %8617 = vmatpush3.bf16.msra.mxu0 %v9108_v22  ;;  %8618 = vmatprep.mubr.msk.bf16.mxu0 %vm9246_vm0, %v9245_v3  ;;  %v7933_v22 = vld.sshfl [vmem:[#allocation2] sm:$0x11 pattern:$0x75316420] }
  0xc1   : > { %8750 = vmatprep.subr.bf16.mxu0 %v9245_v3 }
  0xcb   : > { %8619 = vmatmul.mubr.msk.bf16.vlgmr.msra.gmra.mrb[0].mxu0 %vm270_vm1, %v2170_v45  ;;  %vm5353_vm1 = vsmask.f32 2304 }
  0xcc   : > { %8758 = vmatprep.mubr.msk.bf16.mxu0 %vm9246_vm0, %v9245_v3  ;;  %vm5354_vm2 = vmand %vm5352_vm15, %vm5353_vm1  ;;  %vm5572_vm1 = vsmask.f32 4368 }
 0x19e   : > { %v2214_v26 = vpop.f32.mrb[0].mxu0 }
 0x19f   : > { %v2233_v27 = vmul.f32 %v2214_v26, %v2214_v26  ;;  %v8620_v28 = vpop.f32.mrb[1].mxu0  ;;  %v2224_v9 = vsel %vm2223_vm10, %v2214_v26, 0.0 }
 0x1a0   : > { %v2217_v1 = vpop.f32.mrb[2].mxu0 }
 0x1a1   : > { %v2225_v29 = vsel %vm2223_vm10, %v2217_v1, 0.0  ;;  %v2234_v58 = vmul.f32 %v2217_v1, %v2217_v1  ;;  %v8621_v31 = vpop.f32.mrb[3].mxu0  ;;  %v2235_v32 = vsel %vm2223_vm10, %v2233_v27, 0.0  ;;  %v2350_v27 = vld [vmem:[#allocation2 + $0x4] sm:$0x7] }
 0x1a2   : > { %v2226_v30 = vadd.f32 %v2225_v29, %v2224_v9  ;;  %v2356_v29 = vld [vmem:[#allocation2 + $0xc] sm:$0x7] }
 0x1a3   : > { %v2236_v33 = vsel %vm2223_vm10, %v2234_v58, 0.0  ;;  %v9666_v58 = vsub.s32 %v2378_v0, %v9305_v7 }
 0x1a4   : > { %v2227_v34 = vrot.slane %v2226_v30, 4  ;;  %v2237_v5 = vadd.f32 %v2236_v33, %v2235_v32  ;;  %v2359_v32 = vld [vmem:[#allocation2 + $0x10] sm:$0x7] }
 0x1a6   : > { %v2228_v6 = vadd.f32 %v2227_v34, %v2226_v30  ;;  %v2238_v36 = vrot.slane %v2237_v5, 4  ;;  %v2353_v30 = vld [vmem:[#allocation2 + $0x8] sm:$0x7] }
 0x1a8   : > { %v2229_v37 = vrot.slane %v2228_v6, 2  ;;  %v2239_v39 = vadd.f32 %v2238_v36, %v2237_v5  ;;  %v2375_v36 = vcombine.high %v7933_v22, %v7933_v22 }
 0x1aa   : > { %v2230_v40 = vadd.f32 %v2229_v37, %v2228_v6  ;;  %v2240_v41 = vrot.slane %v2239_v39, 2 }
 0x1ac   : > { %v2231_v61 = vrot.slane %v2230_v40, 1  ;;  %v2241_v10 = vadd.f32 %v2240_v41, %v2239_v39  ;;  %v2389_v41 = vrot.slane %v2375_v36, %v9666_v58 }
 0x1ae   : > { %v2232_v42 = vadd.f32 %v2231_v61, %v2230_v40  ;;  %v2242_v43 = vrot.slane %v2241_v10, 1  ;;  %v2382_v40 = vrot.slane %v7933_v22, %v9666_v58 }
 0x1b0   : > { %v2243_v44 = vadd.f32 %v2242_v43, %v2241_v10  ;;  %v2244_v46 = vmul.f32 0.0625, %v2232_v42  ;;  %v2435_v61 = vunpack.i.h.s16 %v2382_v40 }
 0x1b2   : > { %v2245_v47 = vmul.f32 0.0625, %v2243_v44  ;;  %v2246_v48 = vmul.f32 %v2244_v46, %v2244_v46  ;;  %v2248_v35 = vsub.f32 %v2214_v26, %v2244_v46  ;;  %v2249_v50 = vsub.f32 %v2217_v1, %v2244_v46 }
 0x1b3   : > { %v2447_v44 = vunpack.i.h.s16 %v2389_v41 }
 0x1b4   : > { %v2247_v51 = vsub.f32 %v2245_v47, %v2246_v48 }
 0x1b6   : > { %v2250_v53 = vadd.f32 1e-05, %v2247_v51 }
 0x1b8   : > { %9209 = vrsqrt.f32 %v2250_v53 }
 0x1c2   : > { %v9210_v55 = vpop.eup %9209 }
 0x1c3   : > { %v2252_v45 = vmul.f32 %v9210_v55, %v2248_v35  ;;  %v2253_v52 = vmul.f32 %v9210_v55, %v2249_v50  ;;  %v7940_v50 = vpack.i.b16 %v2389_v41, %v2435_v61 }
 0x1c5   : > { %vm2254_vm11 = vcmp.ge.f32.partialorder %v2252_v45, 0.0  ;;  %vm2255_vm12 = vcmp.ge.f32.partialorder %v2253_v52, 0.0  ;;  %v2256_v56 = vmul.f32 0.2, %v2252_v45  ;;  %v2257_v38 = vmul.f32 0.2, %v2253_v52 }
 0x1c7   : > { %v2258_v49 = vsel %vm2254_vm11, %v2252_v45, %v2256_v56  ;;  %v2259_v12 = vsel %vm2255_vm12, %v2253_v52, %v2257_v38  ;;  %vm5495_vm11 = vcmask 517120   ;;  %vm5496_vm12 = vsmask.f32 7938 }
 0x1c8   : > { %v2260_v59 = vpack.c.bf16 %v2259_v12, %v2258_v49  ;;  %v7932_v54 = vpack.c.bf16 %v2259_v12, %v2259_v12  ;;  %vm10190_vm15 = vmand %vm5495_vm11, %vm5496_vm12 }
 0x1ca   : > { %v2276_v57 = vrot.slane %v2260_v59, %v9313_v8  ;;  %v2283_v60 = vrot.slane %v7932_v54, %v9313_v8 }
 0x1cc   : > { %v2284_v2 = vcombine.high %v2276_v57, %v2276_v57  ;;  %v2285_v4 = vcombine.high %v2283_v60, %v2283_v60  ;;  %v2292_v11 = vrot.slane %v2276_v57, %v9313_v8  ;;  %v2306_v15 = vrot.slane %v2283_v60, %v9313_v8 }
 0x1ce   : > { %v2299_v13 = vrot.slane %v2284_v2, %v9313_v8  ;;  %v2313_v16 = vrot.slane %v2285_v4, %v9313_v8  ;;  %v2315_v17 = vshrl.u32 %v2292_v11, 16  ;;  %v2329_v18 = vshrl.u32 %v2306_v15, 16  ;;  %v7950_v2 = vld.sshfl [vmem:[#allocation2] sm:$0x12 pattern:$0x75316420] }
 0x1cf   : > { %v2318_v19 = vshll.u32 %v2292_v11, 16  ;;  %v2332_v25 = vshll.u32 %v2306_v15, 16 }
 0x1d0   : > { %v2317_v14 = vrot.slane %v2315_v17, 7  ;;  %v2322_v20 = vshrl.u32 %v2299_v13, 16  ;;  %v2336_v21 = vshrl.u32 %v2313_v16, 16  ;;  %v2325_v23 = vshll.u32 %v2299_v13, 16 }
 0x1d1   : > { %v2331_v24 = vrot.slane %v2329_v18, 7  ;;  %v2339_v9 = vshll.u32 %v2313_v16, 16  ;;  %v2675_v13 = vrot.slane %v7950_v2, %v9666_v58 }
 0x1d2   : > { %v2320_v28 = vor.u32 %v2318_v19, %v2317_v14  ;;  %v2324_v8 = vrot.slane %v2322_v20, 7  ;;  %v2338_v1 = vrot.slane %v2336_v21, 7  ;;  %v9111_v14 = vld [vmem:[%s10589_s2] sm:$0xff]  }
 0x1d3   : > { %v2334_v31 = vor.u32 %v2332_v25, %v2331_v24 }
 0x1d4   : > { %v2327_v33 = vor.u32 %v2325_v23, %v2324_v8  ;;  %v2341_v34 = vor.u32 %v2339_v9, %v2338_v1  ;;  %v2351_v5 = vsel %vm9661_vm14, %v2320_v28, %v2350_v27  ;;  %v2683_v23 = vcombine.high %v2675_v13, %v2675_v13  ;;  %v9112_v28 = vld [vmem:[%s10589_s2 + $0x8] sm:$0xff]  }
 0x1d5   : > { %2352 = vst [vmem:[#allocation2 + $0x4] sm:$0x7] %v2351_v5  ;;  %v2357_v6 = vsel %vm9661_vm14, %v2334_v31, %v2356_v29  ;;  %v2668_v1 = vcombine.high %v7950_v2, %v7950_v2 }
 0x1d6   : > { %v2354_v37 = vsel %vm9661_vm14, %v2327_v33, %v2353_v30  ;;  %2358 = vst [vmem:[#allocation2 + $0xc] sm:$0x7] %v2357_v6  ;;  %v2360_v39 = vsel %vm9661_vm14, %v2341_v34, %v2359_v32  ;;  %vm5570_vm14 = vsmask.f32 3340 }
 0x1d7   : > { %2355 = vst [vmem:[#allocation2 + $0x8] sm:$0x7] %v2354_v37  ;;  %2361 = vst [vmem:[#allocation2 + $0x10] sm:$0x7] %v2360_v39  ;;  %v2682_v34 = vrot.slane %v2668_v1, %v9666_v58 }
 0x1dc   : > { %v7934_v10 = vld.sshfl [vmem:[#allocation2 + $0x4] sm:$0x11 pattern:$0x75316420] }
 0x1dd   : > { %v2397_v42 = vcombine.high %v7934_v10, %v7934_v10  ;;  %v9679_v43 = vrot.slane %v7934_v10, %v9666_v58  ;;  %v7951_v52 = vld.sshfl [vmem:[#allocation2 + $0x4] sm:$0x12 pattern:$0x75316420] }
 0x1de   : > { %v7935_v46 = vld.sshfl [vmem:[#allocation2 + $0x8] sm:$0x11 pattern:$0x75316420]  ;;  %v2691_v54 = vcombine.high %v7951_v52, %v7951_v52  ;;  %v2698_v18 = vrot.slane %v7951_v52, %v9666_v58 }
 0x1df   : > { %v2419_v47 = vcombine.high %v7935_v46, %v7935_v46  ;;  %v9682_v48 = vrot.slane %v7935_v46, %v9666_v58  ;;  %v2438_v35 = vunpack.i.h.s16 %v9679_v43  ;;  %v9686_v51 = vrot.slane %v2397_v42, %v9666_v58  ;;  %v7952_v19 = vld.sshfl [vmem:[#allocation2 + $0x8] sm:$0x12 pattern:$0x75316420] }
 0x1e0   : > { %v7945_v63 = vpack.i.b16 %v9679_v43, %v2389_v41  ;;  %v9712_v15 = vrot.slane %v2691_v54, %v9666_v58  ;;  %v9726_v26 = vcombine.high %v2698_v18, %v2698_v18  ;;  %v2714_v27 = vcombine.high %v7952_v19, %v7952_v19  ;;  %v7976_v6 = vld.sshfl [vmem:[#allocation2 + $0xc] sm:$0x11 pattern:$0x75316420] }
 0x1e1   : > { %v9689_v53 = vrot.slane %v2419_v47, %v9666_v58  ;;  %v2441_v55 = vunpack.i.h.s16 %v9682_v48  ;;  %v2456_v45 = vpack.i.b16 %v2438_v35, %v2447_v44  ;;  %v9701_v59 = vpack.i.b16 %v9686_v51, %v2438_v35 }
 0x1e2   : > { %v2560_v0 = vcombine.low %v2382_v40, %v7945_v63  ;;  %v2734_v22 = vunpack.i.h.s16 %v9712_v15  ;;  %v2721_v31 = vrot.slane %v7952_v19, %v9666_v58  ;;  %v9740_v30 = vrot.slane %v2714_v27, %v9666_v58  ;;  %v9113_v40 = vld [vmem:[%s10589_s2 + $0x20] sm:$0xff]   ;;  %v9115_v19 = vld [vmem:[%s10589_s2 + $0x30] sm:$0xff]  }
 0x1e3   : > { %v2449_v56 = vunpack.i.h.s16 %v9689_v53  ;;  %v9696_v38 = vpack.i.b16 %v9689_v53, %v2441_v55  ;;  %v2460_v49 = vcombine.low %v7940_v50, %v2456_v45  ;;  %v2561_v11 = vcombine.low %v9701_v59, %v9682_v48  ;;  %v8000_v50 = vld.sshfl [vmem:[#allocation2 + $0xc] sm:$0x12 pattern:$0x75316420] }
 0x1e4   : > { %v2442_v24 = vunpack.i.l.s16 %v9689_v53  ;;  %v2568_v25 = vrot.slane %v2560_v0, %v9666_v58  ;;  %v9735_v9 = vpack.i.b16 %v9726_v26, %v2734_v22  ;;  %v7957_v32 = vpack.i.b16 %v9712_v15, %v2683_v23  ;;  %v9114_v45 = vld [vmem:[%s10589_s2 + $0x28] sm:$0xff]  }
 0x1e5   : > { %v2461_v12 = vcombine.low %v9686_v51, %v9696_v38  ;;  %v2468_v57 = vrot.slane %v2460_v49, %v9666_v58  ;;  %v2482_v62 = vrot.slane %v2449_v56, %v9666_v58  ;;  %v2575_v21 = vrot.slane %v2561_v11, %v9666_v58 }
 0x1e6   : > { %v2582_v29 = vrot.slane %v2442_v24, %v9666_v58  ;;  %v2750_v5 = vcombine.low %v9735_v9, %v9740_v30  ;;  %v9749_v37 = vcombine.high %v2721_v31, %v2721_v31  ;;  %v2749_v39 = vcombine.low %v2682_v34, %v7957_v32 }
 0x1e7   : > { %v2475_v60 = vrot.slane %v2461_v12, %v9666_v58  ;;  %v2497_v17 = vrot.slane %v2482_v62, %v9666_v58  ;;  %v2583_v8 = vcombine.low %v2568_v25, %v2575_v21  ;;  %v2927_v10 = vunpack.i.h.s16 %v9740_v30 }
 0x1e8   : > { %v2597_v36 = vrot.slane %v2582_v29, %v9666_v58  ;;  %v2764_v61 = vrot.slane %v2750_v5, %v9666_v58  ;;  %v9757_v42 = vrot.slane %v7976_v6, %v9666_v58  ;;  %v2921_v44 = vunpack.i.h.s16 %v2682_v34  ;;  %v9116_v29 = vld [vmem:[%s10589_s2 + $0x38] sm:$0xff]  }
 0x1e9   : > { %v2483_v4 = vcombine.low %v2468_v57, %v2475_v60  ;;  %v2590_v33 = vrot.slane %v2583_v8, %v9666_v58  ;;  %v2738_v46 = vunpack.i.l.s16 %v9749_v37  ;;  %v2757_v47 = vrot.slane %v2749_v39, %v9666_v58 }
 0x1ea   : > { %v2923_v35 = vunpack.i.h.s16 %v2683_v23  ;;  %v9771_v49 = vpack.i.b16 %v9749_v37, %v2927_v10  ;;  %v8029_v12 = vpack.i.b16 %v9757_v42, %v9689_v53  ;;  %v4059_v54 = vunpack.i.h.s16 %v9757_v42 }
 0x1eb   : > { %v2490_v16 = vrot.slane %v2483_v4, %v9666_v58  ;;  %v2598_v41 = vcombine.low %v2590_v33, %v2597_v36  ;;  %v2772_v52 = vcombine.low %v2757_v47, %v2764_v61  ;;  %v7969_v57 = vpack.i.b16 %v2683_v23, %v2921_v44  ;;  %v9802_v23 = vld.sshfl [vmem:[#allocation2 + $0x10] sm:$0x12 pattern:$0x75316420] }
 0x1ec   : > { %v3472_v60 = vcombine.high %v8000_v50, %v8000_v50  ;;  %v2771_v62 = vrot.slane %v2738_v46, %v9666_v58  ;;  %v2936_v63 = vpack.i.b16 %v2734_v22, %v2923_v35  ;;  %v9778_v2 = vcombine.low %v9682_v48, %v8029_v12  ;;  %v9117_v12 = vld [vmem:[%s10589_s2 + $0x40] sm:$0xff]  }
 0x1ed   : > { %v2498_v20 = vcombine.low %v2490_v16, %v2497_v17  ;;  %v9782_v4 = vpack.i.b16 %v4059_v54, %v2449_v56  ;;  %v2779_v11 = vrot.slane %v2772_v52, %v9666_v58  ;;  %v2941_v13 = vcombine.low %v9726_v26, %v9771_v49  ;;  %v9794_v56 = vld.sshfl [vmem:[#allocation2 + $0x10] sm:$0x11 pattern:$0x75316420] }
 0x1ee   : > { %v3094_v17 = vcombine.high %v7976_v6, %v7976_v6  ;;  %v9791_v0 = vrot.slane %v3472_v60, %v9666_v58  ;;  %v2786_v18 = vrot.slane %v2771_v62, %v9666_v58  ;;  %v4440_v24 = vunpack.i.h.s16 %v9749_v37 }
 0x1ef   : > { %8627 = vmatmul.mubr.msk.bf16.vlgmr.msra.gmra.mrb[0].mxu1 %vm2223_vm10, %v2498_v20  ;;  %v4075_v16 = vcombine.low %v9696_v38, %v9782_v4  ;;  %v2955_v22 = vrot.slane %v2941_v13, %v9666_v58  ;;  %v9810_v27 = vrot.slane %v9794_v56, %v9666_v58  ;;  %v4231_v31 = vcombine.high %v9802_v23, %v9802_v23 }
 0x1f0   : > { %8631 = vmatpush3.bf16.msra.mxu1 %v9111_v14  ;;  %8634 = vmatprep.mubr.msk.bf16.mxu1 %vm9246_vm0, %v9245_v3  ;;  %v2940_v14 = vcombine.low %v7969_v57, %v2936_v63  ;;  %v8053_v20 = vpack.i.b16 %v9791_v0, %v9749_v37  ;;  %v2787_v21 = vcombine.low %v2779_v11, %v2786_v18  ;;  %v4441_v1 = vunpack.i.h.s16 %v9791_v0 }
 0x1f1   : > { %8632 = vmatprep.subr.bf16.mxu1 %v9245_v3  ;;  %v9806_v25 = vrot.slane %v3094_v17, %v9666_v58  ;;  %v3479_v34 = vrot.slane %v8000_v50, %v9666_v58  ;;  %v2962_v6 = vrot.slane %v4440_v24, %v9666_v58  ;;  %v7981_v36 = vpack.i.b16 %v9682_v48, %v9686_v51  ;;  %v9119_v48 = vld [vmem:[%s10589_s2 + $0x50] sm:$0xff]  }
 0x1f2   : > { %v2948_v8 = vrot.slane %v2940_v14, %v9666_v58  ;;  %v9826_v33 = vpack.i.b16 %v4441_v1, %v4440_v24  ;;  %v3129_v44 = vcombine.low %v9696_v38, %v9757_v42  ;;  %v4818_v35 = vunpack.i.h.s16 %v9810_v27 }
 0x1f3   : > { %v8077_v5 = vpack.i.b16 %v9810_v27, %v9806_v25  ;;  %v4817_v46 = vunpack.i.h.s16 %v9806_v25  ;;  %v9847_v47 = vcombine.high %v3479_v34, %v3479_v34  ;;  %v9851_v50 = vpack.i.b16 %v9806_v25, %v4059_v54 }
 0x1f4   : > { %8633 = vmatpush3.bf16.msra.mxu1 %v9112_v28  ;;  %v9813_v28 = vcombine.low %v9740_v30, %v8053_v20  ;;  %v2963_v32 = vcombine.low %v2948_v8, %v2955_v22  ;;  %v4457_v39 = vcombine.low %v9771_v49, %v9826_v33  ;;  %v3128_v52 = vcombine.low %v9679_v43, %v7981_v36 }
 0x1f5   : > { %8638 = vmatprep.subr.bf16.mxu1 %v9245_v3  ;;  %v3143_v62 = vrot.slane %v3129_v44, %v9666_v58  ;;  %v3299_v54 = vunpack.i.h.s16 %v9686_v51  ;;  %v5199_v11 = vunpack.i.h.s16 %v9847_v47  ;;  %v3117_v17 = vunpack.i.l.s16 %v9806_v25  ;;  %v9118_v51 = vld [vmem:[%s10589_s2 + $0x48] sm:$0xff]  }
 0x1f6   : > { %v2970_v61 = vrot.slane %v2963_v32, %v9666_v58  ;;  %v3136_v18 = vrot.slane %v3128_v52, %v9666_v58  ;;  %v9877_v14 = vpack.i.b16 %v9847_v47, %v4441_v1  ;;  %v9121_v52 = vld [vmem:[%s10589_s2 + $0x60] sm:$0xff]   ;;  %v4238_v4 = vrot.slane %v9802_v23, %v9666_v58 }
 0x1f7   : > { %v3150_v24 = vrot.slane %v3117_v17, %v9666_v58  ;;  %v4274_v23 = vrot.slane %v9813_v28, %v9666_v58 }
 0x1f8   : > { %v3151_v20 = vcombine.low %v3136_v18, %v3143_v62  ;;  %v3681_v62 = vunpack.i.h.s16 %v9726_v26 }
 0x1fa   : > { %v3158_v8 = vrot.slane %v3151_v20, %v9666_v58  ;;  %v3699_v20 = vcombine.low %v9749_v37, %v9877_v14 }
 0x1fb   : > { %8635 = vmatmul.mubr.msk.bf16.vlgmr.msra.gmra.mrb[0].mxu1 %vm2223_vm10, %v2598_v41  ;;  %v9840_v41 = vcombine.low %v9757_v42, %v8077_v5  ;;  %v9860_v42 = vpack.i.b16 %v4818_v35, %v4817_v46  ;;  %v3338_v5 = vrot.slane %v4817_v46, %v9666_v58 }
 0x1fc   : > { %8639 = vmatpush3.bf16.msra.mxu1 %v9113_v40  ;;  %8642 = vmatprep.mubr.msk.bf16.mxu1 %vm9246_vm0, %v9245_v3  ;;  %v9837_v40 = vrot.slane %v4231_v31, %v9666_v58  ;;  %v3317_v31 = vcombine.low %v9689_v53, %v9851_v50 }
 0x1fd   : > { %8640 = vmatprep.subr.bf16.mxu1 %v9245_v3  ;;  %v4834_v63 = vcombine.low %v9851_v50, %v9860_v42  ;;  %v3353_v44 = vrot.slane %v3338_v5, %v9666_v58 }
 0x1fe   : > { %v8101_v57 = vpack.i.b16 %v9837_v40, %v9847_v47  ;;  %v5200_v13 = vunpack.i.h.s16 %v9837_v40  ;;  %v3331_v34 = vrot.slane %v3317_v31, %v9666_v58 }
 0x200   : > { %8641 = vmatpush3.bf16.msra.mxu1 %v9114_v45  ;;  %v2977_v45 = vrot.slane %v2962_v6, %v9666_v58  ;;  %v9869_v43 = vcombine.low %v9791_v0, %v8101_v57  ;;  %v8005_v6 = vpack.i.b16 %v9740_v30, %v9726_v26  ;;  %v3496_v57 = vunpack.i.l.s16 %v9847_v47 }
 0x201   : > { %8646 = vmatprep.subr.bf16.mxu1 %v9245_v3 }
 0x202   : > { %v2978_v60 = vcombine.low %v2970_v61, %v2977_v45  ;;  %v3508_v61 = vcombine.low %v9771_v49, %v9791_v0  ;;  %v3507_v45 = vcombine.low %v9712_v15, %v8005_v6  ;;  %v9122_v15 = vld [vmem:[%s10589_s2 + $0x68] sm:$0xff]   ;;  %v3529_v17 = vrot.slane %v3496_v57, %v9666_v58 }
 0x203   : > { %v4267_v57 = vcombine.low %v9877_v14, %v9837_v40 }
 0x207   : > { %8643 = vmatmul.mubr.msk.bf16.vlgmr.msra.gmra.mrb[0].mxu1 %vm2223_vm10, %v2787_v21  ;;  %v3312_v21 = vpack.i.b16 %v2441_v55, %v3299_v54  ;;  %v3694_v54 = vpack.i.b16 %v2927_v10, %v3681_v62  ;;  %v10020_v62 = vcombine.high %v4238_v4, %v4238_v4 }
 0x208   : > { %8647 = vmatpush3.bf16.msra.mxu1 %v9115_v19  ;;  %8650 = vmatprep.mubr.msk.bf16.mxu1 %vm9246_vm0, %v9245_v3  ;;  %v9888_v19 = vpack.i.b16 %v5200_v13, %v5199_v11 }
 0x209   : > { %8648 = vmatprep.subr.bf16.mxu1 %v9245_v3  ;;  %v3316_v1 = vcombine.low %v9701_v59, %v3312_v21  ;;  %v9120_v59 = vld [vmem:[%s10589_s2 + $0x58] sm:$0xff]   ;;  %v3698_v18 = vcombine.low %v9735_v9, %v3694_v54  ;;  %v9123_v21 = vld [vmem:[%s10589_s2 + $0x70] sm:$0xff]   ;;  %v4281_v54 = vrot.slane %v4267_v57, %v9666_v58  ;;  %v10039_v28 = vpack.i.b16 %v10020_v62, %v5200_v13 }
 0x20a   : > { %v5216_v22 = vcombine.low %v9877_v14, %v9888_v19  ;;  %v9124_v9 = vld [vmem:[%s10589_s2 + $0x78] sm:$0xff]   ;;  %v4465_v13 = vrot.slane %v4457_v39, %v9666_v58 }
 0x20b   : > { %v3324_v32 = vrot.slane %v3316_v1, %v9666_v58  ;;  %v3706_v10 = vrot.slane %v3698_v18, %v9666_v58  ;;  %v3853_v1 = vcombine.high %v9794_v56, %v9794_v56  ;;  %v3895_v56 = vrot.slane %v9778_v2, %v9666_v58 }
 0x20c   : > { %8649 = vmatpush3.bf16.msra.mxu1 %v9116_v29  ;;  %v3165_v29 = vrot.slane %v3150_v24, %v9666_v58  ;;  %v3713_v24 = vrot.slane %v3699_v20, %v9666_v58  ;;  %v4289_v18 = vcombine.low %v4274_v23, %v4281_v54 }
 0x20d   : > { %8654 = vmatprep.subr.bf16.mxu1 %v9245_v3  ;;  %v3339_v53 = vcombine.low %v3324_v32, %v3331_v34 }
 0x20e   : > { %v3166_v55 = vcombine.low %v3158_v8, %v3165_v29  ;;  %v3721_v37 = vcombine.low %v3706_v10, %v3713_v24  ;;  %v3720_v8 = vrot.slane %v5199_v11, %v9666_v58  ;;  %v9125_v11 = vld [vmem:[%s10589_s2 + $0x80] sm:$0xff]   ;;  %v4296_v20 = vrot.slane %v4289_v18, %v9666_v58  ;;  %v9131_v10 = vld [vmem:[%s10589_s2 + $0xb0] sm:$0xff]   ;;  %v9138_v18 = vld [vmem:[%s10589_s2 + $0xe8] sm:$0xff]  }
 0x20f   : > { %v3346_v36 = vrot.slane %v3339_v53, %v9666_v58  ;;  %v9126_v53 = vld [vmem:[%s10589_s2 + $0x88] sm:$0xff]  }
 0x210   : > { %v3728_v29 = vrot.slane %v3721_v37, %v9666_v58  ;;  %v3735_v31 = vrot.slane %v3720_v8, %v9666_v58  ;;  %v8072_v37 = vld.sshfl [vmem:[#allocation2 + $0x14] sm:$0x11 pattern:$0x75316420] }
 0x211   : > { %v3354_v46 = vcombine.low %v3346_v36, %v3353_v44  ;;  %v4612_v33 = vcombine.high %v8072_v37, %v8072_v37  ;;  %v4619_v39 = vrot.slane %v8072_v37, %v9666_v58 }
 0x212   : > { %v3736_v32 = vcombine.low %v3728_v29, %v3735_v31 }
 0x213   : > { %8651 = vmatmul.mubr.msk.bf16.vlgmr.msra.gmra.mrb[0].mxu1 %vm2223_vm10, %v2978_v60  ;;  %v3515_v60 = vrot.slane %v3507_v45, %v9666_v58  ;;  %v9127_v45 = vld [vmem:[%s10589_s2 + $0x90] sm:$0xff]  }
 0x214   : > { %8655 = vmatpush3.bf16.msra.mxu1 %v9117_v12  ;;  %8658 = vmatprep.mubr.msk.bf16.mxu1 %vm9246_vm0, %v9245_v3  ;;  %v3522_v12 = vrot.slane %v3508_v61, %v9666_v58 }
 0x215   : > { %8656 = vmatprep.subr.bf16.mxu1 %v9245_v3 }
 0x216   : > { %v3530_v0 = vcombine.low %v3515_v60, %v3522_v12 }
 0x218   : > { %8657 = vmatpush3.bf16.msra.mxu1 %v9118_v51  ;;  %v3537_v26 = vrot.slane %v3530_v0, %v9666_v58  ;;  %v3544_v51 = vrot.slane %v3529_v17, %v9666_v58  ;;  %v4255_v17 = vunpack.i.l.s16 %v10020_v62 }
 0x219   : > { %8662 = vmatprep.subr.bf16.mxu1 %v9245_v3 }
 0x21a   : > { %v3545_v30 = vcombine.low %v3537_v26, %v3544_v51  ;;  %v9130_v26 = vld [vmem:[%s10589_s2 + $0xa8] sm:$0xff]   ;;  %v4288_v51 = vrot.slane %v4255_v17, %v9666_v58  ;;  %v5033_v17 = vrot.slane %v9869_v43, %v9666_v58 }
 0x21f   : > { %8659 = vmatmul.mubr.msk.bf16.vlgmr.msra.gmra.mrb[0].mxu1 %vm2223_vm10, %v3166_v55  ;;  %v3888_v55 = vcombine.low %v9851_v50, %v9810_v27  ;;  %v4083_v27 = vrot.slane %v4075_v16, %v9666_v58 }
 0x220   : > { %8663 = vmatpush3.bf16.msra.mxu1 %v9119_v48  ;;  %8666 = vmatprep.mubr.msk.bf16.mxu1 %vm9246_vm0, %v9245_v3  ;;  %v9967_v48 = vrot.slane %v3853_v1, %v9666_v58 }
 0x221   : > { %8664 = vmatprep.subr.bf16.mxu1 %v9245_v3 }
 0x222   : > { %v3876_v34 = vunpack.i.l.s16 %v9967_v48  ;;  %v9989_v2 = vpack.i.b16 %v9967_v48, %v4818_v35  ;;  %v4064_v35 = vunpack.i.h.s16 %v9967_v48 }
 0x224   : > { %8665 = vmatpush3.bf16.msra.mxu1 %v9120_v59  ;;  %v3902_v59 = vrot.slane %v3888_v55, %v9666_v58  ;;  %v3909_v6 = vrot.slane %v3876_v34, %v9666_v58  ;;  %v4076_v44 = vcombine.low %v9806_v25, %v9989_v2  ;;  %v9128_v25 = vld [vmem:[%s10589_s2 + $0x98] sm:$0xff]   ;;  %v4097_v38 = vrot.slane %v4064_v35, %v9666_v58 }
 0x225   : > { %8670 = vmatprep.subr.bf16.mxu1 %v9245_v3  ;;  %v4647_v29 = vcombine.low %v9989_v2, %v4619_v39  ;;  %v4626_v55 = vrot.slane %v4612_v33, %v9666_v58  ;;  %v5361_v33 = vld [vmem:[#allocation3 + $0x8] sm:$0x7] }
 0x226   : > { %v3910_v5 = vcombine.low %v3895_v56, %v3902_v59  ;;  %v3924_v61 = vrot.slane %v3909_v6, %v9666_v58  ;;  %v4112_v60 = vrot.slane %v4097_v38, %v9666_v58  ;;  %v4654_v59 = vrot.slane %v9840_v41, %v9666_v58 }
 0x227   : > { %v4635_v56 = vunpack.i.l.s16 %v4626_v55  ;;  %v4661_v34 = vrot.slane %v4647_v29, %v9666_v58  ;;  %v4823_v35 = vunpack.i.h.s16 %v4626_v55  ;;  %v5362_v29 = vsel %vm5354_vm2, 0, %v5361_v33 }
 0x228   : > { %v3917_v36 = vrot.slane %v3910_v5, %v9666_v58  ;;  %v9134_v5 = vld [vmem:[%s10589_s2 + $0xc8] sm:$0xff]   ;;  %5363 = vst [vmem:[#allocation3 + $0x8] sm:$0x7] %v5362_v29 }
 0x229   : > { %v4668_v6 = vrot.slane %v4635_v56, %v9666_v58  ;;  %v4669_v2 = vcombine.low %v4654_v59, %v4661_v34  ;;  %v4856_v38 = vrot.slane %v4823_v35, %v9666_v58  ;;  %v9141_v56 = vld [vmem:[%s10590_s3] sm:$0xff]   ;;  %v9142_v59 = vld [vmem:[%s10590_s3 + $0x8] sm:$0xff]  }
 0x22a   : > { %v9143_v34 = vld [vmem:[%s10590_s3 + $0x20] sm:$0xff]  }
 0x22b   : > { %8667 = vmatmul.mubr.msk.bf16.vlgmr.msra.gmra.mrb[0].mxu1 %vm2223_vm10, %v3354_v46  ;;  %v4090_v46 = vrot.slane %v4076_v44, %v9666_v58  ;;  %v4676_v41 = vrot.slane %v4669_v2, %v9666_v58  ;;  %8751 = vmatpush3.bf16.msra.mxu0 %v9143_v34  ;;  %v9146_v2 = vld [vmem:[%s10590_s3 + $0x18] sm:$0xff]  }
 0x22c   : > { %8671 = vmatpush3.bf16.msra.mxu1 %v9121_v52  ;;  %8674 = vmatprep.mubr.msk.bf16.mxu1 %vm9246_vm0, %v9245_v3  ;;  %v3925_v52 = vcombine.low %v3917_v36, %v3924_v61  ;;  %v4683_v61 = vrot.slane %v4668_v6, %v9666_v58  ;;  %v9147_v6 = vld [vmem:[%s10590_s3 + $0x30] sm:$0xff]  }
 0x22d   : > { %8672 = vmatprep.subr.bf16.mxu1 %v9245_v3  ;;  %v4098_v12 = vcombine.low %v4083_v27, %v4090_v46  ;;  %v4842_v46 = vrot.slane %v4834_v63, %v9666_v58  ;;  %8752 = vmatprep.subr.bf16.mxu0 %v9245_v3 }
 0x22e   : > { %v4684_v27 = vcombine.low %v4676_v41, %v4683_v61 }
 0x22f   : > { %v4105_v16 = vrot.slane %v4098_v12, %v9666_v58 }
 0x230   : > { %8673 = vmatpush3.bf16.msra.mxu1 %v9122_v15  ;;  %v9129_v15 = vld [vmem:[%s10589_s2 + $0xa0] sm:$0xff]  }
 0x231   : > { %8678 = vmatprep.subr.bf16.mxu1 %v9245_v3  ;;  %v4113_v0 = vcombine.low %v4105_v16, %v4112_v60  ;;  %v4871_v16 = vrot.slane %v4856_v38, %v9666_v58 }
 0x237   : > { %8675 = vmatmul.mubr.msk.bf16.vlgmr.msra.gmra.mrb[0].mxu1 %vm2223_vm10, %v3545_v30  ;;  %v4303_v30 = vrot.slane %v4288_v51, %v9666_v58 }
 0x238   : > { %8679 = vmatpush3.bf16.msra.mxu1 %v9123_v21  ;;  %8682 = vmatprep.mubr.msk.bf16.mxu1 %vm9246_vm0, %v9245_v3  ;;  %v4458_v21 = vcombine.low %v9847_v47, %v10039_v28  ;;  %v9132_v47 = vld [vmem:[%s10589_s2 + $0xb8] sm:$0xff]  }
 0x239   : > { %8680 = vmatprep.subr.bf16.mxu1 %v9245_v3  ;;  %v4304_v40 = vcombine.low %v4296_v20, %v4303_v30 }
 0x23a   : > { %v4472_v24 = vrot.slane %v4458_v21, %v9666_v58 }
 0x23c   : > { %8681 = vmatpush3.bf16.msra.mxu1 %v9124_v9  ;;  %v4446_v9 = vunpack.i.h.s16 %v10020_v62  ;;  %v4480_v8 = vcombine.low %v4465_v13, %v4472_v24  ;;  %v5224_v24 = vrot.slane %v5216_v22, %v9666_v58 }
 0x23d   : > { %8686 = vmatprep.subr.bf16.mxu1 %v9245_v3 }
 0x23e   : > { %v4479_v49 = vrot.slane %v4446_v9, %v9666_v58  ;;  %v4487_v1 = vrot.slane %v4480_v8, %v9666_v58  ;;  %v5355_v8 = vld [vmem:[#allocation3] sm:$0x7] }
 0x240   : > { %v4494_v31 = vrot.slane %v4479_v49, %v9666_v58  ;;  %v5358_v49 = vld [vmem:[#allocation3 + $0x4] sm:$0x7] }
 0x243   : > { %8683 = vmatmul.mubr.msk.bf16.vlgmr.msra.gmra.mrb[0].mxu1 %vm2223_vm10, %v3736_v32  ;;  %v4495_v32 = vcombine.low %v4487_v1, %v4494_v31  ;;  %v5359_v1 = vsel %vm5354_vm2, 0, %v5358_v49  ;;  %v5364_v31 = vld [vmem:[#allocation3 + $0xc] sm:$0x7] }
 0x244   : > { %8687 = vmatpush3.bf16.msra.mxu1 %v9125_v11  ;;  %8690 = vmatprep.mubr.msk.bf16.mxu1 %vm9246_vm0, %v9245_v3  ;;  %v9133_v11 = vld [vmem:[%s10589_s2 + $0xc0] sm:$0xff]   ;;  %5360 = vst [vmem:[#allocation3 + $0x4] sm:$0x7] %v5359_v1 }
 0x245   : > { %8688 = vmatprep.subr.bf16.mxu1 %v9245_v3 }
 0x248   : > { %8689 = vmatpush3.bf16.msra.mxu1 %v9126_v53  ;;  %v4821_v53 = vunpack.i.h.s16 %v4619_v39  ;;  %v5356_v39 = vsel %vm5354_vm2, 0, %v5355_v8 }
 0x249   : > { %8694 = vmatprep.subr.bf16.mxu1 %v9245_v3  ;;  %5357 = vst [vmem:[#allocation3] sm:$0x7] %v5356_v39 }
 0x24a   : > { %v8090_v36 = vpack.i.b16 %v4626_v55, %v4821_v53  ;;  %v5365_v55 = vsel %vm5354_vm2, 0, %v5364_v31  ;;  %v9145_v53 = vld [vmem:[%s10590_s3 + $0x28] sm:$0xff]  }
 0x24b   : > { %5366 = vst [vmem:[#allocation3 + $0xc] sm:$0x7] %v5365_v55  ;;  %8753 = vmatpush3.bf16.msra.mxu0 %v9145_v53 }
 0x24c   : > { %v4835_v44 = vcombine.low %v9967_v48, %v8090_v36  ;;  %v9136_v48 = vld [vmem:[%s10589_s2 + $0xd8] sm:$0xff]   ;;  %8754 = vmatprep.subr.bf16.mxu0 %v9245_v3 }
 0x24d   : > { %v9150_v36 = vld [vmem:[%s10590_s3 + $0x38] sm:$0xff]  }
 0x24f   : > { %8691 = vmatmul.mubr.msk.bf16.vlgmr.msra.gmra.mrb[0].mxu1 %vm2223_vm10, %v3925_v52  ;;  %v8096_v52 = vld.sshfl [vmem:[#allocation2 + $0x14] sm:$0x12 pattern:$0x75316420]  ;;  %8755 = vmatpush3.bf16.msra.mxu0 %v9147_v6 }
 0x250   : > { %8695 = vmatpush3.bf16.msra.mxu1 %v9127_v45  ;;  %8698 = vmatprep.mubr.msk.bf16.mxu1 %vm9246_vm0, %v9245_v3  ;;  %v9135_v45 = vld [vmem:[%s10589_s2 + $0xd0] sm:$0xff]   ;;  %v4990_v12 = vcombine.high %v8096_v52, %v8096_v52  ;;  %v4997_v50 = vrot.slane %v8096_v52, %v9666_v58 }
 0x251   : > { %8696 = vmatprep.subr.bf16.mxu1 %v9245_v3  ;;  %8756 = vmatprep.subr.bf16.mxu0 %v9245_v3 }
 0x252   : > { %v5004_v42 = vrot.slane %v4990_v12, %v9666_v58  ;;  %v5005_v60 = vcombine.high %v4997_v50, %v4997_v50 }
 0x253   : > { %8757 = vmatpush3.bf16.msra.mxu0 %v9150_v36 }
 0x254   : > { %8697 = vmatpush3.bf16.msra.mxu1 %v9128_v25  ;;  %v4849_v25 = vrot.slane %v4835_v44, %v9666_v58  ;;  %v5026_v57 = vcombine.low %v10039_v28, %v5004_v42  ;;  %v5014_v23 = vunpack.i.l.s16 %v5005_v60  ;;  %v5205_v13 = vunpack.i.h.s16 %v5005_v60  ;;  %8774 = vmatprep.subr.bf16.mxu0 %v9245_v3 }
 0x255   : > { %8702 = vmatprep.subr.bf16.mxu1 %v9245_v3 }
 0x256   : > { %v4857_v4 = vcombine.low %v4842_v46, %v4849_v25  ;;  %v5040_v54 = vrot.slane %v5026_v57, %v9666_v58  ;;  %v5047_v28 = vrot.slane %v5014_v23, %v9666_v58 }
 0x258   : > { %v4864_v63 = vrot.slane %v4857_v4, %v9666_v58  ;;  %v5048_v51 = vcombine.low %v5033_v17, %v5040_v54  ;;  %v5062_v21 = vrot.slane %v5047_v28, %v9666_v58 }
 0x25a   : > { %v5055_v43 = vrot.slane %v5048_v51, %v9666_v58 }
 0x25b   : > { %8699 = vmatmul.mubr.msk.bf16.vlgmr.msra.gmra.mrb[0].mxu1 %vm2223_vm10, %v4113_v0  ;;  %v4872_v0 = vcombine.low %v4864_v63, %v4871_v16 }
 0x25c   : > { %8703 = vmatpush3.bf16.msra.mxu1 %v9129_v15  ;;  %8706 = vmatprep.mubr.msk.bf16.mxu1 %vm9246_vm0, %v9245_v3  ;;  %v9137_v15 = vld [vmem:[%s10589_s2 + $0xe0] sm:$0xff]  }
 0x25d   : > { %8704 = vmatprep.subr.bf16.mxu1 %v9245_v3 }
 0x260   : > { %8705 = vmatpush3.bf16.msra.mxu1 %v9130_v26  ;;  %v5203_v26 = vunpack.i.h.s16 %v5004_v42 }
 0x261   : > { %8710 = vmatprep.subr.bf16.mxu1 %v9245_v3 }
 0x262   : > { %v8114_v20 = vpack.i.b16 %v5005_v60, %v5203_v26 }
 0x264   : > { %v5217_v30 = vcombine.low %v10020_v62, %v8114_v20  ;;  %v9140_v62 = vld [vmem:[%s10589_s2 + $0xf8] sm:$0xff]  }
 0x266   : > { %v5231_v9 = vrot.slane %v5217_v30, %v9666_v58 }
 0x267   : > { %8707 = vmatmul.mubr.msk.bf16.vlgmr.msra.gmra.mrb[0].mxu1 %vm2223_vm10, %v4304_v40  ;;  %v5063_v40 = vcombine.low %v5055_v43, %v5062_v21 }
 0x268   : > { %8711 = vmatpush3.bf16.msra.mxu1 %v9131_v10  ;;  %8714 = vmatprep.mubr.msk.bf16.mxu1 %vm9246_vm0, %v9245_v3  ;;  %v9139_v10 = vld [vmem:[%s10589_s2 + $0xf0] sm:$0xff]   ;;  %v5239_v37 = vcombine.low %v5224_v24, %v5231_v9 }
 0x269   : > { %8712 = vmatprep.subr.bf16.mxu1 %v9245_v3 }
 0x26a   : > { %v5246_v14 = vrot.slane %v5239_v37, %v9666_v58 }
 0x26c   : > { %8713 = vmatpush3.bf16.msra.mxu1 %v9132_v47  ;;  %v5238_v47 = vrot.slane %v5205_v13, %v9666_v58  ;;  %v9250_v13 = vmov 1935823168  }
 0x26d   : > { %8718 = vmatprep.subr.bf16.mxu1 %v9245_v3  ;;  %v5426_v24 = vunpack.c.l.s4 %v9250_v13 }
 0x26e   : > { %v5253_v19 = vrot.slane %v5238_v47, %v9666_v58 }
 0x270   : > { %v5254_v22 = vcombine.low %v5246_v14, %v5253_v19 }
 0x273   : > { %8715 = vmatmul.mubr.msk.bf16.vlgmr.msra.gmra.mrb[0].mxu1 %vm2223_vm10, %v4495_v32 }
 0x274   : > { %8719 = vmatpush3.bf16.msra.mxu1 %v9133_v11  ;;  %8722 = vmatprep.mubr.msk.bf16.mxu1 %vm9246_vm0, %v9245_v3  ;;  %v5367_v11 = vld [vmem:[#allocation3 + $0x10] sm:$0x7] }
 0x275   : > { %8720 = vmatprep.subr.bf16.mxu1 %v9245_v3  ;;  %v5368_v32 = vsel %vm5354_vm2, 0, %v5367_v11 }
 0x276   : > { %5369 = vst [vmem:[#allocation3 + $0x10] sm:$0x7] %v5368_v32 }
 0x278   : > { %8721 = vmatpush3.bf16.msra.mxu1 %v9134_v5  ;;  %v9144_v5 = vld [vmem:[%s10590_s3 + $0x10] sm:$0xff]  }
 0x279   : > { %8726 = vmatprep.subr.bf16.mxu1 %v9245_v3 }
 0x27f   : > { %8723 = vmatmul.mubr.msk.bf16.vlgmr.msra.gmra.mrb[0].mxu1 %vm2223_vm10, %v4684_v27 }
 0x280   : > { %8727 = vmatpush3.bf16.msra.mxu1 %v9135_v45  ;;  %8730 = vmatprep.mubr.msk.bf16.mxu1 %vm9246_vm0, %v9245_v3 }
 0x281   : > { %8728 = vmatprep.subr.bf16.mxu1 %v9245_v3 }
 0x284   : > { %8729 = vmatpush3.bf16.msra.mxu1 %v9136_v48 }
 0x285   : > { %8734 = vmatprep.subr.bf16.mxu1 %v9245_v3 }
 0x28b   : > { %8731 = vmatmul.mubr.msk.bf16.vlgmr.msra.gmra.mrb[0].mxu1 %vm2223_vm10, %v4872_v0 }
 0x28c   : > { %8735 = vmatpush3.bf16.msra.mxu1 %v9137_v15  ;;  %8738 = vmatprep.mubr.msk.bf16.mxu1 %vm9246_vm0, %v9245_v3 }
 0x28d   : > { %8736 = vmatprep.subr.bf16.mxu1 %v9245_v3 }
 0x290   : > { %8737 = vmatpush3.bf16.msra.mxu1 %v9138_v18 }
 0x291   : > { %8742 = vmatprep.subr.bf16.mxu1 %v9245_v3 }
 0x297   : > { %8739 = vmatmul.mubr.msk.bf16.vlgmr.msra.gmra.mrb[0].mxu1 %vm2223_vm10, %v5063_v40 }
 0x298   : > { %8743 = vmatpush3.bf16.msra.mxu1 %v9139_v10  ;;  %8746 = vmatprep.mubr.msk.bf16.mxu1 %vm9246_vm0, %v9245_v3 }
 0x299   : > { %8744 = vmatprep.subr.bf16.mxu1 %v9245_v3 }
 0x29c   : > { %8745 = vmatpush3.bf16.msra.mxu1 %v9140_v62 }
 0x29d   : > { %8762 = vmatprep.subr.bf16.mxu1 %v9245_v3 }
 0x2a3   : > { %8747 = vmatmul.mubr.msk.bf16.vlgmr.msra.gmra.mrb[0].mxu1 %vm2223_vm10, %v5254_v22  ;;  %v5427_v22 = vunpack.c.0.s8 %v5426_v24  ;;  %vm5567_vm10 = vmor %vm5565_vm7, %vm5566_vm8  ;;  %vm5576_vm7 = vsmask.f32 6424 }
 0x2a4   : > { %8770 = vmatprep.mubr.msk.bf16.mxu1 %vm9246_vm0, %v9245_v3  ;;  %8763 = vmatpush3.bf16.msra.mxu1 %v9141_v56  ;;  %vm5569_vm13 = vmor %vm5567_vm10, %vm5568_vm9  ;;  %vm5578_vm9 = vsmask.f32 7452 }
 0x2a5   : > { %8764 = vmatprep.subr.bf16.mxu1 %v9245_v3  ;;  %v5430_v1 = vsub.s32 %v5427_v22, %v9305_v7  ;;  %vm5571_vm2 = vmor %vm5569_vm13, %vm5570_vm14 }
 0x2a8   : > { %8765 = vmatpush3.bf16.msra.mxu1 %v9142_v59 }
 0x2a9   : > { %8766 = vmatprep.subr.bf16.mxu1 %v9245_v3 }
 0x2ac   : > { %8767 = vmatpush3.bf16.msra.mxu1 %v9144_v5 }
 0x2ad   : > { %8768 = vmatprep.subr.bf16.mxu1 %v9245_v3 }
 0x2b0   : > { %8769 = vmatpush3.bf16.msra.mxu1 %v9146_v2 }
 0x2b1   : > { %8786 = vmatprep.subr.bf16.mxu1 %v9245_v3 }
 0x376   : > { %v5304_v41 = vpop.f32.mrb[0].mxu1 }
 0x377   : > { %v5324_v61 = vmul.f32 %v5304_v41, %v5304_v41  ;;  %v8748_v44 = vpop.f32.mrb[1].mxu1  ;;  %v5314_v52 = vsel %vm5313_vm3, %v5304_v41, 0.0 }
 0x378   : > { %v5307_v45 = vpop.f32.mrb[2].mxu1 }
 0x379   : > { %v5316_v27 = vsel %vm5315_vm4, %v5307_v45, 0.0  ;;  %v5325_v35 = vmul.f32 %v5307_v45, %v5307_v45  ;;  %v8749_v46 = vpop.f32.mrb[3].mxu1  ;;  %v5326_v12 = vsel %vm5313_vm3, %v5324_v61, 0.0 }
 0x37a   : > { %v5317_v25 = vadd.f32 %v5316_v27, %v5314_v52  ;;  %v5498_v52 = vld [vmem:[#allocation3 + $0x4] sm:$0x3] }
 0x37b   : > { %v5327_v48 = vsel %vm5315_vm4, %v5325_v35, 0.0  ;;  %vm5573_vm4 = vmor %vm5571_vm2, %vm5572_vm1 }
 0x37c   : > { %v5318_v38 = vrot.slane %v5317_v25, 4  ;;  %v5328_v4 = vadd.f32 %v5327_v48, %v5326_v12  ;;  %v8123_v12 = vld.sshfl [vmem:[#allocation3] sm:$0x11 pattern:$0x75316420] }
 0x37d   : > { %v5501_v48 = vld [vmem:[#allocation3 + $0x8] sm:$0x3] }
 0x37e   : > { %v5319_v50 = vadd.f32 %v5318_v38, %v5317_v25  ;;  %v5329_v42 = vrot.slane %v5328_v4, 4 }
 0x380   : > { %v5320_v63 = vrot.slane %v5319_v50, 2  ;;  %v5330_v16 = vadd.f32 %v5329_v42, %v5328_v4  ;;  %v5504_v42 = vld [vmem:[#allocation3 + $0xc] sm:$0x3] }
 0x382   : > { %v5321_v57 = vadd.f32 %v5320_v63, %v5319_v50  ;;  %v5331_v60 = vrot.slane %v5330_v16, 2  ;;  %v5528_v63 = vcombine.high %v8123_v12, %v8123_v12 }
 0x384   : > { %v5322_v15 = vrot.slane %v5321_v57, 1  ;;  %v5332_v0 = vadd.f32 %v5331_v60, %v5330_v16  ;;  %v8160_v60 = vld.sshfl [vmem:[#allocation3] sm:$0x12 pattern:$0x75316420] }
 0x386   : > { %v5323_v23 = vadd.f32 %v5322_v15, %v5321_v57  ;;  %v5333_v54 = vrot.slane %v5332_v0, 1 }
 0x388   : > { %v5334_v17 = vadd.f32 %v5333_v54, %v5332_v0  ;;  %v5335_v26 = vmul.f32 0.11111111, %v5323_v23  ;;  %v5535_v0 = vrot.slane %v8123_v12, %v9666_v58  ;;  %v5542_v23 = vrot.slane %v5528_v63, %v9666_v58 }
 0x389   : > { %v5910_v54 = vcombine.high %v8160_v60, %v8160_v60 }
 0x38a   : > { %v5336_v18 = vmul.f32 0.11111111, %v5334_v17  ;;  %v5337_v28 = vmul.f32 %v5335_v26, %v5335_v26  ;;  %v5339_v51 = vsub.f32 %v5304_v41, %v5335_v26  ;;  %v5340_v20 = vsub.f32 %v5307_v45, %v5335_v26  ;;  %v9154_v45 = vld [vmem:[%s10590_s3 + $0x48] sm:$0xff]  }
 0x38b   : > { %v5917_v17 = vrot.slane %v8160_v60, %v9666_v58 }
 0x38c   : > { %v5338_v43 = vsub.f32 %v5336_v18, %v5337_v28  ;;  %v5581_v28 = vshrl.u32 %v5535_v0, 16  ;;  %v9161_v0 = vld [vmem:[%s10590_s3 + $0xb0] sm:$0xff]  }
 0x38e   : > { %v5341_v21 = vadd.f32 1e-05, %v5338_v43  ;;  %v5925_v43 = vcombine.high %v5917_v17, %v5917_v17 }
 0x390   : > { %9211 = vrsqrt.f32 %v5341_v21  ;;  %v5955_v22 = vshll.u32 %v5925_v43, 16 }
 0x39a   : > { %v9212_v30 = vpop.eup %9211 }
 0x39b   : > { %v5343_v10 = vmul.f32 %v9212_v30, %v5339_v51  ;;  %v5344_v40 = vmul.f32 %v9212_v30, %v5340_v20  ;;  %v5586_v51 = vshll.u32 %v5542_v23, 16  ;;  %v5924_v20 = vrot.slane %v5910_v54, %v9666_v58  ;;  %v9160_v23 = vld [vmem:[%s10590_s3 + $0x80] sm:$0xff]  }
 0x39d   : > { %vm5345_vm5 = vcmp.ge.f32.partialorder %v5343_v10, 0.0  ;;  %vm5346_vm6 = vcmp.ge.f32.partialorder %v5344_v40, 0.0  ;;  %v5347_v9 = vmul.f32 0.2, %v5343_v10  ;;  %v5348_v62 = vmul.f32 0.2, %v5344_v40 }
 0x39f   : > { %v5349_v47 = vsel %vm5345_vm5, %v5343_v10, %v5347_v9  ;;  %v5350_v37 = vsel %vm5346_vm6, %v5344_v40, %v5348_v62  ;;  %vm5574_vm5 = vsmask.f32 5396  ;;  %v9149_v40 = vld [vmem:[%s10590_s3 + $0x60] sm:$0xff]  }
 0x3a0   : > { %v5351_v14 = vpack.c.bf16 %v5350_v37, %v5349_v47  ;;  %v8118_v19 = vpack.c.bf16 %v5350_v37, %v5350_v37  ;;  %vm5575_vm6 = vmor %vm5573_vm4, %vm5574_vm5 }
 0x3a1   : > { %vm5577_vm8 = vmor %vm5575_vm6, %vm5576_vm7 }
 0x3a2   : > { %v5378_v8 = vrot.slane %v5351_v14, %v9666_v58  ;;  %v5385_v39 = vrot.slane %v8118_v19, %v9666_v58  ;;  %vm10208_vm10 = vmor %vm5577_vm8, %vm5578_vm9  ;;  %v5950_v19 = vshrl.u32 %v5924_v20, 16 }
 0x3a4   : > { %v5386_v49 = vcombine.high %v5378_v8, %v5378_v8  ;;  %v5393_v33 = vrot.slane %v5378_v8, %v9666_v58  ;;  %v5400_v59 = vrot.slane %v5385_v39, %v9666_v58  ;;  %v5588_v8 = vsel %vm10208_vm10, %v5581_v28, %v5586_v51  ;;  %v9151_v39 = vld [vmem:[%s10590_s3 + $0x68] sm:$0xff]   ;;  %v9163_v28 = vld [vmem:[%s10590_s3 + $0xb8] sm:$0xff]  }
 0x3a5   : > { %v9162_v51 = vld [vmem:[%s10590_s3 + $0x88] sm:$0xff]  }
 0x3a6   : > { %v5407_v29 = vrot.slane %v5386_v49, %v9666_v58  ;;  %v5411_v31 = vunpack.i.h.s16 %v5393_v33  ;;  %v8119_v55 = vpack.i.b16 %v5393_v33, %v5393_v33  ;;  %v5408_v11 = vcombine.high %v5393_v33, %v5393_v33 }
 0x3a8   : > { %v5409_v32 = vcombine.high %v5407_v29, %v5407_v29  ;;  %v5413_v56 = vunpack.i.h.s16 %v5407_v29  ;;  %v8120_v34 = vpack.i.b16 %v5407_v29, %v5411_v31  ;;  %v5431_v53 = vrot.slane %v8119_v55, %v5430_v1  ;;  %v8145_v55 = vld.sshfl [vmem:[#allocation3] sm:$0x10 pattern:$0x75316420] }
 0x3a9   : > { %v5460_v44 = vrot.slane %v5408_v11, %v5430_v1 }
 0x3aa   : > { %v5417_v5 = vunpack.i.h.s16 %v5409_v32  ;;  %v5421_v6 = vpack.i.b16 %v5413_v56, %v5413_v56  ;;  %v8121_v7 = vpack.i.b16 %v5409_v32, %v5409_v32  ;;  %v5438_v2 = vrot.slane %v8120_v34, %v5430_v1 }
 0x3ab   : > { %v5957_v32 = vsel %vm10208_vm10, %v5950_v19, %v5955_v22 }
 0x3ac   : > { %v8122_v36 = vpack.i.b16 %v5400_v59, %v5417_v5  ;;  %v5439_v41 = vcombine.low %v5431_v53, %v5438_v2  ;;  %v5453_v61 = vrot.slane %v5421_v6, %v5430_v1  ;;  %v5475_v46 = vrot.slane %v8121_v7, %v5430_v1  ;;  %v9153_v5 = vld [vmem:[%s10590_s3 + $0x70] sm:$0xff]   ;;  %v9152_v6 = vld [vmem:[%s10590_s3 + $0x40] sm:$0xff]  }
 0x3ae   : > { %v5446_v27 = vrot.slane %v5439_v41, %v5430_v1  ;;  %v5461_v35 = vcombine.low %v5453_v61, %v5460_v44  ;;  %v5482_v25 = vrot.slane %v8122_v36, %v5430_v1  ;;  %v5784_v36 = vcombine.high %v8145_v55, %v8145_v55  ;;  %v9155_v44 = vld [vmem:[%s10590_s3 + $0x78] sm:$0xff]   ;;  %v9171_v55 = vld [vmem:[%s10590_s3 + $0xc8] sm:$0xff]  }
 0x3b0   : > { %v5468_v38 = vrot.slane %v5461_v35, %v5430_v1  ;;  %v5483_v4 = vcombine.low %v5475_v46, %v5482_v25  ;;  %v5499_v50 = vsel %vm10190_vm15, %v5446_v27, %v5498_v52  ;;  %v5791_v27 = vrot.slane %v5784_v36, %v9666_v58  ;;  %v9157_v25 = vld [vmem:[%s10590_s3 + $0xa0] sm:$0xff]  }
 0x3b1   : > { %5500 = vst [vmem:[#allocation3 + $0x4] sm:$0x3] %v5499_v50 }
 0x3b2   : > { %v5490_v16 = vrot.slane %v5483_v4, %v5430_v1  ;;  %v5502_v57 = vsel %vm10190_vm15, %v5468_v38, %v5501_v48  ;;  %v9156_v48 = vld [vmem:[%s10590_s3 + $0x50] sm:$0xff]  }
 0x3b3   : > { %5503 = vst [vmem:[#allocation3 + $0x8] sm:$0x3] %v5502_v57 }
 0x3b4   : > { %v5505_v15 = vsel %vm10190_vm15, %v5490_v16, %v5504_v42  ;;  %v9159_v42 = vld [vmem:[%s10590_s3 + $0xa8] sm:$0xff]   ;;  %v9158_v16 = vld [vmem:[%s10590_s3 + $0x58] sm:$0xff]  }
 0x3b5   : > { %5506 = vst [vmem:[#allocation3 + $0xc] sm:$0x3] %v5505_v15 }
 0x3b8   : > { %v9233_v26 = vld.sshfl [vmem:[#allocation3] sm:$0x5 pattern:$0x75316420] }
 0x3b9   : > { %v8124_v18 = vld.sshfl [vmem:[#allocation3 + $0x4] sm:$0x11 pattern:$0x75316420]  ;;  %v5705_v62 = vrot.slane %v9233_v26, %v9666_v58 }
 0x3ba   : > { %v5550_v21 = vcombine.high %v8124_v18, %v8124_v18  ;;  %v5557_v30 = vrot.slane %v8124_v18, %v9666_v58  ;;  %v8161_v10 = vld.sshfl [vmem:[#allocation3 + $0x4] sm:$0x12 pattern:$0x75316420] }
 0x3bb   : > { %v5933_v24 = vcombine.high %v8161_v10, %v8161_v10  ;;  %v5940_v9 = vrot.slane %v8161_v10, %v9666_v58  ;;  %8771 = vmatmul.mubr.msk.bf16.vlgmr.msra.gmra.mrb[4].mxu1 %vm5313_vm3, %v5705_v62  ;;  %v8146_v34 = vld.sshfl [vmem:[#allocation3 + $0x4] sm:$0x10 pattern:$0x75316420]  ;;  %v9164_v10 = vld [vmem:[%s10590_s3 + $0x90] sm:$0xff]  }
 0x3bc   : > { %v5564_v47 = vrot.slane %v5550_v21, %v9666_v58  ;;  %v5590_v49 = vshrl.u32 %v5557_v30, 16  ;;  %8787 = vmatpush3.bf16.msra.mxu1 %v9149_v40  ;;  %8794 = vmatprep.mubr.msk.bf16.mxu1 %vm9246_vm0, %v9245_v3  ;;  %v8191_v59 = vld.sshfl [vmem:[#allocation3 + $0x8] sm:$0x11 pattern:$0x75316420]  ;;  %v5799_v41 = vcombine.high %v8146_v34, %v8146_v34 }
 0x3bd   : > { %v5947_v37 = vrot.slane %v5933_v24, %v9666_v58  ;;  %v5948_v14 = vcombine.high %v5940_v9, %v5940_v9  ;;  %8788 = vmatprep.subr.bf16.mxu1 %v9245_v3  ;;  %v6188_v61 = vcombine.high %v8191_v59, %v8191_v59  ;;  %v6195_v12 = vrot.slane %v8191_v59, %v9666_v58  ;;  %v8223_v15 = vld.sshfl [vmem:[#allocation3 + $0x8] sm:$0x12 pattern:$0x75316420] }
 0x3be   : > { %v5595_v33 = vshll.u32 %v5564_v47, 16  ;;  %v10260_v35 = vrot.slane %v5799_v41, %v9666_v58  ;;  %v6473_v26 = vcombine.high %v8223_v15, %v8223_v15  ;;  %v6480_v18 = vrot.slane %v8223_v15, %v9666_v58  ;;  %v9165_v30 = vld [vmem:[%s10590_s3 + $0xe0] sm:$0xff]   ;;  %v9167_v47 = vld [vmem:[%s10590_s3 + $0xe8] sm:$0xff]   ;;  %v9175_v41 = vld [vmem:[%s10590_s3 + $0xd8] sm:$0xff]  }
 0x3bf   : > { %v5959_v1 = vshrl.u32 %v5947_v37, 16  ;;  %v5964_v29 = vshll.u32 %v5948_v14, 16  ;;  %v6202_v46 = vrot.slane %v6188_v61, %v9666_v58  ;;  %v6213_v63 = vshrl.u32 %v6195_v12, 16  ;;  %v9166_v37 = vld [vmem:[%s10590_s3 + $0x98] sm:$0xff]   ;;  %v9174_v34 = vld [vmem:[%s10590_s3 + $0x120] sm:$0xff]  }
 0x3c0   : > { %v10227_v31 = vsel %vm10208_vm10, %v5590_v49, %v5595_v33  ;;  %8789 = vmatpush3.bf16.msra.mxu1 %v9151_v39  ;;  %v5816_v4 = vcombine.low %v5791_v27, %v10260_v35  ;;  %v6487_v43 = vrot.slane %v6473_v26, %v9666_v58  ;;  %v6488_v21 = vcombine.high %v6480_v18, %v6480_v18  ;;  %v9234_v24 = vld.sshfl [vmem:[#allocation3 + $0x4] sm:$0x5 pattern:$0x75316420] }
 0x3c1   : > { %v5607_v11 = vcombine.low %v5588_v8, %v10227_v31  ;;  %v10234_v56 = vsel %vm10208_vm10, %v5959_v1, %v5964_v29  ;;  %8790 = vmatprep.subr.bf16.mxu1 %v9245_v3  ;;  %v6218_v50 = vshll.u32 %v6202_v46, 16  ;;  %v8208_v19 = vld.sshfl [vmem:[#allocation3 + $0x8] sm:$0x10 pattern:$0x75316420]  ;;  %v9170_v8 = vld [vmem:[%s10590_s3 + $0xf0] sm:$0xff]   ;;  %v6086_v39 = vrot.slane %v9234_v24, %v9666_v58 }
 0x3c2   : > { %v5976_v7 = vcombine.low %v5957_v32, %v10234_v56  ;;  %v5823_v57 = vrot.slane %v5816_v4, %v9666_v58  ;;  %v6499_v9 = vshrl.u32 %v6487_v43, 16  ;;  %v6504_v62 = vshll.u32 %v6488_v21, 16  ;;  %v8253_v22 = vld.sshfl [vmem:[#allocation3 + $0xc] sm:$0x11 pattern:$0x75316420] }
 0x3c3   : > { %v5614_v53 = vrot.slane %v5607_v11, %v9666_v58  ;;  %v10288_v60 = vsel %vm10208_vm10, %v6213_v63, %v6218_v50  ;;  %v9169_v49 = vld [vmem:[%s10590_s3 + $0xc0] sm:$0xff]   ;;  %v6339_v1 = vcombine.high %v8208_v19, %v8208_v19  ;;  %v6729_v29 = vcombine.high %v8253_v22, %v8253_v22  ;;  %v8315_v26 = vld.sshfl [vmem:[#allocation3 + $0x10] sm:$0x11 pattern:$0x75316420] }
 0x3c4   : > { %8791 = vmatpush3.bf16.msra.mxu1 %v9153_v5  ;;  %v5983_v52 = vrot.slane %v5976_v7, %v9666_v58  ;;  %v6230_v54 = vcombine.low %v10227_v31, %v10288_v60  ;;  %v5830_v17 = vrot.slane %v5823_v57, %v9666_v58  ;;  %v10337_v14 = vsel %vm10208_vm10, %v6499_v9, %v6504_v62  ;;  %v9172_v31 = vld [vmem:[%s10590_s3 + $0xf8] sm:$0xff]   ;;  %v9177_v27 = vld [vmem:[%s10590_s3 + $0x100] sm:$0xff]  }
 0x3c5   : > { %v5621_v2 = vrot.slane %v5614_v53, %v9666_v58  ;;  %8792 = vmatprep.subr.bf16.mxu1 %v9245_v3  ;;  %v6516_v33 = vcombine.low %v10234_v56, %v10337_v14  ;;  %v10363_v32 = vrot.slane %v6339_v1, %v9666_v58  ;;  %v6743_v56 = vrot.slane %v6729_v29, %v9666_v58  ;;  %v9173_v53 = vld [vmem:[%s10590_s3 + $0xd0] sm:$0xff]   ;;  %v9182_v63 = vld [vmem:[%s10590_s3 + $0x160] sm:$0xff]  }
 0x3c6   : > { %v5990_v38 = vrot.slane %v5983_v52, %v9666_v58  ;;  %v6237_v20 = vrot.slane %v6230_v54, %v9666_v58  ;;  %v6736_v59 = vrot.slane %v8253_v22, %v9666_v58  ;;  %v9178_v52 = vld [vmem:[%s10590_s3 + $0x130] sm:$0xff]   ;;  %v9183_v54 = vld [vmem:[%s10590_s3 + $0x118] sm:$0xff]   ;;  %v8270_v18 = vld.sshfl [vmem:[#allocation3 + $0xc] sm:$0x10 pattern:$0x75316420]  ;;  %v7277_v62 = vrot.slane %v8315_v26, %v9666_v58 }
 0x3c7   : > { %8759 = vmatmul.mubr.msk.bf16.vlgmr.msra.gmra.mrb[4].mxu0 %vm5313_vm3, %v5621_v2  ;;  %v6523_v11 = vrot.slane %v6516_v33, %v9666_v58  ;;  %v6759_v7 = vshll.u32 %v6743_v56, 16  ;;  %v9176_v2 = vld [vmem:[%s10590_s3 + $0x128] sm:$0xff]   ;;  %v6880_v21 = vcombine.high %v8270_v18, %v8270_v18 }
 0x3c8   : > { %8775 = vmatpush3.bf16.msra.mxu0 %v9152_v6  ;;  %8782 = vmatprep.mubr.msk.bf16.mxu0 %vm9246_vm0, %v9245_v3  ;;  %v6244_v40 = vrot.slane %v6237_v20, %v9666_v58  ;;  %v6356_v6 = vcombine.low %v10260_v35, %v10363_v32  ;;  %v6754_v36 = vshrl.u32 %v6736_v59, 16  ;;  %v9193_v33 = vld [vmem:[%s10590_s3 + $0x1a8] sm:$0xff]  }
 0x3c9   : > { %8776 = vmatprep.subr.bf16.mxu0 %v9245_v3  ;;  %8793 = vmatpush3.bf16.msra.mxu1 %v9155_v44  ;;  %v6530_v5 = vrot.slane %v6523_v11, %v9666_v58  ;;  %v10467_v9 = vrot.slane %v6880_v21, %v9666_v58  ;;  %v9194_v11 = vld [vmem:[%s10590_s3 + $0x180] sm:$0xff]  }
 0x3ca   : > { %8810 = vmatprep.subr.bf16.mxu1 %v9245_v3  ;;  %v6363_v61 = vrot.slane %v6356_v6, %v9666_v58  ;;  %v10392_v44 = vsel %vm10208_vm10, %v6754_v36, %v6759_v7  ;;  %v9199_v36 = vld [vmem:[%s10590_s3 + $0x1e0] sm:$0xff]  }
 0x3cb   : > { %v6771_v35 = vcombine.low %v10288_v60, %v10392_v44  ;;  %v9235_v60 = vld.sshfl [vmem:[#allocation3 + $0x8] sm:$0x5 pattern:$0x75316420]  ;;  %v6897_v22 = vcombine.low %v10363_v32, %v10467_v9 }
 0x3cc   : > { %8777 = vmatpush3.bf16.msra.mxu0 %v9154_v45  ;;  %8795 = vmatmul.mubr.msk.bf16.vlgmr.msra.gmra.mrb[8].mxu1 %vm5313_vm3, %v5990_v38  ;;  %v8285_v45 = vld.sshfl [vmem:[#allocation3 + $0xc] sm:$0x12 pattern:$0x75316420]  ;;  %v6370_v46 = vrot.slane %v6363_v61, %v9666_v58  ;;  %v9179_v38 = vld [vmem:[%s10590_s3 + $0x108] sm:$0xff]   ;;  %v6627_v43 = vrot.slane %v9235_v60, %v9666_v58 }
 0x3cd   : > { %8778 = vmatprep.subr.bf16.mxu0 %v9245_v3  ;;  %8811 = vmatpush3.bf16.msra.mxu1 %v9157_v25  ;;  %v7014_v25 = vcombine.high %v8285_v45, %v8285_v45  ;;  %v7021_v12 = vrot.slane %v8285_v45, %v9666_v58  ;;  %v6778_v4 = vrot.slane %v6771_v35, %v9666_v58  ;;  %v9200_v35 = vld [vmem:[%s10590_s3 + $0x198] sm:$0xff]  }
 0x3ce   : > { %8818 = vmatprep.mubr.msk.bf16.mxu1 %vm9246_vm0, %v9245_v3  ;;  %8812 = vmatprep.subr.bf16.mxu1 %v9245_v3  ;;  %v6904_v1 = vrot.slane %v6897_v22, %v9666_v58 }
 0x3cf   : > { %v7028_v50 = vrot.slane %v7014_v25, %v9666_v58  ;;  %v6785_v57 = vrot.slane %v6778_v4, %v9666_v58  ;;  %v8332_v25 = vld.sshfl [vmem:[#allocation3 + $0x10] sm:$0x10 pattern:$0x75316420] }
 0x3d0   : > { %8779 = vmatpush3.bf16.msra.mxu0 %v9156_v48  ;;  %v9180_v48 = vld [vmem:[%s10590_s3 + $0x138] sm:$0xff]   ;;  %v6911_v56 = vrot.slane %v6904_v1, %v9666_v58  ;;  %v7421_v13 = vcombine.high %v8332_v25, %v8332_v25 }
 0x3d1   : > { %8780 = vmatprep.subr.bf16.mxu0 %v9245_v3  ;;  %8813 = vmatpush3.bf16.msra.mxu1 %v9159_v42  ;;  %v7029_v42 = vcombine.high %v7021_v12, %v7021_v12  ;;  %v7040_v15 = vshrl.u32 %v7028_v50, 16  ;;  %v9204_v12 = vld [vmem:[%s10590_s3 + $0x1f0] sm:$0xff]   ;;  %v9206_v50 = vld [vmem:[%s10590_s3 + $0x1f8] sm:$0xff]  }
 0x3d2   : > { %8814 = vmatprep.subr.bf16.mxu1 %v9245_v3 }
 0x3d4   : > { %8781 = vmatpush3.bf16.msra.mxu0 %v9158_v16  ;;  %v9181_v16 = vld [vmem:[%s10590_s3 + $0x110] sm:$0xff]  }
 0x3d5   : > { %8798 = vmatprep.subr.bf16.mxu0 %v9245_v3  ;;  %8815 = vmatpush3.bf16.msra.mxu1 %v9161_v0  ;;  %v7045_v0 = vshll.u32 %v7029_v42, 16  ;;  %v9205_v42 = vld [vmem:[%s10590_s3 + $0x1c8] sm:$0xff]  }
 0x3d6   : > { %8816 = vmatprep.subr.bf16.mxu1 %v9245_v3 }
 0x3d7   : > { %8783 = vmatmul.mubr.msk.bf16.vlgmr.msra.gmra.mrb[8].mxu0 %vm5313_vm3, %v5830_v17  ;;  %v10441_v17 = vsel %vm10208_vm10, %v7040_v15, %v7045_v0  ;;  %v9208_v0 = vld [vmem:[%s10590_s3 + $0x1d8] sm:$0xff]  }
 0x3d8   : > { %8799 = vmatpush3.bf16.msra.mxu0 %v9160_v23  ;;  %8806 = vmatprep.mubr.msk.bf16.mxu0 %vm9246_vm0, %v9245_v3  ;;  %v9184_v23 = vld [vmem:[%s10590_s3 + $0x168] sm:$0xff]   ;;  %v7057_v20 = vcombine.low %v10337_v14, %v10441_v17  ;;  %v9190_v14 = vld [vmem:[%s10590_s3 + $0x150] sm:$0xff]  }
 0x3d9   : > { %8800 = vmatprep.subr.bf16.mxu0 %v9245_v3  ;;  %8817 = vmatpush3.bf16.msra.mxu1 %v9163_v28  ;;  %v9187_v28 = vld [vmem:[%s10590_s3 + $0x170] sm:$0xff]  }
 0x3da   : > { %8834 = vmatprep.subr.bf16.mxu1 %v9245_v3  ;;  %v7064_v24 = vrot.slane %v7057_v20, %v9666_v58 }
 0x3dc   : > { %8801 = vmatpush3.bf16.msra.mxu0 %v9162_v51  ;;  %8819 = vmatmul.mubr.msk.bf16.vlgmr.msra.gmra.mrb[12].mxu1 %vm5313_vm3, %v6244_v40  ;;  %v9186_v51 = vld [vmem:[%s10590_s3 + $0x140] sm:$0xff]   ;;  %v9188_v40 = vld [vmem:[%s10590_s3 + $0x148] sm:$0xff]   ;;  %v7071_v19 = vrot.slane %v7064_v24, %v9666_v58 }
 0x3dd   : > { %8802 = vmatprep.subr.bf16.mxu0 %v9245_v3  ;;  %8835 = vmatpush3.bf16.msra.mxu1 %v9165_v30  ;;  %v7270_v30 = vcombine.high %v8315_v26, %v8315_v26 }
 0x3de   : > { %8842 = vmatprep.mubr.msk.bf16.mxu1 %vm9246_vm0, %v9245_v3  ;;  %8836 = vmatprep.subr.bf16.mxu1 %v9245_v3 }
 0x3e0   : > { %8803 = vmatpush3.bf16.msra.mxu0 %v9164_v10  ;;  %v9189_v10 = vld [vmem:[%s10590_s3 + $0x178] sm:$0xff]  }
 0x3e1   : > { %8804 = vmatprep.subr.bf16.mxu0 %v9245_v3  ;;  %8837 = vmatpush3.bf16.msra.mxu1 %v9167_v47  ;;  %v7284_v47 = vrot.slane %v7270_v30, %v9666_v58 }
 0x3e2   : > { %8838 = vmatprep.subr.bf16.mxu1 %v9245_v3 }
 0x3e4   : > { %8805 = vmatpush3.bf16.msra.mxu0 %v9166_v37  ;;  %v9191_v37 = vld [vmem:[%s10590_s3 + $0x1a0] sm:$0xff]  }
 0x3e5   : > { %8822 = vmatprep.subr.bf16.mxu0 %v9245_v3  ;;  %8839 = vmatpush3.bf16.msra.mxu1 %v9170_v8  ;;  %v7295_v8 = vshrl.u32 %v7277_v62, 16 }
 0x3e6   : > { %8840 = vmatprep.subr.bf16.mxu1 %v9245_v3 }
 0x3e7   : > { %8807 = vmatmul.mubr.msk.bf16.vlgmr.msra.gmra.mrb[12].mxu0 %vm5313_vm3, %v6086_v39  ;;  %v9192_v39 = vld [vmem:[%s10590_s3 + $0x158] sm:$0xff]  }
 0x3e8   : > { %8823 = vmatpush3.bf16.msra.mxu0 %v9169_v49  ;;  %8830 = vmatprep.mubr.msk.bf16.mxu0 %vm9246_vm0, %v9245_v3  ;;  %v7300_v49 = vshll.u32 %v7284_v47, 16 }
 0x3e9   : > { %8824 = vmatprep.subr.bf16.mxu0 %v9245_v3  ;;  %8841 = vmatpush3.bf16.msra.mxu1 %v9172_v31  ;;  %v8347_v31 = vld.sshfl [vmem:[#allocation3 + $0x10] sm:$0x12 pattern:$0x75316420] }
 0x3ea   : > { %8858 = vmatprep.subr.bf16.mxu1 %v9245_v3  ;;  %v7302_v29 = vsel %vm10208_vm10, %v7295_v8, %v7300_v49  ;;  %v7562_v59 = vrot.slane %v8347_v31, %v9666_v58 }
 0x3eb   : > { %v7312_v32 = vcombine.low %v10392_v44, %v7302_v29  ;;  %v9236_v44 = vld.sshfl [vmem:[#allocation3 + $0xc] sm:$0x5 pattern:$0x75316420] }
 0x3ec   : > { %8825 = vmatpush3.bf16.msra.mxu0 %v9171_v55  ;;  %8843 = vmatmul.mubr.msk.bf16.vlgmr.msra.gmra.mrb[16].mxu1 %vm5313_vm3, %v6530_v5  ;;  %v9195_v55 = vld [vmem:[%s10590_s3 + $0x1b0] sm:$0xff]   ;;  %v9196_v5 = vld [vmem:[%s10590_s3 + $0x188] sm:$0xff]   ;;  %v7168_v4 = vrot.slane %v9236_v44, %v9666_v58 }
 0x3ed   : > { %8826 = vmatprep.subr.bf16.mxu0 %v9245_v3  ;;  %8859 = vmatpush3.bf16.msra.mxu1 %v9174_v34  ;;  %v7555_v34 = vcombine.high %v8347_v31, %v8347_v31  ;;  %v7319_v6 = vrot.slane %v7312_v32, %v9666_v58 }
 0x3ee   : > { %8866 = vmatprep.mubr.msk.bf16.mxu1 %vm9246_vm0, %v9245_v3  ;;  %8860 = vmatprep.subr.bf16.mxu1 %v9245_v3 }
 0x3ef   : > { %v7569_v7 = vrot.slane %v7555_v34, %v9666_v58  ;;  %v7326_v61 = vrot.slane %v7319_v6, %v9666_v58 }
 0x3f0   : > { %8827 = vmatpush3.bf16.msra.mxu0 %v9173_v53  ;;  %v9197_v53 = vld [vmem:[%s10590_s3 + $0x1b8] sm:$0xff]  }
 0x3f1   : > { %8828 = vmatprep.subr.bf16.mxu0 %v9245_v3  ;;  %8861 = vmatpush3.bf16.msra.mxu1 %v9176_v2  ;;  %v7570_v2 = vcombine.high %v7562_v59, %v7562_v59  ;;  %v7581_v45 = vshrl.u32 %v7569_v7, 16 }
 0x3f2   : > { %8862 = vmatprep.subr.bf16.mxu1 %v9245_v3 }
 0x3f4   : > { %8829 = vmatpush3.bf16.msra.mxu0 %v9175_v41  ;;  %v9198_v41 = vld [vmem:[%s10590_s3 + $0x190] sm:$0xff]  }
 0x3f5   : > { %8846 = vmatprep.subr.bf16.mxu0 %v9245_v3  ;;  %8863 = vmatpush3.bf16.msra.mxu1 %v9178_v52  ;;  %v7586_v52 = vshll.u32 %v7570_v2, 16 }
 0x3f6   : > { %8864 = vmatprep.subr.bf16.mxu1 %v9245_v3 }
 0x3f7   : > { %8831 = vmatmul.mubr.msk.bf16.vlgmr.msra.gmra.mrb[16].mxu0 %vm5313_vm3, %v6370_v46  ;;  %v7588_v46 = vsel %vm10208_vm10, %v7581_v45, %v7586_v52 }
 0x3f8   : > { %8847 = vmatpush3.bf16.msra.mxu0 %v9177_v27  ;;  %8854 = vmatprep.mubr.msk.bf16.mxu0 %vm9246_vm0, %v9245_v3  ;;  %v9201_v27 = vld [vmem:[%s10590_s3 + $0x1e8] sm:$0xff]  }
 0x3f9   : > { %8848 = vmatprep.subr.bf16.mxu0 %v9245_v3  ;;  %8865 = vmatpush3.bf16.msra.mxu1 %v9180_v48  ;;  %v9203_v48 = vld [vmem:[%s10590_s3 + $0x1c0] sm:$0xff]  }
 0x3fa   : > { %8882 = vmatprep.subr.bf16.mxu1 %v9245_v3 }
 0x3fc   : > { %8849 = vmatpush3.bf16.msra.mxu0 %v9179_v38  ;;  %8867 = vmatmul.mubr.msk.bf16.vlgmr.msra.gmra.mrb[20].mxu1 %vm5313_vm3, %v6785_v57  ;;  %v7598_v38 = vcombine.low %v10441_v17, %v7588_v46  ;;  %v9207_v57 = vld [vmem:[%s10590_s3 + $0x1d0] sm:$0xff]  }
 0x3fd   : > { %8850 = vmatprep.subr.bf16.mxu0 %v9245_v3  ;;  %8883 = vmatpush3.bf16.msra.mxu1 %v9182_v63 }
 0x3fe   : > { %8890 = vmatprep.mubr.msk.bf16.mxu1 %vm9246_vm0, %v9245_v3  ;;  %8884 = vmatprep.subr.bf16.mxu1 %v9245_v3  ;;  %v7605_v63 = vrot.slane %v7598_v38, %v9666_v58 }
 0x400   : > { %8851 = vmatpush3.bf16.msra.mxu0 %v9181_v16  ;;  %v7428_v16 = vrot.slane %v7421_v13, %v9666_v58  ;;  %v7612_v60 = vrot.slane %v7605_v63, %v9666_v58 }
 0x401   : > { %8852 = vmatprep.subr.bf16.mxu0 %v9245_v3  ;;  %8885 = vmatpush3.bf16.msra.mxu1 %v9184_v23 }
 0x402   : > { %8886 = vmatprep.subr.bf16.mxu1 %v9245_v3  ;;  %v7438_v15 = vcombine.low %v10467_v9, %v7428_v16 }
 0x404   : > { %8853 = vmatpush3.bf16.msra.mxu0 %v9183_v54  ;;  %v7445_v23 = vrot.slane %v7438_v15, %v9666_v58 }
 0x405   : > { %8870 = vmatprep.subr.bf16.mxu0 %v9245_v3  ;;  %8887 = vmatpush3.bf16.msra.mxu1 %v9187_v28 }
 0x406   : > { %8888 = vmatprep.subr.bf16.mxu1 %v9245_v3  ;;  %v7452_v54 = vrot.slane %v7445_v23, %v9666_v58 }
 0x407   : > { %8855 = vmatmul.mubr.msk.bf16.vlgmr.msra.gmra.mrb[20].mxu0 %vm5313_vm3, %v6627_v43 }
 0x408   : > { %8871 = vmatpush3.bf16.msra.mxu0 %v9186_v51  ;;  %8878 = vmatprep.mubr.msk.bf16.mxu0 %vm9246_vm0, %v9245_v3 }
 0x409   : > { %8872 = vmatprep.subr.bf16.mxu0 %v9245_v3  ;;  %8889 = vmatpush3.bf16.msra.mxu1 %v9189_v10 }
 0x40a   : > { %8906 = vmatprep.subr.bf16.mxu1 %v9245_v3 }
 0x40c   : > { %8873 = vmatpush3.bf16.msra.mxu0 %v9188_v40  ;;  %8891 = vmatmul.mubr.msk.bf16.vlgmr.msra.gmra.mrb[24].mxu1 %vm5313_vm3, %v7071_v19 }
 0x40d   : > { %8874 = vmatprep.subr.bf16.mxu0 %v9245_v3  ;;  %8907 = vmatpush3.bf16.msra.mxu1 %v9191_v37 }
 0x40e   : > { %8914 = vmatprep.mubr.msk.bf16.mxu1 %vm9246_vm0, %v9245_v3  ;;  %8908 = vmatprep.subr.bf16.mxu1 %v9245_v3 }
 0x410   : > { %8875 = vmatpush3.bf16.msra.mxu0 %v9190_v14 }
 0x411   : > { %8876 = vmatprep.subr.bf16.mxu0 %v9245_v3  ;;  %8909 = vmatpush3.bf16.msra.mxu1 %v9193_v33 }
 0x412   : > { %8910 = vmatprep.subr.bf16.mxu1 %v9245_v3 }
 0x414   : > { %8877 = vmatpush3.bf16.msra.mxu0 %v9192_v39 }
 0x415   : > { %8894 = vmatprep.subr.bf16.mxu0 %v9245_v3  ;;  %8911 = vmatpush3.bf16.msra.mxu1 %v9195_v55 }
 0x416   : > { %8912 = vmatprep.subr.bf16.mxu1 %v9245_v3 }
 0x417   : > { %8879 = vmatmul.mubr.msk.bf16.vlgmr.msra.gmra.mrb[24].mxu0 %vm5313_vm3, %v6911_v56 }
 0x418   : > { %8895 = vmatpush3.bf16.msra.mxu0 %v9194_v11  ;;  %8902 = vmatprep.mubr.msk.bf16.mxu0 %vm9246_vm0, %v9245_v3 }
 0x419   : > { %8896 = vmatprep.subr.bf16.mxu0 %v9245_v3  ;;  %8913 = vmatpush3.bf16.msra.mxu1 %v9197_v53 }
 0x41a   : > { %8930 = vmatprep.subr.bf16.mxu1 %v9245_v3 }
 0x41c   : > { %8897 = vmatpush3.bf16.msra.mxu0 %v9196_v5  ;;  %8915 = vmatmul.mubr.msk.bf16.vlgmr.msra.gmra.mrb[28].mxu1 %vm5313_vm3, %v7326_v61 }
 0x41d   : > { %8898 = vmatprep.subr.bf16.mxu0 %v9245_v3  ;;  %8931 = vmatpush3.bf16.msra.mxu1 %v9199_v36 }
 0x41e   : > { %8938 = vmatprep.mubr.msk.bf16.mxu1 %vm9246_vm0, %v9245_v3  ;;  %8932 = vmatprep.subr.bf16.mxu1 %v9245_v3 }
 0x420   : > { %8899 = vmatpush3.bf16.msra.mxu0 %v9198_v41 }
 0x421   : > { %8900 = vmatprep.subr.bf16.mxu0 %v9245_v3  ;;  %8933 = vmatpush3.bf16.msra.mxu1 %v9201_v27 }
 0x422   : > { %8934 = vmatprep.subr.bf16.mxu1 %v9245_v3 }
 0x424   : > { %8901 = vmatpush3.bf16.msra.mxu0 %v9200_v35 }
 0x425   : > { %8918 = vmatprep.subr.bf16.mxu0 %v9245_v3  ;;  %8935 = vmatpush3.bf16.msra.mxu1 %v9204_v12 }
 0x426   : > { %8936 = vmatprep.subr.bf16.mxu1 %v9245_v3 }
 0x427   : > { %8903 = vmatmul.mubr.msk.bf16.vlgmr.msra.gmra.mrb[28].mxu0 %vm5313_vm3, %v7168_v4 }
 0x428   : > { %8919 = vmatpush3.bf16.msra.mxu0 %v9203_v48  ;;  %8926 = vmatprep.mubr.msk.bf16.mxu0 %vm9246_vm0, %v9245_v3  ;;  %vm7726_vm0 = vcmask 24576  }
 0x429   : > { %8920 = vmatprep.subr.bf16.mxu0 %v9245_v3  ;;  %8937 = vmatpush3.bf16.msra.mxu1 %v9206_v50 }
 0x42c   : > { %8921 = vmatpush3.bf16.msra.mxu0 %v9205_v42  ;;  %8939 = vmatmul.mubr.msk.bf16.vlgmr.msra.gmra.mrb[32].mxu1 %vm5313_vm3, %v7612_v60 }
 0x42d   : > { %8922 = vmatprep.subr.bf16.mxu0 %v9245_v3 }
 0x430   : > { %8923 = vmatpush3.bf16.msra.mxu0 %v9207_v57 }
 0x431   : > { %8924 = vmatprep.subr.bf16.mxu0 %v9245_v3 }
 0x434   : > { %8925 = vmatpush3.bf16.msra.mxu0 %v9208_v0 }
 0x437   : > { %8927 = vmatmul.mubr.msk.bf16.vlgmr.msra.gmra.mrb[32].mxu0 %vm5313_vm3, %v7452_v54 }
 0x48e   : > { %v5767_v17 = vpop.f32.mrb[4].mxu1 }
 0x48f   : > { %v8772_v26 = vpop.f32.mrb[5].mxu1 }
 0x490   : > { %v5770_v18 = vpop.f32.mrb[6].mxu1 }
 0x491   : > { %v8773_v28 = vpop.f32.mrb[7].mxu1 }
 0x49a   : > { %v5683_v51 = vpop.f32.mrb[4].mxu0 }
 0x49b   : > { %v5768_v20 = vadd.f32 %v5767_v17, %v5683_v51  ;;  %v8760_v43 = vpop.f32.mrb[5].mxu0 }
 0x49c   : > { %v5686_v21 = vpop.f32.mrb[6].mxu0 }
 0x49d   : > { %v8761_v30 = vpop.f32.mrb[7].mxu0 }
 0x49f   : > { %v6052_v10 = vpop.f32.mrb[8].mxu1 }
 0x4a0   : > { %v8796_v40 = vpop.f32.mrb[9].mxu1 }
 0x4a1   : > { %v6055_v24 = vpop.f32.mrb[10].mxu1 }
 0x4a2   : > { %v8797_v3 = vpop.f32.mrb[11].mxu1 }
 0x4a3   : > { %v8363_v3 = vld [vmem:[#allocation4] ss:$0 sm:$0xff] }
 0x4aa   : > { %v5892_v9 = vpop.f32.mrb[8].mxu0 }
 0x4ab   : > { %v5898_v62 = vadd.f32 %v5892_v9, %v5768_v20  ;;  %v8784_v47 = vpop.f32.mrb[9].mxu0 }
 0x4ac   : > { %v5895_v37 = vpop.f32.mrb[10].mxu0 }
 0x4ad   : > { %v8785_v58 = vpop.f32.mrb[11].mxu0  ;;  %v6058_v14 = vadd.f32 %v6052_v10, %v5898_v62 }
 0x4af   : > { %v6306_v19 = vpop.f32.mrb[12].mxu1 }
 0x4b0   : > { %v8820_v22 = vpop.f32.mrb[13].mxu1 }
 0x4b1   : > { %v6309_v8 = vpop.f32.mrb[14].mxu1 }
 0x4b2   : > { %v8821_v49 = vpop.f32.mrb[15].mxu1 }
 0x4ba   : > { %v6148_v33 = vpop.f32.mrb[12].mxu0 }
 0x4bb   : > { %v6154_v39 = vadd.f32 %v6148_v33, %v6058_v14  ;;  %v8808_v1 = vpop.f32.mrb[13].mxu0 }
 0x4bc   : > { %v6151_v29 = vpop.f32.mrb[14].mxu0 }
 0x4bd   : > { %v8809_v31 = vpop.f32.mrb[15].mxu0  ;;  %v6312_v55 = vadd.f32 %v6306_v19, %v6154_v39 }
 0x4bf   : > { %v6592_v11 = vpop.f32.mrb[16].mxu1 }
 0x4c0   : > { %v8844_v32 = vpop.f32.mrb[17].mxu1 }
 0x4c1   : > { %v6595_v56 = vpop.f32.mrb[18].mxu1 }
 0x4c2   : > { %v8845_v34 = vpop.f32.mrb[19].mxu1 }
 0x4ca   : > { %v6432_v59 = vpop.f32.mrb[16].mxu0 }
 0x4cb   : > { %v6438_v53 = vadd.f32 %v6432_v59, %v6312_v55  ;;  %v8832_v5 = vpop.f32.mrb[17].mxu0 }
 0x4cc   : > { %v6435_v6 = vpop.f32.mrb[18].mxu0 }
 0x4cd   : > { %v8833_v7 = vpop.f32.mrb[19].mxu0  ;;  %v6598_v2 = vadd.f32 %v6592_v11, %v6438_v53 }
 0x4cf   : > { %v6847_v36 = vpop.f32.mrb[20].mxu1 }
 0x4d0   : > { %v8868_v41 = vpop.f32.mrb[21].mxu1 }
 0x4d1   : > { %v6850_v61 = vpop.f32.mrb[22].mxu1 }
 0x4d2   : > { %v8869_v44 = vpop.f32.mrb[23].mxu1 }
 0x4da   : > { %v6689_v45 = vpop.f32.mrb[20].mxu0 }
 0x4db   : > { %v6695_v52 = vadd.f32 %v6689_v45, %v6598_v2  ;;  %v8856_v27 = vpop.f32.mrb[21].mxu0 }
 0x4dc   : > { %v6692_v35 = vpop.f32.mrb[22].mxu0 }
 0x4dd   : > { %v8857_v46 = vpop.f32.mrb[23].mxu0  ;;  %v6853_v25 = vadd.f32 %v6847_v36, %v6695_v52 }
 0x4df   : > { %v7133_v12 = vpop.f32.mrb[24].mxu1 }
 0x4e0   : > { %v8892_v48 = vpop.f32.mrb[25].mxu1 }
 0x4e1   : > { %v7136_v38 = vpop.f32.mrb[26].mxu1 }
 0x4e2   : > { %v8893_v4 = vpop.f32.mrb[27].mxu1 }
 0x4ea   : > { %v6973_v13 = vpop.f32.mrb[24].mxu0 }
 0x4eb   : > { %v6979_v50 = vadd.f32 %v6973_v13, %v6853_v25  ;;  %v8880_v42 = vpop.f32.mrb[25].mxu0 }
 0x4ec   : > { %v6976_v63 = vpop.f32.mrb[26].mxu0 }
 0x4ed   : > { %v8881_v16 = vpop.f32.mrb[27].mxu0  ;;  %v7139_v57 = vadd.f32 %v7133_v12, %v6979_v50 }
 0x4ef   : > { %v7388_v60 = vpop.f32.mrb[28].mxu1 }
 0x4f0   : > { %v8916_v15 = vpop.f32.mrb[29].mxu1 }
 0x4f1   : > { %v7391_v0 = vpop.f32.mrb[30].mxu1 }
 0x4f2   : > { %v8917_v23 = vpop.f32.mrb[31].mxu1 }
 0x4fa   : > { %v7230_v54 = vpop.f32.mrb[28].mxu0 }
 0x4fb   : > { %v7236_v17 = vadd.f32 %v7230_v54, %v7139_v57  ;;  %v8904_v26 = vpop.f32.mrb[29].mxu0 }
 0x4fc   : > { %v7233_v18 = vpop.f32.mrb[30].mxu0 }
 0x4fd   : > { %v8905_v28 = vpop.f32.mrb[31].mxu0  ;;  %v7394_v51 = vadd.f32 %v7388_v60, %v7236_v17 }
 0x4ff   : > { %v7674_v20 = vpop.f32.mrb[32].mxu1 }
 0x500   : > { %v8940_v43 = vpop.f32.mrb[33].mxu1 }
 0x501   : > { %v7677_v21 = vpop.f32.mrb[34].mxu1 }
 0x502   : > { %v8941_v30 = vpop.f32.mrb[35].mxu1 }
 0x50a   : > { %v7514_v10 = vpop.f32.mrb[32].mxu0 }
 0x50b   : > { %v7520_v40 = vadd.f32 %v7514_v10, %v7394_v51  ;;  %v8928_v24 = vpop.f32.mrb[33].mxu0 }
 0x50c   : > { %v7517_v9 = vpop.f32.mrb[34].mxu0 }
 0x50d   : > { %v7680_v62 = vadd.f32 %v7674_v20, %v7520_v40  ;;  %v8929_v47 = vpop.f32.mrb[35].mxu0 }
 0x50f   : > { %v7688_v37 = vadd.f32 %v8363_v3, %v7680_v62 }
 0x511   : > { %v7689_v58 = vsub.f32 0.0, %v7688_v37 }
 0x513   : > { %v7690_v14 = vmul.f32 1.442695, %v7689_v58 }
 0x515   : > { %9213 = vpow2.f32 %v7690_v14 }
 0x51f   : > { %v9214_v19 = vpop.eup %9213 }
 0x520   : > { %v7692_v22 = vadd.f32 1.0, %v9214_v19 }
 0x522   : > { %9215 = vrcp.f32 %v7692_v22 }
 0x52c   : > { %v9216_v8 = vpop.eup %9215 }
 0x52d   : > { %7694 = vxpose.xlu0.b32.start.end [1/1] (short) (narrow) %v9216_v8, 8 }
 0x5ad   : > { %v7710_v49 = vpop.trf.xlu0 }
 0x5ae   : > { %7727 = vst.msk [vmem:[%s227_s11] sm:$0x1] %vm7726_vm0, %v7710_v49 }
 0x5af PF: > { %s17_s20 = sadd.s32 1, %s9243_s20  }
 0x5b0   : > { %p14_p5 = scmp.ge.s32.totalorder %s17_s20, 4  }
 0x5b2   :  { %16 = sbr.rel (!%p14_p5) target bundleno = 3 (0x3), region = 128 }

</bundles_post_ra>
